<compile_context>
chip_gen: v5e
topology: v5e:2x2
jax: 0.10.0
libtpu: 0.0.40
codegen_flags: <defaults>
</compile_context>

<pallas_src>
import jax
import jax.numpy as jnp
from jax.experimental import pallas as pl
from jax.experimental.pallas import tpu as pltpu


CONV_FILTERS = [[3, 32, 8, 4], [32, 64, 4, 2], [64, 128, 3, 2]]
CPAD = 128   # conv outputs are zero-padded to 128 channels -> lane-dense stores


def conv_outdim(i_dim, k, padding=0, stride=1, dilation=1):
    """Dimension after a convolution along one axis (matches the torch model)."""
    return 1 + (i_dim + 2 * padding - dilation * (k - 1) - 1) // stride


# ---------------------------------------------------------------------------
# Pallas kernels
# ---------------------------------------------------------------------------
def _elu(x):
    # ELU(alpha=1); clamp before exp so the dead branch cannot overflow to inf.
    return jnp.where(x > 0.0, x, jnp.exp(jnp.minimum(x, 0.0)) - 1.0)


def _gemm_bias_elu_kernel(a_ref, w_ref, b_ref, o_ref):
    # a: [M, K] bf16, w: [K, N] bf16, b: [1, N] f32  ->  ELU(a @ w + b)
    acc = jnp.dot(a_ref[...], w_ref[...], preferred_element_type=jnp.float32)
    o_ref[...] = _elu(acc + b_ref[...]).astype(o_ref.dtype)


def gemm_bias_elu(a, w, b, out_dtype):
    """Single-program fused GEMM + bias + ELU, all operands resident in VMEM."""
    M = a.shape[0]
    N = w.shape[1]
    return pl.pallas_call(
        _gemm_bias_elu_kernel,
        out_shape=jax.ShapeDtypeStruct((M, N), out_dtype),
        in_specs=[pl.BlockSpec(memory_space=pltpu.MemorySpace.VMEM)] * 3,
        out_specs=pl.BlockSpec(memory_space=pltpu.MemorySpace.VMEM),
    )(a, w, b)


def _conv3_fc_kernel(p3_ref, w3_ref, b3_ref, wfc_ref, bfc_ref, o_ref):
    # conv3 as GEMM + bias + ELU; the activation stays on-chip.
    a3 = jnp.dot(p3_ref[...], w3_ref[...], preferred_element_type=jnp.float32)
    a3 = _elu(a3 + b3_ref[...])                      # [npos*B, 128] f32

    batch = o_ref.shape[0]
    npos = wfc_ref.shape[0]                          # spatial positions (3*3)
    acc = jnp.zeros(o_ref.shape, jnp.float32)
    # Rows of a3 are ordered (spatial position major, batch minor), so each
    # spatial position is a contiguous [batch, 128] block; the torch NCHW
    # flatten permutation is already folded into wfc ([p, c, dout]).
    for p in range(npos):
        lhs = a3[p * batch:(p + 1) * batch, :].astype(jnp.bfloat16)
        acc = acc + jnp.dot(lhs, wfc_ref[p], preferred_element_type=jnp.float32)
    o_ref[...] = _elu(acc + bfc_ref[...])


def conv3_fc_fused(p3, w3, b3, wfc, bfc, batch):
    dout = wfc.shape[-1]
    return pl.pallas_call(
        _conv3_fc_kernel,
        out_shape=jax.ShapeDtypeStruct((batch, dout), jnp.float32),
        in_specs=[pl.BlockSpec(memory_space=pltpu.MemorySpace.VMEM)] * 5,
        out_specs=pl.BlockSpec(memory_space=pltpu.MemorySpace.VMEM),
    )(p3, w3, b3, wfc, bfc)


# ---------------------------------------------------------------------------
# im2col (trace-time XLA glue on tiny tensors); patch order is (kh, kw, Cin)
# ---------------------------------------------------------------------------
def _im2col(x, k, s):
    """x: [B,H,W,C] -> ([B,OH,OW,k*k,C], OH, OW); patch index = kh*k + kw."""
    B, H, W, C = x.shape
    OH = conv_outdim(H, k, stride=s)
    OW = conv_outdim(W, k, stride=s)
    cols = [x[:, i:i + s * (OH - 1) + 1:s, j:j + s * (OW - 1) + 1:s, :]
            for i in range(k) for j in range(k)]
    return jnp.stack(cols, axis=3), OH, OW


# ---------------------------------------------------------------------------
# Parameter construction: all layout transforms precomputed here.
# ---------------------------------------------------------------------------
def init_params(key, dout=512, h=72, w=72):
    params = {}
    hh, ww = h, w
    stored_cin = CONV_FILTERS[0][0]          # conv1 consumes the raw 3-ch image
    for li, (cin, cout, k, s) in enumerate(CONV_FILTERS):
        key, k1, k2 = jax.random.split(key, 3)
        fan_in = cin * k * k
        w_t = jax.random.normal(k1, (cout, cin, k, k), jnp.float32) * (2.0 / fan_in) ** 0.5
        b_t = jax.random.normal(k2, (cout,), jnp.float32) * 0.01
        if li == 0:
            w_t = w_t / 255.0                # fold the model's input/255 into conv1
        # torch [Cout,Cin,kh,kw] -> [kh,kw,Cin_stored,Cout_padded] -> 2-D weight
        w2d = jnp.zeros((k, k, stored_cin, CPAD), jnp.float32)
        w2d = w2d.at[:, :, :cin, :cout].set(jnp.transpose(w_t, (2, 3, 1, 0)))
        params[f"w{li + 1}"] = w2d.reshape(k * k * stored_cin, CPAD).astype(jnp.bfloat16)
        params[f"b{li + 1}"] = jnp.zeros((1, CPAD), jnp.float32).at[0, :cout].set(b_t)
        hh = conv_outdim(hh, k, stride=s)
        ww = conv_outdim(ww, k, stride=s)
        stored_cin = CPAD
    c_last = CONV_FILTERS[-1][1]             # 128 (== CPAD, no padding needed)
    npos = hh * ww                           # 3*3 = 9
    out_size = npos * c_last                 # 1152, == torch's self.out_size
    key, k1, k2 = jax.random.split(key, 3)
    wfc_t = jax.random.normal(k1, (dout, out_size), jnp.float32) * (2.0 / out_size) ** 0.5
    bfc_t = jax.random.normal(k2, (dout,), jnp.float32) * 0.01
    # torch flattens NCHW: input index = c*npos + p.  Re-order to [p, c, dout].
    wfc = jnp.transpose(wfc_t.reshape(dout, c_last, npos), (2, 1, 0))
    params["wfc"] = wfc.astype(jnp.bfloat16)
    params["bfc"] = bfc_t.reshape(1, dout)
    return params


# ---------------------------------------------------------------------------
# Forward pass (matches ScreenEncoder.forward semantics)
# ---------------------------------------------------------------------------
@jax.jit
def screen_encoder_forward(params, screen_image):
    # screen_image: [B, 3, H, W] (NCHW, like PyTorch). /255 is folded into w1.
    B = screen_image.shape[0]
    x = jnp.transpose(screen_image.astype(jnp.float32), (0, 2, 3, 1))   # NHWC

    # conv1 + ELU
    k, s = CONV_FILTERS[0][2], CONV_FILTERS[0][3]
    p1, OH, OW = _im2col(x, k, s)
    p1 = p1.reshape(B * OH * OW, k * k * x.shape[-1]).astype(jnp.bfloat16)
    a = gemm_bias_elu(p1, params["w1"], params["b1"], jnp.bfloat16)
    a = a.reshape(B, OH, OW, CPAD)

    # conv2 + ELU
    k, s = CONV_FILTERS[1][2], CONV_FILTERS[1][3]
    p2, OH, OW = _im2col(a, k, s)
    p2 = p2.reshape(B * OH * OW, k * k * CPAD)
    a = gemm_bias_elu(p2, params["w2"], params["b2"], jnp.bfloat16)
    a = a.reshape(B, OH, OW, CPAD)

    # conv3 + ELU + flatten + Linear + ELU, fused into one kernel.
    k, s = CONV_FILTERS[2][2], CONV_FILTERS[2][3]
    p3, OH, OW = _im2col(a, k, s)                         # [B, 3, 3, 9, 128]
    # rows ordered (spatial position major, batch minor) so the fused FC reads
    # contiguous row blocks per position.
    p3 = jnp.transpose(p3, (1, 2, 0, 3, 4)).reshape(OH * OW * B, k * k * CPAD)
    return conv3_fc_fused(p3, params["w3"], params["b3"],
                          params["wfc"], params["bfc"], B)   # [B, dout] f32


if __name__ == "__main__":
    key = jax.random.PRNGKey(0)
    k_param, k_img = jax.random.split(key)

    B, H, W, DOUT = 2, 72, 72, 512
    params = init_params(k_param, dout=DOUT, h=H, w=W)

    # synthetic "screen image": values in [0, 255), NCHW like PyTorch
    screen_image = jax.random.uniform(
        k_img, (B, 3, H, W), jnp.float32, 0.0, 255.0)

    out = jax.block_until_ready(screen_encoder_forward(params, screen_image))
    assert out.shape == (B, DOUT), out.shape
    assert bool(jnp.all(jnp.isfinite(out)))
    print("KERNEL_OK")
</pallas_src>

<mosaic_0001>
module attributes {stable_mosaic.version = 11 : i64} {
  func.func @_gemm_bias_elu_kernel(%arg0: memref<578x192xbf16, #tpu.memory_space<vmem>>, %arg1: memref<192x128xbf16, #tpu.memory_space<vmem>>, %arg2: memref<1x128xf32, #tpu.memory_space<vmem>>, %arg3: memref<578x128xbf16, #tpu.memory_space<vmem>>) attributes {dimension_semantics = [], scalar_prefetch = 0 : i64, scratch_operands = 0 : i64, tpu.core_type = #tpu.core_type<tc>} {
    %c0 = arith.constant 0 : index
    %c0_0 = arith.constant 0 : index
    %0 = vector.load %arg0[%c0, %c0_0] : memref<578x192xbf16, #tpu.memory_space<vmem>>, vector<578x192xbf16>
    %c0_1 = arith.constant 0 : index
    %c0_2 = arith.constant 0 : index
    %1 = vector.load %arg1[%c0_1, %c0_2] : memref<192x128xbf16, #tpu.memory_space<vmem>>, vector<192x128xbf16>
    %cst = arith.constant dense<0.000000e+00> : vector<578x128xf32>
    %2 = tpu.matmul %0, %1, %cst {dimension_numbers = #tpu.dot_dimension_numbers<[1], [0], [0], [1], [0, 0, 1, 1], [], []>} : vector<578x192xbf16>, vector<192x128xbf16>, vector<578x128xf32> -> vector<578x128xf32>
    %c0_3 = arith.constant 0 : index
    %c0_4 = arith.constant 0 : index
    %3 = vector.load %arg2[%c0_3, %c0_4] : memref<1x128xf32, #tpu.memory_space<vmem>>, vector<1x128xf32>
    %4 = vector.broadcast %3 : vector<1x128xf32> to vector<578x128xf32>
    %5 = arith.addf %2, %4 : vector<578x128xf32>
    %cst_5 = arith.constant 0.000000e+00 : f32
    %6 = vector.broadcast %cst_5 : f32 to vector<578x128xf32>
    %7 = arith.cmpf ogt, %5, %6 : vector<578x128xf32>
    %cst_6 = arith.constant 0.000000e+00 : f32
    %8 = vector.broadcast %cst_6 : f32 to vector<578x128xf32>
    %9 = arith.minimumf %5, %8 : vector<578x128xf32>
    %10 = math.exp %9 : vector<578x128xf32>
    %cst_7 = arith.constant 1.000000e+00 : f32
    %11 = vector.broadcast %cst_7 : f32 to vector<578x128xf32>
    %12 = arith.subf %10, %11 : vector<578x128xf32>
    %13 = arith.select %7, %5, %12 : vector<578x128xi1>, vector<578x128xf32>
    %14 = arith.truncf %13 : vector<578x128xf32> to vector<578x128xbf16>
    %c0_8 = arith.constant 0 : index
    %c0_9 = arith.constant 0 : index
    %15 = vector.load %arg3[%c0_8, %c0_9] : memref<578x128xbf16, #tpu.memory_space<vmem>>, vector<578x128xbf16>
    tpu.vector_store %arg3[%c0_8, %c0_9], %14 {strides = array<i32>} : memref<578x128xbf16, #tpu.memory_space<vmem>>, vector<578x128xbf16>,
    return
  }
}

module attributes {stable_mosaic.version = 11 : i64} {
  func.func @_gemm_bias_elu_kernel(%arg0: memref<98x2048xbf16, #tpu.memory_space<vmem>>, %arg1: memref<2048x128xbf16, #tpu.memory_space<vmem>>, %arg2: memref<1x128xf32, #tpu.memory_space<vmem>>, %arg3: memref<98x128xbf16, #tpu.memory_space<vmem>>) attributes {dimension_semantics = [], scalar_prefetch = 0 : i64, scratch_operands = 0 : i64, tpu.core_type = #tpu.core_type<tc>} {
    %c0 = arith.constant 0 : index
    %c0_0 = arith.constant 0 : index
    %0 = vector.load %arg0[%c0, %c0_0] : memref<98x2048xbf16, #tpu.memory_space<vmem>>, vector<98x2048xbf16>
    %c0_1 = arith.constant 0 : index
    %c0_2 = arith.constant 0 : index
    %1 = vector.load %arg1[%c0_1, %c0_2] : memref<2048x128xbf16, #tpu.memory_space<vmem>>, vector<2048x128xbf16>
    %cst = arith.constant dense<0.000000e+00> : vector<98x128xf32>
    %2 = tpu.matmul %0, %1, %cst {dimension_numbers = #tpu.dot_dimension_numbers<[1], [0], [0], [1], [0, 0, 1, 1], [], []>} : vector<98x2048xbf16>, vector<2048x128xbf16>, vector<98x128xf32> -> vector<98x128xf32>
    %c0_3 = arith.constant 0 : index
    %c0_4 = arith.constant 0 : index
    %3 = vector.load %arg2[%c0_3, %c0_4] : memref<1x128xf32, #tpu.memory_space<vmem>>, vector<1x128xf32>
    %4 = vector.broadcast %3 : vector<1x128xf32> to vector<98x128xf32>
    %5 = arith.addf %2, %4 : vector<98x128xf32>
    %cst_5 = arith.constant 0.000000e+00 : f32
    %6 = vector.broadcast %cst_5 : f32 to vector<98x128xf32>
    %7 = arith.cmpf ogt, %5, %6 : vector<98x128xf32>
    %cst_6 = arith.constant 0.000000e+00 : f32
    %8 = vector.broadcast %cst_6 : f32 to vector<98x128xf32>
    %9 = arith.minimumf %5, %8 : vector<98x128xf32>
    %10 = math.exp %9 : vector<98x128xf32>
    %cst_7 = arith.constant 1.000000e+00 : f32
    %11 = vector.broadcast %cst_7 : f32 to vector<98x128xf32>
    %12 = arith.subf %10, %11 : vector<98x128xf32>
    %13 = arith.select %7, %5, %12 : vector<98x128xi1>, vector<98x128xf32>
    %14 = arith.truncf %13 : vector<98x128xf32> to vector<98x128xbf16>
    %c0_8 = arith.constant 0 : index
    %c0_9 = arith.constant 0 : index
    %15 = vector.load %arg3[%c0_8, %c0_9] : memref<98x128xbf16, #tpu.memory_space<vmem>>, vector<98x128xbf16>
    tpu.vector_store %arg3[%c0_8, %c0_9], %14 {strides = array<i32>} : memref<98x128xbf16, #tpu.memory_space<vmem>>, vector<98x128xbf16>,
    return
  }
}

module attributes {stable_mosaic.version = 11 : i64} {
  func.func @_conv3_fc_kernel(%arg0: memref<18x1152xbf16, #tpu.memory_space<vmem>>, %arg1: memref<1152x128xbf16, #tpu.memory_space<vmem>>, %arg2: memref<1x128xf32, #tpu.memory_space<vmem>>, %arg3: memref<9x128x512xbf16, #tpu.memory_space<vmem>>, %arg4: memref<1x512xf32, #tpu.memory_space<vmem>>, %arg5: memref<2x512xf32, #tpu.memory_space<vmem>>) attributes {dimension_semantics = [], scalar_prefetch = 0 : i64, scratch_operands = 0 : i64, tpu.core_type = #tpu.core_type<tc>} {
    %c0 = arith.constant 0 : index
    %c0_0 = arith.constant 0 : index
    %0 = vector.load %arg0[%c0, %c0_0] : memref<18x1152xbf16, #tpu.memory_space<vmem>>, vector<18x1152xbf16>
    %c0_1 = arith.constant 0 : index
    %c0_2 = arith.constant 0 : index
    %1 = vector.load %arg1[%c0_1, %c0_2] : memref<1152x128xbf16, #tpu.memory_space<vmem>>, vector<1152x128xbf16>
    %cst = arith.constant dense<0.000000e+00> : vector<18x128xf32>
    %2 = tpu.matmul %0, %1, %cst {dimension_numbers = #tpu.dot_dimension_numbers<[1], [0], [0], [1], [0, 0, 1, 1], [], []>} : vector<18x1152xbf16>, vector<1152x128xbf16>, vector<18x128xf32> -> vector<18x128xf32>
    %c0_3 = arith.constant 0 : index
    %c0_4 = arith.constant 0 : index
    %3 = vector.load %arg2[%c0_3, %c0_4] : memref<1x128xf32, #tpu.memory_space<vmem>>, vector<1x128xf32>
    %4 = vector.broadcast %3 : vector<1x128xf32> to vector<18x128xf32>
    %5 = arith.addf %2, %4 : vector<18x128xf32>
    %cst_5 = arith.constant 0.000000e+00 : f32
    %6 = vector.broadcast %cst_5 : f32 to vector<18x128xf32>
    %7 = arith.cmpf ogt, %5, %6 : vector<18x128xf32>
    %cst_6 = arith.constant 0.000000e+00 : f32
    %8 = vector.broadcast %cst_6 : f32 to vector<18x128xf32>
    %9 = arith.minimumf %5, %8 : vector<18x128xf32>
    %10 = math.exp %9 : vector<18x128xf32>
    %cst_7 = arith.constant 1.000000e+00 : f32
    %11 = vector.broadcast %cst_7 : f32 to vector<18x128xf32>
    %12 = arith.subf %10, %11 : vector<18x128xf32>
    %13 = arith.select %7, %5, %12 : vector<18x128xi1>, vector<18x128xf32>
    %cst_8 = arith.constant 0.000000e+00 : f32
    %14 = vector.broadcast %cst_8 : f32 to vector<2x512xf32>
    %15 = vector.extract_strided_slice %13 {offsets = [0, 0], sizes = [2, 128], strides = [1, 1]} : vector<18x128xf32> to vector<2x128xf32>
    %16 = arith.truncf %15 : vector<2x128xf32> to vector<2x128xbf16>
    %c0_9 = arith.constant 0 : index
    %c0_10 = arith.constant 0 : index
    %c0_11 = arith.constant 0 : index
    %17 = vector.load %arg3[%c0_9, %c0_10, %c0_11] : memref<9x128x512xbf16, #tpu.memory_space<vmem>>, vector<1x128x512xbf16>
    %18 = vector.shape_cast %17 : vector<1x128x512xbf16> to vector<128x512xbf16>
    %cst_12 = arith.constant dense<0.000000e+00> : vector<2x512xf32>
    %19 = tpu.matmul %16, %18, %cst_12 {dimension_numbers = #tpu.dot_dimension_numbers<[1], [0], [0], [1], [0, 0, 1, 1], [], []>} : vector<2x128xbf16>, vector<128x512xbf16>, vector<2x512xf32> -> vector<2x512xf32>
    %20 = arith.addf %14, %19 : vector<2x512xf32>
    %21 = vector.extract_strided_slice %13 {offsets = [2, 0], sizes = [2, 128], strides = [1, 1]} : vector<18x128xf32> to vector<2x128xf32>
    %22 = arith.truncf %21 : vector<2x128xf32> to vector<2x128xbf16>
    %c1 = arith.constant 1 : index
    %c0_13 = arith.constant 0 : index
    %c0_14 = arith.constant 0 : index
    %23 = vector.load %arg3[%c1, %c0_13, %c0_14] : memref<9x128x512xbf16, #tpu.memory_space<vmem>>, vector<1x128x512xbf16>
    %24 = vector.shape_cast %23 : vector<1x128x512xbf16> to vector<128x512xbf16>
    %cst_15 = arith.constant dense<0.000000e+00> : vector<2x512xf32>
    %25 = tpu.matmul %22, %24, %cst_15 {dimension_numbers = #tpu.dot_dimension_numbers<[1], [0], [0], [1], [0, 0, 1, 1], [], []>} : vector<2x128xbf16>, vector<128x512xbf16>, vector<2x512xf32> -> vector<2x512xf32>
    %26 = arith.addf %20, %25 : vector<2x512xf32>
    %27 = vector.extract_strided_slice %13 {offsets = [4, 0], sizes = [2, 128], strides = [1, 1]} : vector<18x128xf32> to vector<2x128xf32>
    %28 = arith.truncf %27 : vector<2x128xf32> to vector<2x128xbf16>
    %c2 = arith.constant 2 : index
    %c0_16 = arith.constant 0 : index
    %c0_17 = arith.constant 0 : index
    %29 = vector.load %arg3[%c2, %c0_16, %c0_17] : memref<9x128x512xbf16, #tpu.memory_space<vmem>>, vector<1x128x512xbf16>
    %30 = vector.shape_cast %29 : vector<1x128x512xbf16> to vector<128x512xbf16>
    %cst_18 = arith.constant dense<0.000000e+00> : vector<2x512xf32>
    %31 = tpu.matmul %28, %30, %cst_18 {dimension_numbers = #tpu.dot_dimension_numbers<[1], [0], [0], [1], [0, 0, 1, 1], [], []>} : vector<2x128xbf16>, vector<128x512xbf16>, vector<2x512xf32> -> vector<2x512xf32>
    %32 = arith.addf %26, %31 : vector<2x512xf32>
    %33 = vector.extract_strided_slice %13 {offsets = [6, 0], sizes = [2, 128], strides = [1, 1]} : vector<18x128xf32> to vector<2x128xf32>
    %34 = arith.truncf %33 : vector<2x128xf32> to vector<2x128xbf16>
    %c3 = arith.constant 3 : index
    %c0_19 = arith.constant 0 : index
    %c0_20 = arith.constant 0 : index
    %35 = vector.load %arg3[%c3, %c0_19, %c0_20] : memref<9x128x512xbf16, #tpu.memory_space<vmem>>, vector<1x128x512xbf16>
    %36 = vector.shape_cast %35 : vector<1x128x512xbf16> to vector<128x512xbf16>
    %cst_21 = arith.constant dense<0.000000e+00> : vector<2x512xf32>
    %37 = tpu.matmul %34, %36, %cst_21 {dimension_numbers = #tpu.dot_dimension_numbers<[1], [0], [0], [1], [0, 0, 1, 1], [], []>} : vector<2x128xbf16>, vector<128x512xbf16>, vector<2x512xf32> -> vector<2x512xf32>
    %38 = arith.addf %32, %37 : vector<2x512xf32>
    %39 = vector.extract_strided_slice %13 {offsets = [8, 0], sizes = [2, 128], strides = [1, 1]} : vector<18x128xf32> to vector<2x128xf32>
    %40 = arith.truncf %39 : vector<2x128xf32> to vector<2x128xbf16>
    %c4 = arith.constant 4 : index
    %c0_22 = arith.constant 0 : index
    %c0_23 = arith.constant 0 : index
    %41 = vector.load %arg3[%c4, %c0_22, %c0_23] : memref<9x128x512xbf16, #tpu.memory_space<vmem>>, vector<1x128x512xbf16>
    %42 = vector.shape_cast %41 : vector<1x128x512xbf16> to vector<128x512xbf16>
    %cst_24 = arith.constant dense<0.000000e+00> : vector<2x512xf32>
    %43 = tpu.matmul %40, %42, %cst_24 {dimension_numbers = #tpu.dot_dimension_numbers<[1], [0], [0], [1], [0, 0, 1, 1], [], []>} : vector<2x128xbf16>, vector<128x512xbf16>, vector<2x512xf32> -> vector<2x512xf32>
    %44 = arith.addf %38, %43 : vector<2x512xf32>
    %45 = vector.extract_strided_slice %13 {offsets = [10, 0], sizes = [2, 128], strides = [1, 1]} : vector<18x128xf32> to vector<2x128xf32>
    %46 = arith.truncf %45 : vector<2x128xf32> to vector<2x128xbf16>
    %c5 = arith.constant 5 : index
    %c0_25 = arith.constant 0 : index
    %c0_26 = arith.constant 0 : index
    %47 = vector.load %arg3[%c5, %c0_25, %c0_26] : memref<9x128x512xbf16, #tpu.memory_space<vmem>>, vector<1x128x512xbf16>
    %48 = vector.shape_cast %47 : vector<1x128x512xbf16> to vector<128x512xbf16>
    %cst_27 = arith.constant dense<0.000000e+00> : vector<2x512xf32>
    %49 = tpu.matmul %46, %48, %cst_27 {dimension_numbers = #tpu.dot_dimension_numbers<[1], [0], [0], [1], [0, 0, 1, 1], [], []>} : vector<2x128xbf16>, vector<128x512xbf16>, vector<2x512xf32> -> vector<2x512xf32>
    %50 = arith.addf %44, %49 : vector<2x512xf32>
    %51 = vector.extract_strided_slice %13 {offsets = [12, 0], sizes = [2, 128], strides = [1, 1]} : vector<18x128xf32> to vector<2x128xf32>
    %52 = arith.truncf %51 : vector<2x128xf32> to vector<2x128xbf16>
    %c6 = arith.constant 6 : index
    %c0_28 = arith.constant 0 : index
    %c0_29 = arith.constant 0 : index
    %53 = vector.load %arg3[%c6, %c0_28, %c0_29] : memref<9x128x512xbf16, #tpu.memory_space<vmem>>, vector<1x128x512xbf16>
    %54 = vector.shape_cast %53 : vector<1x128x512xbf16> to vector<128x512xbf16>
    %cst_30 = arith.constant dense<0.000000e+00> : vector<2x512xf32>
    %55 = tpu.matmul %52, %54, %cst_30 {dimension_numbers = #tpu.dot_dimension_numbers<[1], [0], [0], [1], [0, 0, 1, 1], [], []>} : vector<2x128xbf16>, vector<128x512xbf16>, vector<2x512xf32> -> vector<2x512xf32>
    %56 = arith.addf %50, %55 : vector<2x512xf32>
    %57 = vector.extract_strided_slice %13 {offsets = [14, 0], sizes = [2, 128], strides = [1, 1]} : vector<18x128xf32> to vector<2x128xf32>
    %58 = arith.truncf %57 : vector<2x128xf32> to vector<2x128xbf16>
    %c7 = arith.constant 7 : index
    %c0_31 = arith.constant 0 : index
    %c0_32 = arith.constant 0 : index
    %59 = vector.load %arg3[%c7, %c0_31, %c0_32] : memref<9x128x512xbf16, #tpu.memory_space<vmem>>, vector<1x128x512xbf16>
    %60 = vector.shape_cast %59 : vector<1x128x512xbf16> to vector<128x512xbf16>
    %cst_33 = arith.constant dense<0.000000e+00> : vector<2x512xf32>
    %61 = tpu.matmul %58, %60, %cst_33 {dimension_numbers = #tpu.dot_dimension_numbers<[1], [0], [0], [1], [0, 0, 1, 1], [], []>} : vector<2x128xbf16>, vector<128x512xbf16>, vector<2x512xf32> -> vector<2x512xf32>
    %62 = arith.addf %56, %61 : vector<2x512xf32>
    %63 = vector.extract_strided_slice %13 {offsets = [16, 0], sizes = [2, 128], strides = [1, 1]} : vector<18x128xf32> to vector<2x128xf32>
    %64 = arith.truncf %63 : vector<2x128xf32> to vector<2x128xbf16>
    %c8 = arith.constant 8 : index
    %c0_34 = arith.constant 0 : index
    %c0_35 = arith.constant 0 : index
    %65 = vector.load %arg3[%c8, %c0_34, %c0_35] : memref<9x128x512xbf16, #tpu.memory_space<vmem>>, vector<1x128x512xbf16>
    %66 = vector.shape_cast %65 : vector<1x128x512xbf16> to vector<128x512xbf16>
    %cst_36 = arith.constant dense<0.000000e+00> : vector<2x512xf32>
    %67 = tpu.matmul %64, %66, %cst_36 {dimension_numbers = #tpu.dot_dimension_numbers<[1], [0], [0], [1], [0, 0, 1, 1], [], []>} : vector<2x128xbf16>, vector<128x512xbf16>, vector<2x512xf32> -> vector<2x512xf32>
    %68 = arith.addf %62, %67 : vector<2x512xf32>
    %c0_37 = arith.constant 0 : index
    %c0_38 = arith.constant 0 : index
    %69 = vector.load %arg4[%c0_37, %c0_38] : memref<1x512xf32, #tpu.memory_space<vmem>>, vector<1x512xf32>
    %70 = vector.broadcast %69 : vector<1x512xf32> to vector<2x512xf32>
    %71 = arith.addf %68, %70 : vector<2x512xf32>
    %cst_39 = arith.constant 0.000000e+00 : f32
    %72 = vector.broadcast %cst_39 : f32 to vector<2x512xf32>
    %73 = arith.cmpf ogt, %71, %72 : vector<2x512xf32>
    %cst_40 = arith.constant 0.000000e+00 : f32
    %74 = vector.broadcast %cst_40 : f32 to vector<2x512xf32>
    %75 = arith.minimumf %71, %74 : vector<2x512xf32>
    %76 = math.exp %75 : vector<2x512xf32>
    %cst_41 = arith.constant 1.000000e+00 : f32
    %77 = vector.broadcast %cst_41 : f32 to vector<2x512xf32>
    %78 = arith.subf %76, %77 : vector<2x512xf32>
    %79 = arith.select %73, %71, %78 : vector<2x512xi1>, vector<2x512xf32>
    %c0_42 = arith.constant 0 : index
    %c0_43 = arith.constant 0 : index
    %80 = vector.load %arg5[%c0_42, %c0_43] : memref<2x512xf32, #tpu.memory_space<vmem>>, vector<2x512xf32>
    tpu.vector_store %arg5[%c0_42, %c0_43], %79 {strides = array<i32>} : memref<2x512xf32, #tpu.memory_space<vmem>>, vector<2x512xf32>,
    return
  }
}

</mosaic_0001>

<bundles_post_ra>
// kernel: screen_encoder_forward.3
= control target key start
LH: loop header
LB: loop body
LE: loop exit
PB: predicated region body
PF: predicated region fallthrough
CT: control target
= control target key end

     0   :  { %vm518_vm0 = vcmask 523264   ;;  %s3563_s1 = inlined_call_operand.vmem [shape: bf16[192,128], index: 1, kind: input, shape index: {}]   ;;  %s3564_s0 = inlined_call_operand.vmem [shape: bf16[578,192], index: 0, kind: input, shape index: {}]   ;;  %s3565_s2 = inlined_call_operand.vmem [shape: f32[1,128], index: 2, kind: input, shape index: {}]   ;;  %s3566_s3 = inlined_call_operand.vmem [shape: bf16[578,128], index: 3, kind: output, shape index: {}]  }
   0x1   :  { %v2129_v0 = vld [vmem:[%s3563_s1 + $0x38] sm:$0xff]  ;;  %v2128_v2 = vld [vmem:[%s3563_s1 + $0x30] sm:$0xff]  ;;  %v2127_v4 = vld [vmem:[%s3563_s1 + $0x28] sm:$0xff] }
   0x2   :  { %v2133_v1 = vld [vmem:[%s3563_s1 + $0x58] sm:$0xff]  ;;  %630 = vmatpush.bf16.msra.mxu0 %v2129_v0  ;;  %2349 = vmatpush.bf16.msra.mxu2 %v2129_v0  ;;  %v2132_v3 = vld [vmem:[%s3563_s1 + $0x50] sm:$0xff]  ;;  %v2131_v5 = vld [vmem:[%s3563_s1 + $0x48] sm:$0xff] }
   0x3   :  { %827 = vmatpush.bf16.msra.mxu1 %v2133_v1  ;;  %2357 = vmatpush.bf16.msra.mxu3 %v2133_v1  ;;  %v2126_v6 = vld [vmem:[%s3563_s1 + $0x20] sm:$0xff]  ;;  %v1608_v9 = vld [vmem:[%s3564_s0 + $0x8] sm:$0xf0]  ;;  %v2088_v10 = vld [vmem:[%s3564_s0 + $0x134] sm:$0xf] }
   0x4   :  { %v2130_v7 = vld [vmem:[%s3563_s1 + $0x40] sm:$0xff]  ;;  %v1760_v11 = vld [vmem:[%s3564_s0 + $0x138] sm:$0xf0]  ;;  %v2124_v15 = vld [vmem:[%s3563_s1 + $0x10] sm:$0xff] }
   0x5   :  { %v2050_v8 = vld [vmem:[%s3564_s0 + $0x4] sm:$0xf]  ;;  %v2125_v13 = vld [vmem:[%s3563_s1 + $0x18] sm:$0xff]  ;;  %v1763_v14 = vor.u32 %v2088_v10, %v1760_v11  ;;  %v2123_v16 = vld [vmem:[%s3563_s1 + $0x8] sm:$0xff] }
   0x6   :  { %631 = vmatpush.bf16.msra.mxu0 %v2128_v2  ;;  %2350 = vmatpush.bf16.msra.mxu2 %v2128_v2  ;;  %v1611_v12 = vor.u32 %v2050_v8, %v1608_v9  ;;  %v2122_v17 = vld [vmem:[%s3563_s1] sm:$0xff]  ;;  %v2051_v19 = vld [vmem:[%s3564_s0 + $0x4] sm:$0xf0]  ;;  %v2052_v22 = vld [vmem:[%s3564_s0 + $0x14] sm:$0xf] }
   0x7   :  { %828 = vmatpush.bf16.msra.mxu1 %v2132_v3  ;;  %2358 = vmatpush.bf16.msra.mxu3 %v2132_v3  ;;  %v1606_v18 = vld [vmem:[%s3564_s0] sm:$0xf]  ;;  %v2087_v21 = vld [vmem:[%s3564_s0 + $0x124] sm:$0xf0]  ;;  %v1616_v23 = vld [vmem:[%s3564_s0 + $0x18] sm:$0xf0] }
   0x8   :  { %v1750_v20 = vld [vmem:[%s3564_s0 + $0x120] sm:$0xf]  ;;  %v2090_v24 = vld [vmem:[%s3564_s0 + $0x144] sm:$0xf]  ;;  %v1768_v25 = vld [vmem:[%s3564_s0 + $0x148] sm:$0xf0]  ;;  %v1607_v26 = vor.u32 %v2051_v19, %v1606_v18  ;;  %v1619_v28 = vor.u32 %v2052_v22, %v1616_v23 }
   0x9   :  { %v1751_v27 = vor.u32 %v2087_v21, %v1750_v20  ;;  %v1771_v29 = vor.u32 %v2090_v24, %v1768_v25  ;;  %v1614_v30 = vld [vmem:[%s3564_s0 + $0x10] sm:$0xf]  ;;  %v2053_v31 = vld [vmem:[%s3564_s0 + $0x14] sm:$0xf0]  ;;  %v2054_v34 = vld [vmem:[%s3564_s0 + $0x24] sm:$0xf] }
   0xa   :  { %632 = vmatpush.bf16.msra.mxu0 %v2127_v4  ;;  %2351 = vmatpush.bf16.msra.mxu2 %v2127_v4  ;;  %v1758_v32 = vld [vmem:[%s3564_s0 + $0x130] sm:$0xf]  ;;  %v2089_v33 = vld [vmem:[%s3564_s0 + $0x134] sm:$0xf0]  ;;  %v1624_v35 = vld [vmem:[%s3564_s0 + $0x28] sm:$0xf0]  ;;  %v1615_v38 = vor.u32 %v2053_v31, %v1614_v30 }
   0xb   :  { %829 = vmatpush.bf16.msra.mxu1 %v2131_v5  ;;  %2359 = vmatpush.bf16.msra.mxu3 %v2131_v5  ;;  %v2092_v36 = vld [vmem:[%s3564_s0 + $0x154] sm:$0xf]  ;;  %v1776_v37 = vld [vmem:[%s3564_s0 + $0x158] sm:$0xf0]  ;;  %v1759_v39 = vor.u32 %v2089_v33, %v1758_v32  ;;  %v1627_v40 = vor.u32 %v2054_v34, %v1624_v35  ;;  %v1622_v42 = vld [vmem:[%s3564_s0 + $0x20] sm:$0xf] }
   0xc   :  { %v1779_v41 = vor.u32 %v2092_v36, %v1776_v37  ;;  %v2055_v43 = vld [vmem:[%s3564_s0 + $0x24] sm:$0xf0]  ;;  %v1766_v44 = vld [vmem:[%s3564_s0 + $0x140] sm:$0xf]  ;;  %v2056_v46 = vld [vmem:[%s3564_s0 + $0x34] sm:$0xf] }
   0xd   :  { %v2091_v45 = vld [vmem:[%s3564_s0 + $0x144] sm:$0xf0]  ;;  %v1632_v47 = vld [vmem:[%s3564_s0 + $0x38] sm:$0xf0]  ;;  %v2094_v48 = vld [vmem:[%s3564_s0 + $0x164] sm:$0xf]  ;;  %v1623_v50 = vor.u32 %v2055_v43, %v1622_v42 }
   0xe   :  { %633 = vmatpush.bf16.msra.mxu0 %v2126_v6  ;;  %2352 = vmatpush.bf16.msra.mxu2 %v2126_v6  ;;  %v1784_v49 = vld [vmem:[%s3564_s0 + $0x168] sm:$0xf0]  ;;  %v1767_v51 = vor.u32 %v2091_v45, %v1766_v44  ;;  %v1635_v52 = vor.u32 %v2056_v46, %v1632_v47  ;;  %v1630_v54 = vld [vmem:[%s3564_s0 + $0x30] sm:$0xf]  ;;  %v2057_v55 = vld [vmem:[%s3564_s0 + $0x34] sm:$0xf0] }
   0xf   :  { %830 = vmatpush.bf16.msra.mxu1 %v2130_v7  ;;  %2360 = vmatpush.bf16.msra.mxu3 %v2130_v7  ;;  %v1787_v53 = vor.u32 %v2094_v48, %v1784_v49  ;;  %v1774_v56 = vld [vmem:[%s3564_s0 + $0x150] sm:$0xf]  ;;  %v2093_v57 = vld [vmem:[%s3564_s0 + $0x154] sm:$0xf0]  ;;  %v2058_v58 = vld [vmem:[%s3564_s0 + $0x44] sm:$0xf]  ;;  %v1631_v62 = vor.u32 %v2057_v55, %v1630_v54 }
  0x10   :  { %v1640_v59 = vld [vmem:[%s3564_s0 + $0x48] sm:$0xf0]  ;;  %v2096_v60 = vld [vmem:[%s3564_s0 + $0x174] sm:$0xf]  ;;  %v1792_v61 = vld [vmem:[%s3564_s0 + $0x178] sm:$0xf0]  ;;  %v1775_v63 = vor.u32 %v2093_v57, %v1774_v56 }
  0x11   :  { %v1643_v0 = vor.u32 %v2058_v58, %v1640_v59  ;;  %v1795_v1 = vor.u32 %v2096_v60, %v1792_v61  ;;  %v1638_v2 = vld [vmem:[%s3564_s0 + $0x40] sm:$0xf]  ;;  %v2059_v3 = vld [vmem:[%s3564_s0 + $0x44] sm:$0xf0]  ;;  %v2060_v6 = vld [vmem:[%s3564_s0 + $0x54] sm:$0xf] }
  0x12   :  { %1940 = vmatmul.msk.bf16.vlgmr.msra.gmra.mxu1 %vm518_vm0, %v1611_v12  ;;  %634 = vmatpush.bf16.msra.mxu0 %v2125_v13  ;;  %v1782_v4 = vld [vmem:[%s3564_s0 + $0x160] sm:$0xf]  ;;  %v2095_v5 = vld [vmem:[%s3564_s0 + $0x164] sm:$0xf0]  ;;  %v1648_v7 = vld [vmem:[%s3564_s0 + $0x58] sm:$0xf0]  ;;  %v1639_v10 = vor.u32 %v2059_v3, %v1638_v2 }
  0x13   :  { %2353 = vmatpush.bf16.msra.mxu2 %v2125_v13  ;;  %1959 = vmatmul.msk.bf16.vlgmr.msra.gmra.mxu3 %vm518_vm0, %v1763_v14  ;;  %v2098_v8 = vld [vmem:[%s3564_s0 + $0x184] sm:$0xf]  ;;  %v1800_v9 = vld [vmem:[%s3564_s0 + $0x188] sm:$0xf0]  ;;  %v1783_v11 = vor.u32 %v2095_v5, %v1782_v4  ;;  %v1651_v12 = vor.u32 %v2060_v6, %v1648_v7  ;;  %v1646_v14 = vld [vmem:[%s3564_s0 + $0x50] sm:$0xf] }
  0x14   :  { %v1803_v13 = vor.u32 %v2098_v8, %v1800_v9  ;;  %v2062_v18 = vld [vmem:[%s3564_s0 + $0x64] sm:$0xf]  ;;  %v1656_v19 = vld [vmem:[%s3564_s0 + $0x68] sm:$0xf0]  ;;  %v2100_v20 = vld [vmem:[%s3564_s0 + $0x194] sm:$0xf] }
  0x15   :  { %v1808_v21 = vld [vmem:[%s3564_s0 + $0x198] sm:$0xf0]  ;;  %v1659_v24 = vor.u32 %v2062_v18, %v1656_v19  ;;  %v2064_v30 = vld [vmem:[%s3564_s0 + $0x74] sm:$0xf]  ;;  %v2102_v32 = vld [vmem:[%s3564_s0 + $0x1a4] sm:$0xf] }
  0x16   :  { %635 = vmatpush.bf16.msra.mxu0 %v2124_v15  ;;  %v1811_v25 = vor.u32 %v2100_v20, %v1808_v21  ;;  %v1664_v31 = vld [vmem:[%s3564_s0 + $0x78] sm:$0xf0]  ;;  %v1816_v33 = vld [vmem:[%s3564_s0 + $0x1a8] sm:$0xf0]  ;;  %v2066_v42 = vld [vmem:[%s3564_s0 + $0x84] sm:$0xf] }
  0x17   :  { %2354 = vmatpush.bf16.msra.mxu2 %v2124_v15  ;;  %v2061_v15 = vld [vmem:[%s3564_s0 + $0x54] sm:$0xf0]  ;;  %v1667_v36 = vor.u32 %v2064_v30, %v1664_v31  ;;  %v1819_v37 = vor.u32 %v2102_v32, %v1816_v33  ;;  %v1672_v43 = vld [vmem:[%s3564_s0 + $0x88] sm:$0xf0]  ;;  %v2104_v44 = vld [vmem:[%s3564_s0 + $0x1b4] sm:$0xf] }
  0x18   :  { %v1647_v22 = vor.u32 %v2061_v15, %v1646_v14  ;;  %v1824_v45 = vld [vmem:[%s3564_s0 + $0x1b8] sm:$0xf0]  ;;  %v1675_v48 = vor.u32 %v2066_v42, %v1672_v43  ;;  %v1670_v54 = vld [vmem:[%s3564_s0 + $0x80] sm:$0xf]  ;;  %v2067_v55 = vld [vmem:[%s3564_s0 + $0x84] sm:$0xf0] }
  0x19   :  { %v1814_v56 = vld [vmem:[%s3564_s0 + $0x1a0] sm:$0xf]  ;;  %v2103_v57 = vld [vmem:[%s3564_s0 + $0x1a4] sm:$0xf0]  ;;  %v2068_v58 = vld [vmem:[%s3564_s0 + $0x94] sm:$0xf] }
  0x1a   :  { %636 = vmatpush.bf16.msra.mxu0 %v2123_v16  ;;  %v1680_v59 = vld [vmem:[%s3564_s0 + $0x98] sm:$0xf0]  ;;  %v2106_v60 = vld [vmem:[%s3564_s0 + $0x1c4] sm:$0xf]  ;;  %v1832_v61 = vld [vmem:[%s3564_s0 + $0x1c8] sm:$0xf0] }
  0x1b   :  { %2355 = vmatpush.bf16.msra.mxu2 %v2123_v16  ;;  %v1790_v16 = vld [vmem:[%s3564_s0 + $0x170] sm:$0xf]  ;;  %v1835_v5 = vor.u32 %v2106_v60, %v1832_v61  ;;  %v2105_v18 = vld [vmem:[%s3564_s0 + $0x1b4] sm:$0xf0]  ;;  %v2070_v20 = vld [vmem:[%s3564_s0 + $0xa4] sm:$0xf] }
  0x1c   :  { %v1678_v15 = vld [vmem:[%s3564_s0 + $0x90] sm:$0xf]  ;;  %v1688_v21 = vld [vmem:[%s3564_s0 + $0xa8] sm:$0xf0]  ;;  %v1696_v60 = vld [vmem:[%s3564_s0 + $0xb8] sm:$0xf0] }
  0x1d   :  { %v2110_v61 = vld [vmem:[%s3564_s0 + $0x1e4] sm:$0xf] }
  0x1e   :  { %637 = vmatpush.bf16.msra.mxu0 %v2122_v17 }
  0x1f   :  { %2356 = vmatpush.bf16.msra.mxu2 %v2122_v17  ;;  %v2097_v17 = vld [vmem:[%s3564_s0 + $0x174] sm:$0xf0] }
  0x20   :  { %v1791_v23 = vor.u32 %v2097_v17, %v1790_v16  ;;  %v2069_v16 = vld [vmem:[%s3564_s0 + $0x94] sm:$0xf0]  ;;  %v1822_v17 = vld [vmem:[%s3564_s0 + $0x1b0] sm:$0xf] }
  0x21   :  { %638 = vmatmul.bf16.vlgmr.msra.gmra.mxu0 %v1607_v26  ;;  %v1654_v26 = vld [vmem:[%s3564_s0 + $0x60] sm:$0xf] }
  0x22   :  { %728 = vmatmul.bf16.vlgmr.msra.gmra.mxu2 %v1751_v27  ;;  %1941 = vmatmul.msk.bf16.gmra.mxu1 %vm518_vm0, %v1619_v28  ;;  %v2063_v27 = vld [vmem:[%s3564_s0 + $0x64] sm:$0xf0]  ;;  %v1798_v28 = vld [vmem:[%s3564_s0 + $0x180] sm:$0xf] }
  0x23   :  { %1960 = vmatmul.msk.bf16.gmra.mxu3 %vm518_vm0, %v1771_v29  ;;  %v2099_v29 = vld [vmem:[%s3564_s0 + $0x184] sm:$0xf0]  ;;  %v1655_v34 = vor.u32 %v2063_v27, %v1654_v26  ;;  %v1679_v26 = vor.u32 %v2069_v16, %v1678_v15 }
  0x24   :  { %v1799_v35 = vor.u32 %v2099_v29, %v1798_v28  ;;  %v1823_v28 = vor.u32 %v2105_v18, %v1822_v17  ;;  %v1691_v29 = vor.u32 %v2070_v20, %v1688_v21 }
  0x31   :  { %643 = vmatmul.bf16.gmra.mxu0 %v1615_v38  ;;  %v1662_v38 = vld [vmem:[%s3564_s0 + $0x70] sm:$0xf] }
  0x32   :  { %733 = vmatmul.bf16.gmra.mxu2 %v1759_v39  ;;  %1942 = vmatmul.msk.bf16.gmra.mxu1 %vm518_vm0, %v1627_v40  ;;  %v2065_v39 = vld [vmem:[%s3564_s0 + $0x74] sm:$0xf0]  ;;  %v1806_v40 = vld [vmem:[%s3564_s0 + $0x190] sm:$0xf] }
  0x33   :  { %1961 = vmatmul.msk.bf16.gmra.mxu3 %vm518_vm0, %v1779_v41  ;;  %v2101_v41 = vld [vmem:[%s3564_s0 + $0x194] sm:$0xf0]  ;;  %v1663_v46 = vor.u32 %v2065_v39, %v1662_v38 }
  0x34   :  { %v1807_v47 = vor.u32 %v2101_v41, %v1806_v40 }
  0x41   :  { %648 = vmatmul.bf16.gmra.mxu0 %v1623_v50  ;;  %v1827_v50 = vor.u32 %v2104_v44, %v1824_v45 }
  0x42   :  { %738 = vmatmul.bf16.gmra.mxu2 %v1767_v51  ;;  %1943 = vmatmul.msk.bf16.gmra.mxu1 %vm518_vm0, %v1635_v52 }
  0x43   :  { %1962 = vmatmul.msk.bf16.gmra.mxu3 %vm518_vm0, %v1787_v53  ;;  %v2792_v53 = vld [vmem:[%s3565_s2] ss:$0 sm:$0xff] }
  0x51   :  { %653 = vmatmul.bf16.gmra.mxu0 %v1631_v62  ;;  %v1671_v62 = vor.u32 %v2067_v55, %v1670_v54  ;;  %v1686_v54 = vld [vmem:[%s3564_s0 + $0xa0] sm:$0xf]  ;;  %v2071_v55 = vld [vmem:[%s3564_s0 + $0xa4] sm:$0xf0] }
  0x52   :  { %743 = vmatmul.bf16.gmra.mxu2 %v1775_v63  ;;  %1944 = vmatmul.msk.bf16.gmra.mxu1 %vm518_vm0, %v1643_v0  ;;  %v1815_v0 = vor.u32 %v2103_v57, %v1814_v56  ;;  %v1830_v57 = vld [vmem:[%s3564_s0 + $0x1c0] sm:$0xf] }
  0x53   :  { %1963 = vmatmul.msk.bf16.gmra.mxu3 %vm518_vm0, %v1795_v1  ;;  %v1683_v1 = vor.u32 %v2068_v58, %v1680_v59  ;;  %v2072_v59 = vld [vmem:[%s3564_s0 + $0xb4] sm:$0xf] }
  0x61   :  { %658 = vmatmul.bf16.gmra.mxu0 %v1639_v10 }
  0x62   :  { %748 = vmatmul.bf16.gmra.mxu2 %v1783_v11  ;;  %1945 = vmatmul.msk.bf16.gmra.mxu1 %vm518_vm0, %v1651_v12 }
  0x63   :  { %1964 = vmatmul.msk.bf16.gmra.mxu3 %vm518_vm0, %v1803_v13 }
  0x71   :  { %663 = vmatmul.bf16.gmra.mxu0 %v1647_v22  ;;  %v2108_v22 = vld [vmem:[%s3564_s0 + $0x1d4] sm:$0xf] }
  0x72   :  { %753 = vmatmul.bf16.gmra.mxu2 %v1791_v23  ;;  %1946 = vmatmul.msk.bf16.gmra.mxu1 %vm518_vm0, %v1659_v24  ;;  %v1840_v23 = vld [vmem:[%s3564_s0 + $0x1d8] sm:$0xf0] }
  0x73   :  { %1965 = vmatmul.msk.bf16.gmra.mxu3 %vm518_vm0, %v1811_v25  ;;  %v1843_v33 = vor.u32 %v2108_v22, %v1840_v23 }
  0x81   :  { %668 = vmatmul.bf16.gmra.mxu0 %v1655_v34 }
  0x82   :  { %758 = vmatmul.bf16.gmra.mxu2 %v1799_v35  ;;  %1947 = vmatmul.msk.bf16.gmra.mxu1 %vm518_vm0, %v1667_v36 }
  0x83   :  { %1966 = vmatmul.msk.bf16.gmra.mxu3 %vm518_vm0, %v1819_v37 }
  0x8f   :  { %v832_v49 = vpop.f32.mrf.mxu1 }
  0x91   :  { %673 = vmatmul.bf16.gmra.mxu0 %v1663_v46 }
  0x92   :  { %763 = vmatmul.bf16.gmra.mxu2 %v1807_v47  ;;  %1948 = vmatmul.msk.bf16.gmra.mxu1 %vm518_vm0, %v1675_v48 }
  0x93   :  { %1967 = vmatmul.msk.bf16.gmra.mxu3 %vm518_vm0, %v1827_v50 }
  0x96   :  { %v2787_v51 = vpop.f32.mrf.mxu3 }
  0x97   :  { %v834_v52 = vpop.f32.mrf.mxu1 }
  0x9e   :  { %v639_v63 = vpop.f32.mrf.mxu0  ;;  %v2818_v2 = vpop.f32.mrf.mxu3 }
  0x9f   :  { %v640_v3 = vadd.f32 %v2792_v53, %v639_v63  ;;  %v837_v4 = vpop.f32.mrf.mxu1 }
  0xa1   :  { %v833_v6 = vadd.f32 %v832_v49, %v640_v3  ;;  %678 = vmatmul.bf16.gmra.mxu0 %v1671_v62  ;;  %v1848_v62 = vld [vmem:[%s3564_s0 + $0x1e8] sm:$0xf0]  ;;  %v1687_v3 = vor.u32 %v2071_v55, %v1686_v54 }
  0xa2   :  { %768 = vmatmul.bf16.gmra.mxu2 %v1815_v0  ;;  %1949 = vmatmul.msk.bf16.gmra.mxu1 %vm518_vm0, %v1683_v1 }
  0xa3   :  { %v1089_v7 = vmin.f32 %v833_v6, 0.0  ;;  %1968 = vmatmul.msk.bf16.gmra.mxu3 %vm518_vm0, %v1835_v5  ;;  %vm1016_vm1 = vcmp.gt.f32.partialorder %v833_v6, 0.0 }
  0xa5   :  { %v2823_v8 = vpop.f32.mrf.mxu2  ;;  %v1162_v11 = vmul.f32 1.442695, %v1089_v7  ;;  %v1699_v7 = vor.u32 %v2072_v59, %v1696_v60 }
  0xa6   :  { %v641_v9 = vpop.f32.mrf.mxu0  ;;  %v2825_v10 = vpop.f32.mrf.mxu3 }
  0xa7   :  { %v642_v12 = vadd.f32 %v2792_v53, %v641_v9  ;;  %v839_v13 = vpop.f32.mrf.mxu1  ;;  %2362 = vpow2.f32 %v1162_v11 }
  0xa9   :  { %v835_v14 = vadd.f32 %v834_v52, %v642_v12 }
  0xab   :  { %v1090_v19 = vmin.f32 %v835_v14, 0.0  ;;  %vm1017_vm2 = vcmp.gt.f32.partialorder %v835_v14, 0.0 }
  0xad   :  { %v1164_v24 = vmul.f32 1.442695, %v1090_v19  ;;  %v2852_v25 = vpop.f32.mrf.mxu2  ;;  %v2363_v34 = vpop.eup %2362 }
  0xae   :  { %v644_v27 = vpop.f32.mrf.mxu0  ;;  %v2854_v30 = vpop.f32.mrf.mxu3  ;;  %v1977_v37 = vadd.f32 -1.0, %v2363_v34 }
  0xaf   :  { %2364 = vpow2.f32 %v1164_v24  ;;  %v645_v31 = vadd.f32 %v2792_v53, %v644_v27  ;;  %v842_v32 = vpop.f32.mrf.mxu1 }
  0xb0   :  { %v1381_v47 = vsel %vm1016_vm1, %v833_v6, %v1977_v37 }
  0xb1   :  { %v2857_v35 = vadd.f32 %v837_v4, %v645_v31  ;;  %683 = vmatmul.bf16.gmra.mxu0 %v1679_v26 }
  0xb2   :  { %773 = vmatmul.bf16.gmra.mxu2 %v1823_v28  ;;  %1950 = vmatmul.msk.bf16.gmra.mxu1 %vm518_vm0, %v1691_v29 }
  0xb3   :  { %v1091_v36 = vmin.f32 %v2857_v35, 0.0  ;;  %1969 = vmatmul.msk.bf16.gmra.mxu3 %vm518_vm0, %v1843_v33  ;;  %vm1018_vm3 = vcmp.gt.f32.partialorder %v2857_v35, 0.0 }
  0xb5   :  { %v2365_v38 = vpop.eup %2364  ;;  %v734_v39 = vpop.f32.mrf.mxu2  ;;  %v1166_v44 = vmul.f32 1.442695, %v1091_v36  ;;  %v1694_v36 = vld [vmem:[%s3564_s0 + $0xb0] sm:$0xf] }
  0xb6   :  { %v1978_v40 = vadd.f32 -1.0, %v2365_v38  ;;  %v735_v41 = vadd.f32 %v2792_v53, %v734_v39  ;;  %v646_v42 = vpop.f32.mrf.mxu0  ;;  %v2863_v43 = vpop.f32.mrf.mxu3  ;;  %v2073_v39 = vld [vmem:[%s3564_s0 + $0xb4] sm:$0xf0] }
  0xb7   :  { %v647_v45 = vadd.f32 %v2792_v53, %v646_v42  ;;  %v844_v46 = vpop.f32.mrf.mxu1  ;;  %2366 = vpow2.f32 %v1166_v44  ;;  %v2074_v44 = vld [vmem:[%s3564_s0 + $0xc4] sm:$0xf] }
  0xb8   :  { %v1382_v48 = vsel %vm1017_vm2, %v835_v14, %v1978_v40  ;;  %v2867_v49 = vadd.f32 %v2787_v51, %v735_v41  ;;  %v2107_v51 = vld [vmem:[%s3564_s0 + $0x1c4] sm:$0xf0]  ;;  %v1838_v40 = vld [vmem:[%s3564_s0 + $0x1d0] sm:$0xf] }
  0xb9   :  { %v2137_v50 = vpack.c.bf16 %v1382_v48, %v1381_v47  ;;  %v840_v52 = vadd.f32 %v839_v13, %v647_v45  ;;  %v1831_v6 = vor.u32 %v2107_v51, %v1830_v57  ;;  %v1851_v13 = vor.u32 %v2110_v61, %v1848_v62  ;;  %v1704_v45 = vld [vmem:[%s3564_s0 + $0xc8] sm:$0xf0] }
  0xba   :  { %v1127_v56 = vmin.f32 %v2867_v49, 0.0  ;;  %v1695_v47 = vor.u32 %v2073_v39, %v1694_v36  ;;  %vm1054_vm5 = vcmp.gt.f32.partialorder %v2867_v49, 0.0  ;;  %v1707_v60 = vor.u32 %v2074_v44, %v1704_v45 }
  0xbb   :  { %2138 = vst [vmem:[%s3566_s3] sm:$0xff] %v2137_v50   ;;  %v1092_v58 = vmin.f32 %v840_v52, 0.0  ;;  %vm1019_vm4 = vcmp.gt.f32.partialorder %v840_v52, 0.0  ;;  %v2112_v50 = vld [vmem:[%s3564_s0 + $0x1f4] sm:$0xf] }
  0xbc   :  { %v1238_v63 = vmul.f32 1.442695, %v1127_v56 }
  0xbd   :  { %v1168_v0 = vmul.f32 1.442695, %v1092_v58  ;;  %v736_v1 = vpop.f32.mrf.mxu2  ;;  %v2367_v15 = vpop.eup %2366 }
  0xbe   :  { %v737_v4 = vadd.f32 %v2792_v53, %v736_v1  ;;  %v649_v5 = vpop.f32.mrf.mxu0  ;;  %v2898_v9 = vpop.f32.mrf.mxu3  ;;  %v1979_v19 = vadd.f32 -1.0, %v2367_v15 }
  0xbf   :  { %2368 = vpow2.f32 %v1168_v0  ;;  %v650_v11 = vadd.f32 %v2792_v53, %v649_v5  ;;  %v2901_v12 = vpop.f32.mrf.mxu1 }
  0xc0   :  { %v930_v14 = vadd.f32 %v2818_v2, %v737_v4  ;;  %2370 = vpow2.f32 %v1238_v63 }
  0xc1   :  { %v2904_v16 = vadd.f32 %v842_v32, %v650_v11  ;;  %688 = vmatmul.bf16.gmra.mxu0 %v1687_v3  ;;  %v1383_v32 = vsel %vm1018_vm3, %v2857_v35, %v1979_v19  ;;  %v2109_v35 = vld [vmem:[%s3564_s0 + $0x1d4] sm:$0xf0] }
  0xc2   :  { %v1128_v17 = vmin.f32 %v930_v14, 0.0  ;;  %778 = vmatmul.bf16.gmra.mxu2 %v1831_v6  ;;  %1951 = vmatmul.msk.bf16.gmra.mxu1 %vm518_vm0, %v1699_v7  ;;  %v1839_v48 = vor.u32 %v2109_v35, %v1838_v40  ;;  %vm1055_vm6 = vcmp.gt.f32.partialorder %v930_v14, 0.0 }
  0xc3   :  { %v1093_v18 = vmin.f32 %v2904_v16, 0.0  ;;  %1970 = vmatmul.msk.bf16.gmra.mxu3 %vm518_vm0, %v1851_v13  ;;  %vm1020_vm7 = vcmp.gt.f32.partialorder %v2904_v16, 0.0 }
  0xc4   :  { %v1240_v20 = vmul.f32 1.442695, %v1128_v17 }
  0xc5   :  { %v2369_v21 = vpop.eup %2368  ;;  %v739_v22 = vpop.f32.mrf.mxu2  ;;  %v1170_v28 = vmul.f32 1.442695, %v1093_v18 }
  0xc6   :  { %v1980_v23 = vadd.f32 -1.0, %v2369_v21  ;;  %2372 = vpow2.f32 %v1240_v20  ;;  %v740_v2 = vadd.f32 %v2792_v53, %v739_v22  ;;  %v651_v24 = vpop.f32.mrf.mxu0  ;;  %v2910_v26 = vpop.f32.mrf.mxu3 }
  0xc7   :  { %v2371_v27 = vpop.eup %2370  ;;  %v652_v29 = vadd.f32 %v2792_v53, %v651_v24  ;;  %v2914_v31 = vpop.f32.mrf.mxu1  ;;  %2374 = vpow2.f32 %v1170_v28 }
  0xc8   :  { %v1384_v33 = vsel %vm1019_vm4, %v840_v52, %v1980_v23  ;;  %v2918_v34 = vadd.f32 %v2825_v10, %v740_v2  ;;  %v2015_v10 = vadd.f32 -1.0, %v2371_v27  ;;  %v1856_v52 = vld [vmem:[%s3564_s0 + $0x1f8] sm:$0xf0]  ;;  %v1702_v27 = vld [vmem:[%s3564_s0 + $0xc0] sm:$0xf] }
  0xc9   :  { %v2142_v37 = vpack.c.bf16 %v1384_v33, %v1383_v32  ;;  %v845_v38 = vadd.f32 %v844_v46, %v652_v29  ;;  %v1859_v1 = vor.u32 %v2112_v50, %v1856_v52  ;;  %v2075_v32 = vld [vmem:[%s3564_s0 + $0xc4] sm:$0xf0]  ;;  %v1846_v33 = vld [vmem:[%s3564_s0 + $0x1e0] sm:$0xf] }
  0xca   :  { %v1129_v41 = vmin.f32 %v2918_v34, 0.0  ;;  %v1419_v51 = vsel %vm1054_vm5, %v2867_v49, %v2015_v10  ;;  %v1703_v40 = vor.u32 %v2075_v32, %v1702_v27  ;;  %v2114_v10 = vld [vmem:[%s3564_s0 + $0x204] sm:$0xf]  ;;  %vm1056_vm9 = vcmp.gt.f32.partialorder %v2918_v34, 0.0 }
  0xcb   :  { %2314 = vst [vmem:[%s3566_s3 + $0x8] sm:$0xff] %v2142_v37   ;;  %v1094_v42 = vmin.f32 %v845_v38, 0.0  ;;  %vm1021_vm8 = vcmp.gt.f32.partialorder %v845_v38, 0.0  ;;  %v2076_v37 = vld [vmem:[%s3564_s0 + $0xd4] sm:$0xf] }
  0xcc   :  { %v2373_v46 = vpop.eup %2372  ;;  %v1242_v55 = vmul.f32 1.442695, %v1129_v41  ;;  %v1864_v41 = vld [vmem:[%s3564_s0 + $0x208] sm:$0xf0] }
  0xcd   :  { %v2016_v54 = vadd.f32 -1.0, %v2373_v46  ;;  %v1172_v56 = vmul.f32 1.442695, %v1094_v42  ;;  %v741_v57 = vpop.f32.mrf.mxu2  ;;  %v2375_v5 = vpop.eup %2374 }
  0xce   :  { %v742_v58 = vadd.f32 %v2792_v53, %v741_v57  ;;  %v654_v59 = vpop.f32.mrf.mxu0  ;;  %v2951_v61 = vpop.f32.mrf.mxu3  ;;  %v1981_v11 = vadd.f32 -1.0, %v2375_v5 }
  0xcf   :  { %v1420_v62 = vsel %vm1055_vm6, %v930_v14, %v2016_v54  ;;  %2376 = vpow2.f32 %v1172_v56  ;;  %v655_v63 = vadd.f32 %v2792_v53, %v654_v59  ;;  %v2954_v0 = vpop.f32.mrf.mxu1 }
  0xd0   :  { %v2232_v3 = vpack.c.bf16 %v1420_v62, %v1419_v51  ;;  %v935_v4 = vadd.f32 %v2854_v30, %v742_v58  ;;  %2378 = vpow2.f32 %v1242_v55  ;;  %v1385_v23 = vsel %vm1020_vm7, %v2904_v16, %v1981_v11 }
  0xd1   :  { %v2958_v49 = vadd.f32 %v2901_v12, %v655_v63  ;;  %693 = vmatmul.bf16.gmra.mxu0 %v1695_v47  ;;  %v1867_v51 = vor.u32 %v2114_v10, %v1864_v41 }
  0xd2   :  { %2332 = vst [vmem:[%s3566_s3 + $0x98] sm:$0xff] %v2232_v3   ;;  %v1130_v6 = vmin.f32 %v935_v4, 0.0  ;;  %783 = vmatmul.bf16.gmra.mxu2 %v1839_v48  ;;  %1952 = vmatmul.msk.bf16.gmra.mxu1 %vm518_vm0, %v1707_v60  ;;  %vm1057_vm10 = vcmp.gt.f32.partialorder %v935_v4, 0.0 }
  0xd3   :  { %v1095_v7 = vmin.f32 %v2958_v49, 0.0  ;;  %1971 = vmatmul.msk.bf16.gmra.mxu3 %vm518_vm0, %v1859_v1  ;;  %vm1022_vm11 = vcmp.gt.f32.partialorder %v2958_v49, 0.0 }
  0xd4   :  { %v1244_v30 = vmul.f32 1.442695, %v1130_v6 }
  0xd5   :  { %v2377_v13 = vpop.eup %2376  ;;  %v744_v14 = vpop.f32.mrf.mxu2  ;;  %v1174_v20 = vmul.f32 1.442695, %v1095_v7 }
  0xd6   :  { %v1982_v15 = vadd.f32 -1.0, %v2377_v13  ;;  %2380 = vpow2.f32 %v1244_v30  ;;  %v745_v12 = vadd.f32 %v2792_v53, %v744_v14  ;;  %v656_v17 = vpop.f32.mrf.mxu0  ;;  %v2967_v18 = vpop.f32.mrf.mxu3 }
  0xd7   :  { %v2379_v19 = vpop.eup %2378  ;;  %v657_v21 = vadd.f32 %v2792_v53, %v656_v17  ;;  %v2971_v22 = vpop.f32.mrf.mxu1  ;;  %2382 = vpow2.f32 %v1174_v20 }
  0xd8   :  { %v1386_v2 = vsel %vm1021_vm8, %v845_v38, %v1982_v15  ;;  %v2975_v24 = vadd.f32 %v2863_v43, %v745_v12  ;;  %v2111_v43 = vld [vmem:[%s3564_s0 + $0x1e4] sm:$0xf0]  ;;  %v2017_v16 = vadd.f32 -1.0, %v2379_v19  ;;  %v1712_v38 = vld [vmem:[%s3564_s0 + $0xd8] sm:$0xf0] }
  0xd9   :  { %v2147_v28 = vpack.c.bf16 %v1386_v2, %v1385_v23  ;;  %v850_v29 = vadd.f32 %v2914_v31, %v657_v21  ;;  %v1847_v35 = vor.u32 %v2111_v43, %v1846_v33  ;;  %v1715_v52 = vor.u32 %v2076_v37, %v1712_v38  ;;  %v1710_v19 = vld [vmem:[%s3564_s0 + $0xd0] sm:$0xf]  ;;  %v2077_v23 = vld [vmem:[%s3564_s0 + $0xd4] sm:$0xf0] }
  0xda   :  { %v1131_v36 = vmin.f32 %v2975_v24, 0.0  ;;  %v1421_v47 = vsel %vm1056_vm9, %v2918_v34, %v2017_v16  ;;  %v1854_v2 = vld [vmem:[%s3564_s0 + $0x1f0] sm:$0xf]  ;;  %v1711_v33 = vor.u32 %v2077_v23, %v1710_v19  ;;  %v2116_v16 = vld [vmem:[%s3564_s0 + $0x214] sm:$0xf]  ;;  %vm1058_vm13 = vcmp.gt.f32.partialorder %v2975_v24, 0.0 }
  0xdb   :  { %2315 = vst [vmem:[%s3566_s3 + $0x10] sm:$0xff] %v2147_v28   ;;  %v1096_v31 = vmin.f32 %v850_v29, 0.0  ;;  %vm1023_vm12 = vcmp.gt.f32.partialorder %v850_v29, 0.0  ;;  %v2078_v28 = vld [vmem:[%s3564_s0 + $0xe4] sm:$0xf] }
  0xdc   :  { %v2381_v39 = vpop.eup %2380  ;;  %v1246_v44 = vmul.f32 1.442695, %v1131_v36  ;;  %v1872_v36 = vld [vmem:[%s3564_s0 + $0x218] sm:$0xf0] }
  0xdd   :  { %v2018_v42 = vadd.f32 -1.0, %v2381_v39  ;;  %v1176_v45 = vmul.f32 1.442695, %v1096_v31  ;;  %v746_v46 = vpop.f32.mrf.mxu2  ;;  %v2383_v60 = vpop.eup %2382 }
  0xde   :  { %v747_v48 = vadd.f32 %v2792_v53, %v746_v46  ;;  %v659_v50 = vpop.f32.mrf.mxu0  ;;  %v3009_v54 = vpop.f32.mrf.mxu3  ;;  %v1983_v1 = vadd.f32 -1.0, %v2383_v60 }
  0xdf   :  { %v1422_v55 = vsel %vm1057_vm10, %v935_v4, %v2018_v42  ;;  %2384 = vpow2.f32 %v1176_v45  ;;  %v660_v56 = vadd.f32 %v2792_v53, %v659_v50  ;;  %v3012_v57 = vpop.f32.mrf.mxu1 }
  0xe0   :  { %v2237_v58 = vpack.c.bf16 %v1422_v55, %v1421_v47  ;;  %v940_v59 = vadd.f32 %v2898_v9, %v747_v48  ;;  %2386 = vpow2.f32 %v1246_v44  ;;  %v1387_v15 = vsel %vm1022_vm11, %v2958_v49, %v1983_v1 }
  0xe1   :  { %v3016_v34 = vadd.f32 %v2954_v0, %v660_v56  ;;  %698 = vmatmul.bf16.gmra.mxu0 %v1703_v40  ;;  %v1875_v47 = vor.u32 %v2116_v16, %v1872_v36 }
  0xe2   :  { %2333 = vst [vmem:[%s3566_s3 + $0xa0] sm:$0xff] %v2237_v58   ;;  %v1132_v62 = vmin.f32 %v940_v59, 0.0  ;;  %788 = vmatmul.bf16.gmra.mxu2 %v1847_v35  ;;  %1953 = vmatmul.msk.bf16.gmra.mxu1 %vm518_vm0, %v1715_v52  ;;  %vm1059_vm14 = vcmp.gt.f32.partialorder %v940_v59, 0.0 }
  0xe3   :  { %v1097_v63 = vmin.f32 %v3016_v34, 0.0  ;;  %1972 = vmatmul.msk.bf16.gmra.mxu3 %vm518_vm0, %v1867_v51  ;;  %vm1024_vm15 = vcmp.gt.f32.partialorder %v3016_v34, 0.0 }
  0xe4   :  { %v1248_v9 = vmul.f32 1.442695, %v1132_v62 }
  0xe5   :  { %v2385_v3 = vpop.eup %2384  ;;  %v749_v4 = vpop.f32.mrf.mxu2  ;;  %v1178_v30 = vmul.f32 1.442695, %v1097_v63 }
  0xe6   :  { %v1984_v5 = vadd.f32 -1.0, %v2385_v3  ;;  %2388 = vpow2.f32 %v1248_v9  ;;  %v750_v0 = vadd.f32 %v2792_v53, %v749_v4  ;;  %v661_v6 = vpop.f32.mrf.mxu0  ;;  %v3025_v7 = vpop.f32.mrf.mxu3 }
  0xe7   :  { %v2387_v11 = vpop.eup %2386  ;;  %v662_v13 = vadd.f32 %v2792_v53, %v661_v6  ;;  %v3029_v14 = vpop.f32.mrf.mxu1  ;;  %2390 = vpow2.f32 %v1178_v30 }
  0xe8   :  { %v1388_v12 = vsel %vm1023_vm12, %v850_v29, %v1984_v5  ;;  %v3033_v17 = vadd.f32 %v2910_v26, %v750_v0  ;;  %v2113_v26 = vld [vmem:[%s3564_s0 + $0x1f4] sm:$0xf0]  ;;  %v2019_v49 = vadd.f32 -1.0, %v2387_v11  ;;  %v1720_v29 = vld [vmem:[%s3564_s0 + $0xe8] sm:$0xf0] }
  0xe9   :  { %v2152_v20 = vpack.c.bf16 %v1388_v12, %v1387_v15  ;;  %v855_v21 = vadd.f32 %v2971_v22, %v662_v13  ;;  %v1855_v43 = vor.u32 %v2113_v26, %v1854_v2  ;;  %v1723_v41 = vor.u32 %v2078_v28, %v1720_v29  ;;  %v1718_v11 = vld [vmem:[%s3564_s0 + $0xe0] sm:$0xf]  ;;  %v2079_v15 = vld [vmem:[%s3564_s0 + $0xe4] sm:$0xf0] }
  0xea   :  { %v1133_v27 = vmin.f32 %v3033_v17, 0.0  ;;  %v1423_v40 = vsel %vm1058_vm13, %v2975_v24, %v2019_v49  ;;  %v1862_v12 = vld [vmem:[%s3564_s0 + $0x200] sm:$0xf]  ;;  %v1719_v2 = vor.u32 %v2079_v15, %v1718_v11  ;;  %v2118_v49 = vld [vmem:[%s3564_s0 + $0x224] sm:$0xf]  ;;  %vm1060_vm2 = vcmp.gt.f32.partialorder %v3033_v17, 0.0 }
  0xeb   :  { %2316 = vst [vmem:[%s3566_s3 + $0x18] sm:$0xff] %v2152_v20   ;;  %v1098_v22 = vmin.f32 %v855_v21, 0.0  ;;  %vm1025_vm1 = vcmp.gt.f32.partialorder %v855_v21, 0.0  ;;  %v2080_v20 = vld [vmem:[%s3564_s0 + $0xf4] sm:$0xf] }
  0xec   :  { %v2389_v32 = vpop.eup %2388  ;;  %v1250_v37 = vmul.f32 1.442695, %v1133_v27  ;;  %v1880_v27 = vld [vmem:[%s3564_s0 + $0x228] sm:$0xf0] }
  0xed   :  { %v2020_v31 = vadd.f32 -1.0, %v2389_v32  ;;  %v1180_v38 = vmul.f32 1.442695, %v1098_v22  ;;  %v751_v39 = vpop.f32.mrf.mxu2  ;;  %v2391_v52 = vpop.eup %2390 }
  0xee   :  { %v752_v35 = vadd.f32 %v2792_v53, %v751_v39  ;;  %v664_v10 = vpop.f32.mrf.mxu0  ;;  %v3067_v42 = vpop.f32.mrf.mxu3  ;;  %v1985_v51 = vadd.f32 -1.0, %v2391_v52 }
  0xef   :  { %v1424_v44 = vsel %vm1059_vm14, %v940_v59, %v2020_v31  ;;  %2392 = vpow2.f32 %v1180_v38  ;;  %v665_v45 = vadd.f32 %v2792_v53, %v664_v10  ;;  %v3070_v46 = vpop.f32.mrf.mxu1 }
  0xf0   :  { %v2242_v48 = vpack.c.bf16 %v1424_v44, %v1423_v40  ;;  %v945_v50 = vadd.f32 %v2951_v61, %v752_v35  ;;  %2394 = vpow2.f32 %v1250_v37  ;;  %v1389_v5 = vsel %vm1024_vm15, %v3016_v34, %v1985_v51 }
  0xf1   :  { %v3074_v24 = vadd.f32 %v3012_v57, %v665_v45  ;;  %703 = vmatmul.bf16.gmra.mxu0 %v1711_v33  ;;  %v1883_v40 = vor.u32 %v2118_v49, %v1880_v27 }
  0xf2   :  { %2334 = vst [vmem:[%s3566_s3 + $0xa8] sm:$0xff] %v2242_v48   ;;  %v1134_v55 = vmin.f32 %v945_v50, 0.0  ;;  %793 = vmatmul.bf16.gmra.mxu2 %v1855_v43  ;;  %1954 = vmatmul.msk.bf16.gmra.mxu1 %vm518_vm0, %v1723_v41  ;;  %vm1061_vm3 = vcmp.gt.f32.partialorder %v945_v50, 0.0 }
  0xf3   :  { %v1099_v56 = vmin.f32 %v3074_v24, 0.0  ;;  %1973 = vmatmul.msk.bf16.gmra.mxu3 %vm518_vm0, %v1875_v47  ;;  %vm1026_vm4 = vcmp.gt.f32.partialorder %v3074_v24, 0.0 }
  0xf4   :  { %v1252_v61 = vmul.f32 1.442695, %v1134_v55 }
  0xf5   :  { %v2393_v58 = vpop.eup %2392  ;;  %v754_v59 = vpop.f32.mrf.mxu2  ;;  %v1182_v9 = vmul.f32 1.442695, %v1099_v56 }
  0xf6   :  { %v1986_v60 = vadd.f32 -1.0, %v2393_v58  ;;  %2396 = vpow2.f32 %v1252_v61  ;;  %v755_v57 = vadd.f32 %v2792_v53, %v754_v59  ;;  %v666_v62 = vpop.f32.mrf.mxu0  ;;  %v3083_v63 = vpop.f32.mrf.mxu3 }
  0xf7   :  { %v2395_v1 = vpop.eup %2394  ;;  %v667_v3 = vadd.f32 %v2792_v53, %v666_v62  ;;  %v3087_v4 = vpop.f32.mrf.mxu1  ;;  %2398 = vpow2.f32 %v1182_v9 }
  0xf8   :  { %v1390_v0 = vsel %vm1025_vm1, %v855_v21, %v1986_v60  ;;  %v3091_v6 = vadd.f32 %v2967_v18, %v755_v57  ;;  %v2115_v18 = vld [vmem:[%s3564_s0 + $0x204] sm:$0xf0]  ;;  %v2021_v34 = vadd.f32 -1.0, %v2395_v1  ;;  %v1728_v21 = vld [vmem:[%s3564_s0 + $0xf8] sm:$0xf0] }
  0xf9   :  { %v2157_v30 = vpack.c.bf16 %v1390_v0, %v1389_v5  ;;  %v860_v13 = vadd.f32 %v3029_v14, %v667_v3  ;;  %v1863_v26 = vor.u32 %v2115_v18, %v1862_v12  ;;  %v1731_v36 = vor.u32 %v2080_v20, %v1728_v21  ;;  %v1726_v1 = vld [vmem:[%s3564_s0 + $0xf0] sm:$0xf]  ;;  %v2081_v5 = vld [vmem:[%s3564_s0 + $0xf4] sm:$0xf0] }
  0xfa   :  { %v1135_v19 = vmin.f32 %v3091_v6, 0.0  ;;  %v1425_v33 = vsel %vm1060_vm2, %v3033_v17, %v2021_v34  ;;  %v1870_v0 = vld [vmem:[%s3564_s0 + $0x210] sm:$0xf]  ;;  %v1727_v12 = vor.u32 %v2081_v5, %v1726_v1  ;;  %v2120_v34 = vld [vmem:[%s3564_s0 + $0x234] sm:$0xf]  ;;  %vm1062_vm6 = vcmp.gt.f32.partialorder %v3091_v6, 0.0 }
  0xfb   :  { %2317 = vst [vmem:[%s3566_s3 + $0x20] sm:$0xff] %v2157_v30   ;;  %v1100_v14 = vmin.f32 %v860_v13, 0.0  ;;  %vm1027_vm5 = vcmp.gt.f32.partialorder %v860_v13, 0.0  ;;  %v2082_v30 = vld [vmem:[%s3564_s0 + $0x104] sm:$0xf] }
  0xfc   :  { %v2397_v23 = vpop.eup %2396  ;;  %v1254_v28 = vmul.f32 1.442695, %v1135_v19  ;;  %v1888_v19 = vld [vmem:[%s3564_s0 + $0x238] sm:$0xf0] }
  0xfd   :  { %v2022_v22 = vadd.f32 -1.0, %v2397_v23  ;;  %v1184_v29 = vmul.f32 1.442695, %v1100_v14  ;;  %v756_v32 = vpop.f32.mrf.mxu2  ;;  %v2399_v41 = vpop.eup %2398 }
  0xfe   :  { %v757_v43 = vadd.f32 %v2792_v53, %v756_v32  ;;  %v669_v16 = vpop.f32.mrf.mxu0  ;;  %v3125_v31 = vpop.f32.mrf.mxu3  ;;  %v1987_v47 = vadd.f32 -1.0, %v2399_v41 }
  0xff   :  { %v1426_v37 = vsel %vm1061_vm3, %v945_v50, %v2022_v22  ;;  %2400 = vpow2.f32 %v1184_v29  ;;  %v670_v38 = vadd.f32 %v2792_v53, %v669_v16  ;;  %v3128_v39 = vpop.f32.mrf.mxu1 }
 0x100   :  { %v2247_v35 = vpack.c.bf16 %v1426_v37, %v1425_v33  ;;  %v950_v10 = vadd.f32 %v3009_v54, %v757_v43  ;;  %2402 = vpow2.f32 %v1254_v28  ;;  %v1391_v60 = vsel %vm1026_vm4, %v3074_v24, %v1987_v47 }
 0x101   :  { %v3132_v17 = vadd.f32 %v3070_v46, %v670_v38  ;;  %708 = vmatmul.bf16.gmra.mxu0 %v1719_v2  ;;  %v1891_v33 = vor.u32 %v2120_v34, %v1888_v19 }
 0x102   :  { %2335 = vst [vmem:[%s3566_s3 + $0xb0] sm:$0xff] %v2247_v35   ;;  %v1136_v44 = vmin.f32 %v950_v10, 0.0  ;;  %798 = vmatmul.bf16.gmra.mxu2 %v1863_v26  ;;  %1955 = vmatmul.msk.bf16.gmra.mxu1 %vm518_vm0, %v1731_v36  ;;  %vm1063_vm7 = vcmp.gt.f32.partialorder %v950_v10, 0.0 }
 0x103   :  { %v1101_v45 = vmin.f32 %v3132_v17, 0.0  ;;  %1974 = vmatmul.msk.bf16.gmra.mxu3 %vm518_vm0, %v1883_v40  ;;  %vm1028_vm8 = vcmp.gt.f32.partialorder %v3132_v17, 0.0 }
 0x104   :  { %v1256_v54 = vmul.f32 1.442695, %v1136_v44 }
 0x105   :  { %v2401_v48 = vpop.eup %2400  ;;  %v759_v50 = vpop.f32.mrf.mxu2  ;;  %v1186_v61 = vmul.f32 1.442695, %v1101_v45 }
 0x106   :  { %v1988_v52 = vadd.f32 -1.0, %v2401_v48  ;;  %2404 = vpow2.f32 %v1256_v54  ;;  %v760_v46 = vadd.f32 %v2792_v53, %v759_v50  ;;  %v671_v55 = vpop.f32.mrf.mxu0  ;;  %v3141_v56 = vpop.f32.mrf.mxu3 }
 0x107   :  { %v2403_v51 = vpop.eup %2402  ;;  %v672_v58 = vadd.f32 %v2792_v53, %v671_v55  ;;  %v3145_v59 = vpop.f32.mrf.mxu1  ;;  %2406 = vpow2.f32 %v1186_v61  ;;  %v3215_v61 = vld [vmem:[%s3564_s0 + $0x240] sm:$0x11] }
 0x108   :  { %v1392_v57 = vsel %vm1027_vm5, %v860_v13, %v1988_v52  ;;  %v3149_v62 = vadd.f32 %v3025_v7, %v760_v46  ;;  %v2117_v7 = vld [vmem:[%s3564_s0 + $0x214] sm:$0xf0]  ;;  %v2023_v24 = vadd.f32 -1.0, %v2403_v51  ;;  %v1736_v13 = vld [vmem:[%s3564_s0 + $0x108] sm:$0xf0] }
 0x109   :  { %v2162_v9 = vpack.c.bf16 %v1392_v57, %v1391_v60  ;;  %v865_v3 = vadd.f32 %v3087_v4, %v672_v58  ;;  %v1871_v18 = vor.u32 %v2117_v7, %v1870_v0  ;;  %v1739_v27 = vor.u32 %v2082_v30, %v1736_v13  ;;  %v1734_v51 = vld [vmem:[%s3564_s0 + $0x100] sm:$0xf]  ;;  %v2119_v57 = vld [vmem:[%s3564_s0 + $0x224] sm:$0xf0] }
 0x10a   :  { %v1137_v11 = vmin.f32 %v3149_v62, 0.0  ;;  %v1427_v2 = vsel %vm1062_vm6, %v3091_v6, %v2023_v24  ;;  %v334_v0 = vunpack.c.h.b16 %v3215_v61  ;;  %vm1064_vm10 = vcmp.gt.f32.partialorder %v3149_v62, 0.0 }
 0x10b   :  { %2318 = vst [vmem:[%s3566_s3 + $0x28] sm:$0xff] %v2162_v9   ;;  %v1102_v4 = vmin.f32 %v865_v3, 0.0  ;;  %vm1029_vm9 = vcmp.gt.f32.partialorder %v865_v3, 0.0 }
 0x10c   :  { %v2405_v15 = vpop.eup %2404  ;;  %v1258_v20 = vmul.f32 1.442695, %v1137_v11 }
 0x10d   :  { %v2024_v14 = vadd.f32 -1.0, %v2405_v15  ;;  %v1188_v21 = vmul.f32 1.442695, %v1102_v4  ;;  %v761_v23 = vpop.f32.mrf.mxu2  ;;  %v2407_v36 = vpop.eup %2406 }
 0x10e   :  { %v762_v26 = vadd.f32 %v2792_v53, %v761_v23  ;;  %v674_v49 = vpop.f32.mrf.mxu0  ;;  %v3183_v22 = vpop.f32.mrf.mxu3  ;;  %v1989_v40 = vadd.f32 -1.0, %v2407_v36 }
 0x10f   :  { %v1428_v28 = vsel %vm1063_vm7, %v950_v10, %v2024_v14  ;;  %2408 = vpow2.f32 %v1188_v21  ;;  %v675_v29 = vadd.f32 %v2792_v53, %v674_v49  ;;  %v3186_v32 = vpop.f32.mrf.mxu1 }
 0x110   :  { %v2252_v43 = vpack.c.bf16 %v1428_v28, %v1427_v2  ;;  %v955_v16 = vadd.f32 %v3067_v42, %v762_v26  ;;  %2410 = vpow2.f32 %v1258_v20  ;;  %v1393_v52 = vsel %vm1028_vm8, %v3132_v17, %v1989_v40  ;;  %v2083_v17 = vld [vmem:[%s3564_s0 + $0x104] sm:$0xf0] }
 0x111   :  { %v3190_v6 = vadd.f32 %v3128_v39, %v675_v29  ;;  %713 = vmatmul.bf16.gmra.mxu0 %v1727_v12  ;;  %v1735_v24 = vor.u32 %v2083_v17, %v1734_v51  ;;  %v408_v2 = vpack.c.b16 %v334_v0, %v334_v0 }
 0x112   :  { %2336 = vst [vmem:[%s3566_s3 + $0xb8] sm:$0xff] %v2252_v43   ;;  %v1138_v37 = vmin.f32 %v955_v16, 0.0  ;;  %803 = vmatmul.bf16.gmra.mxu2 %v1871_v18  ;;  %1956 = vmatmul.msk.bf16.gmra.mxu1 %vm518_vm0, %v1739_v27  ;;  %vm1065_vm11 = vcmp.gt.f32.partialorder %v955_v16, 0.0 }
 0x113   :  { %v1103_v38 = vmin.f32 %v3190_v6, 0.0  ;;  %1975 = vmatmul.msk.bf16.gmra.mxu3 %vm518_vm0, %v1891_v33  ;;  %vm1030_vm12 = vcmp.gt.f32.partialorder %v3190_v6, 0.0 }
 0x114   :  { %v1260_v42 = vmul.f32 1.442695, %v1138_v37 }
 0x115   :  { %v2409_v35 = vpop.eup %2408  ;;  %v764_v10 = vpop.f32.mrf.mxu2  ;;  %v1190_v54 = vmul.f32 1.442695, %v1103_v38 }
 0x116   :  { %v1990_v41 = vadd.f32 -1.0, %v2409_v35  ;;  %2412 = vpow2.f32 %v1260_v42  ;;  %v765_v39 = vadd.f32 %v2792_v53, %v764_v10  ;;  %v676_v44 = vpop.f32.mrf.mxu0  ;;  %v3199_v45 = vpop.f32.mrf.mxu3 }
 0x117   :  { %v2411_v47 = vpop.eup %2410  ;;  %v677_v48 = vadd.f32 %v2792_v53, %v676_v44  ;;  %v3203_v50 = vpop.f32.mrf.mxu1  ;;  %2414 = vpow2.f32 %v1190_v54 }
 0x118   :  { %v1394_v46 = vsel %vm1029_vm9, %v865_v3, %v1990_v41  ;;  %v3207_v55 = vadd.f32 %v3083_v63, %v765_v39  ;;  %v1878_v63 = vld [vmem:[%s3564_s0 + $0x220] sm:$0xf]  ;;  %v2025_v1 = vadd.f32 -1.0, %v2411_v47  ;;  %v2084_v3 = vld [vmem:[%s3564_s0 + $0x114] sm:$0xf] }
 0x119   :  { %v2167_v58 = vpack.c.bf16 %v1394_v46, %v1393_v52  ;;  %v870_v60 = vadd.f32 %v3145_v59, %v677_v48  ;;  %v1744_v59 = vld [vmem:[%s3564_s0 + $0x118] sm:$0xf0]  ;;  %v1879_v11 = vor.u32 %v2119_v57, %v1878_v63  ;;  %v1742_v47 = vld [vmem:[%s3564_s0 + $0x110] sm:$0xf]  ;;  %v2086_v46 = vld [vmem:[%s3564_s0 + $0x124] sm:$0xf] }
 0x11a   :  { %v1139_v9 = vmin.f32 %v3207_v55, 0.0  ;;  %v1747_v15 = vor.u32 %v2084_v3, %v1744_v59  ;;  %v1429_v12 = vsel %vm1064_vm10, %v3149_v62, %v2025_v1  ;;  %v1886_v52 = vld [vmem:[%s3564_s0 + $0x230] sm:$0xf]  ;;  %vm1066_vm14 = vcmp.gt.f32.partialorder %v3207_v55, 0.0 }
 0x11b   :  { %2319 = vst [vmem:[%s3566_s3 + $0x30] sm:$0xff] %v2167_v58   ;;  %v1104_v5 = vmin.f32 %v870_v60, 0.0  ;;  %vm1031_vm13 = vcmp.gt.f32.partialorder %v870_v60, 0.0 }
 0x11c   :  { %v2413_v7 = vpop.eup %2412  ;;  %v1262_v18 = vmul.f32 1.442695, %v1139_v9 }
 0x11d   :  { %v2026_v4 = vadd.f32 -1.0, %v2413_v7  ;;  %v1192_v30 = vmul.f32 1.442695, %v1104_v5  ;;  %v766_v13 = vpop.f32.mrf.mxu2  ;;  %v2415_v27 = vpop.eup %2414  ;;  %v3294_v5 = vld [vmem:[%s3565_s2] ss:$0 sm:$0xff] }
 0x11e   :  { %v767_v34 = vadd.f32 %v2792_v53, %v766_v13  ;;  %v679_v19 = vpop.f32.mrf.mxu0  ;;  %v3241_v14 = vpop.f32.mrf.mxu3  ;;  %v1991_v33 = vadd.f32 -1.0, %v2415_v27 }
 0x11f   :  { %v1430_v20 = vsel %vm1065_vm11, %v955_v16, %v2026_v4  ;;  %2416 = vpow2.f32 %v1192_v30  ;;  %v680_v21 = vadd.f32 %v2792_v53, %v679_v19  ;;  %v3244_v23 = vpop.f32.mrf.mxu1 }
 0x120   :  { %v2257_v26 = vpack.c.bf16 %v1430_v20, %v1429_v12  ;;  %v960_v49 = vadd.f32 %v3125_v31, %v767_v34  ;;  %2418 = vpow2.f32 %v1262_v18  ;;  %v1395_v41 = vsel %vm1030_vm12, %v3190_v6, %v1991_v33 }
 0x121   :  { %v3248_v62 = vadd.f32 %v3186_v32, %v680_v21  ;;  %718 = vmatmul.bf16.gmra.mxu0 %v1735_v24 }
 0x122   :  { %2337 = vst [vmem:[%s3566_s3 + $0xc0] sm:$0xff] %v2257_v26   ;;  %v1140_v28 = vmin.f32 %v960_v49, 0.0  ;;  %808 = vmatmul.bf16.gmra.mxu2 %v1879_v11  ;;  %1957 = vmatmul.msk.bf16.gmra.mxu1 %vm518_vm0, %v1747_v15  ;;  %vm1067_vm15 = vcmp.gt.f32.partialorder %v960_v49, 0.0 }
 0x123   :  { %v1105_v29 = vmin.f32 %v3248_v62, 0.0  ;;  %1976 = vmatmul.msk.bf16.gmra.mxu3 %vm518_vm0, %v408_v2  ;;  %vm1032_vm1 = vcmp.gt.f32.partialorder %v3248_v62, 0.0 }
 0x124   :  { %v1264_v31 = vmul.f32 1.442695, %v1140_v28 }
 0x125   :  { %v2417_v43 = vpop.eup %2416  ;;  %v769_v16 = vpop.f32.mrf.mxu2  ;;  %v1194_v40 = vmul.f32 1.442695, %v1105_v29 }
 0x126   :  { %v1992_v32 = vadd.f32 -1.0, %v2417_v43  ;;  %2420 = vpow2.f32 %v1264_v31  ;;  %v770_v36 = vadd.f32 %v2792_v53, %v769_v16  ;;  %v681_v37 = vpop.f32.mrf.mxu0  ;;  %v3257_v38 = vpop.f32.mrf.mxu3 }
 0x127   :  { %v682_v42 = vadd.f32 %v2792_v53, %v681_v37  ;;  %v3261_v35 = vpop.f32.mrf.mxu1  ;;  %v2419_v10 = vpop.eup %2418  ;;  %v2085_v53 = vld [vmem:[%s3564_s0 + $0x114] sm:$0xf0]  ;;  %2422 = vpow2.f32 %v1194_v40  ;;  %v333_v40 = vunpack.c.l.b16 %v3215_v61 }
 0x128   :  { %v1396_v39 = vsel %vm1031_vm13, %v870_v60, %v1992_v32  ;;  %v3265_v44 = vadd.f32 %v3141_v56, %v770_v36  ;;  %v2121_v56 = vld [vmem:[%s3564_s0 + $0x234] sm:$0xf0]  ;;  %v2027_v51 = vadd.f32 -1.0, %v2419_v10  ;;  %v1743_v17 = vor.u32 %v2085_v53, %v1742_v47 }
 0x129   :  { %v2172_v54 = vpack.c.bf16 %v1396_v39, %v1395_v41  ;;  %v875_v48 = vadd.f32 %v3203_v50, %v682_v42  ;;  %v1752_v50 = vld [vmem:[%s3564_s0 + $0x128] sm:$0xf0]  ;;  %v1887_v9 = vor.u32 %v2121_v56, %v1886_v52 }
 0x12a   :  { %v1141_v6 = vmin.f32 %v3265_v44, 0.0  ;;  %v1755_v3 = vor.u32 %v2086_v46, %v1752_v50  ;;  %v1431_v11 = vsel %vm1066_vm14, %v3207_v55, %v2027_v51 }
 0x12b   :  { %2320 = vst [vmem:[%s3566_s3 + $0x38] sm:$0xff] %v2172_v54   ;;  %v1106_v58 = vmin.f32 %v875_v48, 0.0  ;;  %vm1033_vm2 = vcmp.gt.f32.partialorder %v875_v48, 0.0 }
 0x12c   :  { %v2421_v60 = vpop.eup %2420  ;;  %v1266_v59 = vmul.f32 1.442695, %v1141_v6 }
 0x12d   :  { %v2028_v63 = vadd.f32 -1.0, %v2421_v60  ;;  %v1196_v57 = vmul.f32 1.442695, %v1106_v58  ;;  %v771_v1 = vpop.f32.mrf.mxu2  ;;  %v2423_v18 = vpop.eup %2422 }
 0x12e   :  { %v772_v0 = vadd.f32 %v3294_v5, %v771_v1  ;;  %v684_v7 = vpop.f32.mrf.mxu0  ;;  %v3297_v24 = vpop.f32.mrf.mxu3  ;;  %v1993_v20 = vadd.f32 -1.0, %v2423_v18 }
 0x12f   :  { %v1432_v4 = vsel %vm1067_vm15, %v960_v49, %v2028_v63  ;;  %2424 = vpow2.f32 %v1196_v57  ;;  %v685_v30 = vadd.f32 %v3294_v5, %v684_v7  ;;  %v882_v13 = vpop.f32.mrf.mxu1 }
 0x130   :  { %v2262_v15 = vpack.c.bf16 %v1432_v4, %v1431_v11  ;;  %v965_v12 = vadd.f32 %v3183_v22, %v772_v0  ;;  %2426 = vpow2.f32 %v1266_v59  ;;  %v1397_v43 = vsel %vm1032_vm1, %v3248_v62, %v1993_v20 }
 0x131   :  { %v3303_v34 = vadd.f32 %v3244_v23, %v685_v30  ;;  %723 = vmatmul.bf16.gmra.mxu0 %v1743_v17 }
 0x132   :  { %2338 = vst [vmem:[%s3566_s3 + $0xc8] sm:$0xff] %v2262_v15   ;;  %v1142_v19 = vmin.f32 %v965_v12, 0.0  ;;  %813 = vmatmul.bf16.gmra.mxu2 %v1887_v9  ;;  %1958 = vmatmul.msk.bf16.gmra.mxu1 %vm518_vm0, %v1755_v3  ;;  %vm1068_vm0 = vcmp.gt.f32.partialorder %v3265_v44, 0.0  ;;  %vm1069_vm3 = vcmp.gt.f32.partialorder %v965_v12, 0.0 }
 0x133   :  { %v1107_v55 = vmin.f32 %v3303_v34, 0.0  ;;  %vm1034_vm4 = vcmp.gt.f32.partialorder %v3303_v34, 0.0 }
 0x134   :  { %v1268_v21 = vmul.f32 1.442695, %v1142_v19 }
 0x135   :  { %v2425_v2 = vpop.eup %2424  ;;  %v774_v22 = vpop.f32.mrf.mxu2  ;;  %v1198_v28 = vmul.f32 1.442695, %v1107_v55 }
 0x136   :  { %v1994_v26 = vadd.f32 -1.0, %v2425_v2  ;;  %2428 = vpow2.f32 %v1268_v21  ;;  %v775_v23 = vadd.f32 %v3294_v5, %v774_v22  ;;  %v686_v49 = vpop.f32.mrf.mxu0  ;;  %v3311_v27 = vpop.f32.mrf.mxu3 }
 0x137   :  { %v687_v29 = vadd.f32 %v3294_v5, %v686_v49  ;;  %v884_v33 = vpop.f32.mrf.mxu1  ;;  %v2427_v31 = vpop.eup %2426  ;;  %2430 = vpow2.f32 %v1198_v28 }
 0x138   :  { %v1398_v16 = vsel %vm1033_vm2, %v875_v48, %v1994_v26  ;;  %v3317_v32 = vadd.f32 %v3199_v45, %v775_v23  ;;  %v2029_v10 = vadd.f32 -1.0, %v2427_v31  ;;  %v407_v45 = vpack.c.b16 %v333_v40, %v333_v40 }
 0x139   :  { %v2177_v36 = vpack.c.bf16 %v1398_v16, %v1397_v43  ;;  %v880_v37 = vadd.f32 %v3261_v35, %v687_v29 }
 0x13a   :  { %v1143_v42 = vmin.f32 %v3317_v32, 0.0  ;;  %v1433_v52 = vsel %vm1068_vm0, %v3265_v44, %v2029_v10  ;;  %vm1070_vm6 = vcmp.gt.f32.partialorder %v3317_v32, 0.0 }
 0x13b   :  { %2321 = vst [vmem:[%s3566_s3 + $0x40] sm:$0xff] %v2177_v36   ;;  %v1108_v41 = vmin.f32 %v880_v37, 0.0  ;;  %vm1035_vm5 = vcmp.gt.f32.partialorder %v880_v37, 0.0 }
 0x13c   :  { %v2429_v39 = vpop.eup %2428  ;;  %v1270_v35 = vmul.f32 1.442695, %v1143_v42 }
 0x13d   :  { %v2030_v62 = vadd.f32 -1.0, %v2429_v39  ;;  %v1200_v47 = vmul.f32 1.442695, %v1108_v41  ;;  %v776_v54 = vpop.f32.mrf.mxu2  ;;  %v2431_v58 = vpop.eup %2430 }
 0x13e   :  { %v777_v61 = vadd.f32 %v3294_v5, %v776_v54  ;;  %v689_v48 = vpop.f32.mrf.mxu0  ;;  %v3327_v53 = vpop.f32.mrf.mxu3  ;;  %v1995_v63 = vadd.f32 -1.0, %v2431_v58 }
 0x13f   :  { %v1434_v56 = vsel %vm1069_vm3, %v965_v12, %v2030_v62  ;;  %2432 = vpow2.f32 %v1200_v47  ;;  %v690_v6 = vadd.f32 %v3294_v5, %v689_v48  ;;  %v887_v46 = vpop.f32.mrf.mxu1 }
 0x140   :  { %v2267_v50 = vpack.c.bf16 %v1434_v56, %v1433_v52  ;;  %v970_v51 = vadd.f32 %v3241_v14, %v777_v61  ;;  %2434 = vpow2.f32 %v1270_v35 }
 0x141   :  { %v3332_v60 = vadd.f32 %v882_v13, %v690_v6  ;;  %v1399_v13 = vsel %vm1034_vm4, %v3303_v34, %v1995_v63 }
 0x142   :  { %2339 = vst [vmem:[%s3566_s3 + $0xd0] sm:$0xff] %v2267_v50   ;;  %v1144_v17 = vmin.f32 %v970_v51, 0.0  ;;  %818 = vmatmul.bf16.gmra.mxu2 %v407_v45  ;;  %vm1071_vm7 = vcmp.gt.f32.partialorder %v970_v51, 0.0 }
 0x143   :  { %v1109_v44 = vmin.f32 %v3332_v60, 0.0  ;;  %vm1036_vm8 = vcmp.gt.f32.partialorder %v3332_v60, 0.0 }
 0x144   :  { %v1272_v57 = vmul.f32 1.442695, %v1144_v17 }
 0x145   :  { %v2433_v1 = vpop.eup %2432  ;;  %v779_v9 = vpop.f32.mrf.mxu2  ;;  %v1202_v7 = vmul.f32 1.442695, %v1109_v44 }
 0x146   :  { %v1996_v3 = vadd.f32 -1.0, %v2433_v1  ;;  %2436 = vpow2.f32 %v1272_v57  ;;  %v780_v14 = vadd.f32 %v3294_v5, %v779_v9  ;;  %v691_v59 = vpop.f32.mrf.mxu0  ;;  %v3339_v0 = vpop.f32.mrf.mxu3 }
 0x147   :  { %v692_v11 = vadd.f32 %v3294_v5, %v691_v59  ;;  %v889_v4 = vpop.f32.mrf.mxu1  ;;  %v2435_v30 = vpop.eup %2434  ;;  %2438 = vpow2.f32 %v1202_v7 }
 0x148   :  { %v1400_v15 = vsel %vm1035_vm5, %v880_v37, %v1996_v3  ;;  %v3345_v12 = vadd.f32 %v3257_v38, %v780_v14  ;;  %v2031_v20 = vadd.f32 -1.0, %v2435_v30 }
 0x149   :  { %v2182_v18 = vpack.c.bf16 %v1400_v15, %v1399_v13  ;;  %v885_v19 = vadd.f32 %v884_v33, %v692_v11 }
 0x14a   :  { %v1145_v55 = vmin.f32 %v3345_v12, 0.0  ;;  %v1435_v29 = vsel %vm1070_vm6, %v3317_v32, %v2031_v20  ;;  %vm1072_vm10 = vcmp.gt.f32.partialorder %v3345_v12, 0.0 }
 0x14b   :  { %2322 = vst [vmem:[%s3566_s3 + $0x48] sm:$0xff] %v2182_v18   ;;  %v1110_v21 = vmin.f32 %v885_v19, 0.0  ;;  %vm1037_vm9 = vcmp.gt.f32.partialorder %v885_v19, 0.0 }
 0x14c   :  { %v2437_v2 = vpop.eup %2436  ;;  %v1274_v38 = vmul.f32 1.442695, %v1145_v55 }
 0x14d   :  { %v2032_v22 = vadd.f32 -1.0, %v2437_v2  ;;  %v1204_v26 = vmul.f32 1.442695, %v1110_v21  ;;  %v781_v23 = vpop.f32.mrf.mxu2  ;;  %v2439_v37 = vpop.eup %2438 }
 0x14e   :  { %v782_v34 = vadd.f32 %v3294_v5, %v781_v23  ;;  %v694_v49 = vpop.f32.mrf.mxu0  ;;  %v3353_v28 = vpop.f32.mrf.mxu3  ;;  %v1997_v32 = vadd.f32 -1.0, %v2439_v37 }
 0x14f   :  { %v1436_v33 = vsel %vm1071_vm7, %v970_v51, %v2032_v22  ;;  %2440 = vpow2.f32 %v1204_v26  ;;  %v695_v31 = vadd.f32 %v3294_v5, %v694_v49  ;;  %v892_v43 = vpop.f32.mrf.mxu1 }
 0x150   :  { %v2272_v16 = vpack.c.bf16 %v1436_v33, %v1435_v29  ;;  %v975_v36 = vadd.f32 %v3297_v24, %v782_v34  ;;  %2442 = vpow2.f32 %v1274_v38  ;;  %v1401_v56 = vsel %vm1036_vm8, %v3332_v60, %v1997_v32 }
 0x151   :  { %v3358_v40 = vadd.f32 %v887_v46, %v695_v31 }
 0x152   :  { %2340 = vst [vmem:[%s3566_s3 + $0xd8] sm:$0xff] %v2272_v16   ;;  %v1146_v42 = vmin.f32 %v975_v36, 0.0  ;;  %vm1073_vm11 = vcmp.gt.f32.partialorder %v975_v36, 0.0 }
 0x153   :  { %v1111_v10 = vmin.f32 %v3358_v40, 0.0  ;;  %vm1038_vm12 = vcmp.gt.f32.partialorder %v3358_v40, 0.0 }
 0x154   :  { %v1276_v41 = vmul.f32 1.442695, %v1146_v42 }
 0x155   :  { %v2441_v39 = vpop.eup %2440  ;;  %v784_v62 = vpop.f32.mrf.mxu2  ;;  %v1206_v35 = vmul.f32 1.442695, %v1111_v10 }
 0x156   :  { %v1998_v47 = vadd.f32 -1.0, %v2441_v39  ;;  %2444 = vpow2.f32 %v1276_v41  ;;  %v785_v54 = vadd.f32 %v3294_v5, %v784_v62  ;;  %v696_v24 = vpop.f32.mrf.mxu0  ;;  %v3365_v45 = vpop.f32.mrf.mxu3 }
 0x157   :  { %v697_v61 = vadd.f32 %v3294_v5, %v696_v24  ;;  %v894_v48 = vpop.f32.mrf.mxu1  ;;  %v2443_v52 = vpop.eup %2442  ;;  %2446 = vpow2.f32 %v1206_v35 }
 0x158   :  { %v1402_v6 = vsel %vm1037_vm9, %v885_v19, %v1998_v47  ;;  %v3371_v46 = vadd.f32 %v3311_v27, %v785_v54  ;;  %v2033_v17 = vadd.f32 -1.0, %v2443_v52 }
 0x159   :  { %v2187_v50 = vpack.c.bf16 %v1402_v6, %v1401_v56  ;;  %v890_v51 = vadd.f32 %v889_v4, %v697_v61 }
 0x15a   :  { %v1147_v58 = vmin.f32 %v3371_v46, 0.0  ;;  %v1437_v59 = vsel %vm1072_vm10, %v3345_v12, %v2033_v17  ;;  %vm1074_vm14 = vcmp.gt.f32.partialorder %v3371_v46, 0.0 }
 0x15b   :  { %2323 = vst [vmem:[%s3566_s3 + $0x50] sm:$0xff] %v2187_v50   ;;  %v1112_v44 = vmin.f32 %v890_v51, 0.0  ;;  %vm1039_vm13 = vcmp.gt.f32.partialorder %v890_v51, 0.0 }
 0x15c   :  { %v2445_v63 = vpop.eup %2444  ;;  %v1278_v27 = vmul.f32 1.442695, %v1147_v58 }
 0x15d   :  { %v2034_v57 = vadd.f32 -1.0, %v2445_v63  ;;  %v1208_v1 = vmul.f32 1.442695, %v1112_v44  ;;  %v786_v9 = vpop.f32.mrf.mxu2  ;;  %v2447_v15 = vpop.eup %2446 }
 0x15e   :  { %v787_v60 = vadd.f32 %v3294_v5, %v786_v9  ;;  %v699_v3 = vpop.f32.mrf.mxu0  ;;  %v3379_v14 = vpop.f32.mrf.mxu3  ;;  %v1999_v12 = vadd.f32 -1.0, %v2447_v15 }
 0x15f   :  { %v1438_v7 = vsel %vm1073_vm11, %v975_v36, %v2034_v57  ;;  %2448 = vpow2.f32 %v1208_v1  ;;  %v700_v11 = vadd.f32 %v3294_v5, %v699_v3  ;;  %v897_v4 = vpop.f32.mrf.mxu1 }
 0x160   :  { %v2277_v30 = vpack.c.bf16 %v1438_v7, %v1437_v59  ;;  %v980_v13 = vadd.f32 %v3327_v53, %v787_v60  ;;  %2450 = vpow2.f32 %v1278_v27  ;;  %v1403_v33 = vsel %vm1038_vm12, %v3358_v40, %v1999_v12 }
 0x161   :  { %v3384_v18 = vadd.f32 %v892_v43, %v700_v11 }
 0x162   :  { %2341 = vst [vmem:[%s3566_s3 + $0xe0] sm:$0xff] %v2277_v30   ;;  %v1148_v19 = vmin.f32 %v980_v13, 0.0  ;;  %vm1075_vm15 = vcmp.gt.f32.partialorder %v980_v13, 0.0 }
 0x163   :  { %v1113_v55 = vmin.f32 %v3384_v18, 0.0  ;;  %vm1040_vm1 = vcmp.gt.f32.partialorder %v3384_v18, 0.0 }
 0x164   :  { %v1280_v20 = vmul.f32 1.442695, %v1148_v19 }
 0x165   :  { %v2449_v21 = vpop.eup %2448  ;;  %v789_v2 = vpop.f32.mrf.mxu2  ;;  %v1210_v38 = vmul.f32 1.442695, %v1113_v55 }
 0x166   :  { %v2000_v22 = vadd.f32 -1.0, %v2449_v21  ;;  %2452 = vpow2.f32 %v1280_v20  ;;  %v790_v26 = vadd.f32 %v3294_v5, %v789_v2  ;;  %v701_v53 = vpop.f32.mrf.mxu0  ;;  %v3391_v23 = vpop.f32.mrf.mxu3 }
 0x167   :  { %v702_v34 = vadd.f32 %v3294_v5, %v701_v53  ;;  %v899_v49 = vpop.f32.mrf.mxu1  ;;  %v2451_v29 = vpop.eup %2450  ;;  %2454 = vpow2.f32 %v1210_v38 }
 0x168   :  { %v1404_v31 = vsel %vm1039_vm13, %v890_v51, %v2000_v22  ;;  %v3397_v43 = vadd.f32 %v3339_v0, %v790_v26  ;;  %v2035_v42 = vadd.f32 -1.0, %v2451_v29 }
 0x169   :  { %v2192_v16 = vpack.c.bf16 %v1404_v31, %v1403_v33  ;;  %v895_v36 = vadd.f32 %v894_v48, %v702_v34 }
 0x16a   :  { %v1149_v37 = vmin.f32 %v3397_v43, 0.0  ;;  %v1439_v24 = vsel %vm1074_vm14, %v3371_v46, %v2035_v42  ;;  %vm1076_vm0 = vcmp.gt.f32.partialorder %v3397_v43, 0.0 }
 0x16b   :  { %2324 = vst [vmem:[%s3566_s3 + $0x58] sm:$0xff] %v2192_v16   ;;  %v1114_v10 = vmin.f32 %v895_v36, 0.0  ;;  %vm1041_vm2 = vcmp.gt.f32.partialorder %v895_v36, 0.0 }
 0x16c   :  { %v2453_v32 = vpop.eup %2452  ;;  %v1282_v0 = vmul.f32 1.442695, %v1149_v37 }
 0x16d   :  { %v2036_v41 = vadd.f32 -1.0, %v2453_v32  ;;  %v1212_v39 = vmul.f32 1.442695, %v1114_v10  ;;  %v791_v62 = vpop.f32.mrf.mxu2  ;;  %v2455_v6 = vpop.eup %2454 }
 0x16e   :  { %v792_v40 = vadd.f32 %v3294_v5, %v791_v62  ;;  %v704_v47 = vpop.f32.mrf.mxu0  ;;  %v3405_v54 = vpop.f32.mrf.mxu3  ;;  %v2001_v46 = vadd.f32 -1.0, %v2455_v6 }
 0x16f   :  { %v1440_v35 = vsel %vm1075_vm15, %v980_v13, %v2036_v41  ;;  %2456 = vpow2.f32 %v1212_v39  ;;  %v705_v61 = vadd.f32 %v3294_v5, %v704_v47  ;;  %v902_v48 = vpop.f32.mrf.mxu1 }
 0x170   :  { %v2282_v52 = vpack.c.bf16 %v1440_v35, %v1439_v24  ;;  %v985_v56 = vadd.f32 %v3353_v28, %v792_v40  ;;  %2458 = vpow2.f32 %v1282_v0  ;;  %v1405_v7 = vsel %vm1040_vm1, %v3384_v18, %v2001_v46 }
 0x171   :  { %v3410_v50 = vadd.f32 %v897_v4, %v705_v61 }
 0x172   :  { %2342 = vst [vmem:[%s3566_s3 + $0xe8] sm:$0xff] %v2282_v52   ;;  %v1150_v51 = vmin.f32 %v985_v56, 0.0  ;;  %vm1077_vm3 = vcmp.gt.f32.partialorder %v985_v56, 0.0 }
 0x173   :  { %v1115_v58 = vmin.f32 %v3410_v50, 0.0  ;;  %vm1042_vm4 = vcmp.gt.f32.partialorder %v3410_v50, 0.0 }
 0x174   :  { %v1284_v17 = vmul.f32 1.442695, %v1150_v51 }
 0x175   :  { %v2457_v44 = vpop.eup %2456  ;;  %v794_v63 = vpop.f32.mrf.mxu2  ;;  %v1214_v27 = vmul.f32 1.442695, %v1115_v58 }
 0x176   :  { %v2002_v57 = vadd.f32 -1.0, %v2457_v44  ;;  %2460 = vpow2.f32 %v1284_v17  ;;  %v795_v1 = vadd.f32 %v3294_v5, %v794_v63  ;;  %v706_v28 = vpop.f32.mrf.mxu0  ;;  %v3417_v9 = vpop.f32.mrf.mxu3 }
 0x177   :  { %v707_v60 = vadd.f32 %v3294_v5, %v706_v28  ;;  %v904_v3 = vpop.f32.mrf.mxu1  ;;  %v2459_v59 = vpop.eup %2458  ;;  %2462 = vpow2.f32 %v1214_v27 }
 0x178   :  { %v1406_v11 = vsel %vm1041_vm2, %v895_v36, %v2002_v57  ;;  %v3423_v4 = vadd.f32 %v3365_v45, %v795_v1  ;;  %v2037_v19 = vadd.f32 -1.0, %v2459_v59 }
 0x179   :  { %v2197_v30 = vpack.c.bf16 %v1406_v11, %v1405_v7  ;;  %v900_v13 = vadd.f32 %v899_v49, %v707_v60 }
 0x17a   :  { %v1151_v15 = vmin.f32 %v3423_v4, 0.0  ;;  %v1441_v53 = vsel %vm1076_vm0, %v3397_v43, %v2037_v19  ;;  %vm1078_vm6 = vcmp.gt.f32.partialorder %v3423_v4, 0.0 }
 0x17b   :  { %2325 = vst [vmem:[%s3566_s3 + $0x60] sm:$0xff] %v2197_v30   ;;  %v1116_v55 = vmin.f32 %v900_v13, 0.0  ;;  %vm1043_vm5 = vcmp.gt.f32.partialorder %v900_v13, 0.0 }
 0x17c   :  { %v2461_v12 = vpop.eup %2460  ;;  %v1286_v45 = vmul.f32 1.442695, %v1151_v15 }
 0x17d   :  { %v2038_v20 = vadd.f32 -1.0, %v2461_v12  ;;  %v1216_v21 = vmul.f32 1.442695, %v1116_v55  ;;  %v796_v2 = vpop.f32.mrf.mxu2  ;;  %v2463_v31 = vpop.eup %2462 }
 0x17e   :  { %v797_v18 = vadd.f32 %v3294_v5, %v796_v2  ;;  %v709_v22 = vpop.f32.mrf.mxu0  ;;  %v3431_v26 = vpop.f32.mrf.mxu3  ;;  %v2003_v43 = vadd.f32 -1.0, %v2463_v31 }
 0x17f   :  { %v1442_v38 = vsel %vm1077_vm3, %v985_v56, %v2038_v20  ;;  %2464 = vpow2.f32 %v1216_v21  ;;  %v710_v34 = vadd.f32 %v3294_v5, %v709_v22  ;;  %v907_v49 = vpop.f32.mrf.mxu1 }
 0x180   :  { %v2287_v29 = vpack.c.bf16 %v1442_v38, %v1441_v53  ;;  %v990_v33 = vadd.f32 %v3379_v14, %v797_v18  ;;  %2466 = vpow2.f32 %v1286_v45  ;;  %v1407_v35 = vsel %vm1042_vm4, %v3410_v50, %v2003_v43 }
 0x181   :  { %v3436_v16 = vadd.f32 %v902_v48, %v710_v34 }
 0x182   :  { %2343 = vst [vmem:[%s3566_s3 + $0xf0] sm:$0xff] %v2287_v29   ;;  %v1152_v36 = vmin.f32 %v990_v33, 0.0  ;;  %vm1079_vm7 = vcmp.gt.f32.partialorder %v990_v33, 0.0 }
 0x183   :  { %v1117_v37 = vmin.f32 %v3436_v16, 0.0  ;;  %vm1044_vm8 = vcmp.gt.f32.partialorder %v3436_v16, 0.0 }
 0x184   :  { %v1288_v42 = vmul.f32 1.442695, %v1152_v36 }
 0x185   :  { %v2465_v10 = vpop.eup %2464  ;;  %v799_v32 = vpop.f32.mrf.mxu2  ;;  %v1218_v0 = vmul.f32 1.442695, %v1117_v37 }
 0x186   :  { %v2004_v41 = vadd.f32 -1.0, %v2465_v10  ;;  %2468 = vpow2.f32 %v1288_v42  ;;  %v800_v39 = vadd.f32 %v3294_v5, %v799_v32  ;;  %v711_v14 = vpop.f32.mrf.mxu0  ;;  %v3443_v62 = vpop.f32.mrf.mxu3 }
 0x187   :  { %v712_v40 = vadd.f32 %v3294_v5, %v711_v14  ;;  %v909_v47 = vpop.f32.mrf.mxu1  ;;  %v2467_v24 = vpop.eup %2466  ;;  %2470 = vpow2.f32 %v1218_v0 }
 0x188   :  { %v1408_v61 = vsel %vm1043_vm5, %v900_v13, %v2004_v41  ;;  %v3449_v48 = vadd.f32 %v3391_v23, %v800_v39  ;;  %v2039_v51 = vadd.f32 -1.0, %v2467_v24 }
 0x189   :  { %v2202_v52 = vpack.c.bf16 %v1408_v61, %v1407_v35  ;;  %v905_v56 = vadd.f32 %v904_v3, %v712_v40 }
 0x18a   :  { %v1153_v6 = vmin.f32 %v3449_v48, 0.0  ;;  %v1443_v28 = vsel %vm1078_vm6, %v3423_v4, %v2039_v51  ;;  %vm1080_vm10 = vcmp.gt.f32.partialorder %v3449_v48, 0.0 }
 0x18b   :  { %2326 = vst [vmem:[%s3566_s3 + $0x68] sm:$0xff] %v2202_v52   ;;  %v1118_v58 = vmin.f32 %v905_v56, 0.0  ;;  %vm1045_vm9 = vcmp.gt.f32.partialorder %v905_v56, 0.0 }
 0x18c   :  { %v2469_v46 = vpop.eup %2468  ;;  %v1290_v23 = vmul.f32 1.442695, %v1153_v6 }
 0x18d   :  { %v2040_v17 = vadd.f32 -1.0, %v2469_v46  ;;  %v1220_v44 = vmul.f32 1.442695, %v1118_v58  ;;  %v801_v63 = vpop.f32.mrf.mxu2  ;;  %v2471_v11 = vpop.eup %2470 }
 0x18e   :  { %v802_v50 = vadd.f32 %v3294_v5, %v801_v63  ;;  %v714_v57 = vpop.f32.mrf.mxu0  ;;  %v3457_v1 = vpop.f32.mrf.mxu3  ;;  %v2005_v4 = vadd.f32 -1.0, %v2471_v11 }
 0x18f   :  { %v1444_v27 = vsel %vm1079_vm7, %v990_v33, %v2040_v17  ;;  %2472 = vpow2.f32 %v1220_v44  ;;  %v715_v60 = vadd.f32 %v3294_v5, %v714_v57  ;;  %v912_v3 = vpop.f32.mrf.mxu1 }
 0x190   :  { %v2292_v59 = vpack.c.bf16 %v1444_v27, %v1443_v28  ;;  %v995_v7 = vadd.f32 %v3405_v54, %v802_v50  ;;  %2474 = vpow2.f32 %v1290_v23  ;;  %v1409_v38 = vsel %vm1044_vm8, %v3436_v16, %v2005_v4 }
 0x191   :  { %v3462_v30 = vadd.f32 %v907_v49, %v715_v60 }
 0x192   :  { %2344 = vst [vmem:[%s3566_s3 + $0xf8] sm:$0xff] %v2292_v59   ;;  %v1154_v13 = vmin.f32 %v995_v7, 0.0  ;;  %vm1081_vm11 = vcmp.gt.f32.partialorder %v995_v7, 0.0 }
 0x193   :  { %v1119_v15 = vmin.f32 %v3462_v30, 0.0  ;;  %vm1046_vm12 = vcmp.gt.f32.partialorder %v3462_v30, 0.0 }
 0x194   :  { %v1292_v19 = vmul.f32 1.442695, %v1154_v13 }
 0x195   :  { %v2473_v55 = vpop.eup %2472  ;;  %v804_v12 = vpop.f32.mrf.mxu2  ;;  %v1222_v45 = vmul.f32 1.442695, %v1119_v15 }
 0x196   :  { %v2006_v20 = vadd.f32 -1.0, %v2473_v55  ;;  %2476 = vpow2.f32 %v1292_v19  ;;  %v805_v21 = vadd.f32 %v3294_v5, %v804_v12  ;;  %v716_v54 = vpop.f32.mrf.mxu0  ;;  %v3469_v2 = vpop.f32.mrf.mxu3  ;;  %v730_v19 = vadd.f32 %v3294_v5, %v2823_v8 }
 0x197   :  { %v717_v18 = vadd.f32 %v3294_v5, %v716_v54  ;;  %v914_v22 = vpop.f32.mrf.mxu1  ;;  %v2475_v53 = vpop.eup %2474  ;;  %2478 = vpow2.f32 %v1222_v45 }
 0x198   :  { %v1410_v34 = vsel %vm1045_vm9, %v905_v56, %v2006_v20  ;;  %v3475_v49 = vadd.f32 %v3417_v9, %v805_v21  ;;  %v2041_v36 = vadd.f32 -1.0, %v2475_v53 }
 0x199   :  { %v2207_v29 = vpack.c.bf16 %v1410_v34, %v1409_v38  ;;  %v910_v33 = vadd.f32 %v909_v47, %v717_v18 }
 0x19a   :  { %v1155_v31 = vmin.f32 %v3475_v49, 0.0  ;;  %v1445_v14 = vsel %vm1080_vm10, %v3449_v48, %v2041_v36  ;;  %vm1082_vm14 = vcmp.gt.f32.partialorder %v3475_v49, 0.0 }
 0x19b   :  { %2327 = vst [vmem:[%s3566_s3 + $0x70] sm:$0xff] %v2207_v29   ;;  %v1120_v37 = vmin.f32 %v910_v33, 0.0  ;;  %vm1047_vm13 = vcmp.gt.f32.partialorder %v910_v33, 0.0 }
 0x19c   :  { %v2477_v43 = vpop.eup %2476  ;;  %v1294_v9 = vmul.f32 1.442695, %v1155_v31 }
 0x19d   :  { %v2042_v42 = vadd.f32 -1.0, %v2477_v43  ;;  %v1224_v10 = vmul.f32 1.442695, %v1120_v37  ;;  %v806_v32 = vpop.f32.mrf.mxu2  ;;  %v2479_v61 = vpop.eup %2478 }
 0x19e   :  { %v807_v16 = vadd.f32 %v3294_v5, %v806_v32  ;;  %v719_v41 = vpop.f32.mrf.mxu0  ;;  %v3483_v39 = vpop.f32.mrf.mxu3  ;;  %v2007_v48 = vadd.f32 -1.0, %v2479_v61 }
 0x19f   :  { %v1446_v0 = vsel %vm1081_vm11, %v995_v7, %v2042_v42  ;;  %2480 = vpow2.f32 %v1224_v10  ;;  %v720_v40 = vadd.f32 %v3294_v5, %v719_v41  ;;  %v917_v47 = vpop.f32.mrf.mxu1 }
 0x1a0   :  { %v2297_v24 = vpack.c.bf16 %v1446_v0, %v1445_v14  ;;  %v1000_v35 = vadd.f32 %v3431_v26, %v807_v16  ;;  %2482 = vpow2.f32 %v1294_v9  ;;  %v1411_v27 = vsel %vm1046_vm12, %v3462_v30, %v2007_v48 }
 0x1a1   :  { %v3488_v52 = vadd.f32 %v912_v3, %v720_v40 }
 0x1a2   :  { %2345 = vst [vmem:[%s3566_s3 + $0x100] sm:$0xff] %v2297_v24   ;;  %v1156_v56 = vmin.f32 %v1000_v35, 0.0  ;;  %vm1083_vm15 = vcmp.gt.f32.partialorder %v1000_v35, 0.0 }
 0x1a3   :  { %v1121_v6 = vmin.f32 %v3488_v52, 0.0  ;;  %vm1048_vm1 = vcmp.gt.f32.partialorder %v3488_v52, 0.0 }
 0x1a4   :  { %v1296_v51 = vmul.f32 1.442695, %v1156_v56 }
 0x1a5   :  { %v2481_v58 = vpop.eup %2480  ;;  %v809_v46 = vpop.f32.mrf.mxu2  ;;  %v1226_v44 = vmul.f32 1.442695, %v1121_v6 }
 0x1a6   :  { %v2008_v17 = vadd.f32 -1.0, %v2481_v58  ;;  %2484 = vpow2.f32 %v1296_v51  ;;  %v810_v26 = vadd.f32 %v3294_v5, %v809_v46  ;;  %v721_v63 = vpop.f32.mrf.mxu0  ;;  %v3495_v23 = vpop.f32.mrf.mxu3 }
 0x1a7   :  { %v722_v50 = vadd.f32 %v3294_v5, %v721_v63  ;;  %v919_v57 = vpop.f32.mrf.mxu1  ;;  %v2483_v28 = vpop.eup %2482  ;;  %2486 = vpow2.f32 %v1226_v44 }
 0x1a8   :  { %v1412_v60 = vsel %vm1047_vm13, %v910_v33, %v2008_v17  ;;  %v3501_v3 = vadd.f32 %v3443_v62, %v810_v26  ;;  %v2043_v13 = vadd.f32 -1.0, %v2483_v28 }
 0x1a9   :  { %v2212_v59 = vpack.c.bf16 %v1412_v60, %v1411_v27  ;;  %v915_v7 = vadd.f32 %v914_v22, %v722_v50 }
 0x1aa   :  { %v1157_v11 = vmin.f32 %v3501_v3, 0.0  ;;  %v1447_v45 = vsel %vm1082_vm14, %v3475_v49, %v2043_v13  ;;  %vm1084_vm0 = vcmp.gt.f32.partialorder %v3501_v3, 0.0 }
 0x1ab   :  { %2328 = vst [vmem:[%s3566_s3 + $0x78] sm:$0xff] %v2212_v59   ;;  %v1122_v15 = vmin.f32 %v915_v7, 0.0  ;;  %vm1049_vm2 = vcmp.gt.f32.partialorder %v915_v7, 0.0 }
 0x1ac   :  { %v2485_v4 = vpop.eup %2484  ;;  %v1298_v62 = vmul.f32 1.442695, %v1157_v11 }
 0x1ad   :  { %v2044_v30 = vadd.f32 -1.0, %v2485_v4  ;;  %v1228_v55 = vmul.f32 1.442695, %v1122_v15  ;;  %v811_v12 = vpop.f32.mrf.mxu2  ;;  %v2487_v38 = vpop.eup %2486 }
 0x1ae   :  { %v812_v20 = vadd.f32 %v3294_v5, %v811_v12  ;;  %v724_v21 = vpop.f32.mrf.mxu0  ;;  %v1014_v54 = vpop.f32.mrf.mxu3  ;;  %v2009_v49 = vadd.f32 -1.0, %v2487_v38 }
 0x1af   :  { %v1448_v18 = vsel %vm1083_vm15, %v1000_v35, %v2044_v30  ;;  %2488 = vpow2.f32 %v1228_v55  ;;  %v725_v22 = vadd.f32 %v3294_v5, %v724_v21  ;;  %v922_v53 = vpop.f32.mrf.mxu1 }
 0x1b0   :  { %v2302_v8 = vpack.c.bf16 %v1448_v18, %v1447_v45  ;;  %v1005_v34 = vadd.f32 %v3457_v1, %v812_v20  ;;  %v3514_v29 = vadd.f32 %v922_v53, %v730_v19  ;;  %2490 = vpow2.f32 %v1298_v62 }
 0x1b1   :  { %v3516_v33 = vadd.f32 %v917_v47, %v725_v22  ;;  %v732_v1 = vadd.f32 %v3294_v5, %v2852_v25  ;;  %v1413_v41 = vsel %vm1048_vm1, %v3488_v52, %v2009_v49 }
 0x1b2   :  { %2346 = vst [vmem:[%s3566_s3 + $0x108] sm:$0xff] %v2302_v8   ;;  %v1158_v31 = vmin.f32 %v1005_v34, 0.0  ;;  %v1125_v43 = vmin.f32 %v3514_v29, 0.0  ;;  %vm1085_vm3 = vcmp.gt.f32.partialorder %v1005_v34, 0.0  ;;  %vm1052_vm5 = vcmp.gt.f32.partialorder %v3514_v29, 0.0 }
 0x1b3   :  { %v1123_v36 = vmin.f32 %v3516_v33, 0.0  ;;  %vm1050_vm4 = vcmp.gt.f32.partialorder %v3516_v33, 0.0 }
 0x1b4   :  { %v1300_v37 = vmul.f32 1.442695, %v1158_v31  ;;  %v1234_v35 = vmul.f32 1.442695, %v1125_v43 }
 0x1b5   :  { %v2489_v42 = vpop.eup %2488  ;;  %v814_v10 = vpop.f32.mrf.mxu2  ;;  %v1230_v14 = vmul.f32 1.442695, %v1123_v36 }
 0x1b6   :  { %v2010_v32 = vadd.f32 -1.0, %v2489_v42  ;;  %2492 = vpow2.f32 %v1300_v37  ;;  %v815_v9 = vadd.f32 %v3294_v5, %v814_v10  ;;  %v726_v16 = vpop.f32.mrf.mxu0  ;;  %v2491_v47 = vpop.eup %2490 }
 0x1b7   :  { %v727_v0 = vadd.f32 %v3294_v5, %v726_v16  ;;  %v924_v40 = vpop.f32.mrf.mxu1  ;;  %v2045_v58 = vadd.f32 -1.0, %v2491_v47  ;;  %2494 = vpow2.f32 %v1230_v14 }
 0x1b8   :  { %v1414_v24 = vsel %vm1049_vm2, %v915_v7, %v2010_v32  ;;  %v3530_v25 = vadd.f32 %v3469_v2, %v815_v9  ;;  %v925_v61 = vadd.f32 %v924_v40, %v732_v1  ;;  %2496 = vpow2.f32 %v1234_v35 }
 0x1b9   :  { %v2217_v56 = vpack.c.bf16 %v1414_v24, %v1413_v41  ;;  %v920_v6 = vadd.f32 %v919_v57, %v727_v0  ;;  %v1449_v57 = vsel %vm1084_vm0, %v3501_v3, %v2045_v58 }
 0x1ba   :  { %v1159_v48 = vmin.f32 %v3530_v25, 0.0  ;;  %v1126_v51 = vmin.f32 %v925_v61, 0.0  ;;  %vm1053_vm7 = vcmp.gt.f32.partialorder %v925_v61, 0.0  ;;  %vm1086_vm8 = vcmp.gt.f32.partialorder %v3530_v25, 0.0 }
 0x1bb   :  { %2329 = vst [vmem:[%s3566_s3 + $0x80] sm:$0xff] %v2217_v56   ;;  %v1124_v52 = vmin.f32 %v920_v6, 0.0  ;;  %vm1051_vm6 = vcmp.gt.f32.partialorder %v920_v6, 0.0 }
 0x1bc   :  { %v2493_v46 = vpop.eup %2492  ;;  %v1236_v17 = vmul.f32 1.442695, %v1126_v51  ;;  %v1302_v63 = vmul.f32 1.442695, %v1159_v48 }
 0x1bd   :  { %v2046_v44 = vadd.f32 -1.0, %v2493_v46  ;;  %v1232_v26 = vmul.f32 1.442695, %v1124_v52  ;;  %v816_v2 = vpop.f32.mrf.mxu2  ;;  %v2495_v59 = vpop.eup %2494 }
 0x1be   :  { %v817_v50 = vadd.f32 %v3294_v5, %v816_v2  ;;  %v2497_v7 = vpop.eup %2496  ;;  %v2011_v13 = vadd.f32 -1.0, %v2495_v59 }
 0x1bf   :  { %v1450_v28 = vsel %vm1085_vm3, %v1005_v34, %v2046_v44  ;;  %2498 = vpow2.f32 %v1232_v26  ;;  %v2013_v19 = vadd.f32 -1.0, %v2497_v7 }
 0x1c0   :  { %v2307_v27 = vpack.c.bf16 %v1450_v28, %v1449_v57  ;;  %2500 = vpow2.f32 %v1236_v17  ;;  %v1010_v60 = vadd.f32 %v3483_v39, %v817_v50  ;;  %v1415_v20 = vsel %vm1050_vm4, %v3516_v33, %v2011_v13 }
 0x1c1   :  { %2502 = vpow2.f32 %v1302_v63  ;;  %v1417_v45 = vsel %vm1052_vm5, %v3514_v29, %v2013_v19 }
 0x1c2   :  { %2347 = vst [vmem:[%s3566_s3 + $0x110] sm:$0xff] %v2307_v27   ;;  %v1160_v11 = vmin.f32 %v1010_v60, 0.0  ;;  %vm1087_vm9 = vcmp.gt.f32.partialorder %v1010_v60, 0.0 }
 0x1c4   :  { %v1304_v15 = vmul.f32 1.442695, %v1160_v11 }
 0x1c5   :  { %v2499_v4 = vpop.eup %2498  ;;  %v819_v30 = vpop.f32.mrf.mxu2 }
 0x1c6   :  { %v2501_v3 = vpop.eup %2500  ;;  %v2012_v55 = vadd.f32 -1.0, %v2499_v4  ;;  %2504 = vpow2.f32 %v1304_v15  ;;  %v820_v12 = vadd.f32 %v3294_v5, %v819_v30 }
 0x1c7   :  { %v2014_v39 = vadd.f32 -1.0, %v2501_v3  ;;  %v2503_v62 = vpop.eup %2502 }
 0x1c8   :  { %v1416_v21 = vsel %vm1051_vm6, %v920_v6, %v2012_v55  ;;  %v1013_v54 = vadd.f32 %v3495_v23, %v820_v12  ;;  %v2047_v5 = vadd.f32 -1.0, %v2503_v62 }
 0x1c9   :  { %v2222_v18 = vpack.c.bf16 %v1416_v21, %v1415_v20  ;;  %v1418_v22 = vsel %vm1053_vm7, %v925_v61, %v2014_v39 }
 0x1ca   :  { %v2227_v53 = vpack.c.bf16 %v1418_v22, %v1417_v45  ;;  %v1161_v38 = vmin.f32 %v1013_v54, 0.0  ;;  %v1451_v23 = vsel %vm1086_vm8, %v3530_v25, %v2047_v5  ;;  %vm1088_vm10 = vcmp.gt.f32.partialorder %v1013_v54, 0.0 }
 0x1cb   :  { %2330 = vst [vmem:[%s3566_s3 + $0x88] sm:$0xff] %v2222_v18  }
 0x1cc   :  { %v2505_v8 = vpop.eup %2504  ;;  %2331 = vst [vmem:[%s3566_s3 + $0x90] sm:$0xff] %v2227_v53   ;;  %v1306_v34 = vmul.f32 1.442695, %v1161_v38 }
 0x1cd   :  { %v2048_v33 = vadd.f32 -1.0, %v2505_v8  ;;  %v821_v31 = vpop.f32.mrf.mxu2 }
 0x1ce   :  { %2506 = vpow2.f32 %v1306_v34 }
 0x1cf   :  { %v1452_v29 = vsel %vm1087_vm9, %v1010_v60, %v2048_v33 }
 0x1d0   :  { %v2312_v49 = vpack.c.bf16 %v1452_v29, %v1451_v23 }
 0x1d2   :  { %2348 = vst [vmem:[%s3566_s3 + $0x118] sm:$0xff] %v2312_v49  }
 0x1d4   :  { %v2507_v36 = vpop.eup %2506 }
 0x1d5   :  { %v2049_v37 = vadd.f32 -1.0, %v2507_v36 }
 0x1d7   :  { %v1453_v43 = vsel %vm1088_vm10, %v1013_v54, %v2049_v37 }
 0x1d8   :  { %v1526_v42 = vpack.c.bf16 %v1453_v43, %v1453_v43 }
 0x1da   :  { %1599 = vst [vmem:[%s3566_s3 + $0x120] sm:$0x1] %v1526_v42 }

// kernel: screen_encoder_forward.4
= control target key start
LH: loop header
LB: loop body
LE: loop exit
PB: predicated region body
PF: predicated region fallthrough
CT: control target
= control target key end

     0   :  { %s4833_s1 = inlined_call_operand.vmem [shape: bf16[2048,128], index: 1, kind: input, shape index: {}]   ;;  %s4834_s2 = inlined_call_operand.vmem [shape: f32[1,128], index: 2, kind: input, shape index: {}]   ;;  %s4835_s0 = inlined_call_operand.vmem [shape: bf16[98,2048], index: 0, kind: input, shape index: {}]   ;;  %s4836_s3 = inlined_call_operand.vmem [shape: bf16[98,128], index: 3, kind: output, shape index: {}]  }
   0x1   :  { %v3490_v0 = vld [vmem:[%s4833_s1 + $0x38] sm:$0xff]  ;;  %v3489_v4 = vld [vmem:[%s4833_s1 + $0x30] sm:$0xff]  ;;  %v3488_v8 = vld [vmem:[%s4833_s1 + $0x28] sm:$0xff] }
   0x2   :  { %v3498_v1 = vld [vmem:[%s4833_s1 + $0x78] sm:$0xff]  ;;  %1682 = vmatpush.bf16.msra.mxu0 %v3490_v0  ;;  %v3497_v5 = vld [vmem:[%s4833_s1 + $0x70] sm:$0xff]  ;;  %v3496_v9 = vld [vmem:[%s4833_s1 + $0x68] sm:$0xff] }
   0x3   :  { %v3506_v2 = vld [vmem:[%s4833_s1 + $0xb8] sm:$0xff]  ;;  %1725 = vmatpush.bf16.msra.mxu1 %v3498_v1  ;;  %v3505_v6 = vld [vmem:[%s4833_s1 + $0xb0] sm:$0xff]  ;;  %v3504_v10 = vld [vmem:[%s4833_s1 + $0xa8] sm:$0xff] }
   0x4   :  { %v3514_v3 = vld [vmem:[%s4833_s1 + $0xf8] sm:$0xff]  ;;  %1768 = vmatpush.bf16.msra.mxu2 %v3506_v2  ;;  %v3513_v7 = vld [vmem:[%s4833_s1 + $0xf0] sm:$0xff]  ;;  %v3512_v11 = vld [vmem:[%s4833_s1 + $0xe8] sm:$0xff] }
   0x5   :  { %1811 = vmatpush.bf16.msra.mxu3 %v3514_v3  ;;  %v3487_v12 = vld [vmem:[%s4833_s1 + $0x20] sm:$0xff]  ;;  %v3486_v16 = vld [vmem:[%s4833_s1 + $0x18] sm:$0xff]  ;;  %v3485_v20 = vld [vmem:[%s4833_s1 + $0x10] sm:$0xff] }
   0x6   :  { %1683 = vmatpush.bf16.msra.mxu0 %v3489_v4  ;;  %v3495_v13 = vld [vmem:[%s4833_s1 + $0x60] sm:$0xff]  ;;  %v3494_v17 = vld [vmem:[%s4833_s1 + $0x58] sm:$0xff]  ;;  %v3493_v21 = vld [vmem:[%s4833_s1 + $0x50] sm:$0xff] }
   0x7   :  { %1726 = vmatpush.bf16.msra.mxu1 %v3497_v5  ;;  %v3503_v14 = vld [vmem:[%s4833_s1 + $0xa0] sm:$0xff]  ;;  %v3502_v18 = vld [vmem:[%s4833_s1 + $0x98] sm:$0xff]  ;;  %v3501_v22 = vld [vmem:[%s4833_s1 + $0x90] sm:$0xff] }
   0x8   :  { %1769 = vmatpush.bf16.msra.mxu2 %v3505_v6  ;;  %v3511_v15 = vld [vmem:[%s4833_s1 + $0xe0] sm:$0xff]  ;;  %v3510_v19 = vld [vmem:[%s4833_s1 + $0xd8] sm:$0xff]  ;;  %v3509_v23 = vld [vmem:[%s4833_s1 + $0xd0] sm:$0xff] }
   0x9   :  { %1812 = vmatpush.bf16.msra.mxu3 %v3513_v7  ;;  %v3484_v24 = vld [vmem:[%s4833_s1 + $0x8] sm:$0xff]  ;;  %v3483_v28 = vld [vmem:[%s4833_s1] sm:$0xff]  ;;  %v3538_v40 = vld [vmem:[%s4833_s1 + $0x1b8] sm:$0xff] }
   0xa   :  { %1684 = vmatpush.bf16.msra.mxu0 %v3488_v8  ;;  %v3492_v25 = vld [vmem:[%s4833_s1 + $0x48] sm:$0xff]  ;;  %v3491_v29 = vld [vmem:[%s4833_s1 + $0x40] sm:$0xff]  ;;  %v3522_v41 = vld [vmem:[%s4833_s1 + $0x138] sm:$0xff] }
   0xb   :  { %1727 = vmatpush.bf16.msra.mxu1 %v3496_v9  ;;  %v3500_v26 = vld [vmem:[%s4833_s1 + $0x88] sm:$0xff]  ;;  %v3499_v30 = vld [vmem:[%s4833_s1 + $0x80] sm:$0xff]  ;;  %v3546_v46 = vld [vmem:[%s4833_s1 + $0x1f8] sm:$0xff] }
   0xc   :  { %1770 = vmatpush.bf16.msra.mxu2 %v3504_v10  ;;  %v3508_v27 = vld [vmem:[%s4833_s1 + $0xc8] sm:$0xff]  ;;  %v3507_v31 = vld [vmem:[%s4833_s1 + $0xc0] sm:$0xff]  ;;  %v3530_v47 = vld [vmem:[%s4833_s1 + $0x178] sm:$0xff] }
   0xd   :  { %1813 = vmatpush.bf16.msra.mxu3 %v3512_v11  ;;  %v2480_v32 = vld [vmem:[%s4835_s0] sm:$0xf]  ;;  %v3387_v34 = vld [vmem:[%s4835_s0 + $0x4] sm:$0xf]  ;;  %v2488_v36 = vld [vmem:[%s4835_s0 + $0x8] sm:$0xf] }
   0xe   :  { %1685 = vmatpush.bf16.msra.mxu0 %v3487_v12  ;;  %v3395_v33 = vld [vmem:[%s4835_s0 + $0x3c] sm:$0xf0]  ;;  %v2482_v35 = vld [vmem:[%s4835_s0 + $0x40] sm:$0xf0]  ;;  %v3396_v37 = vld [vmem:[%s4835_s0 + $0x44] sm:$0xf0] }
   0xf   :  { %1728 = vmatpush.bf16.msra.mxu1 %v3495_v13  ;;  %v3388_v38 = vld [vmem:[%s4835_s0 + $0xc] sm:$0xf]  ;;  %v2481_v42 = vor.u32 %v3395_v33, %v2480_v32  ;;  %v2485_v43 = vor.u32 %v3387_v34, %v2482_v35  ;;  %v2489_v44 = vor.u32 %v3396_v37, %v2488_v36  ;;  %v3537_v48 = vld [vmem:[%s4833_s1 + $0x1b0] sm:$0xff]  ;;  %v2544_v56 = vld [vmem:[%s4835_s0 + $0x80] sm:$0xf] }
  0x10   :  { %1771 = vmatpush.bf16.msra.mxu2 %v3503_v14  ;;  %v2490_v39 = vld [vmem:[%s4835_s0 + $0x48] sm:$0xf0]  ;;  %v3521_v49 = vld [vmem:[%s4833_s1 + $0x130] sm:$0xff]  ;;  %v3535_v57 = vld [vmem:[%s4833_s1 + $0x1a0] sm:$0xff] }
  0x11   :  { %1814 = vmatpush.bf16.msra.mxu3 %v3511_v15  ;;  %v2493_v45 = vor.u32 %v3388_v38, %v2490_v39  ;;  %v3545_v50 = vld [vmem:[%s4833_s1 + $0x1f0] sm:$0xff]  ;;  %v3536_v52 = vld [vmem:[%s4833_s1 + $0x1a8] sm:$0xff]  ;;  %v3519_v58 = vld [vmem:[%s4833_s1 + $0x120] sm:$0xff] }
  0x12   :  { %1686 = vmatpush.bf16.msra.mxu0 %v3486_v16  ;;  %v3529_v51 = vld [vmem:[%s4833_s1 + $0x170] sm:$0xff]  ;;  %v3520_v53 = vld [vmem:[%s4833_s1 + $0x128] sm:$0xff]  ;;  %v3411_v59 = vld [vmem:[%s4835_s0 + $0xbc] sm:$0xf0] }
  0x13   :  { %1729 = vmatpush.bf16.msra.mxu1 %v3494_v17  ;;  %v3544_v54 = vld [vmem:[%s4833_s1 + $0x1e8] sm:$0xff]  ;;  %v3403_v60 = vld [vmem:[%s4835_s0 + $0x84] sm:$0xf]  ;;  %v2545_v4 = vor.u32 %v3411_v59, %v2544_v56  ;;  %v3534_v8 = vld [vmem:[%s4833_s1 + $0x198] sm:$0xff] }
  0x14   :  { %1772 = vmatpush.bf16.msra.mxu2 %v3502_v18  ;;  %v3528_v55 = vld [vmem:[%s4833_s1 + $0x168] sm:$0xff]  ;;  %v2546_v61 = vld [vmem:[%s4835_s0 + $0xc0] sm:$0xf0]  ;;  %v3518_v9 = vld [vmem:[%s4833_s1 + $0x118] sm:$0xff] }
  0x15   :  { %1815 = vmatpush.bf16.msra.mxu3 %v3510_v19  ;;  %v2552_v62 = vld [vmem:[%s4835_s0 + $0x88] sm:$0xf]  ;;  %v3404_v0 = vld [vmem:[%s4835_s0 + $0x8c] sm:$0xf]  ;;  %v3543_v2 = vld [vmem:[%s4833_s1 + $0x1e0] sm:$0xff]  ;;  %v2549_v5 = vor.u32 %v3403_v60, %v2546_v61 }
  0x16   :  { %1687 = vmatpush.bf16.msra.mxu0 %v3485_v20  ;;  %v3412_v63 = vld [vmem:[%s4835_s0 + $0xc4] sm:$0xf0]  ;;  %v2554_v1 = vld [vmem:[%s4835_s0 + $0xc8] sm:$0xf0]  ;;  %v3527_v3 = vld [vmem:[%s4833_s1 + $0x160] sm:$0xff] }
  0x17   :  { %1730 = vmatpush.bf16.msra.mxu1 %v3493_v21  ;;  %v2553_v6 = vor.u32 %v3412_v63, %v2552_v62  ;;  %v2557_v7 = vor.u32 %v3404_v0, %v2554_v1  ;;  %v3542_v10 = vld [vmem:[%s4833_s1 + $0x1d8] sm:$0xff]  ;;  %v2608_v12 = vld [vmem:[%s4835_s0 + $0x100] sm:$0xf]  ;;  %v3419_v14 = vld [vmem:[%s4835_s0 + $0x104] sm:$0xf] }
  0x18   :  { %1773 = vmatpush.bf16.msra.mxu2 %v3501_v22  ;;  %v3526_v11 = vld [vmem:[%s4833_s1 + $0x158] sm:$0xff]  ;;  %v3427_v13 = vld [vmem:[%s4835_s0 + $0x13c] sm:$0xf0]  ;;  %v2610_v15 = vld [vmem:[%s4835_s0 + $0x140] sm:$0xf0] }
  0x19   :  { %1816 = vmatpush.bf16.msra.mxu3 %v3509_v23  ;;  %v2616_v16 = vld [vmem:[%s4835_s0 + $0x108] sm:$0xf]  ;;  %v3420_v18 = vld [vmem:[%s4835_s0 + $0x10c] sm:$0xf]  ;;  %v2609_v20 = vor.u32 %v3427_v13, %v2608_v12  ;;  %v2613_v21 = vor.u32 %v3419_v14, %v2610_v15  ;;  %v3531_v56 = vld [vmem:[%s4833_s1 + $0x180] sm:$0xff] }
  0x1a   :  { %1688 = vmatpush.bf16.msra.mxu0 %v3484_v24  ;;  %v3428_v17 = vld [vmem:[%s4835_s0 + $0x144] sm:$0xf0]  ;;  %v2618_v19 = vld [vmem:[%s4835_s0 + $0x148] sm:$0xf0]  ;;  %v3533_v24 = vld [vmem:[%s4833_s1 + $0x190] sm:$0xff] }
  0x1b   :  { %1731 = vmatpush.bf16.msra.mxu1 %v3492_v25  ;;  %v2617_v22 = vor.u32 %v3428_v17, %v2616_v16  ;;  %v2621_v23 = vor.u32 %v3420_v18, %v2618_v19  ;;  %v3517_v25 = vld [vmem:[%s4833_s1 + $0x110] sm:$0xff]  ;;  %v2680_v32 = vld [vmem:[%s4835_s0 + $0x188] sm:$0xf]  ;;  %v3436_v34 = vld [vmem:[%s4835_s0 + $0x18c] sm:$0xf] }
  0x1c   :  { %1774 = vmatpush.bf16.msra.mxu2 %v3500_v26  ;;  %v3541_v26 = vld [vmem:[%s4833_s1 + $0x1d0] sm:$0xff]  ;;  %v3444_v33 = vld [vmem:[%s4835_s0 + $0x1c4] sm:$0xf0]  ;;  %v2682_v35 = vld [vmem:[%s4835_s0 + $0x1c8] sm:$0xf0] }
  0x1d   :  { %1817 = vmatpush.bf16.msra.mxu3 %v3508_v27  ;;  %v3525_v27 = vld [vmem:[%s4833_s1 + $0x150] sm:$0xff]  ;;  %v2681_v38 = vor.u32 %v3444_v33, %v2680_v32  ;;  %v2685_v39 = vor.u32 %v3436_v34, %v2682_v35  ;;  %v3523_v59 = vld [vmem:[%s4833_s1 + $0x140] sm:$0xff]  ;;  %v2808_v0 = vld [vmem:[%s4835_s0 + $0x288] sm:$0xf] }
  0x1e   :  { %1689 = vmatpush.bf16.msra.mxu0 %v3483_v28  ;;  %v2672_v28 = vld [vmem:[%s4835_s0 + $0x180] sm:$0xf]  ;;  %v3467_v62 = vld [vmem:[%s4835_s0 + $0x284] sm:$0xf]  ;;  %v3476_v1 = vld [vmem:[%s4835_s0 + $0x2c4] sm:$0xf0] }
  0x1f   :  { %1732 = vmatpush.bf16.msra.mxu1 %v3491_v29  ;;  %v3443_v29 = vld [vmem:[%s4835_s0 + $0x1bc] sm:$0xf0]  ;;  %v2802_v63 = vld [vmem:[%s4835_s0 + $0x2c0] sm:$0xf0]  ;;  %v111_v13 = vld [vmem:[%s4835_s0 + $0x308] sm:$0x11] }
  0x20   :  { %1775 = vmatpush.bf16.msra.mxu2 %v3499_v30  ;;  %v3435_v30 = vld [vmem:[%s4835_s0 + $0x184] sm:$0xf]  ;;  %v2673_v36 = vor.u32 %v3443_v29, %v2672_v28  ;;  %v2800_v60 = vld [vmem:[%s4835_s0 + $0x280] sm:$0xf]  ;;  %v676_v16 = vunpack.c.l.b16 %v111_v13  ;;  %v677_v17 = vunpack.c.h.b16 %v111_v13  ;;  %v3389_v28 = vld [vmem:[%s4835_s0 + $0x14] sm:$0xf] }
  0x21   :  { %1818 = vmatpush.bf16.msra.mxu3 %v3507_v31  ;;  %1690 = vmatmul.bf16.vlgmr.msra.gmra.mxu0 %v2481_v42  ;;  %v2674_v31 = vld [vmem:[%s4835_s0 + $0x1c0] sm:$0xf0]  ;;  %v3540_v42 = vld [vmem:[%s4833_s1 + $0x1c8] sm:$0xff]  ;;  %v3475_v61 = vld [vmem:[%s4835_s0 + $0x2bc] sm:$0xf0] }
  0x22   :  { %1854 = vmatpush.bf16.msrb.mxu0 %v3522_v41  ;;  %1733 = vmatmul.bf16.vlgmr.msra.gmra.mxu1 %v2485_v43  ;;  %v2677_v37 = vor.u32 %v3435_v30, %v2674_v31  ;;  %v3516_v41 = vld [vmem:[%s4833_s1 + $0x108] sm:$0xff]  ;;  %v110_v12 = vld [vmem:[%s4835_s0 + $0x300] sm:$0x11]  ;;  %v2498_v29 = vld [vmem:[%s4835_s0 + $0x50] sm:$0xf0] }
  0x23   :  { %1776 = vmatmul.bf16.vlgmr.msra.gmra.mxu2 %v2489_v44  ;;  %1897 = vmatpush.bf16.msrb.mxu1 %v3530_v47  ;;  %v3524_v43 = vld [vmem:[%s4833_s1 + $0x148] sm:$0xff]  ;;  %v2736_v44 = vld [vmem:[%s4835_s0 + $0x200] sm:$0xf]  ;;  %v2738_v47 = vld [vmem:[%s4835_s0 + $0x240] sm:$0xf0]  ;;  %v674_v14 = vunpack.c.l.b16 %v110_v12  ;;  %v675_v15 = vunpack.c.h.b16 %v110_v12  ;;  %v2501_v35 = vor.u32 %v3389_v28, %v2498_v29 }
  0x24   :  { %1940 = vmatpush.bf16.msrb.mxu2 %v3538_v40  ;;  %1819 = vmatmul.bf16.vlgmr.msra.gmra.mxu3 %v2493_v45  ;;  %v3532_v40 = vld [vmem:[%s4833_s1 + $0x188] sm:$0xff]  ;;  %v3459_v45 = vld [vmem:[%s4835_s0 + $0x23c] sm:$0xf0]  ;;  %v2504_v30 = vld [vmem:[%s4835_s0 + $0x18] sm:$0xf] }
  0x25   :  { %1983 = vmatpush.bf16.msrb.mxu3 %v3546_v46  ;;  %v3451_v46 = vld [vmem:[%s4835_s0 + $0x204] sm:$0xf]  ;;  %v786_v18 = vpack.c.b16 %v674_v14, %v674_v14  ;;  %v787_v19 = vpack.c.b16 %v675_v15, %v675_v15  ;;  %v3398_v31 = vld [vmem:[%s4835_s0 + $0x54] sm:$0xf0]  ;;  %v3390_v32 = vld [vmem:[%s4835_s0 + $0x1c] sm:$0xf] }
  0x26   :  { %1855 = vmatpush.bf16.msrb.mxu0 %v3521_v49  ;;  %v3460_v49 = vld [vmem:[%s4835_s0 + $0x244] sm:$0xf0]  ;;  %v2506_v33 = vld [vmem:[%s4835_s0 + $0x58] sm:$0xf0]  ;;  %v3421_v12 = vld [vmem:[%s4835_s0 + $0x114] sm:$0xf] }
  0x27   :  { %1898 = vmatpush.bf16.msrb.mxu1 %v3529_v51  ;;  %v2746_v51 = vld [vmem:[%s4835_s0 + $0x248] sm:$0xf0]  ;;  %v2626_v13 = vld [vmem:[%s4835_s0 + $0x150] sm:$0xf0]  ;;  %v2632_v14 = vld [vmem:[%s4835_s0 + $0x118] sm:$0xf] }
  0x28   :  { %1941 = vmatpush.bf16.msrb.mxu2 %v3537_v48  ;;  %v2744_v48 = vld [vmem:[%s4835_s0 + $0x208] sm:$0xf]  ;;  %v3430_v15 = vld [vmem:[%s4835_s0 + $0x154] sm:$0xf0] }
  0x29   :  { %1984 = vmatpush.bf16.msrb.mxu3 %v3545_v50  ;;  %v3452_v50 = vld [vmem:[%s4835_s0 + $0x20c] sm:$0xf]  ;;  %v3558_v29 = vld [vmem:[%s4833_s1 + $0x258] sm:$0xff] }
  0x2a   :  { %1856 = vmatpush.bf16.msrb.mxu0 %v3520_v53  ;;  %v2741_v53 = vor.u32 %v3451_v46, %v2738_v47  ;;  %v3405_v46 = vld [vmem:[%s4835_s0 + $0x94] sm:$0xf] }
  0x2b   :  { %1899 = vmatpush.bf16.msrb.mxu1 %v3528_v55  ;;  %v2749_v55 = vor.u32 %v3452_v50, %v2746_v51  ;;  %v2562_v47 = vld [vmem:[%s4835_s0 + $0xd0] sm:$0xf0]  ;;  %v3406_v50 = vld [vmem:[%s4835_s0 + $0x9c] sm:$0xf] }
  0x2c   :  { %1942 = vmatpush.bf16.msrb.mxu2 %v3536_v52  ;;  %v2737_v52 = vor.u32 %v3459_v45, %v2736_v44  ;;  %v3413_v44 = vld [vmem:[%s4835_s0 + $0xcc] sm:$0xf0]  ;;  %v3567_v45 = vld [vmem:[%s4833_s1 + $0x2a0] sm:$0xff]  ;;  %v2570_v51 = vld [vmem:[%s4835_s0 + $0xd8] sm:$0xf0] }
  0x2d   :  { %1985 = vmatpush.bf16.msrb.mxu3 %v3544_v54  ;;  %v2745_v54 = vor.u32 %v3460_v49, %v2744_v48  ;;  %v2568_v48 = vld [vmem:[%s4835_s0 + $0x98] sm:$0xf] }
  0x2e   :  { %1857 = vmatpush.bf16.msrb.mxu0 %v3519_v58  ;;  %v3539_v58 = vld [vmem:[%s4833_s1 + $0x1c0] sm:$0xff]  ;;  %v3414_v49 = vld [vmem:[%s4835_s0 + $0xd4] sm:$0xf0] }
  0x2f   :  { %1900 = vmatpush.bf16.msrb.mxu1 %v3527_v3  ;;  %v2810_v3 = vld [vmem:[%s4835_s0 + $0x2c8] sm:$0xf0] }
  0x30   :  { %1943 = vmatpush.bf16.msrb.mxu2 %v3535_v57  ;;  %v3515_v57 = vld [vmem:[%s4833_s1 + $0x100] sm:$0xff] }
  0x31   :  { %1986 = vmatpush.bf16.msrb.mxu3 %v3543_v2  ;;  %1695 = vmatmul.bf16.gmra.mxu0 %v2545_v4  ;;  %v3468_v2 = vld [vmem:[%s4835_s0 + $0x28c] sm:$0xf]  ;;  %v2801_v4 = vor.u32 %v3475_v61, %v2800_v60  ;;  %v3575_v60 = vld [vmem:[%s4833_s1 + $0x2e0] sm:$0xff] }
  0x32   :  { %1738 = vmatmul.bf16.gmra.mxu1 %v2549_v5  ;;  %1858 = vmatpush.bf16.msrb.mxu0 %v3518_v9  ;;  %v2805_v5 = vor.u32 %v3467_v62, %v2802_v63  ;;  %v3554_v9 = vld [vmem:[%s4833_s1 + $0x238] sm:$0xff]  ;;  %v3559_v62 = vld [vmem:[%s4833_s1 + $0x260] sm:$0xff] }
  0x33   :  { %1781 = vmatmul.bf16.gmra.mxu2 %v2553_v6  ;;  %1901 = vmatpush.bf16.msrb.mxu1 %v3526_v11  ;;  %v2809_v6 = vor.u32 %v3476_v1, %v2808_v0  ;;  %v3562_v11 = vld [vmem:[%s4833_s1 + $0x278] sm:$0xff] }
  0x34   :  { %1824 = vmatmul.bf16.gmra.mxu3 %v2557_v7  ;;  %1944 = vmatpush.bf16.msrb.mxu2 %v3534_v8  ;;  %v2813_v7 = vor.u32 %v3468_v2, %v2810_v3  ;;  %v3570_v8 = vld [vmem:[%s4833_s1 + $0x2b8] sm:$0xff] }
  0x35   :  { %1987 = vmatpush.bf16.msrb.mxu3 %v3542_v10  ;;  %v3578_v10 = vld [vmem:[%s4833_s1 + $0x2f8] sm:$0xff] }
  0x36   :  { %1859 = vmatpush.bf16.msrb.mxu0 %v3517_v25  ;;  %v3561_v25 = vld [vmem:[%s4833_s1 + $0x270] sm:$0xff] }
  0x37   :  { %1902 = vmatpush.bf16.msrb.mxu1 %v3525_v27  ;;  %v3397_v27 = vld [vmem:[%s4835_s0 + $0x4c] sm:$0xf0] }
  0x38   :  { %1945 = vmatpush.bf16.msrb.mxu2 %v3533_v24  ;;  %v3577_v24 = vld [vmem:[%s4833_s1 + $0x2f0] sm:$0xff] }
  0x39   :  { %1988 = vmatpush.bf16.msrb.mxu3 %v3541_v26  ;;  %v2496_v26 = vld [vmem:[%s4835_s0 + $0x10] sm:$0xf] }
  0x3a   :  { %1860 = vmatpush.bf16.msrb.mxu0 %v3516_v41  ;;  %v2497_v34 = vor.u32 %v3397_v27, %v2496_v26  ;;  %v3560_v41 = vld [vmem:[%s4833_s1 + $0x268] sm:$0xff] }
  0x3b   :  { %1903 = vmatpush.bf16.msrb.mxu1 %v3524_v43  ;;  %v2560_v43 = vld [vmem:[%s4835_s0 + $0x90] sm:$0xf] }
  0x3c   :  { %1946 = vmatpush.bf16.msrb.mxu2 %v3532_v40  ;;  %v3576_v40 = vld [vmem:[%s4833_s1 + $0x2e8] sm:$0xff] }
  0x3d   :  { %1989 = vmatpush.bf16.msrb.mxu3 %v3540_v42  ;;  %v4098_v42 = vld [vmem:[%s4834_s2] ss:$0 sm:$0xff] }
  0x3e   :  { %1861 = vmatpush.bf16.msrb.mxu0 %v3515_v57  ;;  %v2573_v57 = vor.u32 %v3406_v50, %v2570_v51  ;;  %v3438_v50 = vld [vmem:[%s4835_s0 + $0x19c] sm:$0xf] }
  0x3f   :  { %1904 = vmatpush.bf16.msrb.mxu1 %v3523_v59  ;;  %v3551_v59 = vld [vmem:[%s4833_s1 + $0x220] sm:$0xff]  ;;  %v2698_v51 = vld [vmem:[%s4835_s0 + $0x1d8] sm:$0xf0] }
  0x40   :  { %1947 = vmatpush.bf16.msrb.mxu2 %v3531_v56  ;;  %v2569_v56 = vor.u32 %v3414_v49, %v2568_v48  ;;  %v3557_v48 = vld [vmem:[%s4833_s1 + $0x250] sm:$0xff]  ;;  %v3446_v49 = vld [vmem:[%s4835_s0 + $0x1d4] sm:$0xf0] }
  0x41   :  { %1700 = vmatmul.bf16.gmra.mxu0 %v2609_v20  ;;  %1990 = vmatpush.bf16.msrb.mxu3 %v3539_v58  ;;  %v788_v20 = vpack.c.b16 %v676_v16, %v676_v16  ;;  %v3422_v16 = vld [vmem:[%s4835_s0 + $0x11c] sm:$0xf] }
  0x42   :  { %1743 = vmatmul.bf16.gmra.mxu1 %v2613_v21  ;;  %2026 = vmatpush.bf16.msra.mxu0 %v3554_v9  ;;  %v789_v21 = vpack.c.b16 %v677_v17, %v677_v17  ;;  %v3566_v9 = vld [vmem:[%s4833_s1 + $0x298] sm:$0xff] }
  0x43   :  { %1786 = vmatmul.bf16.gmra.mxu2 %v2617_v22  ;;  %2069 = vmatpush.bf16.msra.mxu1 %v3562_v11  ;;  %v3569_v22 = vld [vmem:[%s4833_s1 + $0x2b0] sm:$0xff]  ;;  %v3574_v11 = vld [vmem:[%s4833_s1 + $0x2d8] sm:$0xff] }
  0x44   :  { %1829 = vmatmul.bf16.gmra.mxu3 %v2621_v23  ;;  %2112 = vmatpush.bf16.msra.mxu2 %v3570_v8  ;;  %v3553_v23 = vld [vmem:[%s4833_s1 + $0x230] sm:$0xff]  ;;  %v2634_v17 = vld [vmem:[%s4835_s0 + $0x158] sm:$0xf0] }
  0x45   :  { %2155 = vmatpush.bf16.msra.mxu3 %v3578_v10  ;;  %v3550_v10 = vld [vmem:[%s4833_s1 + $0x218] sm:$0xff]  ;;  %v2637_v26 = vor.u32 %v3422_v16, %v2634_v17  ;;  %v2754_v16 = vld [vmem:[%s4835_s0 + $0x250] sm:$0xf0] }
  0x46   :  { %2027 = vmatpush.bf16.msra.mxu0 %v3553_v23  ;;  %v2760_v17 = vld [vmem:[%s4835_s0 + $0x218] sm:$0xf] }
  0x47   :  { %2070 = vmatpush.bf16.msra.mxu1 %v3561_v25  ;;  %v2633_v25 = vor.u32 %v3430_v15, %v2632_v14  ;;  %v3556_v14 = vld [vmem:[%s4833_s1 + $0x248] sm:$0xff]  ;;  %v3453_v15 = vld [vmem:[%s4835_s0 + $0x214] sm:$0xf] }
  0x48   :  { %2113 = vmatpush.bf16.msra.mxu2 %v3569_v22 }
  0x49   :  { %2156 = vmatpush.bf16.msra.mxu3 %v3577_v24 }
  0x4b   :  { %2071 = vmatpush.bf16.msra.mxu1 %v3560_v41 }
  0x4d   :  { %2157 = vmatpush.bf16.msra.mxu3 %v3576_v40  ;;  %v3437_v40 = vld [vmem:[%s4835_s0 + $0x194] sm:$0xf] }
  0x4f   :  { %2072 = vmatpush.bf16.msra.mxu1 %v3559_v62 }
  0x51   :  { %1705 = vmatmul.bf16.gmra.mxu0 %v2673_v36  ;;  %v2505_v36 = vor.u32 %v3398_v31, %v2504_v30  ;;  %2158 = vmatpush.bf16.msra.mxu3 %v3575_v60  ;;  %v2701_v60 = vor.u32 %v3438_v50, %v2698_v51  ;;  %v3469_v50 = vld [vmem:[%s4835_s0 + $0x294] sm:$0xf] }
  0x52   :  { %1748 = vmatmul.bf16.gmra.mxu1 %v2677_v37  ;;  %v2509_v37 = vor.u32 %v3390_v32, %v2506_v33  ;;  %v2818_v51 = vld [vmem:[%s4835_s0 + $0x2d0] sm:$0xf0] }
  0x53   :  { %1791 = vmatmul.bf16.gmra.mxu2 %v2681_v38  ;;  %v3568_v38 = vld [vmem:[%s4833_s1 + $0x2a8] sm:$0xff]  ;;  %2073 = vmatpush.bf16.msra.mxu1 %v3558_v29 }
  0x54   :  { %1834 = vmatmul.bf16.gmra.mxu3 %v2685_v39  ;;  %v3552_v39 = vld [vmem:[%s4833_s1 + $0x228] sm:$0xff]  ;;  %2114 = vmatpush.bf16.msra.mxu2 %v3568_v38  ;;  %v2688_v38 = vld [vmem:[%s4835_s0 + $0x190] sm:$0xf] }
  0x55   :  { %2028 = vmatpush.bf16.msra.mxu0 %v3552_v39  ;;  %2159 = vmatpush.bf16.msra.mxu3 %v3574_v11  ;;  %v3445_v39 = vld [vmem:[%s4835_s0 + $0x1cc] sm:$0xf0] }
  0x57   :  { %2074 = vmatpush.bf16.msra.mxu1 %v3557_v48  ;;  %v3477_v48 = vld [vmem:[%s4835_s0 + $0x2cc] sm:$0xf0] }
  0x58   :  { %2115 = vmatpush.bf16.msra.mxu2 %v3567_v45  ;;  %v3573_v45 = vld [vmem:[%s4833_s1 + $0x2d0] sm:$0xff] }
  0x59   :  { %2029 = vmatpush.bf16.msra.mxu0 %v3551_v59  ;;  %2160 = vmatpush.bf16.msra.mxu3 %v3573_v45  ;;  %v3571_v45 = vld [vmem:[%s4833_s1 + $0x2c0] sm:$0xff] }
  0x5b   :  { %2075 = vmatpush.bf16.msra.mxu1 %v3556_v14 }
  0x5c   :  { %2116 = vmatpush.bf16.msra.mxu2 %v3566_v9  ;;  %v3461_v9 = vld [vmem:[%s4835_s0 + $0x24c] sm:$0xf0] }
  0x5d   :  { %2030 = vmatpush.bf16.msra.mxu0 %v3550_v10  ;;  %v3564_v10 = vld [vmem:[%s4833_s1 + $0x288] sm:$0xff] }
  0x61   :  { %1710 = vmatmul.bf16.gmra.mxu0 %v2737_v52  ;;  %v2561_v52 = vor.u32 %v3413_v44, %v2560_v43  ;;  %v3565_v43 = vld [vmem:[%s4833_s1 + $0x290] sm:$0xff] }
  0x62   :  { %1753 = vmatmul.bf16.gmra.mxu1 %v2741_v53  ;;  %v2565_v53 = vor.u32 %v3405_v46, %v2562_v47  ;;  %v3549_v44 = vld [vmem:[%s4833_s1 + $0x210] sm:$0xff]  ;;  %v2696_v47 = vld [vmem:[%s4835_s0 + $0x198] sm:$0xf]  ;;  %2117 = vmatpush.bf16.msra.mxu2 %v3565_v43 }
  0x63   :  { %1796 = vmatmul.bf16.gmra.mxu2 %v2745_v54  ;;  %v2690_v46 = vld [vmem:[%s4835_s0 + $0x1d0] sm:$0xf0]  ;;  %2031 = vmatpush.bf16.msra.mxu0 %v3549_v44  ;;  %v2697_v59 = vor.u32 %v3446_v49, %v2696_v47  ;;  %v3547_v44 = vld [vmem:[%s4833_s1 + $0x200] sm:$0xff]  ;;  %v2816_v47 = vld [vmem:[%s4835_s0 + $0x290] sm:$0xf] }
  0x64   :  { %1839 = vmatmul.bf16.gmra.mxu3 %v2749_v55  ;;  %v3555_v49 = vld [vmem:[%s4833_s1 + $0x240] sm:$0xff] }
  0x65   :  { %2076 = vmatpush.bf16.msra.mxu1 %v3555_v49 }
  0x66   :  { %2118 = vmatpush.bf16.msra.mxu2 %v3564_v10 }
  0x71   :  { %1715 = vmatmul.bf16.gmra.mxu0 %v2801_v4 }
  0x72   :  { %1758 = vmatmul.bf16.gmra.mxu1 %v2805_v5 }
  0x73   :  { %1801 = vmatmul.bf16.gmra.mxu2 %v2809_v6  ;;  %v2624_v6 = vld [vmem:[%s4835_s0 + $0x110] sm:$0xf] }
  0x74   :  { %1844 = vmatmul.bf16.gmra.mxu3 %v2813_v7  ;;  %v3429_v7 = vld [vmem:[%s4835_s0 + $0x14c] sm:$0xf0] }
  0x81   :  { %1720 = vmatmul.bf16.gmra.mxu0 %v786_v18 }
  0x82   :  { %1763 = vmatmul.bf16.gmra.mxu1 %v787_v19 }
  0x83   :  { %1806 = vmatmul.bf16.gmra.mxu2 %v788_v20  ;;  %v2625_v20 = vor.u32 %v3429_v7, %v2624_v6 }
  0x84   :  { %1849 = vmatmul.bf16.gmra.mxu3 %v789_v21  ;;  %v2629_v21 = vor.u32 %v3421_v12, %v2626_v13  ;;  %v3548_v12 = vld [vmem:[%s4833_s1 + $0x208] sm:$0xff] }
  0x85   :  { %v3572_v13 = vld [vmem:[%s4833_s1 + $0x2c8] sm:$0xff]  ;;  %2032 = vmatpush.bf16.msra.mxu0 %v3548_v12 }
  0x86   :  { %2161 = vmatpush.bf16.msra.mxu3 %v3572_v13 }
  0x89   :  { %2033 = vmatpush.bf16.msra.mxu0 %v3547_v44  ;;  %v3609_v44 = vld [vmem:[%s4833_s1 + $0x3f0] sm:$0xff] }
  0x8a   :  { %2162 = vmatpush.bf16.msra.mxu3 %v3571_v45  ;;  %v3593_v45 = vld [vmem:[%s4833_s1 + $0x370] sm:$0xff] }
  0x91   :  { %1862 = vmatmul.bf16.vlgmr.msrb.gmra.mxu0 %v2497_v34 }
  0x92   :  { %1905 = vmatmul.bf16.vlgmr.msrb.gmra.mxu1 %v2501_v35 }
  0x93   :  { %1948 = vmatmul.bf16.vlgmr.msrb.gmra.mxu2 %v2505_v36 }
  0x94   :  { %1991 = vmatmul.bf16.vlgmr.msrb.gmra.mxu3 %v2509_v37 }
  0x9e   :  { %v1691_v54 = vpop.f32.mrf.mxu0 }
  0x9f   :  { %v1734_v55 = vpop.f32.mrf.mxu1  ;;  %v1692_v58 = vadd.f32 %v4098_v42, %v1691_v54  ;;  %v2689_v54 = vor.u32 %v3445_v39, %v2688_v38 }
  0xa1   :  { %v1735_v61 = vadd.f32 %v1734_v55, %v1692_v58  ;;  %1867 = vmatmul.bf16.gmra.mxu0 %v2561_v52  ;;  %v2693_v55 = vor.u32 %v3437_v40, %v2690_v46 }
  0xa2   :  { %1910 = vmatmul.bf16.gmra.mxu1 %v2565_v53 }
  0xa3   :  { %1953 = vmatmul.bf16.gmra.mxu2 %v2569_v56 }
  0xa4   :  { %1996 = vmatmul.bf16.gmra.mxu3 %v2573_v57 }
  0xa6   :  { %v1777_v63 = vpop.f32.mrf.mxu2  ;;  %v1693_v2 = vpop.f32.mrf.mxu0 }
  0xa7   :  { %v1820_v0 = vpop.f32.mrf.mxu3  ;;  %v1778_v1 = vadd.f32 %v1777_v63, %v1735_v61  ;;  %v1736_v3 = vpop.f32.mrf.mxu1  ;;  %v1694_v4 = vadd.f32 %v4098_v42, %v1693_v2 }
  0xa9   :  { %v4138_v5 = vadd.f32 %v1820_v0, %v1778_v1  ;;  %v1737_v8 = vadd.f32 %v1736_v3, %v1694_v4 }
  0xae   :  { %v1779_v18 = vpop.f32.mrf.mxu2  ;;  %v1696_v23 = vpop.f32.mrf.mxu0 }
  0xaf   :  { %v1822_v19 = vpop.f32.mrf.mxu3  ;;  %v1780_v22 = vadd.f32 %v1779_v18, %v1737_v8  ;;  %v1739_v24 = vpop.f32.mrf.mxu1  ;;  %v1697_v27 = vadd.f32 %v4098_v42, %v1696_v23  ;;  %v2752_v8 = vld [vmem:[%s4835_s0 + $0x210] sm:$0xf]  ;;  %v3462_v18 = vld [vmem:[%s4835_s0 + $0x254] sm:$0xf0] }
  0xb0   :  { %v2753_v23 = vor.u32 %v3461_v9, %v2752_v8  ;;  %v2761_v29 = vor.u32 %v3462_v18, %v2760_v17  ;;  %v3586_v8 = vld [vmem:[%s4833_s1 + $0x338] sm:$0xff] }
  0xb1   :  { %v4174_v28 = vadd.f32 %v1822_v19, %v1780_v22  ;;  %v1740_v30 = vadd.f32 %v1739_v24, %v1697_v27  ;;  %1872 = vmatmul.bf16.gmra.mxu0 %v2625_v20  ;;  %v3454_v19 = vld [vmem:[%s4835_s0 + $0x21c] sm:$0xf]  ;;  %v2757_v24 = vor.u32 %v3453_v15, %v2754_v16  ;;  %v112_v15 = vld [vmem:[%s4835_s0 + $0x310] sm:$0x11] }
  0xb2   :  { %1915 = vmatmul.bf16.gmra.mxu1 %v2629_v21  ;;  %v2762_v20 = vld [vmem:[%s4835_s0 + $0x258] sm:$0xf0]  ;;  %2198 = vmatpush.bf16.msrb.mxu0 %v3586_v8 }
  0xb3   :  { %1958 = vmatmul.bf16.gmra.mxu2 %v2633_v25  ;;  %v3610_v9 = vld [vmem:[%s4833_s1 + $0x3f8] sm:$0xff] }
  0xb4   :  { %2001 = vmatmul.bf16.gmra.mxu3 %v2637_v26  ;;  %v113_v17 = vld [vmem:[%s4835_s0 + $0x318] sm:$0x11] }
  0xb5   :  { %2327 = vmatpush.bf16.msrb.mxu3 %v3610_v9 }
  0xb6   :  { %v1782_v31 = vpop.f32.mrf.mxu2  ;;  %v1698_v34 = vpop.f32.mrf.mxu0 }
  0xb7   :  { %v1825_v32 = vpop.f32.mrf.mxu3  ;;  %v1783_v33 = vadd.f32 %v1782_v31, %v1740_v30  ;;  %v1741_v35 = vpop.f32.mrf.mxu1  ;;  %v1699_v36 = vadd.f32 %v4098_v42, %v1698_v34  ;;  %v2765_v30 = vor.u32 %v3454_v19, %v2762_v20  ;;  %v3563_v34 = vld [vmem:[%s4833_s1 + $0x280] sm:$0xff]  ;;  %v3594_v19 = vld [vmem:[%s4833_s1 + $0x378] sm:$0xff] }
  0xb8   :  { %2119 = vmatpush.bf16.msra.mxu2 %v3563_v34  ;;  %2241 = vmatpush.bf16.msrb.mxu1 %v3594_v19 }
  0xb9   :  { %v4180_v37 = vadd.f32 %v1825_v32, %v1783_v33  ;;  %v1742_v41 = vadd.f32 %v1741_v35, %v1699_v36  ;;  %2328 = vmatpush.bf16.msrb.mxu3 %v3609_v44 }
  0xbc   :  { %2242 = vmatpush.bf16.msrb.mxu1 %v3593_v45 }
  0xbe   :  { %v1784_v52 = vpop.f32.mrf.mxu2  ;;  %v1701_v57 = vpop.f32.mrf.mxu0 }
  0xbf   :  { %v1827_v53 = vpop.f32.mrf.mxu3  ;;  %v1785_v56 = vadd.f32 %v1784_v52, %v1742_v41  ;;  %v1744_v58 = vpop.f32.mrf.mxu1  ;;  %v1702_v61 = vadd.f32 %v4098_v42, %v1701_v57  ;;  %v2824_v52 = vld [vmem:[%s4835_s0 + $0x298] sm:$0xf] }
  0xc1   :  { %v4219_v62 = vadd.f32 %v1827_v53, %v1785_v56  ;;  %v1745_v63 = vadd.f32 %v1744_v58, %v1702_v61  ;;  %1877 = vmatmul.bf16.gmra.mxu0 %v2689_v54  ;;  %v3478_v53 = vld [vmem:[%s4835_s0 + $0x2d4] sm:$0xf0]  ;;  %v3470_v54 = vld [vmem:[%s4835_s0 + $0x29c] sm:$0xf]  ;;  %v2817_v58 = vor.u32 %v3477_v48, %v2816_v47 }
  0xc2   :  { %1920 = vmatmul.bf16.gmra.mxu1 %v2693_v55  ;;  %v2826_v55 = vld [vmem:[%s4835_s0 + $0x2d8] sm:$0xf0] }
  0xc3   :  { %1963 = vmatmul.bf16.gmra.mxu2 %v2697_v59  ;;  %v2821_v59 = vor.u32 %v3469_v50, %v2818_v51 }
  0xc4   :  { %2006 = vmatmul.bf16.gmra.mxu3 %v2701_v60 }
  0xc6   :  { %v1787_v0 = vpop.f32.mrf.mxu2  ;;  %v1703_v3 = vpop.f32.mrf.mxu0 }
  0xc7   :  { %v1830_v1 = vpop.f32.mrf.mxu3  ;;  %v1788_v2 = vadd.f32 %v1787_v0, %v1745_v63  ;;  %v1746_v4 = vpop.f32.mrf.mxu1  ;;  %v1704_v6 = vadd.f32 %v4098_v42, %v1703_v3  ;;  %v2825_v0 = vor.u32 %v3478_v53, %v2824_v52 }
  0xc9   :  { %v4222_v7 = vadd.f32 %v1830_v1, %v1788_v2  ;;  %v1747_v11 = vadd.f32 %v1746_v4, %v1704_v6  ;;  %v2829_v1 = vor.u32 %v3470_v54, %v2826_v55  ;;  %v3602_v6 = vld [vmem:[%s4833_s1 + $0x3b8] sm:$0xff]  ;;  %v2512_v54 = vld [vmem:[%s4835_s0 + $0x20] sm:$0xf] }
  0xca   :  { %2284 = vmatpush.bf16.msrb.mxu2 %v3602_v6  ;;  %v3399_v55 = vld [vmem:[%s4835_s0 + $0x5c] sm:$0xf0] }
  0xce   :  { %v1789_v21 = vpop.f32.mrf.mxu2  ;;  %v1706_v26 = vpop.f32.mrf.mxu0 }
  0xcf   :  { %v1832_v22 = vpop.f32.mrf.mxu3  ;;  %v1790_v25 = vadd.f32 %v1789_v21, %v1747_v11  ;;  %v1749_v27 = vpop.f32.mrf.mxu1  ;;  %v1707_v31 = vadd.f32 %v4098_v42, %v1706_v26  ;;  %v678_v21 = vunpack.c.l.b16 %v112_v15 }
  0xd1   :  { %v4261_v32 = vadd.f32 %v1832_v22, %v1790_v25  ;;  %v1750_v33 = vadd.f32 %v1749_v27, %v1707_v31  ;;  %1882 = vmatmul.bf16.gmra.mxu0 %v2753_v23  ;;  %v679_v22 = vunpack.c.h.b16 %v112_v15  ;;  %v680_v23 = vunpack.c.l.b16 %v113_v17  ;;  %v3584_v15 = vld [vmem:[%s4833_s1 + $0x328] sm:$0xff] }
  0xd2   :  { %1925 = vmatmul.bf16.gmra.mxu1 %v2757_v24  ;;  %v681_v24 = vunpack.c.h.b16 %v113_v17  ;;  %v790_v27 = vpack.c.b16 %v678_v21, %v678_v21 }
  0xd3   :  { %1968 = vmatmul.bf16.gmra.mxu2 %v2761_v29  ;;  %v791_v29 = vpack.c.b16 %v679_v22, %v679_v22  ;;  %v792_v34 = vpack.c.b16 %v680_v23, %v680_v23 }
  0xd4   :  { %2011 = vmatmul.bf16.gmra.mxu3 %v2765_v30 }
  0xd6   :  { %v1792_v35 = vpop.f32.mrf.mxu2  ;;  %v1708_v39 = vpop.f32.mrf.mxu0 }
  0xd7   :  { %v1835_v36 = vpop.f32.mrf.mxu3  ;;  %v1793_v38 = vadd.f32 %v1792_v35, %v1750_v33  ;;  %v1751_v40 = vpop.f32.mrf.mxu1  ;;  %v1709_v41 = vadd.f32 %v4098_v42, %v1708_v39  ;;  %v793_v35 = vpack.c.b16 %v681_v24, %v681_v24  ;;  %v2576_v24 = vld [vmem:[%s4835_s0 + $0xa0] sm:$0xf] }
  0xd9   :  { %v4267_v43 = vadd.f32 %v1835_v36, %v1793_v38  ;;  %v1752_v46 = vadd.f32 %v1751_v40, %v1709_v41  ;;  %v3601_v40 = vld [vmem:[%s4833_s1 + $0x3b0] sm:$0xff] }
  0xda   :  { %v3585_v41 = vld [vmem:[%s4833_s1 + $0x330] sm:$0xff]  ;;  %2285 = vmatpush.bf16.msrb.mxu2 %v3601_v40 }
  0xdb   :  { %2199 = vmatpush.bf16.msrb.mxu0 %v3585_v41 }
  0xde   :  { %v1794_v56 = vpop.f32.mrf.mxu2  ;;  %v1711_v61 = vpop.f32.mrf.mxu0 }
  0xdf   :  { %v1837_v57 = vpop.f32.mrf.mxu3  ;;  %v1795_v60 = vadd.f32 %v1794_v56, %v1752_v46  ;;  %v1754_v63 = vpop.f32.mrf.mxu1  ;;  %v1712_v2 = vadd.f32 %v4098_v42, %v1711_v61  ;;  %v3391_v56 = vld [vmem:[%s4835_s0 + $0x24] sm:$0xf]  ;;  %v2522_v61 = vld [vmem:[%s4835_s0 + $0x68] sm:$0xf0]  ;;  %2200 = vmatpush.bf16.msrb.mxu0 %v3584_v15 }
  0xe1   :  { %v4303_v3 = vadd.f32 %v1837_v57, %v1795_v60  ;;  %v1755_v4 = vadd.f32 %v1754_v63, %v1712_v2  ;;  %1887 = vmatmul.bf16.gmra.mxu0 %v2817_v58  ;;  %v2514_v57 = vld [vmem:[%s4835_s0 + $0x60] sm:$0xf0]  ;;  %v2520_v58 = vld [vmem:[%s4835_s0 + $0x28] sm:$0xf]  ;;  %v3392_v60 = vld [vmem:[%s4835_s0 + $0x2c] sm:$0xf] }
  0xe2   :  { %1930 = vmatmul.bf16.gmra.mxu1 %v2821_v59  ;;  %v3400_v59 = vld [vmem:[%s4835_s0 + $0x64] sm:$0xf0]  ;;  %v2517_v2 = vor.u32 %v3391_v56, %v2514_v57 }
  0xe3   :  { %1973 = vmatmul.bf16.gmra.mxu2 %v2825_v0  ;;  %v2521_v9 = vor.u32 %v3400_v59, %v2520_v58  ;;  %v2640_v59 = vld [vmem:[%s4835_s0 + $0x120] sm:$0xf] }
  0xe4   :  { %2016 = vmatmul.bf16.gmra.mxu3 %v2829_v1  ;;  %v2513_v1 = vor.u32 %v3399_v55, %v2512_v54 }
  0xe6   :  { %v1797_v10 = vpop.f32.mrf.mxu2  ;;  %v1713_v13 = vpop.f32.mrf.mxu0 }
  0xe7   :  { %v1840_v11 = vpop.f32.mrf.mxu3  ;;  %v1798_v12 = vadd.f32 %v1797_v10, %v1755_v4  ;;  %v1756_v14 = vpop.f32.mrf.mxu1  ;;  %v1714_v16 = vadd.f32 %v4098_v42, %v1713_v13  ;;  %v2525_v10 = vor.u32 %v3392_v60, %v2522_v61  ;;  %v3600_v13 = vld [vmem:[%s4833_s1 + $0x3a8] sm:$0xff]  ;;  %v3431_v60 = vld [vmem:[%s4835_s0 + $0x15c] sm:$0xf0] }
  0xe8   :  { %2286 = vmatpush.bf16.msrb.mxu2 %v3600_v13  ;;  %v2641_v13 = vor.u32 %v3431_v60, %v2640_v59 }
  0xe9   :  { %v4321_v18 = vadd.f32 %v1840_v11, %v1798_v12  ;;  %v1757_v20 = vadd.f32 %v1756_v14, %v1714_v16  ;;  %v3608_v16 = vld [vmem:[%s4833_s1 + $0x3e8] sm:$0xff] }
  0xea   :  { %2329 = vmatpush.bf16.msrb.mxu3 %v3608_v16 }
  0xee   :  { %v1799_v25 = vpop.f32.mrf.mxu2  ;;  %v1716_v31 = vpop.f32.mrf.mxu0 }
  0xef   :  { %v1842_v26 = vpop.f32.mrf.mxu3  ;;  %v1800_v30 = vadd.f32 %v1799_v25, %v1757_v20  ;;  %v1759_v33 = vpop.f32.mrf.mxu1  ;;  %v1717_v36 = vadd.f32 %v4098_v42, %v1716_v31  ;;  %v3415_v25 = vld [vmem:[%s4835_s0 + $0xdc] sm:$0xf0]  ;;  %v3416_v31 = vld [vmem:[%s4835_s0 + $0xe4] sm:$0xf0] }
  0xf1   :  { %v4327_v38 = vadd.f32 %v1842_v26, %v1800_v30  ;;  %v1760_v39 = vadd.f32 %v1759_v33, %v1717_v36  ;;  %1892 = vmatmul.bf16.gmra.mxu0 %v790_v27  ;;  %v3599_v26 = vld [vmem:[%s4833_s1 + $0x3a0] sm:$0xff]  ;;  %v2584_v30 = vld [vmem:[%s4835_s0 + $0xa8] sm:$0xf]  ;;  %v3408_v33 = vld [vmem:[%s4835_s0 + $0xac] sm:$0xf] }
  0xf2   :  { %1935 = vmatmul.bf16.gmra.mxu1 %v791_v29  ;;  %v3407_v27 = vld [vmem:[%s4835_s0 + $0xa4] sm:$0xf]  ;;  %2287 = vmatpush.bf16.msrb.mxu2 %v3599_v26  ;;  %v2585_v45 = vor.u32 %v3416_v31, %v2584_v30 }
  0xf3   :  { %1978 = vmatmul.bf16.gmra.mxu2 %v792_v34  ;;  %v2578_v29 = vld [vmem:[%s4835_s0 + $0xe0] sm:$0xf0]  ;;  %v2586_v34 = vld [vmem:[%s4835_s0 + $0xe8] sm:$0xf0] }
  0xf4   :  { %2021 = vmatmul.bf16.gmra.mxu3 %v793_v35  ;;  %v2581_v40 = vor.u32 %v3407_v27, %v2578_v29 }
  0xf6   :  { %v1802_v46 = vpop.f32.mrf.mxu2  ;;  %v1718_v49 = vpop.f32.mrf.mxu0 }
  0xf7   :  { %v1845_v47 = vpop.f32.mrf.mxu3  ;;  %v1803_v48 = vadd.f32 %v1802_v46, %v1760_v39  ;;  %v1761_v50 = vpop.f32.mrf.mxu1  ;;  %v1719_v51 = vadd.f32 %v4098_v42, %v1718_v49  ;;  %v2577_v39 = vor.u32 %v3415_v25, %v2576_v24  ;;  %v2589_v46 = vor.u32 %v3408_v33, %v2586_v34  ;;  %v3607_v49 = vld [vmem:[%s4833_s1 + $0x3e0] sm:$0xff] }
  0xf8   :  { %2330 = vmatpush.bf16.msrb.mxu3 %v3607_v49  ;;  %v2704_v33 = vld [vmem:[%s4835_s0 + $0x1a0] sm:$0xf] }
  0xf9   :  { %v4342_v52 = vadd.f32 %v1845_v47, %v1803_v48  ;;  %v1762_v53 = vadd.f32 %v1761_v50, %v1719_v51  ;;  %v3583_v48 = vld [vmem:[%s4833_s1 + $0x320] sm:$0xff] }
  0xfa   :  { %v3591_v51 = vld [vmem:[%s4833_s1 + $0x360] sm:$0xff]  ;;  %2201 = vmatpush.bf16.msrb.mxu0 %v3583_v48  ;;  %v2714_v48 = vld [vmem:[%s4835_s0 + $0x1e8] sm:$0xf0] }
  0xfb   :  { %v3447_v34 = vld [vmem:[%s4835_s0 + $0x1dc] sm:$0xf0] }
  0xfe   :  { %v1804_v63 = vpop.f32.mrf.mxu2  ;;  %v1721_v6 = vpop.f32.mrf.mxu0 }
  0xff   :  { %v1847_v0 = vpop.f32.mrf.mxu3  ;;  %v1805_v4 = vadd.f32 %v1804_v63, %v1762_v53  ;;  %v1764_v8 = vpop.f32.mrf.mxu1  ;;  %v1722_v11 = vadd.f32 %v4098_v42, %v1721_v6  ;;  %v3592_v42 = vld [vmem:[%s4833_s1 + $0x368] sm:$0xff]  ;;  %v3598_v63 = vld [vmem:[%s4833_s1 + $0x398] sm:$0xff] }
 0x100   :  { %2243 = vmatpush.bf16.msrb.mxu1 %v3592_v42  ;;  %v3432_v6 = vld [vmem:[%s4835_s0 + $0x164] sm:$0xf0]  ;;  %2288 = vmatpush.bf16.msrb.mxu2 %v3598_v63 }
 0x101   :  { %v4369_v12 = vadd.f32 %v1847_v0, %v1805_v4  ;;  %v1765_v14 = vadd.f32 %v1764_v8, %v1722_v11  ;;  %2034 = vmatmul.bf16.vlgmr.msra.gmra.mxu0 %v2513_v1  ;;  %v3582_v0 = vld [vmem:[%s4833_s1 + $0x318] sm:$0xff]  ;;  %v3423_v1 = vld [vmem:[%s4835_s0 + $0x124] sm:$0xf]  ;;  %v2648_v4 = vld [vmem:[%s4835_s0 + $0x128] sm:$0xf] }
 0x102   :  { %2077 = vmatmul.bf16.vlgmr.msra.gmra.mxu1 %v2517_v2  ;;  %v2642_v2 = vld [vmem:[%s4835_s0 + $0x160] sm:$0xf0]  ;;  %v3424_v8 = vld [vmem:[%s4835_s0 + $0x12c] sm:$0xf]  ;;  %2202 = vmatpush.bf16.msrb.mxu0 %v3582_v0 }
 0x103   :  { %2120 = vmatmul.bf16.vlgmr.msra.gmra.mxu2 %v2521_v9  ;;  %v2650_v9 = vld [vmem:[%s4835_s0 + $0x168] sm:$0xf0] }
 0x104   :  { %2163 = vmatmul.bf16.vlgmr.msra.gmra.mxu3 %v2525_v10  ;;  %2244 = vmatpush.bf16.msrb.mxu1 %v3591_v51  ;;  %v2705_v51 = vor.u32 %v3447_v34, %v2704_v33 }
 0x106   :  { %v1807_v17 = vpop.f32.mrf.mxu2  ;;  %v1723_v21 = vpop.f32.mrf.mxu0 }
 0x107   :  { %v1850_v19 = vpop.f32.mrf.mxu3  ;;  %v1808_v20 = vadd.f32 %v1807_v17, %v1765_v14  ;;  %v1766_v22 = vpop.f32.mrf.mxu1  ;;  %v2645_v14 = vor.u32 %v3423_v1, %v2642_v2  ;;  %v2649_v17 = vor.u32 %v3432_v6, %v2648_v4 }
 0x108   :  { %v3590_v22 = vld [vmem:[%s4833_s1 + $0x358] sm:$0xff] }
 0x109   :  { %v4383_v23 = vadd.f32 %v1850_v19, %v1808_v20  ;;  %v2653_v19 = vor.u32 %v3424_v8, %v2650_v9  ;;  %2245 = vmatpush.bf16.msrb.mxu1 %v3590_v22  ;;  %v3463_v8 = vld [vmem:[%s4835_s0 + $0x25c] sm:$0xf0]  ;;  %v3596_v9 = vld [vmem:[%s4833_s1 + $0x388] sm:$0xff] }
 0x10e   :  { %v1809_v35 = vpop.f32.mrf.mxu2  ;;  %v1863_v41 = vpop.f32.mrf.mxu0 }
 0x10f   :  { %v1852_v36 = vpop.f32.mrf.mxu3  ;;  %v1906_v44 = vpop.f32.mrf.mxu1  ;;  %v1864_v47 = vadd.f32 %v1863_v41, %v4138_v5  ;;  %v3439_v35 = vld [vmem:[%s4835_s0 + $0x1a4] sm:$0xf] }
 0x110   :  { %v2706_v41 = vld [vmem:[%s4835_s0 + $0x1e0] sm:$0xf0] }
 0x111   :  { %v1907_v50 = vadd.f32 %v1906_v44, %v1864_v47  ;;  %2039 = vmatmul.bf16.gmra.mxu0 %v2577_v39  ;;  %v3597_v39 = vld [vmem:[%s4833_s1 + $0x390] sm:$0xff]  ;;  %v2712_v44 = vld [vmem:[%s4835_s0 + $0x1a8] sm:$0xf]  ;;  %v3440_v47 = vld [vmem:[%s4835_s0 + $0x1ac] sm:$0xf] }
 0x112   :  { %2082 = vmatmul.bf16.gmra.mxu1 %v2581_v40  ;;  %v3605_v40 = vld [vmem:[%s4833_s1 + $0x3d0] sm:$0xff]  ;;  %2289 = vmatpush.bf16.msrb.mxu2 %v3597_v39 }
 0x113   :  { %2125 = vmatmul.bf16.gmra.mxu2 %v2585_v45  ;;  %v3589_v45 = vld [vmem:[%s4833_s1 + $0x350] sm:$0xff] }
 0x114   :  { %2168 = vmatmul.bf16.gmra.mxu3 %v2589_v46  ;;  %v3448_v46 = vld [vmem:[%s4835_s0 + $0x1e4] sm:$0xf0]  ;;  %2246 = vmatpush.bf16.msrb.mxu1 %v3589_v45 }
 0x116   :  { %v1949_v5 = vpop.f32.mrf.mxu2  ;;  %v1865_v55 = vpop.f32.mrf.mxu0  ;;  %2290 = vmatpush.bf16.msrb.mxu2 %v3596_v9 }
 0x117   :  { %v1992_v53 = vpop.f32.mrf.mxu3  ;;  %v1950_v54 = vadd.f32 %v1949_v5, %v1907_v50  ;;  %v1908_v56 = vpop.f32.mrf.mxu1  ;;  %v1866_v57 = vadd.f32 %v1865_v55, %v4174_v28  ;;  %v3606_v28 = vld [vmem:[%s4833_s1 + $0x3d8] sm:$0xff]  ;;  %v2709_v5 = vor.u32 %v3439_v35, %v2706_v41 }
 0x118   :  { %2331 = vmatpush.bf16.msrb.mxu3 %v3606_v28 }
 0x119   :  { %v4423_v58 = vadd.f32 %v1992_v53, %v1950_v54  ;;  %v1909_v61 = vadd.f32 %v1908_v56, %v1866_v57  ;;  %v2713_v56 = vor.u32 %v3448_v46, %v2712_v44  ;;  %v2717_v57 = vor.u32 %v3440_v47, %v2714_v48  ;;  %v3579_v46 = vld [vmem:[%s4833_s1 + $0x300] sm:$0xff] }
 0x11a   :  { %v3603_v47 = vld [vmem:[%s4833_s1 + $0x3c0] sm:$0xff] }
 0x11c   :  { %2332 = vmatpush.bf16.msrb.mxu3 %v3605_v40 }
 0x11e   :  { %v1951_v10 = vpop.f32.mrf.mxu2  ;;  %v1868_v16 = vpop.f32.mrf.mxu0 }
 0x11f   :  { %v1994_v11 = vpop.f32.mrf.mxu3  ;;  %v1952_v15 = vadd.f32 %v1951_v10, %v1909_v61  ;;  %v1911_v42 = vpop.f32.mrf.mxu1  ;;  %v1869_v20 = vadd.f32 %v1868_v16, %v4180_v37  ;;  %v2776_v16 = vld [vmem:[%s4835_s0 + $0x228] sm:$0xf] }
 0x121   :  { %v4459_v21 = vadd.f32 %v1994_v11, %v1952_v15  ;;  %v1912_v24 = vadd.f32 %v1911_v42, %v1869_v20  ;;  %2044 = vmatmul.bf16.gmra.mxu0 %v2641_v13  ;;  %v3580_v11 = vld [vmem:[%s4833_s1 + $0x308] sm:$0xff]  ;;  %v2770_v15 = vld [vmem:[%s4835_s0 + $0x260] sm:$0xf0] }
 0x122   :  { %2087 = vmatmul.bf16.gmra.mxu1 %v2645_v14  ;;  %v3588_v13 = vld [vmem:[%s4833_s1 + $0x348] sm:$0xff]  ;;  %v3455_v14 = vld [vmem:[%s4835_s0 + $0x224] sm:$0xf] }
 0x123   :  { %2130 = vmatmul.bf16.gmra.mxu2 %v2649_v17  ;;  %v3464_v42 = vld [vmem:[%s4835_s0 + $0x264] sm:$0xf0]  ;;  %v3456_v17 = vld [vmem:[%s4835_s0 + $0x22c] sm:$0xf]  ;;  %2247 = vmatpush.bf16.msrb.mxu1 %v3588_v13 }
 0x124   :  { %2173 = vmatmul.bf16.gmra.mxu3 %v2653_v19  ;;  %v2778_v19 = vld [vmem:[%s4835_s0 + $0x268] sm:$0xf0] }
 0x126   :  { %v1954_v25 = vpop.f32.mrf.mxu2  ;;  %v1870_v29 = vpop.f32.mrf.mxu0 }
 0x127   :  { %v1997_v26 = vpop.f32.mrf.mxu3  ;;  %v1955_v27 = vadd.f32 %v1954_v25, %v1912_v24  ;;  %v1913_v30 = vpop.f32.mrf.mxu1  ;;  %v1871_v31 = vadd.f32 %v1870_v29, %v4219_v62  ;;  %v3581_v62 = vld [vmem:[%s4833_s1 + $0x310] sm:$0xff]  ;;  %v2773_v25 = vor.u32 %v3455_v14, %v2770_v15  ;;  %v114_v15 = vld [vmem:[%s4835_s0 + $0x320] sm:$0x11] }
 0x128   :  { %2203 = vmatpush.bf16.msrb.mxu0 %v3581_v62 }
 0x129   :  { %v4465_v37 = vadd.f32 %v1997_v26, %v1955_v27  ;;  %v1914_v36 = vadd.f32 %v1913_v30, %v1871_v31  ;;  %v2777_v30 = vor.u32 %v3464_v42, %v2776_v16  ;;  %v2781_v31 = vor.u32 %v3456_v17, %v2778_v19 }
 0x12a   :  { %v682_v19 = vunpack.c.l.b16 %v114_v15 }
 0x12c   :  { %2204 = vmatpush.bf16.msrb.mxu0 %v3580_v11 }
 0x12e   :  { %v1956_v49 = vpop.f32.mrf.mxu2  ;;  %v1873_v54 = vpop.f32.mrf.mxu0 }
 0x12f   :  { %v1999_v50 = vpop.f32.mrf.mxu3  ;;  %v1957_v53 = vadd.f32 %v1956_v49, %v1914_v36  ;;  %v1916_v55 = vpop.f32.mrf.mxu1  ;;  %v1874_v59 = vadd.f32 %v1873_v54, %v4222_v7  ;;  %v2768_v7 = vld [vmem:[%s4835_s0 + $0x220] sm:$0xf]  ;;  %v3480_v54 = vld [vmem:[%s4835_s0 + $0x2e4] sm:$0xf0] }
 0x130   :  { %v2769_v24 = vor.u32 %v3463_v8, %v2768_v7  ;;  %v3595_v36 = vld [vmem:[%s4833_s1 + $0x380] sm:$0xff]  ;;  %2205 = vmatpush.bf16.msrb.mxu0 %v3579_v46 }
 0x131   :  { %v4504_v60 = vadd.f32 %v1999_v50, %v1957_v53  ;;  %v1917_v61 = vadd.f32 %v1916_v55, %v1874_v59  ;;  %2049 = vmatmul.bf16.gmra.mxu0 %v2705_v51  ;;  %2291 = vmatpush.bf16.msrb.mxu2 %v3595_v36  ;;  %v2832_v49 = vld [vmem:[%s4835_s0 + $0x2a0] sm:$0xf]  ;;  %v3471_v51 = vld [vmem:[%s4835_s0 + $0x2a4] sm:$0xf]  ;;  %v2840_v53 = vld [vmem:[%s4835_s0 + $0x2a8] sm:$0xf] }
 0x132   :  { %2092 = vmatmul.bf16.gmra.mxu1 %v2709_v5  ;;  %v3479_v50 = vld [vmem:[%s4835_s0 + $0x2dc] sm:$0xf0]  ;;  %v2834_v5 = vld [vmem:[%s4835_s0 + $0x2e0] sm:$0xf0]  ;;  %v3472_v55 = vld [vmem:[%s4835_s0 + $0x2ac] sm:$0xf] }
 0x133   :  { %2135 = vmatmul.bf16.gmra.mxu2 %v2713_v56  ;;  %v2842_v56 = vld [vmem:[%s4835_s0 + $0x2e8] sm:$0xf0] }
 0x134   :  { %2178 = vmatmul.bf16.gmra.mxu3 %v2717_v57 }
 0x136   :  { %v1959_v63 = vpop.f32.mrf.mxu2  ;;  %v1875_v1 = vpop.f32.mrf.mxu0 }
 0x137   :  { %v2002_v0 = vpop.f32.mrf.mxu3  ;;  %v1960_v28 = vadd.f32 %v1959_v63, %v1917_v61  ;;  %v1918_v2 = vpop.f32.mrf.mxu1  ;;  %v1876_v4 = vadd.f32 %v1875_v1, %v4261_v32  ;;  %v3604_v32 = vld [vmem:[%s4833_s1 + $0x3c8] sm:$0xff]  ;;  %v2833_v61 = vor.u32 %v3479_v50, %v2832_v49  ;;  %v2837_v63 = vor.u32 %v3471_v51, %v2834_v5  ;;  %v3401_v50 = vld [vmem:[%s4835_s0 + $0x6c] sm:$0xf0]  ;;  %v2530_v51 = vld [vmem:[%s4835_s0 + $0x70] sm:$0xf0] }
 0x138   :  { %2333 = vmatpush.bf16.msrb.mxu3 %v3604_v32  ;;  %v3402_v5 = vld [vmem:[%s4835_s0 + $0x74] sm:$0xf0] }
 0x139   :  { %v4507_v6 = vadd.f32 %v2002_v0, %v1960_v28  ;;  %v1919_v10 = vadd.f32 %v1918_v2, %v1876_v4  ;;  %v2841_v2 = vor.u32 %v3480_v54, %v2840_v53  ;;  %v2845_v4 = vor.u32 %v3472_v55, %v2842_v56  ;;  %v3394_v53 = vld [vmem:[%s4835_s0 + $0x3c] sm:$0xf] }
 0x13a   :  { %v2538_v54 = vld [vmem:[%s4835_s0 + $0x78] sm:$0xf0] }
 0x13c   :  { %2334 = vmatpush.bf16.msrb.mxu3 %v3603_v47 }
 0x13e   :  { %v1961_v20 = vpop.f32.mrf.mxu2  ;;  %v1878_v27 = vpop.f32.mrf.mxu0 }
 0x13f   :  { %v2004_v22 = vpop.f32.mrf.mxu3  ;;  %v1962_v26 = vadd.f32 %v1961_v20, %v1919_v10  ;;  %v1921_v29 = vpop.f32.mrf.mxu1  ;;  %v1879_v33 = vadd.f32 %v1878_v27, %v4267_v43  ;;  %v683_v20 = vunpack.c.h.b16 %v114_v15  ;;  %v794_v27 = vpack.c.b16 %v682_v19, %v682_v19  ;;  %v2592_v15 = vld [vmem:[%s4835_s0 + $0xb0] sm:$0xf]  ;;  %v3418_v19 = vld [vmem:[%s4835_s0 + $0xf4] sm:$0xf0] }
 0x141   :  { %v4546_v34 = vadd.f32 %v2004_v22, %v1962_v26  ;;  %v1922_v35 = vadd.f32 %v1921_v29, %v1879_v33  ;;  %2054 = vmatmul.bf16.gmra.mxu0 %v2769_v24  ;;  %v795_v29 = vpack.c.b16 %v683_v20, %v683_v20  ;;  %v3410_v20 = vld [vmem:[%s4835_s0 + $0xbc] sm:$0xf] }
 0x142   :  { %2097 = vmatmul.bf16.gmra.mxu1 %v2773_v25 }
 0x143   :  { %2140 = vmatmul.bf16.gmra.mxu2 %v2777_v30 }
 0x144   :  { %2183 = vmatmul.bf16.gmra.mxu3 %v2781_v31 }
 0x146   :  { %v1964_v39 = vpop.f32.mrf.mxu2  ;;  %v1880_v41 = vpop.f32.mrf.mxu0 }
 0x147   :  { %v2007_v62 = vpop.f32.mrf.mxu3  ;;  %v1965_v40 = vadd.f32 %v1964_v39, %v1922_v35  ;;  %v1923_v44 = vpop.f32.mrf.mxu1  ;;  %v1881_v45 = vadd.f32 %v1880_v41, %v4303_v3  ;;  %v3587_v3 = vld [vmem:[%s4833_s1 + $0x340] sm:$0xff] }
 0x148   :  { %2248 = vmatpush.bf16.msrb.mxu1 %v3587_v3  ;;  %v3393_v3 = vld [vmem:[%s4835_s0 + $0x34] sm:$0xf] }
 0x149   :  { %v4552_v43 = vadd.f32 %v2007_v62, %v1965_v40  ;;  %v1924_v48 = vadd.f32 %v1923_v44, %v1881_v45 }
 0x14e   :  { %v1966_v57 = vpop.f32.mrf.mxu2  ;;  %v1883_v28 = vpop.f32.mrf.mxu0 }
 0x14f   :  { %v2009_v59 = vpop.f32.mrf.mxu3  ;;  %v1967_v0 = vadd.f32 %v1966_v57, %v1924_v48  ;;  %v1926_v1 = vpop.f32.mrf.mxu1  ;;  %v1884_v7 = vadd.f32 %v1883_v28, %v4321_v18  ;;  %v115_v18 = vld [vmem:[%s4835_s0 + $0x328] sm:$0x11] }
 0x150   :  { %v684_v22 = vunpack.c.l.b16 %v115_v18  ;;  %v685_v24 = vunpack.c.h.b16 %v115_v18  ;;  %v2594_v18 = vld [vmem:[%s4835_s0 + $0xf0] sm:$0xf0] }
 0x151   :  { %v4588_v8 = vadd.f32 %v2009_v59, %v1967_v0  ;;  %v1927_v9 = vadd.f32 %v1926_v1, %v1884_v7  ;;  %2059 = vmatmul.bf16.gmra.mxu0 %v2833_v61  ;;  %v2533_v59 = vor.u32 %v3393_v3, %v2530_v51  ;;  %v2541_v1 = vor.u32 %v3394_v53, %v2538_v54  ;;  %v3434_v3 = vld [vmem:[%s4835_s0 + $0x174] sm:$0xf0]  ;;  %v3426_v51 = vld [vmem:[%s4835_s0 + $0x13c] sm:$0xf] }
 0x152   :  { %2102 = vmatmul.bf16.gmra.mxu1 %v2837_v63  ;;  %v796_v35 = vpack.c.b16 %v684_v22, %v684_v22  ;;  %v2602_v22 = vld [vmem:[%s4835_s0 + $0xf8] sm:$0xf0] }
 0x153   :  { %2145 = vmatmul.bf16.gmra.mxu2 %v2841_v2 }
 0x154   :  { %2188 = vmatmul.bf16.gmra.mxu3 %v2845_v4 }
 0x156   :  { %v1969_v10 = vpop.f32.mrf.mxu2  ;;  %v1885_v13 = vpop.f32.mrf.mxu0 }
 0x157   :  { %v2012_v11 = vpop.f32.mrf.mxu3  ;;  %v1970_v32 = vadd.f32 %v1969_v10, %v1927_v9  ;;  %v1928_v14 = vpop.f32.mrf.mxu1  ;;  %v1886_v16 = vadd.f32 %v1885_v13, %v4327_v38  ;;  %v797_v38 = vpack.c.b16 %v685_v24, %v685_v24 }
 0x159   :  { %v4597_v42 = vadd.f32 %v2012_v11, %v1970_v32  ;;  %v1929_v17 = vadd.f32 %v1928_v14, %v1886_v16  ;;  %v3409_v16 = vld [vmem:[%s4835_s0 + $0xb4] sm:$0xf] }
 0x15e   :  { %v1971_v25 = vpop.f32.mrf.mxu2  ;;  %v1888_v31 = vpop.f32.mrf.mxu0 }
 0x15f   :  { %v2014_v26 = vpop.f32.mrf.mxu3  ;;  %v1972_v30 = vadd.f32 %v1971_v25, %v1929_v17  ;;  %v1931_v33 = vpop.f32.mrf.mxu1  ;;  %v1889_v36 = vadd.f32 %v1888_v31, %v4342_v52  ;;  %v2528_v52 = vld [vmem:[%s4835_s0 + $0x30] sm:$0xf]  ;;  %v2600_v17 = vld [vmem:[%s4835_s0 + $0xb8] sm:$0xf] }
 0x160   :  { %v2529_v57 = vor.u32 %v3401_v50, %v2528_v52  ;;  %v2601_v31 = vor.u32 %v3418_v19, %v2600_v17  ;;  %v3425_v52 = vld [vmem:[%s4835_s0 + $0x134] sm:$0xf]  ;;  %v3450_v17 = vld [vmem:[%s4835_s0 + $0x1f4] sm:$0xf0]  ;;  %v3442_v19 = vld [vmem:[%s4835_s0 + $0x1bc] sm:$0xf] }
 0x161   :  { %v4600_v39 = vadd.f32 %v2014_v26, %v1972_v30  ;;  %v1932_v62 = vadd.f32 %v1931_v33, %v1889_v36  ;;  %2064 = vmatmul.bf16.gmra.mxu0 %v794_v27  ;;  %v2597_v27 = vor.u32 %v3409_v16, %v2594_v18  ;;  %v2605_v33 = vor.u32 %v3410_v20, %v2602_v22  ;;  %v2658_v50 = vld [vmem:[%s4835_s0 + $0x170] sm:$0xf0]  ;;  %v2730_v20 = vld [vmem:[%s4835_s0 + $0x1f8] sm:$0xf0] }
 0x162   :  { %2107 = vmatmul.bf16.gmra.mxu1 %v795_v29  ;;  %v3441_v16 = vld [vmem:[%s4835_s0 + $0x1b4] sm:$0xf] }
 0x163   :  { %2150 = vmatmul.bf16.gmra.mxu2 %v796_v35  ;;  %v2722_v18 = vld [vmem:[%s4835_s0 + $0x1f0] sm:$0xf0] }
 0x164   :  { %2193 = vmatmul.bf16.gmra.mxu3 %v797_v38 }
 0x166   :  { %v1974_v40 = vpop.f32.mrf.mxu2  ;;  %v1890_v45 = vpop.f32.mrf.mxu0 }
 0x167   :  { %v2017_v41 = vpop.f32.mrf.mxu3  ;;  %v1975_v44 = vadd.f32 %v1974_v40, %v1932_v62  ;;  %v1933_v46 = vpop.f32.mrf.mxu1  ;;  %v1891_v47 = vadd.f32 %v1890_v45, %v4369_v12  ;;  %v2536_v12 = vld [vmem:[%s4835_s0 + $0x38] sm:$0xf] }
 0x168   :  { %v2537_v28 = vor.u32 %v3402_v5, %v2536_v12  ;;  %v2666_v12 = vld [vmem:[%s4835_s0 + $0x178] sm:$0xf0] }
 0x169   :  { %v4603_v48 = vadd.f32 %v2017_v41, %v1975_v44  ;;  %v1934_v49 = vadd.f32 %v1933_v46, %v1891_v47 }
 0x16e   :  { %v1976_v55 = vpop.f32.mrf.mxu2  ;;  %v1893_v63 = vpop.f32.mrf.mxu0 }
 0x16f   :  { %v2019_v56 = vpop.f32.mrf.mxu3  ;;  %v1977_v61 = vadd.f32 %v1976_v55, %v1934_v49  ;;  %v1936_v0 = vpop.f32.mrf.mxu1  ;;  %v1894_v2 = vadd.f32 %v1893_v63, %v4383_v23  ;;  %v3417_v23 = vld [vmem:[%s4835_s0 + $0xec] sm:$0xf0]  ;;  %v2661_v55 = vor.u32 %v3425_v52, %v2658_v50  ;;  %v2669_v63 = vor.u32 %v3426_v51, %v2666_v12  ;;  %v3457_v50 = vld [vmem:[%s4835_s0 + $0x234] sm:$0xf]  ;;  %v3458_v51 = vld [vmem:[%s4835_s0 + $0x23c] sm:$0xf] }
 0x170   :  { %v2593_v26 = vor.u32 %v3417_v23, %v2592_v15  ;;  %v2656_v49 = vld [vmem:[%s4835_s0 + $0x130] sm:$0xf]  ;;  %v2794_v12 = vld [vmem:[%s4835_s0 + $0x278] sm:$0xf0] }
 0x171   :  { %v4630_v4 = vadd.f32 %v2019_v56, %v1977_v61  ;;  %v1937_v7 = vadd.f32 %v1936_v0, %v1894_v2  ;;  %2206 = vmatmul.bf16.vlgmr.msrb.gmra.mxu0 %v2529_v57  ;;  %v3449_v23 = vld [vmem:[%s4835_s0 + $0x1ec] sm:$0xf0] }
 0x172   :  { %2249 = vmatmul.bf16.vlgmr.msrb.gmra.mxu1 %v2533_v59  ;;  %v3465_v52 = vld [vmem:[%s4835_s0 + $0x26c] sm:$0xf0] }
 0x173   :  { %2292 = vmatmul.bf16.vlgmr.msrb.gmra.mxu2 %v2537_v28 }
 0x174   :  { %2335 = vmatmul.bf16.vlgmr.msrb.gmra.mxu3 %v2541_v1 }
 0x176   :  { %v1979_v9 = vpop.f32.mrf.mxu2  ;;  %v1895_v32 = vpop.f32.mrf.mxu0 }
 0x177   :  { %v2022_v10 = vpop.f32.mrf.mxu3  ;;  %v1980_v11 = vadd.f32 %v1979_v9, %v1937_v7  ;;  %v1938_v13 = vpop.f32.mrf.mxu1 }
 0x179   :  { %v4632_v14 = vadd.f32 %v2022_v10, %v1980_v11 }
 0x17e   :  { %v1981_v24 = vpop.f32.mrf.mxu2  ;;  %v2035_v29 = vpop.f32.mrf.mxu0 }
 0x17f   :  { %v2024_v25 = vpop.f32.mrf.mxu3  ;;  %v2078_v30 = vpop.f32.mrf.mxu1  ;;  %v2036_v35 = vadd.f32 %v2035_v29, %v4423_v58  ;;  %v3433_v58 = vld [vmem:[%s4835_s0 + $0x16c] sm:$0xf0] }
 0x180   :  { %v2657_v54 = vor.u32 %v3433_v58, %v2656_v49 }
 0x181   :  { %v2079_v38 = vadd.f32 %v2078_v30, %v2036_v35  ;;  %2211 = vmatmul.bf16.gmra.mxu0 %v2593_v26  ;;  %v2725_v26 = vor.u32 %v3441_v16, %v2722_v18  ;;  %v3481_v16 = vld [vmem:[%s4835_s0 + $0x2ec] sm:$0xf0]  ;;  %v3473_v18 = vld [vmem:[%s4835_s0 + $0x2b4] sm:$0xf] }
 0x182   :  { %2254 = vmatmul.bf16.gmra.mxu1 %v2597_v27 }
 0x183   :  { %2297 = vmatmul.bf16.gmra.mxu2 %v2601_v31 }
 0x184   :  { %2340 = vmatmul.bf16.gmra.mxu3 %v2605_v33  ;;  %v2733_v33 = vor.u32 %v3442_v19, %v2730_v20  ;;  %v3474_v19 = vld [vmem:[%s4835_s0 + $0x2bc] sm:$0xf] }
 0x185   :  { %v2858_v20 = vld [vmem:[%s4835_s0 + $0x2f8] sm:$0xf0] }
 0x186   :  { %v2121_v36 = vpop.f32.mrf.mxu2  ;;  %v2037_v41 = vpop.f32.mrf.mxu0 }
 0x187   :  { %v2164_v62 = vpop.f32.mrf.mxu3  ;;  %v2122_v40 = vadd.f32 %v2121_v36, %v2079_v38  ;;  %v2080_v44 = vpop.f32.mrf.mxu1  ;;  %v2038_v45 = vadd.f32 %v2037_v41, %v4459_v21  ;;  %v2664_v21 = vld [vmem:[%s4835_s0 + $0x138] sm:$0xf] }
 0x188   :  { %v2665_v61 = vor.u32 %v3434_v3, %v2664_v21  ;;  %v2786_v21 = vld [vmem:[%s4835_s0 + $0x270] sm:$0xf0]  ;;  %v3466_v3 = vld [vmem:[%s4835_s0 + $0x274] sm:$0xf0] }
 0x189   :  { %v4660_v46 = vadd.f32 %v2164_v62, %v2122_v40  ;;  %v2081_v47 = vadd.f32 %v2080_v44, %v2038_v45 }
 0x18e   :  { %v2123_v5 = vpop.f32.mrf.mxu2  ;;  %v2040_v57 = vpop.f32.mrf.mxu0 }
 0x18f   :  { %v2166_v53 = vpop.f32.mrf.mxu3  ;;  %v2124_v56 = vadd.f32 %v2123_v5, %v2081_v47  ;;  %v2083_v59 = vpop.f32.mrf.mxu1  ;;  %v2041_v0 = vadd.f32 %v2040_v57, %v4465_v37  ;;  %v2720_v37 = vld [vmem:[%s4835_s0 + $0x1b0] sm:$0xf] }
 0x190   :  { %v2721_v25 = vor.u32 %v3449_v23, %v2720_v37 }
 0x191   :  { %v4687_v28 = vadd.f32 %v2166_v53, %v2124_v56  ;;  %v2084_v1 = vadd.f32 %v2083_v59, %v2041_v0  ;;  %2216 = vmatmul.bf16.gmra.mxu0 %v2657_v54 }
 0x192   :  { %2259 = vmatmul.bf16.gmra.mxu1 %v2661_v55  ;;  %v2789_v55 = vor.u32 %v3457_v50, %v2786_v21 }
 0x193   :  { %2302 = vmatmul.bf16.gmra.mxu2 %v2665_v61 }
 0x194   :  { %2345 = vmatmul.bf16.gmra.mxu3 %v2669_v63  ;;  %v2797_v63 = vor.u32 %v3458_v51, %v2794_v12 }
 0x196   :  { %v2126_v2 = vpop.f32.mrf.mxu2  ;;  %v2042_v10 = vpop.f32.mrf.mxu0 }
 0x197   :  { %v2169_v7 = vpop.f32.mrf.mxu3  ;;  %v2127_v9 = vadd.f32 %v2126_v2, %v2084_v1  ;;  %v2085_v11 = vpop.f32.mrf.mxu1  ;;  %v2043_v32 = vadd.f32 %v2042_v10, %v4504_v60  ;;  %v2728_v60 = vld [vmem:[%s4835_s0 + $0x1b8] sm:$0xf] }
 0x198   :  { %v2729_v31 = vor.u32 %v3450_v17, %v2728_v60  ;;  %v2850_v60 = vld [vmem:[%s4835_s0 + $0x2f0] sm:$0xf0]  ;;  %v3482_v17 = vld [vmem:[%s4835_s0 + $0x2f4] sm:$0xf0] }
 0x199   :  { %v4690_v13 = vadd.f32 %v2169_v7, %v2127_v9  ;;  %v2086_v15 = vadd.f32 %v2085_v11, %v2043_v32 }
 0x19e   :  { %v2128_v22 = vpop.f32.mrf.mxu2  ;;  %v2045_v29 = vpop.f32.mrf.mxu0 }
 0x19f   :  { %v2171_v24 = vpop.f32.mrf.mxu3  ;;  %v2129_v27 = vadd.f32 %v2128_v22, %v2086_v15  ;;  %v2088_v30 = vpop.f32.mrf.mxu1  ;;  %v2046_v35 = vadd.f32 %v2045_v29, %v4507_v6  ;;  %v2784_v6 = vld [vmem:[%s4835_s0 + $0x230] sm:$0xf] }
 0x1a0   :  { %v2785_v54 = vor.u32 %v3465_v52, %v2784_v6 }
 0x1a1   :  { %v4717_v38 = vadd.f32 %v2171_v24, %v2129_v27  ;;  %v2089_v36 = vadd.f32 %v2088_v30, %v2046_v35  ;;  %2221 = vmatmul.bf16.gmra.mxu0 %v2721_v25 }
 0x1a2   :  { %2264 = vmatmul.bf16.gmra.mxu1 %v2725_v26  ;;  %v2853_v26 = vor.u32 %v3473_v18, %v2850_v60 }
 0x1a3   :  { %2307 = vmatmul.bf16.gmra.mxu2 %v2729_v31 }
 0x1a4   :  { %2350 = vmatmul.bf16.gmra.mxu3 %v2733_v33  ;;  %v2861_v33 = vor.u32 %v3474_v19, %v2858_v20 }
 0x1a6   :  { %v2131_v62 = vpop.f32.mrf.mxu2  ;;  %v2047_v44 = vpop.f32.mrf.mxu0 }
 0x1a7   :  { %v2174_v40 = vpop.f32.mrf.mxu3  ;;  %v2132_v41 = vadd.f32 %v2131_v62, %v2089_v36  ;;  %v2090_v45 = vpop.f32.mrf.mxu1  ;;  %v2048_v47 = vadd.f32 %v2047_v44, %v4546_v34  ;;  %v2792_v34 = vld [vmem:[%s4835_s0 + $0x238] sm:$0xf] }
 0x1a8   :  { %v2793_v61 = vor.u32 %v3466_v3, %v2792_v34 }
 0x1a9   :  { %v4720_v49 = vadd.f32 %v2174_v40, %v2132_v41  ;;  %v2091_v58 = vadd.f32 %v2090_v45, %v2048_v47 }
 0x1ae   :  { %v2133_v5 = vpop.f32.mrf.mxu2  ;;  %v2050_v57 = vpop.f32.mrf.mxu0 }
 0x1af   :  { %v2176_v53 = vpop.f32.mrf.mxu3  ;;  %v2134_v56 = vadd.f32 %v2133_v5, %v2091_v58  ;;  %v2093_v59 = vpop.f32.mrf.mxu1  ;;  %v2051_v0 = vadd.f32 %v2050_v57, %v4552_v43  ;;  %v2848_v43 = vld [vmem:[%s4835_s0 + $0x2b0] sm:$0xf] }
 0x1b0   :  { %v2849_v25 = vor.u32 %v3481_v16, %v2848_v43  ;;  %v116_v58 = vld [vmem:[%s4835_s0 + $0x330] sm:$0x11] }
 0x1b1   :  { %v4747_v1 = vadd.f32 %v2176_v53, %v2134_v56  ;;  %v2094_v2 = vadd.f32 %v2093_v59, %v2051_v0  ;;  %2226 = vmatmul.bf16.gmra.mxu0 %v2785_v54  ;;  %v686_v21 = vunpack.c.l.b16 %v116_v58  ;;  %v687_v34 = vunpack.c.h.b16 %v116_v58 }
 0x1b2   :  { %2269 = vmatmul.bf16.gmra.mxu1 %v2789_v55 }
 0x1b3   :  { %2312 = vmatmul.bf16.gmra.mxu2 %v2793_v61  ;;  %v798_v53 = vpack.c.b16 %v686_v21, %v686_v21  ;;  %v799_v54 = vpack.c.b16 %v687_v34, %v687_v34 }
 0x1b4   :  { %2355 = vmatmul.bf16.gmra.mxu3 %v2797_v63 }
 0x1b6   :  { %v2136_v7 = vpop.f32.mrf.mxu2  ;;  %v2052_v11 = vpop.f32.mrf.mxu0 }
 0x1b7   :  { %v2179_v9 = vpop.f32.mrf.mxu3  ;;  %v2137_v10 = vadd.f32 %v2136_v7, %v2094_v2  ;;  %v2095_v32 = vpop.f32.mrf.mxu1  ;;  %v2053_v15 = vadd.f32 %v2052_v11, %v4588_v8  ;;  %v2856_v8 = vld [vmem:[%s4835_s0 + $0x2b8] sm:$0xf] }
 0x1b8   :  { %v2857_v31 = vor.u32 %v3482_v17, %v2856_v8 }
 0x1b9   :  { %v4750_v37 = vadd.f32 %v2179_v9, %v2137_v10  ;;  %v2096_v23 = vadd.f32 %v2095_v32, %v2053_v15 }
 0x1be   :  { %v2138_v22 = vpop.f32.mrf.mxu2  ;;  %v2055_v29 = vpop.f32.mrf.mxu0 }
 0x1bf   :  { %v2181_v24 = vpop.f32.mrf.mxu3  ;;  %v2139_v27 = vadd.f32 %v2138_v22, %v2096_v23  ;;  %v2098_v30 = vpop.f32.mrf.mxu1  ;;  %v2056_v35 = vadd.f32 %v2055_v29, %v4597_v42  ;;  %v117_v42 = vld [vmem:[%s4835_s0 + $0x338] sm:$0x11] }
 0x1c0   :  { %v688_v3 = vunpack.c.l.b16 %v117_v42  ;;  %v689_v51 = vunpack.c.h.b16 %v117_v42 }
 0x1c1   :  { %v4777_v36 = vadd.f32 %v2181_v24, %v2139_v27  ;;  %v2099_v62 = vadd.f32 %v2098_v30, %v2056_v35  ;;  %2231 = vmatmul.bf16.gmra.mxu0 %v2849_v25 }
 0x1c2   :  { %2274 = vmatmul.bf16.gmra.mxu1 %v2853_v26  ;;  %v800_v59 = vpack.c.b16 %v688_v3, %v688_v3 }
 0x1c3   :  { %2317 = vmatmul.bf16.gmra.mxu2 %v2857_v31 }
 0x1c4   :  { %2360 = vmatmul.bf16.gmra.mxu3 %v2861_v33 }
 0x1c6   :  { %v2141_v40 = vpop.f32.mrf.mxu2  ;;  %v2057_v45 = vpop.f32.mrf.mxu0 }
 0x1c7   :  { %v2184_v41 = vpop.f32.mrf.mxu3  ;;  %v2142_v44 = vadd.f32 %v2141_v40, %v2099_v62  ;;  %v2100_v47 = vpop.f32.mrf.mxu1  ;;  %v2058_v6 = vadd.f32 %v2057_v45, %v4600_v39  ;;  %v801_v39 = vpack.c.b16 %v689_v51, %v689_v51 }
 0x1c9   :  { %v4786_v52 = vadd.f32 %v2184_v41, %v2142_v44  ;;  %v2101_v50 = vadd.f32 %v2100_v47, %v2058_v6 }
 0x1ce   :  { %v2143_v12 = vpop.f32.mrf.mxu2  ;;  %v2060_v56 = vpop.f32.mrf.mxu0 }
 0x1cf   :  { %v2186_v5 = vpop.f32.mrf.mxu3  ;;  %v2144_v55 = vadd.f32 %v2143_v12, %v2101_v50  ;;  %v2103_v57 = vpop.f32.mrf.mxu1  ;;  %v2061_v61 = vadd.f32 %v2060_v56, %v4603_v48 }
 0x1d1   :  { %v4789_v63 = vadd.f32 %v2186_v5, %v2144_v55  ;;  %v2104_v0 = vadd.f32 %v2103_v57, %v2061_v61  ;;  %2236 = vmatmul.bf16.gmra.mxu0 %v798_v53 }
 0x1d2   :  { %2279 = vmatmul.bf16.gmra.mxu1 %v799_v54 }
 0x1d3   :  { %2322 = vmatmul.bf16.gmra.mxu2 %v800_v59 }
 0x1d4   :  { %2365 = vmatmul.bf16.gmra.mxu3 %v801_v39 }
 0x1d6   :  { %v2146_v2 = vpop.f32.mrf.mxu2  ;;  %v2062_v10 = vpop.f32.mrf.mxu0 }
 0x1d7   :  { %v2189_v7 = vpop.f32.mrf.mxu3  ;;  %v2147_v9 = vadd.f32 %v2146_v2, %v2104_v0  ;;  %v2105_v11 = vpop.f32.mrf.mxu1  ;;  %v2063_v32 = vadd.f32 %v2062_v10, %v4630_v4 }
 0x1d9   :  { %v4792_v15 = vadd.f32 %v2189_v7, %v2147_v9  ;;  %v2106_v23 = vadd.f32 %v2105_v11, %v2063_v32 }
 0x1de   :  { %v2148_v43 = vpop.f32.mrf.mxu2  ;;  %v2065_v18 = vpop.f32.mrf.mxu0 }
 0x1df   :  { %v2191_v16 = vpop.f32.mrf.mxu3  ;;  %v2149_v48 = vadd.f32 %v2148_v43, %v2106_v23  ;;  %v2108_v60 = vpop.f32.mrf.mxu1  ;;  %v2066_v8 = vadd.f32 %v2065_v18, %v4632_v14 }
 0x1e1   :  { %v4795_v17 = vadd.f32 %v2191_v16, %v2149_v48  ;;  %v2109_v19 = vadd.f32 %v2108_v60, %v2066_v8 }
 0x1e6   :  { %v2151_v20 = vpop.f32.mrf.mxu2  ;;  %v2067_v25 = vpop.f32.mrf.mxu0 }
 0x1e7   :  { %v2194_v22 = vpop.f32.mrf.mxu3  ;;  %v2152_v24 = vadd.f32 %v2151_v20, %v2109_v19  ;;  %v2110_v26 = vpop.f32.mrf.mxu1 }
 0x1e9   :  { %v4797_v27 = vadd.f32 %v2194_v22, %v2152_v24 }
 0x1ee   :  { %v2153_v4 = vpop.f32.mrf.mxu2  ;;  %v2207_v30 = vpop.f32.mrf.mxu0 }
 0x1ef   :  { %v2196_v29 = vpop.f32.mrf.mxu3  ;;  %v2250_v31 = vpop.f32.mrf.mxu1  ;;  %v2208_v33 = vadd.f32 %v2207_v30, %v4660_v46 }
 0x1f1   :  { %v2251_v35 = vadd.f32 %v2250_v31, %v2208_v33 }
 0x1f6   :  { %v2293_v62 = vpop.f32.mrf.mxu2  ;;  %v2209_v41 = vpop.f32.mrf.mxu0 }
 0x1f7   :  { %v2336_v40 = vpop.f32.mrf.mxu3  ;;  %v2294_v14 = vadd.f32 %v2293_v62, %v2251_v35  ;;  %v2252_v44 = vpop.f32.mrf.mxu1  ;;  %v2210_v47 = vadd.f32 %v2209_v41, %v4687_v28 }
 0x1f9   :  { %v2337_v45 = vadd.f32 %v2336_v40, %v2294_v14  ;;  %v2253_v6 = vadd.f32 %v2252_v44, %v2210_v47 }
 0x1fb   :  { %v2383_v58 = vmin.f32 %v2337_v45, 0.0  ;;  %vm2370_vm0 = vcmp.gt.f32.partialorder %v2337_v45, 0.0 }
 0x1fd   :  { %v2396_v21 = vmul.f32 1.442695, %v2383_v58 }
 0x1fe   :  { %v2295_v42 = vpop.f32.mrf.mxu2  ;;  %v2212_v3 = vpop.f32.mrf.mxu0 }
 0x1ff   :  { %v2338_v50 = vpop.f32.mrf.mxu3  ;;  %v2296_v34 = vadd.f32 %v2295_v42, %v2253_v6  ;;  %v2255_v51 = vpop.f32.mrf.mxu1  ;;  %v2213_v46 = vadd.f32 %v2212_v3, %v4690_v13  ;;  %3647 = vpow2.f32 %v2396_v21 }
 0x201   :  { %v2339_v12 = vadd.f32 %v2338_v50, %v2296_v34  ;;  %v2256_v54 = vadd.f32 %v2255_v51, %v2213_v46 }
 0x203   :  { %v2384_v5 = vmin.f32 %v2339_v12, 0.0  ;;  %vm2371_vm1 = vcmp.gt.f32.partialorder %v2339_v12, 0.0 }
 0x205   :  { %v2398_v53 = vmul.f32 1.442695, %v2384_v5  ;;  %v3648_v39 = vpop.eup %3647 }
 0x206   :  { %v2298_v55 = vpop.f32.mrf.mxu2  ;;  %v2214_v28 = vpop.f32.mrf.mxu0  ;;  %v3374_v7 = vadd.f32 -1.0, %v3648_v39 }
 0x207   :  { %v2341_v56 = vpop.f32.mrf.mxu3  ;;  %3649 = vpow2.f32 %v2398_v53  ;;  %v2299_v57 = vadd.f32 %v2298_v55, %v2256_v54  ;;  %v2257_v59 = vpop.f32.mrf.mxu1  ;;  %v2215_v0 = vadd.f32 %v2214_v28, %v4717_v38 }
 0x208   :  { %v2435_v18 = vsel %vm2370_vm0, %v2337_v45, %v3374_v7 }
 0x209   :  { %v2342_v61 = vadd.f32 %v2341_v56, %v2299_v57  ;;  %v2258_v10 = vadd.f32 %v2257_v59, %v2215_v0 }
 0x20b   :  { %v2385_v2 = vmin.f32 %v2342_v61, 0.0  ;;  %vm2372_vm2 = vcmp.gt.f32.partialorder %v2342_v61, 0.0 }
 0x20d   :  { %v3650_v9 = vpop.eup %3649  ;;  %v2400_v23 = vmul.f32 1.442695, %v2385_v2 }
 0x20e   :  { %v3375_v11 = vadd.f32 -1.0, %v3650_v9  ;;  %v2300_v13 = vpop.f32.mrf.mxu2  ;;  %v2217_v16 = vpop.f32.mrf.mxu0 }
 0x20f   :  { %v2343_v32 = vpop.f32.mrf.mxu3  ;;  %v2301_v43 = vadd.f32 %v2300_v13, %v2258_v10  ;;  %v2260_v48 = vpop.f32.mrf.mxu1  ;;  %v2218_v20 = vadd.f32 %v2217_v16, %v4720_v49  ;;  %3651 = vpow2.f32 %v2400_v23 }
 0x210   :  { %v2436_v60 = vsel %vm2371_vm1, %v2339_v12, %v3375_v11 }
 0x211   :  { %v3614_v8 = vpack.c.bf16 %v2436_v60, %v2435_v18  ;;  %v2344_v19 = vadd.f32 %v2343_v32, %v2301_v43  ;;  %v2261_v24 = vadd.f32 %v2260_v48, %v2218_v20 }
 0x213   :  { %3615 = vst [vmem:[%s4836_s3] sm:$0xff] %v3614_v8   ;;  %v2386_v38 = vmin.f32 %v2344_v19, 0.0  ;;  %vm2373_vm3 = vcmp.gt.f32.partialorder %v2344_v19, 0.0 }
 0x215   :  { %v2402_v22 = vmul.f32 1.442695, %v2386_v38  ;;  %v3652_v31 = vpop.eup %3651 }
 0x216   :  { %v2303_v25 = vpop.f32.mrf.mxu2  ;;  %v2219_v29 = vpop.f32.mrf.mxu0  ;;  %v3376_v49 = vadd.f32 -1.0, %v3652_v31 }
 0x217   :  { %v2346_v26 = vpop.f32.mrf.mxu3  ;;  %3653 = vpow2.f32 %v2402_v22  ;;  %v2304_v4 = vadd.f32 %v2303_v25, %v2261_v24  ;;  %v2262_v30 = vpop.f32.mrf.mxu1  ;;  %v2220_v35 = vadd.f32 %v2219_v29, %v4747_v1 }
 0x218   :  { %v2437_v50 = vsel %vm2372_vm2, %v2342_v61, %v3376_v49 }
 0x219   :  { %v2347_v33 = vadd.f32 %v2346_v26, %v2304_v4  ;;  %v2263_v14 = vadd.f32 %v2262_v30, %v2220_v35 }
 0x21b   :  { %v2387_v62 = vmin.f32 %v2347_v33, 0.0  ;;  %vm2374_vm4 = vcmp.gt.f32.partialorder %v2347_v33, 0.0 }
 0x21d   :  { %v3654_v40 = vpop.eup %3653  ;;  %v2404_v47 = vmul.f32 1.442695, %v2387_v62 }
 0x21e   :  { %v3377_v41 = vadd.f32 -1.0, %v3654_v40  ;;  %v2305_v44 = vpop.f32.mrf.mxu2  ;;  %v2222_v6 = vpop.f32.mrf.mxu0 }
 0x21f   :  { %v2348_v45 = vpop.f32.mrf.mxu3  ;;  %v2306_v58 = vadd.f32 %v2305_v44, %v2263_v14  ;;  %v2265_v42 = vpop.f32.mrf.mxu1  ;;  %v2223_v51 = vadd.f32 %v2222_v6, %v4750_v37  ;;  %3655 = vpow2.f32 %v2404_v47 }
 0x220   :  { %v2438_v21 = vsel %vm2373_vm3, %v2344_v19, %v3377_v41 }
 0x221   :  { %v3619_v34 = vpack.c.bf16 %v2438_v21, %v2437_v50  ;;  %v2349_v3 = vadd.f32 %v2348_v45, %v2306_v58  ;;  %v2266_v46 = vadd.f32 %v2265_v42, %v2223_v51 }
 0x223   :  { %3641 = vst [vmem:[%s4836_s3 + $0x8] sm:$0xff] %v3619_v34   ;;  %v2388_v1 = vmin.f32 %v2349_v3, 0.0  ;;  %vm2375_vm5 = vcmp.gt.f32.partialorder %v2349_v3, 0.0 }
 0x225   :  { %v2406_v12 = vmul.f32 1.442695, %v2388_v1  ;;  %v3656_v57 = vpop.eup %3655 }
 0x226   :  { %v2308_v5 = vpop.f32.mrf.mxu2  ;;  %v2224_v55 = vpop.f32.mrf.mxu0  ;;  %v3378_v37 = vadd.f32 -1.0, %v3656_v57 }
 0x227   :  { %v2351_v53 = vpop.f32.mrf.mxu3  ;;  %3657 = vpow2.f32 %v2406_v12  ;;  %v2309_v54 = vadd.f32 %v2308_v5, %v2266_v46  ;;  %v2267_v56 = vpop.f32.mrf.mxu1  ;;  %v2225_v59 = vadd.f32 %v2224_v55, %v4777_v36 }
 0x228   :  { %v2439_v23 = vsel %vm2374_vm4, %v2347_v33, %v3378_v37 }
 0x229   :  { %v2352_v28 = vadd.f32 %v2351_v53, %v2309_v54  ;;  %v2268_v0 = vadd.f32 %v2267_v56, %v2225_v59 }
 0x22b   :  { %v2389_v39 = vmin.f32 %v2352_v28, 0.0  ;;  %vm2376_vm6 = vcmp.gt.f32.partialorder %v2352_v28, 0.0 }
 0x22d   :  { %v3658_v61 = vpop.eup %3657  ;;  %v2408_v10 = vmul.f32 1.442695, %v2389_v39 }
 0x22e   :  { %v3379_v2 = vadd.f32 -1.0, %v3658_v61  ;;  %v2310_v7 = vpop.f32.mrf.mxu2  ;;  %v2227_v13 = vpop.f32.mrf.mxu0 }
 0x22f   :  { %v2353_v9 = vpop.f32.mrf.mxu3  ;;  %v2311_v11 = vadd.f32 %v2310_v7, %v2268_v0  ;;  %v2270_v32 = vpop.f32.mrf.mxu1  ;;  %v2228_v18 = vadd.f32 %v2227_v13, %v4786_v52  ;;  %3659 = vpow2.f32 %v2408_v10 }
 0x230   :  { %v2440_v43 = vsel %vm2375_vm5, %v2349_v3, %v3379_v2 }
 0x231   :  { %v3624_v16 = vpack.c.bf16 %v2440_v43, %v2439_v23  ;;  %v2354_v48 = vadd.f32 %v2353_v9, %v2311_v11  ;;  %v2271_v8 = vadd.f32 %v2270_v32, %v2228_v18 }
 0x233   :  { %3642 = vst [vmem:[%s4836_s3 + $0x10] sm:$0xff] %v3624_v16   ;;  %v2390_v36 = vmin.f32 %v2354_v48, 0.0  ;;  %vm2377_vm7 = vcmp.gt.f32.partialorder %v2354_v48, 0.0 }
 0x235   :  { %v2410_v60 = vmul.f32 1.442695, %v2390_v36  ;;  %v3660_v25 = vpop.eup %3659 }
 0x236   :  { %v2313_v19 = vpop.f32.mrf.mxu2  ;;  %v2229_v22 = vpop.f32.mrf.mxu0  ;;  %v3380_v52 = vadd.f32 -1.0, %v3660_v25 }
 0x237   :  { %v2356_v20 = vpop.f32.mrf.mxu3  ;;  %3661 = vpow2.f32 %v2410_v60  ;;  %v2314_v38 = vadd.f32 %v2313_v19, %v2271_v8  ;;  %v2272_v24 = vpop.f32.mrf.mxu1  ;;  %v2230_v4 = vadd.f32 %v2229_v22, %v4789_v63 }
 0x238   :  { %v2441_v44 = vsel %vm2376_vm6, %v2352_v28, %v3380_v52 }
 0x239   :  { %v2357_v26 = vadd.f32 %v2356_v20, %v2314_v38  ;;  %v2273_v31 = vadd.f32 %v2272_v24, %v2230_v4 }
 0x23b   :  { %v2391_v29 = vmin.f32 %v2357_v26, 0.0  ;;  %vm2378_vm8 = vcmp.gt.f32.partialorder %v2357_v26, 0.0 }
 0x23d   :  { %v3662_v30 = vpop.eup %3661  ;;  %v2412_v49 = vmul.f32 1.442695, %v2391_v29 }
 0x23e   :  { %v3381_v33 = vadd.f32 -1.0, %v3662_v30  ;;  %v2315_v35 = vpop.f32.mrf.mxu2  ;;  %v2232_v14 = vpop.f32.mrf.mxu0 }
 0x23f   :  { %v2358_v62 = vpop.f32.mrf.mxu3  ;;  %v2316_v40 = vadd.f32 %v2315_v35, %v2273_v31  ;;  %v2275_v41 = vpop.f32.mrf.mxu1  ;;  %v2233_v6 = vadd.f32 %v2232_v14, %v4792_v15  ;;  %3663 = vpow2.f32 %v2412_v49 }
 0x240   :  { %v2442_v45 = vsel %vm2377_vm7, %v2354_v48, %v3381_v33 }
 0x241   :  { %v3629_v47 = vpack.c.bf16 %v2442_v45, %v2441_v44  ;;  %v2359_v58 = vadd.f32 %v2358_v62, %v2316_v40  ;;  %v2276_v50 = vadd.f32 %v2275_v41, %v2233_v6 }
 0x243   :  { %3643 = vst [vmem:[%s4836_s3 + $0x18] sm:$0xff] %v3629_v47   ;;  %v2392_v63 = vmin.f32 %v2359_v58, 0.0  ;;  %vm2379_vm9 = vcmp.gt.f32.partialorder %v2359_v58, 0.0 }
 0x245   :  { %v2414_v42 = vmul.f32 1.442695, %v2392_v63  ;;  %v3664_v12 = vpop.eup %3663 }
 0x246   :  { %v2318_v21 = vpop.f32.mrf.mxu2  ;;  %v2234_v51 = vpop.f32.mrf.mxu0  ;;  %v3382_v15 = vadd.f32 -1.0, %v3664_v12 }
 0x247   :  { %v2361_v34 = vpop.f32.mrf.mxu3  ;;  %3665 = vpow2.f32 %v2414_v42  ;;  %v2319_v3 = vadd.f32 %v2318_v21, %v2276_v50  ;;  %v2277_v1 = vpop.f32.mrf.mxu1  ;;  %v2235_v5 = vadd.f32 %v2234_v51, %v4795_v17 }
 0x248   :  { %v2443_v0 = vsel %vm2378_vm8, %v2357_v26, %v3382_v15 }
 0x249   :  { %v2362_v46 = vadd.f32 %v2361_v34, %v2319_v3  ;;  %v2278_v55 = vadd.f32 %v2277_v1, %v2235_v5 }
 0x24b   :  { %v2393_v53 = vmin.f32 %v2362_v46, 0.0  ;;  %vm2380_vm10 = vcmp.gt.f32.partialorder %v2362_v46, 0.0 }
 0x24d   :  { %v3666_v54 = vpop.eup %3665  ;;  %v2416_v59 = vmul.f32 1.442695, %v2393_v53 }
 0x24e   :  { %v3383_v56 = vadd.f32 -1.0, %v3666_v54  ;;  %v2320_v57 = vpop.f32.mrf.mxu2  ;;  %v2237_v37 = vpop.f32.mrf.mxu0 }
 0x24f   :  { %v2363_v28 = vpop.f32.mrf.mxu3  ;;  %v2321_v39 = vadd.f32 %v2320_v57, %v2278_v55  ;;  %v2280_v61 = vpop.f32.mrf.mxu1  ;;  %v2238_v10 = vadd.f32 %v2237_v37, %v4797_v27  ;;  %3667 = vpow2.f32 %v2416_v59 }
 0x250   :  { %v2444_v2 = vsel %vm2379_vm9, %v2359_v58, %v3383_v56 }
 0x251   :  { %v3634_v7 = vpack.c.bf16 %v2444_v2, %v2443_v0  ;;  %v2364_v9 = vadd.f32 %v2363_v28, %v2321_v39  ;;  %v2281_v13 = vadd.f32 %v2280_v61, %v2238_v10 }
 0x253   :  { %3644 = vst [vmem:[%s4836_s3 + $0x20] sm:$0xff] %v3634_v7   ;;  %v2394_v17 = vmin.f32 %v2364_v9, 0.0  ;;  %vm2381_vm11 = vcmp.gt.f32.partialorder %v2364_v9, 0.0 }
 0x255   :  { %v2418_v11 = vmul.f32 1.442695, %v2394_v17  ;;  %v3668_v18 = vpop.eup %3667 }
 0x256   :  { %v2323_v32 = vpop.f32.mrf.mxu2  ;;  %v2239_v16 = vpop.f32.mrf.mxu0  ;;  %v3384_v8 = vadd.f32 -1.0, %v3668_v18 }
 0x257   :  { %v2366_v23 = vpop.f32.mrf.mxu3  ;;  %3669 = vpow2.f32 %v2418_v11  ;;  %v2324_v43 = vadd.f32 %v2323_v32, %v2281_v13  ;;  %v2282_v48 = vpop.f32.mrf.mxu1 }
 0x258   :  { %v2445_v24 = vsel %vm2380_vm10, %v2362_v46, %v3384_v8 }
 0x259   :  { %v2367_v36 = vadd.f32 %v2366_v23, %v2324_v43 }
 0x25b   :  { %v2395_v60 = vmin.f32 %v2367_v36, 0.0  ;;  %vm2382_vm12 = vcmp.gt.f32.partialorder %v2367_v36, 0.0 }
 0x25d   :  { %v3670_v19 = vpop.eup %3669  ;;  %v2420_v27 = vmul.f32 1.442695, %v2395_v60 }
 0x25e   :  { %v3385_v20 = vadd.f32 -1.0, %v3670_v19  ;;  %v2325_v38 = vpop.f32.mrf.mxu2 }
 0x25f   :  { %v2368_v22 = vpop.f32.mrf.mxu3  ;;  %3671 = vpow2.f32 %v2420_v27 }
 0x260   :  { %v2446_v25 = vsel %vm2381_vm11, %v2364_v9, %v3385_v20 }
 0x261   :  { %v3639_v26 = vpack.c.bf16 %v2446_v25, %v2445_v24 }
 0x263   :  { %3645 = vst [vmem:[%s4836_s3 + $0x28] sm:$0xff] %v3639_v26  }
 0x265   :  { %v3672_v4 = vpop.eup %3671 }
 0x266   :  { %v3386_v29 = vadd.f32 -1.0, %v3672_v4 }
 0x268   :  { %v2447_v52 = vsel %vm2382_vm12, %v2367_v36, %v3386_v29 }
 0x269   :  { %v2460_v30 = vpack.c.bf16 %v2447_v52, %v2447_v52 }
 0x26b   :  { %2473 = vst [vmem:[%s4836_s3 + $0x30] sm:$0x1] %v2460_v30 }

// kernel: screen_encoder_forward.5
= control target key start
LH: loop header
LB: loop body
LE: loop exit
PB: predicated region body
PF: predicated region fallthrough
CT: control target
= control target key end

     0   :  { %s7515_s0 = inlined_call_operand.vmem [shape: bf16[18,1152], index: 0, kind: input, shape index: {}]   ;;  %s7516_s1 = inlined_call_operand.vmem [shape: bf16[1152,128], index: 1, kind: input, shape index: {}]   ;;  %s7517_s2 = inlined_call_operand.vmem [shape: f32[1,128], index: 2, kind: input, shape index: {}]   ;;  %s7518_s3 = inlined_call_operand.vmem [shape: bf16[9,128,512], index: 3, kind: input, shape index: {}]   ;;  %s7519_s4 = inlined_call_operand.vmem [shape: f32[1,512], index: 4, kind: input, shape index: {}]   ;;  %s7520_s5 = inlined_call_operand.hbm [shape: f32[2,512], index: 5, kind: output, shape index: {}]  }
   0x1   :  { %v4947_v0 = vld [vmem:[%s7516_s1 + $0x38] sm:$0xff]  ;;  %v4946_v4 = vld [vmem:[%s7516_s1 + $0x30] sm:$0xff]  ;;  %v4945_v8 = vld [vmem:[%s7516_s1 + $0x28] sm:$0xff] }
   0x2   :  { %v4963_v1 = vld [vmem:[%s7516_s1 + $0xb8] sm:$0xff]  ;;  %694 = vmatpush.bf16.msra.mxu0 %v4947_v0  ;;  %v4962_v5 = vld [vmem:[%s7516_s1 + $0xb0] sm:$0xff]  ;;  %v4961_v9 = vld [vmem:[%s7516_s1 + $0xa8] sm:$0xff] }
   0x3   :  { %v4955_v2 = vld [vmem:[%s7516_s1 + $0x78] sm:$0xff]  ;;  %730 = vmatpush.bf16.msra.mxu2 %v4963_v1  ;;  %v4954_v6 = vld [vmem:[%s7516_s1 + $0x70] sm:$0xff]  ;;  %v4953_v10 = vld [vmem:[%s7516_s1 + $0x68] sm:$0xff] }
   0x4   :  { %v4971_v3 = vld [vmem:[%s7516_s1 + $0xf8] sm:$0xff]  ;;  %712 = vmatpush.bf16.msra.mxu1 %v4955_v2  ;;  %v4970_v7 = vld [vmem:[%s7516_s1 + $0xf0] sm:$0xff]  ;;  %v4969_v11 = vld [vmem:[%s7516_s1 + $0xe8] sm:$0xff] }
   0x5   :  { %748 = vmatpush.bf16.msra.mxu3 %v4971_v3  ;;  %v4944_v12 = vld [vmem:[%s7516_s1 + $0x20] sm:$0xff]  ;;  %v4943_v16 = vld [vmem:[%s7516_s1 + $0x18] sm:$0xff]  ;;  %v4942_v20 = vld [vmem:[%s7516_s1 + $0x10] sm:$0xff] }
   0x6   :  { %695 = vmatpush.bf16.msra.mxu0 %v4946_v4  ;;  %v4960_v13 = vld [vmem:[%s7516_s1 + $0xa0] sm:$0xff]  ;;  %v4959_v17 = vld [vmem:[%s7516_s1 + $0x98] sm:$0xff]  ;;  %v4958_v21 = vld [vmem:[%s7516_s1 + $0x90] sm:$0xff] }
   0x7   :  { %731 = vmatpush.bf16.msra.mxu2 %v4962_v5  ;;  %v4952_v14 = vld [vmem:[%s7516_s1 + $0x60] sm:$0xff]  ;;  %v4951_v18 = vld [vmem:[%s7516_s1 + $0x58] sm:$0xff]  ;;  %v4950_v22 = vld [vmem:[%s7516_s1 + $0x50] sm:$0xff] }
   0x8   :  { %713 = vmatpush.bf16.msra.mxu1 %v4954_v6  ;;  %v4968_v15 = vld [vmem:[%s7516_s1 + $0xe0] sm:$0xff]  ;;  %v4967_v19 = vld [vmem:[%s7516_s1 + $0xd8] sm:$0xff]  ;;  %v4966_v23 = vld [vmem:[%s7516_s1 + $0xd0] sm:$0xff] }
   0x9   :  { %749 = vmatpush.bf16.msra.mxu3 %v4970_v7  ;;  %v4941_v24 = vld [vmem:[%s7516_s1 + $0x8] sm:$0xff] }
   0xa   :  { %696 = vmatpush.bf16.msra.mxu0 %v4945_v8  ;;  %v4957_v25 = vld [vmem:[%s7516_s1 + $0x88] sm:$0xff] }
   0xb   :  { %732 = vmatpush.bf16.msra.mxu2 %v4961_v9 }
   0xc   :  { %714 = vmatpush.bf16.msra.mxu1 %v4953_v10 }
   0xd   :  { %750 = vmatpush.bf16.msra.mxu3 %v4969_v11 }
   0xe   :  { %697 = vmatpush.bf16.msra.mxu0 %v4944_v12 }
   0xf   :  { %733 = vmatpush.bf16.msra.mxu2 %v4960_v13 }
  0x10   :  { %715 = vmatpush.bf16.msra.mxu1 %v4952_v14 }
  0x11   :  { %751 = vmatpush.bf16.msra.mxu3 %v4968_v15 }
  0x12   :  { %698 = vmatpush.bf16.msra.mxu0 %v4943_v16 }
  0x13   :  { %734 = vmatpush.bf16.msra.mxu2 %v4959_v17 }
  0x14   :  { %716 = vmatpush.bf16.msra.mxu1 %v4951_v18 }
  0x15   :  { %752 = vmatpush.bf16.msra.mxu3 %v4967_v19 }
  0x16   :  { %699 = vmatpush.bf16.msra.mxu0 %v4942_v20 }
  0x17   :  { %735 = vmatpush.bf16.msra.mxu2 %v4958_v21 }
  0x18   :  { %10 = vsyncpa [#allocation3], 0  ;;  %717 = vmatpush.bf16.msra.mxu1 %v4950_v22  ;;  %v4949_v26 = vld [vmem:[%s7516_s1 + $0x48] sm:$0xff]  ;;  %v4940_v28 = vld [vmem:[%s7516_s1] sm:$0xff]  ;;  %vm3168_vm6 = vcmask 1041408   ;;  %vm3170_vm8 = vcmask 1045508  }
  0x19   :  { %753 = vmatpush.bf16.msra.mxu3 %v4966_v23  ;;  %v4965_v27 = vld [vmem:[%s7516_s1 + $0xc8] sm:$0xff]  ;;  %v4956_v29 = vld [vmem:[%s7516_s1 + $0x80] sm:$0xff]  ;;  %v3204_v39 = vld [vmem:[%s7515_s0 + $0x2c] sm:$0xf0]  ;;  %s3183_s19 = sshll.u32 %s7520_s5, 4  ;;  %vm3172_vm9 = vcmask 1043456   ;;  %s3184_s19 = int_to_ptr.hbm [resolvable:$true] %s3183_s19 }
  0x1a   :  { %v4948_v30 = vld [vmem:[%s7516_s1 + $0x40] sm:$0xff]  ;;  %700 = vmatpush.bf16.msra.mxu0 %v4941_v24  ;;  %v3202_v34 = vld [vmem:[%s7515_s0 + $0x8] sm:$0xf]  ;;  %v4936_v35 = vld [vmem:[%s7515_s0 + $0x28] sm:$0xf0] }
  0x1b   :  { %v4964_v31 = vld [vmem:[%s7516_s1 + $0xc0] sm:$0xff]  ;;  %736 = vmatpush.bf16.msra.mxu2 %v4957_v25  ;;  %v3196_v37 = vld [vmem:[%s7515_s0 + $0x24] sm:$0xf0]  ;;  %v4932_v38 = vld [vmem:[%s7515_s0 + $0xc] sm:$0xf]  ;;  %v3203_v43 = vor.u32 %v4936_v35, %v3202_v34 }
  0x1c   :  { %v3194_v32 = vld [vmem:[%s7515_s0] sm:$0xf]  ;;  %v4935_v33 = vld [vmem:[%s7515_s0 + $0x20] sm:$0xf0]  ;;  %718 = vmatpush.bf16.msra.mxu1 %v4949_v26  ;;  %v4979_v40 = vld [vmem:[%s7516_s1 + $0x138] sm:$0xff]  ;;  %v3207_v45 = vor.u32 %v4932_v38, %v3204_v39 }
  0x1d   :  { %v4931_v36 = vld [vmem:[%s7515_s0 + $0x4] sm:$0xf]  ;;  %754 = vmatpush.bf16.msra.mxu3 %v4965_v27  ;;  %v4995_v41 = vld [vmem:[%s7516_s1 + $0x1b8] sm:$0xff]  ;;  %v3195_v42 = vor.u32 %v4935_v33, %v3194_v32  ;;  %v4978_v48 = vld [vmem:[%s7516_s1 + $0x130] sm:$0xff] }
  0x1e   :  { %701 = vmatpush.bf16.msra.mxu0 %v4940_v28  ;;  %v3199_v44 = vor.u32 %v4931_v36, %v3196_v37  ;;  %v4987_v46 = vld [vmem:[%s7516_s1 + $0x178] sm:$0xff]  ;;  %v4994_v49 = vld [vmem:[%s7516_s1 + $0x1b0] sm:$0xff]  ;;  %v4977_v52 = vld [vmem:[%s7516_s1 + $0x128] sm:$0xff] }
  0x1f   :  { %737 = vmatpush.bf16.msra.mxu2 %v4956_v29  ;;  %v5003_v47 = vld [vmem:[%s7516_s1 + $0x1f8] sm:$0xff]  ;;  %v4986_v50 = vld [vmem:[%s7516_s1 + $0x170] sm:$0xff]  ;;  %v4993_v53 = vld [vmem:[%s7516_s1 + $0x1a8] sm:$0xff] }
  0x20   :  { %719 = vmatpush.bf16.msra.mxu1 %v4948_v30  ;;  %v5002_v51 = vld [vmem:[%s7516_s1 + $0x1f0] sm:$0xff]  ;;  %v31_v54 = vld [vmem:[%s7515_s0 + $0x48] sm:$0x11]  ;;  %v4976_v58 = vld [vmem:[%s7516_s1 + $0x120] sm:$0xff] }
  0x21   :  { %755 = vmatpush.bf16.msra.mxu3 %v4964_v31  ;;  %702 = vmatmul.bf16.vlgmr.msra.gmra.mxu0 %v3195_v42  ;;  %v32_v55 = vld [vmem:[%s7515_s0 + $0x50] sm:$0x11]  ;;  %v4985_v56 = vld [vmem:[%s7516_s1 + $0x168] sm:$0xff]  ;;  %v4992_v59 = vld [vmem:[%s7516_s1 + $0x1a0] sm:$0xff]  ;;  %v217_v60 = vunpack.c.l.b16 %v31_v54  ;;  %v218_v62 = vunpack.c.h.b16 %v31_v54 }
  0x22   :  { %766 = vmatpush.bf16.msrb.mxu0 %v4979_v40  ;;  %738 = vmatmul.bf16.vlgmr.msra.gmra.mxu2 %v3203_v43  ;;  %v5001_v57 = vld [vmem:[%s7516_s1 + $0x1e8] sm:$0xff]  ;;  %v219_v61 = vunpack.c.l.b16 %v32_v55  ;;  %v220_v63 = vunpack.c.h.b16 %v32_v55  ;;  %v4984_v0 = vld [vmem:[%s7516_s1 + $0x160] sm:$0xff]  ;;  %v4975_v2 = vld [vmem:[%s7516_s1 + $0x118] sm:$0xff] }
  0x23   :  { %802 = vmatpush.bf16.msrb.mxu2 %v4995_v41  ;;  %720 = vmatmul.bf16.vlgmr.msra.gmra.mxu1 %v3199_v44  ;;  %v5000_v1 = vld [vmem:[%s7516_s1 + $0x1e0] sm:$0xff]  ;;  %v4991_v3 = vld [vmem:[%s7516_s1 + $0x198] sm:$0xff]  ;;  %v235_v4 = vpack.c.b16 %v217_v60, %v217_v60  ;;  %v236_v6 = vpack.c.b16 %v218_v62, %v218_v62  ;;  %v4974_v10 = vld [vmem:[%s7516_s1 + $0x110] sm:$0xff] }
  0x24   :  { %756 = vmatmul.bf16.vlgmr.msra.gmra.mxu3 %v3207_v45  ;;  %784 = vmatpush.bf16.msrb.mxu1 %v4987_v46  ;;  %v237_v5 = vpack.c.b16 %v219_v61, %v219_v61  ;;  %v238_v7 = vpack.c.b16 %v220_v63, %v220_v63  ;;  %v4983_v8 = vld [vmem:[%s7516_s1 + $0x158] sm:$0xff]  ;;  %v4990_v11 = vld [vmem:[%s7516_s1 + $0x190] sm:$0xff]  ;;  %v4973_v14 = vld [vmem:[%s7516_s1 + $0x108] sm:$0xff] }
  0x25   :  { %820 = vmatpush.bf16.msrb.mxu3 %v5003_v47  ;;  %v4999_v9 = vld [vmem:[%s7516_s1 + $0x1d8] sm:$0xff]  ;;  %v4982_v12 = vld [vmem:[%s7516_s1 + $0x150] sm:$0xff]  ;;  %v4989_v15 = vld [vmem:[%s7516_s1 + $0x188] sm:$0xff] }
  0x26   :  { %767 = vmatpush.bf16.msrb.mxu0 %v4978_v48  ;;  %v4998_v13 = vld [vmem:[%s7516_s1 + $0x1d0] sm:$0xff]  ;;  %v4981_v16 = vld [vmem:[%s7516_s1 + $0x148] sm:$0xff]  ;;  %v4972_v18 = vld [vmem:[%s7516_s1 + $0x100] sm:$0xff] }
  0x27   :  { %803 = vmatpush.bf16.msrb.mxu2 %v4994_v49  ;;  %v4997_v17 = vld [vmem:[%s7516_s1 + $0x1c8] sm:$0xff]  ;;  %v4988_v19 = vld [vmem:[%s7516_s1 + $0x180] sm:$0xff]  ;;  %v3210_v22 = vld [vmem:[%s7515_s0 + $0x10] sm:$0xf] }
  0x28   :  { %785 = vmatpush.bf16.msrb.mxu1 %v4986_v50  ;;  %v4980_v20 = vld [vmem:[%s7516_s1 + $0x140] sm:$0xff]  ;;  %v4937_v23 = vld [vmem:[%s7515_s0 + $0x30] sm:$0xf0]  ;;  %v5011_v24 = vld [vmem:[%s7516_s1 + $0x238] sm:$0xff] }
  0x29   :  { %821 = vmatpush.bf16.msrb.mxu3 %v5002_v51  ;;  %v4996_v21 = vld [vmem:[%s7516_s1 + $0x1c0] sm:$0xff]  ;;  %v3218_v25 = vld [vmem:[%s7515_s0 + $0x18] sm:$0xf]  ;;  %v4938_v26 = vld [vmem:[%s7515_s0 + $0x38] sm:$0xf0]  ;;  %v3211_v31 = vor.u32 %v4937_v23, %v3210_v22 }
  0x2a   :  { %768 = vmatpush.bf16.msrb.mxu0 %v4977_v52  ;;  %v4933_v27 = vld [vmem:[%s7515_s0 + $0x14] sm:$0xf]  ;;  %v3212_v28 = vld [vmem:[%s7515_s0 + $0x34] sm:$0xf0]  ;;  %v4934_v29 = vld [vmem:[%s7515_s0 + $0x1c] sm:$0xf]  ;;  %v3219_v32 = vor.u32 %v4938_v26, %v3218_v25 }
  0x2b   :  { %804 = vmatpush.bf16.msrb.mxu2 %v4993_v53  ;;  %v3220_v30 = vld [vmem:[%s7515_s0 + $0x3c] sm:$0xf0]  ;;  %v3215_v33 = vor.u32 %v4933_v27, %v3212_v28  ;;  %v5010_v35 = vld [vmem:[%s7516_s1 + $0x230] sm:$0xff]  ;;  %v5009_v36 = vld [vmem:[%s7516_s1 + $0x228] sm:$0xff] }
  0x2c   :  { %786 = vmatpush.bf16.msrb.mxu1 %v4985_v56  ;;  %v3223_v34 = vor.u32 %v4934_v29, %v3220_v30  ;;  %v33_v37 = vld [vmem:[%s7515_s0 + $0x58] sm:$0x11]  ;;  %v34_v38 = vld [vmem:[%s7515_s0 + $0x60] sm:$0x11]  ;;  %v5006_v49 = vld [vmem:[%s7516_s1 + $0x210] sm:$0xff] }
  0x2d   :  { %822 = vmatpush.bf16.msrb.mxu3 %v5001_v57  ;;  %v5008_v39 = vld [vmem:[%s7516_s1 + $0x220] sm:$0xff]  ;;  %v221_v40 = vunpack.c.l.b16 %v33_v37  ;;  %v223_v41 = vunpack.c.l.b16 %v34_v38  ;;  %v222_v42 = vunpack.c.h.b16 %v33_v37  ;;  %v224_v43 = vunpack.c.h.b16 %v34_v38  ;;  %v5007_v44 = vld [vmem:[%s7516_s1 + $0x218] sm:$0xff]  ;;  %v5005_v50 = vld [vmem:[%s7516_s1 + $0x208] sm:$0xff] }
  0x2e   :  { %769 = vmatpush.bf16.msrb.mxu0 %v4976_v58  ;;  %v5004_v51 = vld [vmem:[%s7516_s1 + $0x200] sm:$0xff]  ;;  %v35_v55 = vld [vmem:[%s7515_s0 + $0x68] sm:$0x1]  ;;  %v3667_v62 = vld [vmem:[%s7518_s3 + $0x1f0] sm:$0xf0] }
  0x2f   :  { %805 = vmatpush.bf16.msrb.mxu2 %v4992_v59  ;;  %v239_v45 = vpack.c.b16 %v221_v40, %v221_v40  ;;  %v241_v46 = vpack.c.b16 %v223_v41, %v223_v41  ;;  %v240_v47 = vpack.c.b16 %v222_v42, %v222_v42  ;;  %v242_v48 = vpack.c.b16 %v224_v43, %v224_v43  ;;  %v3226_v52 = vld [vmem:[%s7515_s0 + $0x20] sm:$0xf]  ;;  %v4939_v53 = vld [vmem:[%s7515_s0 + $0x40] sm:$0xf0]  ;;  %v5074_v59 = vld [vmem:[%s7518_s3 + $0x1ec] sm:$0xf0] }
  0x30   :  { %787 = vmatpush.bf16.msrb.mxu1 %v4984_v0  ;;  %v3227_v54 = vor.u32 %v4939_v53, %v3226_v52  ;;  %v225_v56 = vunpack.c.l.b16 %v35_v55  ;;  %v3665_v58 = vld [vmem:[%s7518_s3 + $0x1e0] sm:$0xf]  ;;  %v5072_v60 = vld [vmem:[%s7518_s3 + $0x1e4] sm:$0xf]  ;;  %v3673_v63 = vld [vmem:[%s7518_s3 + $0x1e8] sm:$0xf] }
  0x31   :  { %823 = vmatpush.bf16.msrb.mxu3 %v5000_v1  ;;  %707 = vmatmul.bf16.gmra.mxu0 %v235_v4  ;;  %v3666_v61 = vor.u32 %v5074_v59, %v3665_v58  ;;  %v5075_v0 = vld [vmem:[%s7518_s3 + $0x1f4] sm:$0xf0]  ;;  %v3670_v1 = vor.u32 %v5072_v60, %v3667_v62  ;;  %v3675_v4 = vld [vmem:[%s7518_s3 + $0x1f8] sm:$0xf0]  ;;  %v3641_v25 = vld [vmem:[%s7518_s3 + $0x1a8] sm:$0xf] }
  0x32   :  { %770 = vmatpush.bf16.msrb.mxu0 %v4975_v2  ;;  %743 = vmatmul.bf16.gmra.mxu2 %v237_v5  ;;  %v243_v57 = vpack.c.b16 %v225_v56, %v225_v56  ;;  %v3674_v2 = vor.u32 %v5075_v0, %v3673_v63  ;;  %v5067_v26 = vld [vmem:[%s7518_s3 + $0x1b4] sm:$0xf0]  ;;  %v5065_v29 = vld [vmem:[%s7518_s3 + $0x1ac] sm:$0xf]  ;;  %v3643_v30 = vld [vmem:[%s7518_s3 + $0x1b8] sm:$0xf0] }
  0x33   :  { %806 = vmatpush.bf16.msrb.mxu2 %v4991_v3  ;;  %725 = vmatmul.bf16.gmra.mxu1 %v236_v6  ;;  %v5073_v3 = vld [vmem:[%s7518_s3 + $0x1ec] sm:$0xf]  ;;  %v3649_v6 = vld [vmem:[%s7518_s3 + $0x1c0] sm:$0xf]  ;;  %v3642_v28 = vor.u32 %v5067_v26, %v3641_v25  ;;  %v3625_v37 = vld [vmem:[%s7518_s3 + $0x188] sm:$0xf] }
  0x34   :  { %761 = vmatmul.bf16.gmra.mxu3 %v238_v7  ;;  %788 = vmatpush.bf16.msrb.mxu1 %v4983_v8  ;;  %v3678_v5 = vor.u32 %v5073_v3, %v3675_v4  ;;  %v5070_v7 = vld [vmem:[%s7518_s3 + $0x1cc] sm:$0xf0]  ;;  %v5068_v8 = vld [vmem:[%s7518_s3 + $0x1c4] sm:$0xf]  ;;  %v5063_v38 = vld [vmem:[%s7518_s3 + $0x194] sm:$0xf0] }
  0x35   :  { %824 = vmatpush.bf16.msrb.mxu3 %v4999_v9  ;;  %v3650_v9 = vor.u32 %v5070_v7, %v3649_v6  ;;  %v3626_v41 = vor.u32 %v5063_v38, %v3625_v37  ;;  %v5061_v42 = vld [vmem:[%s7518_s3 + $0x18c] sm:$0xf]  ;;  %v3627_v43 = vld [vmem:[%s7518_s3 + $0x198] sm:$0xf0]  ;;  %v3603_v52 = vld [vmem:[%s7518_s3 + $0x170] sm:$0xf0] }
  0x36   :  { %771 = vmatpush.bf16.msrb.mxu0 %v4974_v10  ;;  %v3651_v10 = vld [vmem:[%s7518_s3 + $0x1d0] sm:$0xf0]  ;;  %v3609_v53 = vld [vmem:[%s7518_s3 + $0x168] sm:$0xf]  ;;  %v3611_v58 = vld [vmem:[%s7518_s3 + $0x178] sm:$0xf0] }
  0x37   :  { %807 = vmatpush.bf16.msrb.mxu2 %v4990_v11  ;;  %v3657_v11 = vld [vmem:[%s7518_s3 + $0x1c8] sm:$0xf]  ;;  %v3585_v60 = vld [vmem:[%s7518_s3 + $0x140] sm:$0xf]  ;;  %v5052_v62 = vld [vmem:[%s7518_s3 + $0x144] sm:$0xf] }
  0x38   :  { %789 = vmatpush.bf16.msrb.mxu1 %v4982_v12  ;;  %v5071_v12 = vld [vmem:[%s7518_s3 + $0x1d4] sm:$0xf0]  ;;  %v3587_v0 = vld [vmem:[%s7518_s3 + $0x150] sm:$0xf0]  ;;  %v5053_v6 = vld [vmem:[%s7518_s3 + $0x14c] sm:$0xf] }
  0x39   :  { %825 = vmatpush.bf16.msrb.mxu3 %v4998_v13  ;;  %v3654_v13 = vor.u32 %v5068_v8, %v3651_v10  ;;  %v3590_v4 = vor.u32 %v5052_v62, %v3587_v0  ;;  %v3595_v7 = vld [vmem:[%s7518_s3 + $0x158] sm:$0xf0]  ;;  %v5819_v8 = vld [vmem:[%s7517_s2] ss:$0 sm:$0xff]  ;;  %v5049_v25 = vld [vmem:[%s7518_s3 + $0x12c] sm:$0xf] }
  0x3a   :  { %772 = vmatpush.bf16.msrb.mxu0 %v4973_v14  ;;  %v3658_v14 = vor.u32 %v5071_v12, %v3657_v11  ;;  %v3598_v10 = vor.u32 %v5053_v6, %v3595_v7  ;;  %v3569_v12 = vld [vmem:[%s7518_s3 + $0x120] sm:$0xf]  ;;  %v3579_v26 = vld [vmem:[%s7518_s3 + $0x138] sm:$0xf0]  ;;  %v5039_v7 = vld [vmem:[%s7518_s3 + $0xd4] sm:$0xf0] }
  0x3b   :  { %808 = vmatpush.bf16.msrb.mxu2 %v4989_v15  ;;  %v5069_v15 = vld [vmem:[%s7518_s3 + $0x1cc] sm:$0xf]  ;;  %v3777_v62 = vld [vmem:[%s7518_s3 + $0xc0] sm:$0xf] }
  0x3c   :  { %790 = vmatpush.bf16.msrb.mxu1 %v4981_v16  ;;  %v3659_v16 = vld [vmem:[%s7518_s3 + $0x1d8] sm:$0xf0] }
  0x3d   :  { %826 = vmatpush.bf16.msrb.mxu3 %v4997_v17  ;;  %v3662_v17 = vor.u32 %v5069_v15, %v3659_v16 }
  0x3e   :  { %773 = vmatpush.bf16.msrb.mxu0 %v4972_v18 }
  0x3f   :  { %809 = vmatpush.bf16.msrb.mxu2 %v4988_v19  ;;  %v3633_v19 = vld [vmem:[%s7518_s3 + $0x1a0] sm:$0xf] }
  0x40   :  { %791 = vmatpush.bf16.msrb.mxu1 %v4980_v20  ;;  %v5066_v20 = vld [vmem:[%s7518_s3 + $0x1ac] sm:$0xf0] }
  0x41   :  { %827 = vmatpush.bf16.msrb.mxu3 %v4996_v21  ;;  %774 = vmatmul.bf16.vlgmr.msrb.gmra.mxu0 %v3211_v31  ;;  %v5064_v21 = vld [vmem:[%s7518_s3 + $0x1a4] sm:$0xf]  ;;  %v3634_v23 = vor.u32 %v5066_v20, %v3633_v19  ;;  %v3646_v31 = vor.u32 %v5065_v29, %v3643_v30  ;;  %v3571_v19 = vld [vmem:[%s7518_s3 + $0x130] sm:$0xf0]  ;;  %v3577_v20 = vld [vmem:[%s7518_s3 + $0x128] sm:$0xf] }
  0x42   :  { %838 = vmatpush.bf16.msra.mxu0 %v5011_v24  ;;  %810 = vmatmul.bf16.vlgmr.msrb.gmra.mxu2 %v3219_v32  ;;  %v3635_v24 = vld [vmem:[%s7518_s3 + $0x1b0] sm:$0xf0]  ;;  %v3617_v32 = vld [vmem:[%s7518_s3 + $0x180] sm:$0xf]  ;;  %v5046_v30 = vld [vmem:[%s7518_s3 + $0x10c] sm:$0xf0] }
  0x43   :  { %792 = vmatmul.bf16.vlgmr.msrb.gmra.mxu1 %v3215_v33  ;;  %1116 = vmatpush.bf16.msra.mxu2 %v3670_v1  ;;  %v3638_v27 = vor.u32 %v5064_v21, %v3635_v24  ;;  %v5062_v33 = vld [vmem:[%s7518_s3 + $0x18c] sm:$0xf0]  ;;  %v3593_v1 = vld [vmem:[%s7518_s3 + $0x148] sm:$0xf]  ;;  %v5051_v21 = vld [vmem:[%s7518_s3 + $0x134] sm:$0xf0] }
  0x44   :  { %828 = vmatmul.bf16.vlgmr.msrb.gmra.mxu3 %v3223_v34  ;;  %1103 = vmatpush.bf16.msra.mxu1 %v3666_v61  ;;  %v5060_v34 = vld [vmem:[%s7518_s3 + $0x184] sm:$0xf]  ;;  %v5054_v61 = vld [vmem:[%s7518_s3 + $0x14c] sm:$0xf0]  ;;  %v3578_v24 = vor.u32 %v5051_v21, %v3577_v20  ;;  %v3553_v29 = vld [vmem:[%s7518_s3 + $0x100] sm:$0xf] }
  0x45   :  { %1129 = vmatpush.bf16.msra.mxu3 %v3674_v2  ;;  %v3586_v63 = vor.u32 %v5054_v61, %v3585_v60  ;;  %v5055_v2 = vld [vmem:[%s7518_s3 + $0x154] sm:$0xf0]  ;;  %v3803_v61 = vld [vmem:[%s7518_s3 + $0xf8] sm:$0xf0]  ;;  %v3769_v21 = vld [vmem:[%s7518_s3 + $0xa8] sm:$0xf] }
  0x46   :  { %839 = vmatpush.bf16.msra.mxu0 %v5010_v35  ;;  %v3618_v35 = vor.u32 %v5062_v33, %v3617_v32  ;;  %v3554_v32 = vor.u32 %v5046_v30, %v3553_v29  ;;  %v3555_v33 = vld [vmem:[%s7518_s3 + $0x110] sm:$0xf0] }
  0x47   :  { %1117 = vmatpush.bf16.msra.mxu2 %v3654_v13  ;;  %v5050_v13 = vld [vmem:[%s7518_s3 + $0x12c] sm:$0xf0] }
  0x48   :  { %1104 = vmatpush.bf16.msra.mxu1 %v3650_v9 }
  0x49   :  { %1130 = vmatpush.bf16.msra.mxu3 %v3658_v14  ;;  %v5048_v14 = vld [vmem:[%s7518_s3 + $0x124] sm:$0xf] }
  0x4a   :  { %840 = vmatpush.bf16.msra.mxu0 %v5009_v36  ;;  %v3619_v36 = vld [vmem:[%s7518_s3 + $0x190] sm:$0xf0] }
  0x4b   :  { %1118 = vmatpush.bf16.msra.mxu2 %v3638_v27  ;;  %v3622_v40 = vor.u32 %v5060_v34, %v3619_v36  ;;  %v3561_v34 = vld [vmem:[%s7518_s3 + $0x108] sm:$0xf] }
  0x4c   :  { %1105 = vmatpush.bf16.msra.mxu1 %v3634_v23  ;;  %v3574_v23 = vor.u32 %v5048_v14, %v3571_v19 }
  0x4d   :  { %1131 = vmatpush.bf16.msra.mxu3 %v3642_v28  ;;  %v3582_v28 = vor.u32 %v5049_v25, %v3579_v26 }
  0x4e   :  { %841 = vmatpush.bf16.msra.mxu0 %v5008_v39 }
  0x4f   :  { %1119 = vmatpush.bf16.msra.mxu2 %v3622_v40  ;;  %v5045_v40 = vld [vmem:[%s7518_s3 + $0x10c] sm:$0xf] }
  0x50   :  { %1106 = vmatpush.bf16.msra.mxu1 %v3618_v35  ;;  %v5047_v35 = vld [vmem:[%s7518_s3 + $0x114] sm:$0xf0] }
  0x51   :  { %779 = vmatmul.bf16.gmra.mxu0 %v239_v45  ;;  %v3630_v45 = vor.u32 %v5061_v42, %v3627_v43  ;;  %1132 = vmatpush.bf16.msra.mxu3 %v3626_v41  ;;  %v3562_v38 = vor.u32 %v5047_v35, %v3561_v34  ;;  %v3563_v41 = vld [vmem:[%s7518_s3 + $0x118] sm:$0xf0]  ;;  %v3793_v42 = vld [vmem:[%s7518_s3 + $0xe0] sm:$0xf]  ;;  %v5030_v34 = vld [vmem:[%s7518_s3 + $0x8c] sm:$0xf0] }
  0x52   :  { %842 = vmatpush.bf16.msra.mxu0 %v5007_v44  ;;  %815 = vmatmul.bf16.gmra.mxu2 %v241_v46  ;;  %v5028_v35 = vld [vmem:[%s7518_s3 + $0x84] sm:$0xf] }
  0x53   :  { %797 = vmatmul.bf16.gmra.mxu1 %v240_v47  ;;  %v3601_v47 = vld [vmem:[%s7518_s3 + $0x160] sm:$0xf] }
  0x54   :  { %833 = vmatmul.bf16.gmra.mxu3 %v242_v48  ;;  %v5058_v48 = vld [vmem:[%s7518_s3 + $0x16c] sm:$0xf0] }
  0x56   :  { %843 = vmatpush.bf16.msra.mxu0 %v5006_v49  ;;  %v5056_v49 = vld [vmem:[%s7518_s3 + $0x164] sm:$0xf] }
  0x57   :  { %v3606_v55 = vor.u32 %v5056_v49, %v3603_v52  ;;  %v5040_v49 = vld [vmem:[%s7518_s3 + $0xe4] sm:$0xf] }
  0x59   :  { %1120 = vmatpush.bf16.msra.mxu2 %v3606_v55  ;;  %v3801_v55 = vld [vmem:[%s7518_s3 + $0xe8] sm:$0xf] }
  0x5a   :  { %844 = vmatpush.bf16.msra.mxu0 %v5005_v50 }
  0x5d   :  { %1121 = vmatpush.bf16.msra.mxu2 %v3590_v4  ;;  %v3779_v4 = vld [vmem:[%s7518_s3 + $0xd0] sm:$0xf0] }
  0x5e   :  { %845 = vmatpush.bf16.msra.mxu0 %v5004_v51  ;;  %v3602_v51 = vor.u32 %v5058_v48, %v3601_v47  ;;  %v3566_v47 = vor.u32 %v5045_v40, %v3563_v41  ;;  %v5042_v48 = vld [vmem:[%s7518_s3 + $0xec] sm:$0xf0] }
  0x60   :  { %1107 = vmatpush.bf16.msra.mxu1 %v3602_v51  ;;  %v3795_v51 = vld [vmem:[%s7518_s3 + $0xf0] sm:$0xf0] }
  0x61   :  { %846 = vmatmul.bf16.vlgmr.msra.gmra.mxu0 %v3227_v54  ;;  %v5059_v54 = vld [vmem:[%s7518_s3 + $0x174] sm:$0xf0]  ;;  %1122 = vmatpush.bf16.msra.mxu2 %v3574_v23 }
  0x62   :  { %1142 = vmatpush.bf16.msrb.mxu0 %v3678_v5  ;;  %v3610_v56 = vor.u32 %v5059_v54, %v3609_v53  ;;  %v3594_v5 = vor.u32 %v5055_v2, %v3593_v1  ;;  %v3794_v53 = vor.u32 %v5042_v48, %v3793_v42  ;;  %v3798_v54 = vor.u32 %v5040_v49, %v3795_v51  ;;  %v5036_v2 = vld [vmem:[%s7518_s3 + $0xc4] sm:$0xf]  ;;  %v5035_v23 = vld [vmem:[%s7518_s3 + $0xb4] sm:$0xf0]  ;;  %v3729_v48 = vld [vmem:[%s7518_s3 + $0x60] sm:$0xf] }
  0x63   :  { %v3782_v6 = vor.u32 %v5036_v2, %v3779_v4  ;;  %v3770_v26 = vor.u32 %v5035_v23, %v3769_v21  ;;  %v5024_v49 = vld [vmem:[%s7518_s3 + $0x64] sm:$0xf]  ;;  %v3713_v4 = vld [vmem:[%s7518_s3 + $0x40] sm:$0xf] }
  0x64   :  { %1133 = vmatpush.bf16.msra.mxu3 %v3610_v56  ;;  %1108 = vmatpush.bf16.msra.mxu1 %v3586_v63  ;;  %v5043_v56 = vld [vmem:[%s7518_s3 + $0xf4] sm:$0xf0]  ;;  %v5038_v63 = vld [vmem:[%s7518_s3 + $0xcc] sm:$0xf0] }
  0x65   :  { %v3802_v60 = vor.u32 %v5043_v56, %v3801_v55  ;;  %v3778_v1 = vor.u32 %v5038_v63, %v3777_v62  ;;  %v5027_v55 = vld [vmem:[%s7518_s3 + $0x74] sm:$0xf0]  ;;  %v3739_v62 = vld [vmem:[%s7518_s3 + $0x78] sm:$0xf0] }
  0x66   :  { %1143 = vmatpush.bf16.msrb.mxu0 %v3662_v17  ;;  %v3570_v17 = vor.u32 %v5050_v13, %v3569_v12 }
  0x68   :  { %1134 = vmatpush.bf16.msra.mxu3 %v3594_v5  ;;  %1109 = vmatpush.bf16.msra.mxu1 %v3570_v17  ;;  %v3785_v5 = vld [vmem:[%s7518_s3 + $0xc8] sm:$0xf]  ;;  %v5032_v17 = vld [vmem:[%s7518_s3 + $0xa4] sm:$0xf] }
  0x69   :  { %v3786_v12 = vor.u32 %v5039_v7, %v3785_v5  ;;  %v5022_v5 = vld [vmem:[%s7518_s3 + $0x4c] sm:$0xf0] }
  0x6a   :  { %1144 = vmatpush.bf16.msrb.mxu0 %v3646_v31  ;;  %v5044_v31 = vld [vmem:[%s7518_s3 + $0x104] sm:$0xf]  ;;  %v3714_v7 = vor.u32 %v5022_v5, %v3713_v4 }
  0x6b   :  { %v3558_v37 = vor.u32 %v5044_v31, %v3555_v33  ;;  %v3745_v33 = vld [vmem:[%s7518_s3 + $0x80] sm:$0xf] }
  0x6c   :  { %1135 = vmatpush.bf16.msra.mxu3 %v3578_v24  ;;  %1110 = vmatpush.bf16.msra.mxu1 %v3554_v32 }
  0x6d   :  { %1123 = vmatpush.bf16.msra.mxu2 %v3558_v37  ;;  %v3753_v37 = vld [vmem:[%s7518_s3 + $0x88] sm:$0xf] }
  0x6e   :  { %1145 = vmatpush.bf16.msrb.mxu0 %v3630_v45 }
  0x70   :  { %1136 = vmatpush.bf16.msra.mxu3 %v3562_v38  ;;  %1315 = vmatpush.bf16.msrb.mxu1 %v3794_v53  ;;  %v5031_v38 = vld [vmem:[%s7518_s3 + $0x94] sm:$0xf0]  ;;  %v3731_v53 = vld [vmem:[%s7518_s3 + $0x70] sm:$0xf0] }
  0x71   :  { %851 = vmatmul.bf16.gmra.mxu0 %v243_v57  ;;  %v5057_v57 = vld [vmem:[%s7518_s3 + $0x16c] sm:$0xf]  ;;  %1328 = vmatpush.bf16.msrb.mxu2 %v3798_v54  ;;  %v3754_v42 = vor.u32 %v5031_v38, %v3753_v37  ;;  %v3737_v54 = vld [vmem:[%s7518_s3 + $0x68] sm:$0xf]  ;;  %v3681_v38 = vld [vmem:[%s7518_s3] sm:$0xf] }
  0x72   :  { %v3614_v59 = vor.u32 %v5057_v57, %v3611_v58  ;;  %v5041_v57 = vld [vmem:[%s7518_s3 + $0xec] sm:$0xf] }
  0x73   :  { %v3806_v0 = vor.u32 %v5041_v57, %v3803_v61  ;;  %v5025_v61 = vld [vmem:[%s7518_s3 + $0x6c] sm:$0xf] }
  0x74   :  { %1146 = vmatpush.bf16.msrb.mxu0 %v3614_v59  ;;  %1341 = vmatpush.bf16.msrb.mxu3 %v3802_v60  ;;  %v3738_v60 = vor.u32 %v5027_v55, %v3737_v54 }
  0x75   :  { %1316 = vmatpush.bf16.msrb.mxu1 %v3778_v1  ;;  %1329 = vmatpush.bf16.msrb.mxu2 %v3782_v6  ;;  %v5020_v6 = vld [vmem:[%s7518_s3 + $0x44] sm:$0xf] }
  0x78   :  { %1147 = vmatpush.bf16.msrb.mxu0 %v3598_v10  ;;  %v5037_v10 = vld [vmem:[%s7518_s3 + $0xcc] sm:$0xf]  ;;  %1342 = vmatpush.bf16.msrb.mxu3 %v3786_v12 }
  0x7c   :  { %1148 = vmatpush.bf16.msrb.mxu0 %v3582_v28  ;;  %v3771_v28 = vld [vmem:[%s7518_s3 + $0xb8] sm:$0xf0]  ;;  %1343 = vmatpush.bf16.msrb.mxu3 %v3770_v26 }
  0x80   :  { %1149 = vmatpush.bf16.msrb.mxu0 %v3566_v47  ;;  %1344 = vmatpush.bf16.msrb.mxu3 %v3754_v42 }
  0x84   :  { %1354 = vmatpush.bf16.msra.mxu0 %v3806_v0  ;;  %v3742_v0 = vor.u32 %v5025_v61, %v3739_v62  ;;  %1345 = vmatpush.bf16.msrb.mxu3 %v3738_v60 }
  0x9e   :  { %v5706_v18 = vpop.f32.mrf.mxu0 }
  0x9f   :  { %v704_v1 = vadd.f32 %v5819_v8, %v5706_v18  ;;  %v3715_v18 = vld [vmem:[%s7518_s3 + $0x50] sm:$0xf0] }
  0xa0   :  { %v5717_v22 = vpop.f32.mrf.mxu1  ;;  %v3718_v12 = vor.u32 %v5020_v6, %v3715_v18 }
  0xa5   :  { %v5752_v39 = vpop.f32.mrf.mxu2 }
  0xa6   :  { %v5762_v46 = vpop.f32.mrf.mxu0 }
  0xa7   :  { %v5760_v44 = vpop.f32.mrf.mxu3  ;;  %v706_v14 = vadd.f32 %v5819_v8, %v5762_v46  ;;  %v3763_v46 = vld [vmem:[%s7518_s3 + $0xb0] sm:$0xf0] }
  0xa8   :  { %v5773_v50 = vpop.f32.mrf.mxu1  ;;  %v3766_v25 = vor.u32 %v5032_v17, %v3763_v46  ;;  %v722_v17 = vadd.f32 %v5717_v22, %v704_v1  ;;  %v5016_v46 = vld [vmem:[%s7518_s3 + $0x24] sm:$0xf]  ;;  %v3699_v22 = vld [vmem:[%s7518_s3 + $0x30] sm:$0xf0] }
  0xa9   :  { %v724_v31 = vadd.f32 %v5773_v50, %v706_v14  ;;  %v3747_v50 = vld [vmem:[%s7518_s3 + $0x90] sm:$0xf0]  ;;  %v5021_v14 = vld [vmem:[%s7518_s3 + $0x4c] sm:$0xf] }
  0xaa   :  { %1330 = vmatpush.bf16.msrb.mxu2 %v3766_v25  ;;  %v3750_v41 = vor.u32 %v5028_v35, %v3747_v50  ;;  %v5019_v25 = vld [vmem:[%s7518_s3 + $0x34] sm:$0xf0]  ;;  %v740_v26 = vadd.f32 %v5752_v39, %v722_v17 }
  0xab   :  { %v5107_v17 = vld [vmem:[%s7518_s3 + $0x2f4] sm:$0xf0] }
  0xad   :  { %v5808_v3 = vpop.f32.mrf.mxu2 }
  0xae   :  { %v708_v11 = vpop.f32.mrf.mxu0  ;;  %v742_v40 = vadd.f32 %v5808_v3, %v724_v31  ;;  %v5026_v3 = vld [vmem:[%s7518_s3 + $0x6c] sm:$0xf0]  ;;  %1331 = vmatpush.bf16.msrb.mxu2 %v3750_v41  ;;  %v5012_v41 = vld [vmem:[%s7518_s3 + $0x4] sm:$0xf] }
  0xaf   :  { %v5821_v9 = vpop.f32.mrf.mxu3  ;;  %v709_v15 = vadd.f32 %v5819_v8, %v708_v11  ;;  %v3787_v11 = vld [vmem:[%s7518_s3 + $0xd8] sm:$0xf0]  ;;  %v3721_v8 = vld [vmem:[%s7518_s3 + $0x48] sm:$0xf] }
  0xb0   :  { %v726_v16 = vpop.f32.mrf.mxu1  ;;  %v3790_v13 = vor.u32 %v5037_v10, %v3787_v11  ;;  %v760_v56 = vadd.f32 %v5821_v9, %v742_v40  ;;  %v5023_v10 = vld [vmem:[%s7518_s3 + $0x54] sm:$0xf0]  ;;  %v5014_v40 = vld [vmem:[%s7518_s3 + $0xc] sm:$0xf0] }
  0xb1   :  { %v727_v27 = vadd.f32 %v726_v16, %v709_v15  ;;  %v3761_v15 = vld [vmem:[%s7518_s3 + $0xa0] sm:$0xf]  ;;  %v5034_v16 = vld [vmem:[%s7518_s3 + $0xac] sm:$0xf0]  ;;  %v3682_v42 = vor.u32 %v5014_v40, %v3681_v38  ;;  %v5096_v40 = vld [vmem:[%s7518_s3 + $0x2a4] sm:$0xf] }
  0xb2   :  { %v3762_v20 = vor.u32 %v5034_v16, %v3761_v15  ;;  %1355 = vmatpush.bf16.msra.mxu0 %v3790_v13  ;;  %v3722_v13 = vor.u32 %v5023_v10, %v3721_v8  ;;  %v3723_v15 = vld [vmem:[%s7518_s3 + $0x58] sm:$0xf0] }
  0xb3   :  { %v3726_v16 = vor.u32 %v5021_v14, %v3723_v15  ;;  %v3961_v14 = vld [vmem:[%s7518_s3 + $0x2e8] sm:$0xf] }
  0xb4   :  { %1317 = vmatpush.bf16.msrb.mxu1 %v3762_v20  ;;  %v5018_v20 = vld [vmem:[%s7518_s3 + $0x2c] sm:$0xf0]  ;;  %1346 = vmatpush.bf16.msrb.mxu3 %v3722_v13  ;;  %v3955_v13 = vld [vmem:[%s7518_s3 + $0x2f0] sm:$0xf0] }
  0xb5   :  { %v744_v36 = vpop.f32.mrf.mxu2 }
  0xb6   :  { %v745_v43 = vadd.f32 %v744_v36, %v727_v27  ;;  %v710_v52 = vpop.f32.mrf.mxu0  ;;  %v5033_v27 = vld [vmem:[%s7518_s3 + $0xac] sm:$0xf]  ;;  %v3746_v36 = vor.u32 %v5030_v34, %v3745_v33  ;;  %v3707_v34 = vld [vmem:[%s7518_s3 + $0x38] sm:$0xf0] }
  0xb7   :  { %v762_v45 = vpop.f32.mrf.mxu3  ;;  %v3774_v30 = vor.u32 %v5033_v27, %v3771_v28  ;;  %v3730_v52 = vor.u32 %v5026_v3, %v3729_v48  ;;  %v5017_v33 = vld [vmem:[%s7518_s3 + $0x2c] sm:$0xf] }
  0xb8   :  { %v5893_v58 = vadd.f32 %v762_v45, %v745_v43  ;;  %v728_v59 = vpop.f32.mrf.mxu1  ;;  %v5029_v43 = vld [vmem:[%s7518_s3 + $0x8c] sm:$0xf]  ;;  %v3755_v45 = vld [vmem:[%s7518_s3 + $0x98] sm:$0xf0]  ;;  %1318 = vmatpush.bf16.msrb.mxu1 %v3746_v36  ;;  %v3710_v36 = vor.u32 %v5017_v33, %v3707_v34 }
  0xb9   :  { %1356 = vmatpush.bf16.msra.mxu0 %v3774_v30  ;;  %v3758_v47 = vor.u32 %v5029_v43, %v3755_v45  ;;  %v3734_v59 = vor.u32 %v5024_v49, %v3731_v53  ;;  %v3702_v30 = vor.u32 %v5016_v46, %v3699_v22  ;;  %v3689_v43 = vld [vmem:[%s7518_s3 + $0x8] sm:$0xf]  ;;  %v5015_v45 = vld [vmem:[%s7518_s3 + $0x14] sm:$0xf0]  ;;  %v3691_v53 = vld [vmem:[%s7518_s3 + $0x18] sm:$0xf0] }
  0xba   :  { %v3690_v49 = vor.u32 %v5015_v45, %v3689_v43  ;;  %v3937_v22 = vld [vmem:[%s7518_s3 + $0x2c0] sm:$0xf]  ;;  %v5101_v33 = vld [vmem:[%s7518_s3 + $0x2cc] sm:$0xf]  ;;  %v3947_v34 = vld [vmem:[%s7518_s3 + $0x2d8] sm:$0xf0] }
  0xbb   :  { %1332 = vmatpush.bf16.msrb.mxu2 %v3734_v59  ;;  %v3950_v38 = vor.u32 %v5101_v33, %v3947_v34  ;;  %v5099_v43 = vld [vmem:[%s7518_s3 + $0x2b4] sm:$0xf0]  ;;  %v5097_v45 = vld [vmem:[%s7518_s3 + $0x2ac] sm:$0xf]  ;;  %v3867_v34 = vld [vmem:[%s7518_s3 + $0x238] sm:$0xf0] }
  0xbc   :  { %1319 = vmatpush.bf16.msrb.mxu1 %v3730_v52  ;;  %v5013_v52 = vld [vmem:[%s7518_s3 + $0xc] sm:$0xf] }
  0xbd   :  { %v746_v19 = vpop.f32.mrf.mxu2  ;;  %1357 = vmatpush.bf16.msra.mxu0 %v3758_v47  ;;  %v758_v47 = vadd.f32 %v5760_v44, %v740_v26  ;;  %v3694_v54 = vor.u32 %v5013_v52, %v3691_v53  ;;  %v5094_v52 = vld [vmem:[%s7518_s3 + $0x28c] sm:$0xf0]  ;;  %v5081_v33 = vld [vmem:[%s7518_s3 + $0x22c] sm:$0xf] }
  0xbe   :  { %v5948_v29 = vpop.f32.mrf.mxu0  ;;  %v3697_v19 = vld [vmem:[%s7518_s3 + $0x20] sm:$0xf] }
  0xbf   :  { %v764_v24 = vpop.f32.mrf.mxu3  ;;  %1333 = vmatpush.bf16.msrb.mxu2 %v3718_v12  ;;  %v3698_v23 = vor.u32 %v5018_v20, %v3697_v19  ;;  %v776_v55 = vadd.f32 %v5948_v29, %v758_v47  ;;  %v5104_v12 = vld [vmem:[%s7518_s3 + $0x2e4] sm:$0xf]  ;;  %v5105_v19 = vld [vmem:[%s7518_s3 + $0x2ec] sm:$0xf]  ;;  %v3963_v20 = vld [vmem:[%s7518_s3 + $0x2f8] sm:$0xf0] }
  0xc0   :  { %v5951_v32 = vpop.f32.mrf.mxu1  ;;  %1320 = vmatpush.bf16.msrb.mxu1 %v3714_v7  ;;  %v3705_v24 = vld [vmem:[%s7518_s3 + $0x28] sm:$0xf]  ;;  %v3966_v26 = vor.u32 %v5105_v19, %v3963_v20  ;;  %v3931_v47 = vld [vmem:[%s7518_s3 + $0x2b8] sm:$0xf0]  ;;  %v5087_v19 = vld [vmem:[%s7518_s3 + $0x254] sm:$0xf0] }
  0xc1   :  { %1358 = vmatpush.bf16.msra.mxu0 %v3742_v0  ;;  %v3706_v31 = vor.u32 %v5019_v25, %v3705_v24  ;;  %v794_v61 = vadd.f32 %v5951_v32, %v776_v55  ;;  %v3953_v32 = vld [vmem:[%s7518_s3 + $0x2e0] sm:$0xf]  ;;  %v5102_v24 = vld [vmem:[%s7518_s3 + $0x2cc] sm:$0xf0]  ;;  %v3962_v25 = vor.u32 %v5107_v17, %v3961_v14  ;;  %v5092_v55 = vld [vmem:[%s7518_s3 + $0x284] sm:$0xf] }
  0xc2   :  { %v3875_v14 = vld [vmem:[%s7518_s3 + $0x250] sm:$0xf0]  ;;  %v3881_v17 = vld [vmem:[%s7518_s3 + $0x248] sm:$0xf]  ;;  %v5085_v20 = vld [vmem:[%s7518_s3 + $0x24c] sm:$0xf] }
  0xc3   :  { %1334 = vmatpush.bf16.msrb.mxu2 %v3702_v30  ;;  %1347 = vmatpush.bf16.msrb.mxu3 %v3706_v31  ;;  %v3945_v30 = vld [vmem:[%s7518_s3 + $0x2c8] sm:$0xf]  ;;  %v5103_v31 = vld [vmem:[%s7518_s3 + $0x2d4] sm:$0xf0] }
  0xc4   :  { %1321 = vmatpush.bf16.msrb.mxu1 %v3698_v23  ;;  %v3958_v23 = vor.u32 %v5104_v12, %v3955_v13  ;;  %v5084_v13 = vld [vmem:[%s7518_s3 + $0x244] sm:$0xf] }
  0xc5   :  { %v5987_v51 = vpop.f32.mrf.mxu2  ;;  %1359 = vmatpush.bf16.msra.mxu0 %v3726_v16 }
  0xc6   :  { %v777_v63 = vpop.f32.mrf.mxu0  ;;  %v812_v0 = vadd.f32 %v5987_v51, %v794_v61  ;;  %v5106_v51 = vld [vmem:[%s7518_s3 + $0x2ec] sm:$0xf0]  ;;  %v3915_v61 = vld [vmem:[%s7518_s3 + $0x298] sm:$0xf0] }
  0xc7   :  { %v5999_v57 = vpop.f32.mrf.mxu3  ;;  %v778_v9 = vadd.f32 %v777_v63, %v760_v56  ;;  %1348 = vmatpush.bf16.msrb.mxu3 %v3690_v49  ;;  %v3905_v49 = vld [vmem:[%s7518_s3 + $0x280] sm:$0xf] }
  0xc8   :  { %v795_v2 = vpop.f32.mrf.mxu1  ;;  %1322 = vmatpush.bf16.msrb.mxu1 %v3682_v42  ;;  %v3929_v42 = vld [vmem:[%s7518_s3 + $0x2a8] sm:$0xf] }
  0xc9   :  { %v796_v11 = vadd.f32 %v795_v2, %v778_v9  ;;  %1360 = vmatpush.bf16.msra.mxu0 %v3710_v36  ;;  %v830_v9 = vadd.f32 %v5999_v57, %v812_v0  ;;  %v3930_v53 = vor.u32 %v5099_v43, %v3929_v42  ;;  %v3889_v0 = vld [vmem:[%s7518_s3 + $0x260] sm:$0xf]  ;;  %v3849_v42 = vld [vmem:[%s7518_s3 + $0x208] sm:$0xf]  ;;  %v5077_v43 = vld [vmem:[%s7518_s3 + $0x20c] sm:$0xf] }
  0xcd   :  { %v813_v21 = vpop.f32.mrf.mxu2  ;;  %1361 = vmatpush.bf16.msra.mxu0 %v3694_v54  ;;  %v3934_v54 = vor.u32 %v5097_v45, %v3931_v47  ;;  %v3851_v45 = vld [vmem:[%s7518_s3 + $0x218] sm:$0xf0]  ;;  %v4113_v47 = vld [vmem:[%s7518_s3 + $0x3e0] sm:$0xf] }
  0xce   :  { %v814_v27 = vadd.f32 %v813_v21, %v796_v11  ;;  %v780_v35 = vpop.f32.mrf.mxu0  ;;  %v3954_v21 = vor.u32 %v5106_v51, %v3953_v32  ;;  %v3873_v51 = vld [vmem:[%s7518_s3 + $0x240] sm:$0xf] }
  0xcf   :  { %v831_v28 = vpop.f32.mrf.mxu3  ;;  %v781_v50 = vadd.f32 %v780_v35, %v5893_v58  ;;  %v3683_v58 = vld [vmem:[%s7518_s3 + $0x10] sm:$0xf0]  ;;  %v3938_v35 = vor.u32 %v5102_v24, %v3937_v22  ;;  %v3857_v22 = vld [vmem:[%s7518_s3 + $0x220] sm:$0xf]  ;;  %v5082_v24 = vld [vmem:[%s7518_s3 + $0x22c] sm:$0xf0] }
  0xd0   :  { %v832_v37 = vadd.f32 %v831_v28, %v814_v27  ;;  %v798_v39 = vpop.f32.mrf.mxu1  ;;  %v3686_v3 = vor.u32 %v5012_v41, %v3683_v58  ;;  %v5100_v27 = vld [vmem:[%s7518_s3 + $0x2c4] sm:$0xf]  ;;  %v3939_v28 = vld [vmem:[%s7518_s3 + $0x2d0] sm:$0xf0] }
  0xd1   :  { %v799_v48 = vadd.f32 %v798_v39, %v781_v50  ;;  %v3942_v36 = vor.u32 %v5100_v27, %v3939_v28  ;;  %v3921_v50 = vld [vmem:[%s7518_s3 + $0x2a0] sm:$0xf]  ;;  %v3946_v39 = vor.u32 %v5103_v31, %v3945_v30  ;;  %v3923_v41 = vld [vmem:[%s7518_s3 + $0x2b0] sm:$0xf0]  ;;  %v5080_v27 = vld [vmem:[%s7518_s3 + $0x224] sm:$0xf] }
  0xd2   :  { %1335 = vmatpush.bf16.msrb.mxu2 %v3686_v3  ;;  %v3926_v3 = vor.u32 %v5096_v40, %v3923_v41  ;;  %v3859_v28 = vld [vmem:[%s7518_s3 + $0x230] sm:$0xf0]  ;;  %v3865_v30 = vld [vmem:[%s7518_s3 + $0x228] sm:$0xf]  ;;  %v5083_v31 = vld [vmem:[%s7518_s3 + $0x234] sm:$0xf0]  ;;  %v3870_v41 = vor.u32 %v5081_v33, %v3867_v34 }
  0xd3   :  { %v3866_v40 = vor.u32 %v5083_v31, %v3865_v30  ;;  %v4073_v30 = vld [vmem:[%s7518_s3 + $0x388] sm:$0xf]  ;;  %v5127_v31 = vld [vmem:[%s7518_s3 + $0x394] sm:$0xf0]  ;;  %v5125_v33 = vld [vmem:[%s7518_s3 + $0x38c] sm:$0xf] }
  0xd4   :  { %v4075_v34 = vld [vmem:[%s7518_s3 + $0x398] sm:$0xf0] }
  0xd5   :  { %v816_v56 = vpop.f32.mrf.mxu2 }
  0xd6   :  { %v817_v44 = vadd.f32 %v816_v56, %v799_v48  ;;  %v782_v60 = vpop.f32.mrf.mxu0  ;;  %v3907_v56 = vld [vmem:[%s7518_s3 + $0x290] sm:$0xf0] }
  0xd7   :  { %v834_v59 = vpop.f32.mrf.mxu3  ;;  %v5093_v60 = vld [vmem:[%s7518_s3 + $0x28c] sm:$0xf] }
  0xd8   :  { %v835_v62 = vadd.f32 %v834_v59, %v817_v44  ;;  %v800_v63 = vpop.f32.mrf.mxu1  ;;  %v3913_v44 = vld [vmem:[%s7518_s3 + $0x288] sm:$0xf]  ;;  %v5095_v59 = vld [vmem:[%s7518_s3 + $0x294] sm:$0xf0] }
  0xd9   :  { %v3910_v63 = vor.u32 %v5092_v55, %v3907_v56  ;;  %v5139_v55 = vld [vmem:[%s7518_s3 + $0x3f4] sm:$0xf0]  ;;  %v5137_v56 = vld [vmem:[%s7518_s3 + $0x3ec] sm:$0xf] }
  0xdd   :  { %v818_v1 = vpop.f32.mrf.mxu2 }
  0xde   :  { %v847_v4 = vpop.f32.mrf.mxu0  ;;  %v5090_v1 = vld [vmem:[%s7518_s3 + $0x26c] sm:$0xf0] }
  0xdf   :  { %v836_v2 = vpop.f32.mrf.mxu3  ;;  %v848_v29 = vadd.f32 %v847_v4, %v830_v9  ;;  %v3914_v9 = vor.u32 %v5095_v59, %v3913_v44  ;;  %v5088_v4 = vld [vmem:[%s7518_s3 + $0x264] sm:$0xf]  ;;  %v4123_v44 = vld [vmem:[%s7518_s3 + $0x3f8] sm:$0xf0] }
  0xe0   :  { %v3918_v2 = vor.u32 %v5093_v60, %v3915_v61  ;;  %v3854_v60 = vor.u32 %v5077_v43, %v3851_v45  ;;  %v5121_v43 = vld [vmem:[%s7518_s3 + $0x36c] sm:$0xf]  ;;  %v4059_v45 = vld [vmem:[%s7518_s3 + $0x378] sm:$0xf0] }
  0xe1   :  { %v859_v5 = vmin.f32 %v848_v29, 0.0  ;;  %vm856_vm0 = vcmp.gt.f32.partialorder %v848_v29, 0.0 }
  0xe3   :  { %v862_v6 = vmul.f32 1.442695, %v859_v5  ;;  %v3897_v5 = vld [vmem:[%s7518_s3 + $0x268] sm:$0xf] }
  0xe5   :  { %5302 = vpow2.f32 %v862_v6  ;;  %v5091_v6 = vld [vmem:[%s7518_s3 + $0x274] sm:$0xf0] }
  0xe6   :  { %v849_v7 = vpop.f32.mrf.mxu0 }
  0xe7   :  { %v6089_v18 = vadd.f32 %v849_v7, %v832_v37  ;;  %v5098_v37 = vld [vmem:[%s7518_s3 + $0x2ac] sm:$0xf0]  ;;  %v5089_v7 = vld [vmem:[%s7518_s3 + $0x26c] sm:$0xf] }
  0xe8   :  { %v3922_v48 = vor.u32 %v5098_v37, %v3921_v50  ;;  %v3862_v50 = vor.u32 %v5080_v27, %v3859_v28  ;;  %v5078_v37 = vld [vmem:[%s7518_s3 + $0x20c] sm:$0xf0]  ;;  %v5124_v27 = vld [vmem:[%s7518_s3 + $0x384] sm:$0xf]  ;;  %v4067_v28 = vld [vmem:[%s7518_s3 + $0x390] sm:$0xf0] }
  0xe9   :  { %vm857_vm1 = vcmp.gt.f32.partialorder %v6089_v18, 0.0 }
  0xeb   :  { %v5303_v8 = vpop.eup %5302 }
  0xec   :  { %v3516_v10 = vadd.f32 -1.0, %v5303_v8  ;;  %v3899_v8 = vld [vmem:[%s7518_s3 + $0x278] sm:$0xf0] }
  0xed   :  { %v3902_v12 = vor.u32 %v5089_v7, %v3899_v8  ;;  %v4107_v7 = vld [vmem:[%s7518_s3 + $0x3d8] sm:$0xf0] }
  0xee   :  { %v871_v57 = vsel %vm856_vm0, %v848_v29, %v3516_v10  ;;  %v852_v11 = vpop.f32.mrf.mxu0  ;;  %v3891_v29 = vld [vmem:[%s7518_s3 + $0x270] sm:$0xf0]  ;;  %v3890_v10 = vor.u32 %v5090_v1, %v3889_v0  ;;  %v5134_v0 = vld [vmem:[%s7518_s3 + $0x3cc] sm:$0xf0] }
  0xef   :  { %v6106_v15 = vpack.c.bf16 %v871_v57, %v871_v57  ;;  %v6108_v16 = vadd.f32 %v852_v11, %v835_v62  ;;  %v3906_v62 = vor.u32 %v5094_v52, %v3905_v49  ;;  %v3894_v32 = vor.u32 %v5088_v4, %v3891_v29  ;;  %v5086_v57 = vld [vmem:[%s7518_s3 + $0x24c] sm:$0xf0]  ;;  %v4115_v49 = vld [vmem:[%s7518_s3 + $0x3f0] sm:$0xf0]  ;;  %v4121_v52 = vld [vmem:[%s7518_s3 + $0x3e8] sm:$0xf] }
  0xf0   :  { %v3898_v11 = vor.u32 %v5091_v6, %v3897_v5  ;;  %v4122_v1 = vor.u32 %v5139_v55, %v4121_v52  ;;  %v4099_v4 = vld [vmem:[%s7518_s3 + $0x3d0] sm:$0xf0]  ;;  %v4105_v29 = vld [vmem:[%s7518_s3 + $0x3c8] sm:$0xf]  ;;  %v5135_v5 = vld [vmem:[%s7518_s3 + $0x3d4] sm:$0xf0] }
  0xf1   :  { %v941_v46 = vrot.slane %v6106_v15, 1  ;;  %v5133_v6 = vld [vmem:[%s7518_s3 + $0x3cc] sm:$0xf]  ;;  %v1400_v8 = vrot.slane %v6106_v15, 2  ;;  %v4035_v55 = vld [vmem:[%s7518_s3 + $0x350] sm:$0xf0] }
  0xf2   :  { %vm858_vm2 = vcmp.gt.f32.partialorder %v6108_v16, 0.0 }
  0xf3   :  { %1111 = vmatmul.bf16.vlgmr.msra.gmra.mxu1 %v941_v46  ;;  %1124 = vmatmul.bf16.vlgmr.msra.gmra.mxu2 %v941_v46 }
  0xf4   :  { %1137 = vmatmul.bf16.vlgmr.msra.gmra.mxu3 %v941_v46  ;;  %1150 = vmatmul.bf16.vlgmr.msrb.gmra.mxu0 %v941_v46  ;;  %v3883_v46 = vld [vmem:[%s7518_s3 + $0x258] sm:$0xf0] }
  0xf5   :  { %1562 = vmatpush.bf16.msra.mxu1 %v3954_v21  ;;  %1575 = vmatpush.bf16.msra.mxu2 %v3958_v23  ;;  %v3874_v21 = vor.u32 %v5086_v57, %v3873_v51  ;;  %v3878_v23 = vor.u32 %v5084_v13, %v3875_v14  ;;  %v4081_v51 = vld [vmem:[%s7518_s3 + $0x3a0] sm:$0xf]  ;;  %v5130_v57 = vld [vmem:[%s7518_s3 + $0x3ac] sm:$0xf0]  ;;  %v5128_v13 = vld [vmem:[%s7518_s3 + $0x3a4] sm:$0xf] }
  0xf6   :  { %1588 = vmatpush.bf16.msra.mxu3 %v3962_v25  ;;  %1601 = vmatpush.bf16.msrb.mxu0 %v3966_v26  ;;  %v854_v58 = vpop.f32.mrf.mxu0  ;;  %v3882_v25 = vor.u32 %v5087_v19, %v3881_v17  ;;  %v3886_v26 = vor.u32 %v5085_v20, %v3883_v46  ;;  %v4083_v14 = vld [vmem:[%s7518_s3 + $0x3b0] sm:$0xf0]  ;;  %v4089_v17 = vld [vmem:[%s7518_s3 + $0x3a8] sm:$0xf]  ;;  %v5131_v19 = vld [vmem:[%s7518_s3 + $0x3b4] sm:$0xf0] }
  0xf7   :  { %v5079_v58 = vld [vmem:[%s7518_s3 + $0x214] sm:$0xf0]  ;;  %v5129_v20 = vld [vmem:[%s7518_s3 + $0x3ac] sm:$0xf]  ;;  %v4091_v46 = vld [vmem:[%s7518_s3 + $0x3b8] sm:$0xf0] }
  0xf8   :  { %v3850_v59 = vor.u32 %v5079_v58, %v3849_v42  ;;  %v4057_v42 = vld [vmem:[%s7518_s3 + $0x368] sm:$0xf]  ;;  %v5123_v58 = vld [vmem:[%s7518_s3 + $0x374] sm:$0xf0] }
  0xf9   :  { %1563 = vmatpush.bf16.msra.mxu1 %v3938_v35  ;;  %1576 = vmatpush.bf16.msra.mxu2 %v3942_v36  ;;  %v3841_v35 = vld [vmem:[%s7518_s3 + $0x200] sm:$0xf]  ;;  %v3858_v36 = vor.u32 %v5082_v24, %v3857_v22  ;;  %v5126_v24 = vld [vmem:[%s7518_s3 + $0x38c] sm:$0xf0]  ;;  %v4058_v52 = vor.u32 %v5123_v58, %v4057_v42  ;;  %v5167_v42 = vld [vmem:[%s7518_s3 + $0x4d4] sm:$0xf0] }
  0xfa   :  { %1589 = vmatpush.bf16.msra.mxu3 %v3946_v39  ;;  %1602 = vmatpush.bf16.msrb.mxu0 %v3950_v38  ;;  %v5076_v39 = vld [vmem:[%s7518_s3 + $0x204] sm:$0xf]  ;;  %v3843_v38 = vld [vmem:[%s7518_s3 + $0x210] sm:$0xf0]  ;;  %v4065_v22 = vld [vmem:[%s7518_s3 + $0x380] sm:$0xf] }
  0xfb   :  { %v5165_v58 = vld [vmem:[%s7518_s3 + $0x4cc] sm:$0xf] }
  0xfd   :  { %1564 = vmatpush.bf16.msra.mxu1 %v3922_v48  ;;  %1577 = vmatpush.bf16.msra.mxu2 %v3926_v3  ;;  %v5138_v48 = vld [vmem:[%s7518_s3 + $0x3ec] sm:$0xf0]  ;;  %v5136_v3 = vld [vmem:[%s7518_s3 + $0x3e4] sm:$0xf] }
  0xfe   :  { %1590 = vmatpush.bf16.msra.mxu3 %v3930_v53  ;;  %1603 = vmatpush.bf16.msrb.mxu0 %v3934_v54  ;;  %v3842_v53 = vor.u32 %v5078_v37, %v3841_v35  ;;  %v3846_v54 = vor.u32 %v5076_v39, %v3843_v38  ;;  %v4114_v61 = vor.u32 %v5138_v48, %v4113_v47  ;;  %v5122_v37 = vld [vmem:[%s7518_s3 + $0x36c] sm:$0xf0] }
  0xff   :  { %v4066_v35 = vor.u32 %v5126_v24, %v4065_v22  ;;  %v4074_v39 = vor.u32 %v5127_v31, %v4073_v30  ;;  %v4078_v38 = vor.u32 %v5125_v33, %v4075_v34  ;;  %v4275_v22 = vld [vmem:[%s7518_s3 + $0x4f0] sm:$0xf0]  ;;  %v4281_v24 = vld [vmem:[%s7518_s3 + $0x4e8] sm:$0xf]  ;;  %v4283_v30 = vld [vmem:[%s7518_s3 + $0x4f8] sm:$0xf0] }
 0x101   :  { %1565 = vmatpush.bf16.msra.mxu1 %v3906_v62  ;;  %1578 = vmatpush.bf16.msra.mxu2 %v3910_v63  ;;  %v4118_v62 = vor.u32 %v5136_v3, %v4115_v49  ;;  %v4097_v63 = vld [vmem:[%s7518_s3 + $0x3c0] sm:$0xf]  ;;  %v5118_v49 = vld [vmem:[%s7518_s3 + $0x34c] sm:$0xf0] }
 0x102   :  { %1591 = vmatpush.bf16.msra.mxu3 %v3914_v9  ;;  %1604 = vmatpush.bf16.msrb.mxu0 %v3918_v2  ;;  %v4126_v9 = vor.u32 %v5137_v56, %v4123_v44  ;;  %v5132_v2 = vld [vmem:[%s7518_s3 + $0x3c4] sm:$0xf]  ;;  %v4033_v3 = vld [vmem:[%s7518_s3 + $0x340] sm:$0xf]  ;;  %v4041_v56 = vld [vmem:[%s7518_s3 + $0x348] sm:$0xf] }
 0x103   :  { %1323 = vmatmul.bf16.vlgmr.msrb.gmra.mxu1 %v6106_v15  ;;  %1336 = vmatmul.bf16.vlgmr.msrb.gmra.mxu2 %v6106_v15  ;;  %v5119_v44 = vld [vmem:[%s7518_s3 + $0x354] sm:$0xf0] }
 0x104   :  { %1349 = vmatmul.bf16.vlgmr.msrb.gmra.mxu3 %v6106_v15  ;;  %1362 = vmatmul.bf16.vlgmr.msra.gmra.mxu0 %v6106_v15 }
 0x105   :  { %1566 = vmatpush.bf16.msra.mxu1 %v3890_v10  ;;  %1579 = vmatpush.bf16.msra.mxu2 %v3894_v32  ;;  %v4098_v10 = vor.u32 %v5134_v0, %v4097_v63  ;;  %v4102_v32 = vor.u32 %v5132_v2, %v4099_v4  ;;  %v4017_v63 = vld [vmem:[%s7518_s3 + $0x320] sm:$0xf]  ;;  %v5114_v0 = vld [vmem:[%s7518_s3 + $0x32c] sm:$0xf0]  ;;  %v5112_v2 = vld [vmem:[%s7518_s3 + $0x324] sm:$0xf] }
 0x106   :  { %1592 = vmatpush.bf16.msra.mxu3 %v3898_v11  ;;  %1605 = vmatpush.bf16.msrb.mxu0 %v3902_v12  ;;  %v4106_v11 = vor.u32 %v5135_v5, %v4105_v29  ;;  %v4110_v12 = vor.u32 %v5133_v6, %v4107_v7  ;;  %v4019_v4 = vld [vmem:[%s7518_s3 + $0x330] sm:$0xf0]  ;;  %v4025_v29 = vld [vmem:[%s7518_s3 + $0x328] sm:$0xf]  ;;  %v5115_v5 = vld [vmem:[%s7518_s3 + $0x334] sm:$0xf0] }
 0x107   :  { %v5113_v6 = vld [vmem:[%s7518_s3 + $0x32c] sm:$0xf]  ;;  %v4027_v7 = vld [vmem:[%s7518_s3 + $0x338] sm:$0xf0] }
 0x109   :  { %1567 = vmatpush.bf16.msra.mxu1 %v3874_v21  ;;  %1580 = vmatpush.bf16.msra.mxu2 %v3878_v23  ;;  %v4082_v21 = vor.u32 %v5130_v57, %v4081_v51  ;;  %v4086_v23 = vor.u32 %v5128_v13, %v4083_v14  ;;  %v5110_v51 = vld [vmem:[%s7518_s3 + $0x30c] sm:$0xf0]  ;;  %v5108_v57 = vld [vmem:[%s7518_s3 + $0x304] sm:$0xf]  ;;  %v4030_v13 = vor.u32 %v5113_v6, %v4027_v7  ;;  %v4009_v14 = vld [vmem:[%s7518_s3 + $0x308] sm:$0xf] }
 0x10a   :  { %1593 = vmatpush.bf16.msra.mxu3 %v3882_v25  ;;  %1606 = vmatpush.bf16.msrb.mxu0 %v3886_v26  ;;  %v4090_v25 = vor.u32 %v5131_v19, %v4089_v17  ;;  %v4094_v26 = vor.u32 %v5129_v20, %v4091_v46  ;;  %v5111_v17 = vld [vmem:[%s7518_s3 + $0x314] sm:$0xf0]  ;;  %v5109_v19 = vld [vmem:[%s7518_s3 + $0x30c] sm:$0xf]  ;;  %v4011_v20 = vld [vmem:[%s7518_s3 + $0x318] sm:$0xf0] }
 0x10b   :  { %v4273_v46 = vld [vmem:[%s7518_s3 + $0x4e0] sm:$0xf]  ;;  %v4010_v31 = vor.u32 %v5111_v17, %v4009_v14  ;;  %v4014_v33 = vor.u32 %v5109_v19, %v4011_v20  ;;  %v5159_v6 = vld [vmem:[%s7518_s3 + $0x494] sm:$0xf0]  ;;  %v5157_v7 = vld [vmem:[%s7518_s3 + $0x48c] sm:$0xf] }
 0x10c   :  { %v4211_v14 = vld [vmem:[%s7518_s3 + $0x470] sm:$0xf0]  ;;  %v4217_v17 = vld [vmem:[%s7518_s3 + $0x468] sm:$0xf]  ;;  %v5155_v19 = vld [vmem:[%s7518_s3 + $0x474] sm:$0xf0] }
 0x10d   :  { %1568 = vmatpush.bf16.msra.mxu1 %v3858_v36  ;;  %1581 = vmatpush.bf16.msra.mxu2 %v3862_v50  ;;  %v4070_v36 = vor.u32 %v5124_v27, %v4067_v28  ;;  %v4049_v50 = vld [vmem:[%s7518_s3 + $0x360] sm:$0xf]  ;;  %v5171_v27 = vld [vmem:[%s7518_s3 + $0x4f4] sm:$0xf0]  ;;  %v5169_v28 = vld [vmem:[%s7518_s3 + $0x4ec] sm:$0xf] }
 0x10e   :  { %1594 = vmatpush.bf16.msra.mxu3 %v3866_v40  ;;  %1607 = vmatpush.bf16.msrb.mxu0 %v3870_v41  ;;  %v5120_v40 = vld [vmem:[%s7518_s3 + $0x364] sm:$0xf]  ;;  %v4051_v41 = vld [vmem:[%s7518_s3 + $0x370] sm:$0xf0]  ;;  %v4050_v47 = vor.u32 %v5122_v37, %v4049_v50  ;;  %v5166_v50 = vld [vmem:[%s7518_s3 + $0x4cc] sm:$0xf0]  ;;  %v4282_v37 = vor.u32 %v5171_v27, %v4281_v24 }
 0x10f   :  { %v4054_v48 = vor.u32 %v5120_v40, %v4051_v41  ;;  %v4259_v40 = vld [vmem:[%s7518_s3 + $0x4d0] sm:$0xf0]  ;;  %v4265_v41 = vld [vmem:[%s7518_s3 + $0x4c8] sm:$0xf]  ;;  %v5153_v20 = vld [vmem:[%s7518_s3 + $0x46c] sm:$0xf] }
 0x110   :  { %v5150_v24 = vld [vmem:[%s7518_s3 + $0x44c] sm:$0xf0]  ;;  %v5148_v27 = vld [vmem:[%s7518_s3 + $0x444] sm:$0xf] }
 0x111   :  { %1569 = vmatpush.bf16.msra.mxu1 %v3842_v53  ;;  %1582 = vmatpush.bf16.msra.mxu2 %v3846_v54  ;;  %v4062_v53 = vor.u32 %v5121_v43, %v4059_v45  ;;  %v5116_v54 = vld [vmem:[%s7518_s3 + $0x344] sm:$0xf]  ;;  %v4267_v43 = vld [vmem:[%s7518_s3 + $0x4d8] sm:$0xf0]  ;;  %v860_v45 = vmin.f32 %v6089_v18, 0.0 }
 0x112   :  { %1595 = vmatpush.bf16.msra.mxu3 %v3850_v59  ;;  %1608 = vmatpush.bf16.msrb.mxu0 %v3854_v60  ;;  %v5117_v59 = vld [vmem:[%s7518_s3 + $0x34c] sm:$0xf]  ;;  %v4043_v60 = vld [vmem:[%s7518_s3 + $0x358] sm:$0xf0] }
 0x114   :  { %1570 = vmatmul.bf16.vlgmr.msra.gmra.mxu1 %v1400_v8  ;;  %1583 = vmatmul.bf16.vlgmr.msra.gmra.mxu2 %v1400_v8 }
 0x115   :  { %1813 = vmatpush.bf16.msrb.mxu1 %v4114_v61  ;;  %1826 = vmatpush.bf16.msrb.mxu2 %v4118_v62  ;;  %v4034_v61 = vor.u32 %v5118_v49, %v4033_v3  ;;  %v4038_v62 = vor.u32 %v5116_v54, %v4035_v55  ;;  %v4241_v49 = vld [vmem:[%s7518_s3 + $0x4a0] sm:$0xf]  ;;  %v4270_v54 = vor.u32 %v5165_v58, %v4267_v43  ;;  %v5160_v55 = vld [vmem:[%s7518_s3 + $0x4a4] sm:$0xf]  ;;  %v4185_v58 = vld [vmem:[%s7518_s3 + $0x428] sm:$0xf] }
 0x116   :  { %1839 = vmatpush.bf16.msrb.mxu3 %v4122_v1  ;;  %1852 = vmatpush.bf16.msra.mxu0 %v4126_v9  ;;  %v4042_v1 = vor.u32 %v5119_v44, %v4041_v56  ;;  %v4046_v9 = vor.u32 %v5117_v59, %v4043_v60  ;;  %v4249_v56 = vld [vmem:[%s7518_s3 + $0x4a8] sm:$0xf]  ;;  %v5163_v44 = vld [vmem:[%s7518_s3 + $0x4b4] sm:$0xf0]  ;;  %v5161_v59 = vld [vmem:[%s7518_s3 + $0x4ac] sm:$0xf] }
 0x117   :  { %1596 = vmatmul.bf16.vlgmr.msra.gmra.mxu3 %v1400_v8  ;;  %1609 = vmatmul.bf16.vlgmr.msrb.gmra.mxu0 %v1400_v8  ;;  %v4001_v8 = vld [vmem:[%s7518_s3 + $0x300] sm:$0xf]  ;;  %v4251_v60 = vld [vmem:[%s7518_s3 + $0x4b8] sm:$0xf0]  ;;  %v5147_v43 = vld [vmem:[%s7518_s3 + $0x434] sm:$0xf0] }
 0x119   :  { %1814 = vmatpush.bf16.msrb.mxu1 %v4098_v10  ;;  %1827 = vmatpush.bf16.msrb.mxu2 %v4102_v32  ;;  %v4018_v10 = vor.u32 %v5114_v0, %v4017_v63  ;;  %v4022_v32 = vor.u32 %v5112_v2, %v4019_v4  ;;  %v4225_v0 = vld [vmem:[%s7518_s3 + $0x480] sm:$0xf]  ;;  %v4254_v2 = vor.u32 %v5161_v59, %v4251_v60  ;;  %v5156_v4 = vld [vmem:[%s7518_s3 + $0x484] sm:$0xf]  ;;  %v5143_v59 = vld [vmem:[%s7518_s3 + $0x414] sm:$0xf0] }
 0x11a   :  { %1840 = vmatpush.bf16.msrb.mxu3 %v4106_v11  ;;  %1853 = vmatpush.bf16.msra.mxu0 %v4110_v12  ;;  %v4003_v11 = vld [vmem:[%s7518_s3 + $0x310] sm:$0xf0]  ;;  %v4026_v12 = vor.u32 %v5115_v5, %v4025_v29  ;;  %v4233_v5 = vld [vmem:[%s7518_s3 + $0x488] sm:$0xf]  ;;  %v5141_v60 = vld [vmem:[%s7518_s3 + $0x40c] sm:$0xf] }
 0x11b   :  { %v4227_v29 = vld [vmem:[%s7518_s3 + $0x490] sm:$0xf0] }
 0x11d   :  { %1815 = vmatpush.bf16.msrb.mxu1 %v4082_v21  ;;  %1828 = vmatpush.bf16.msrb.mxu2 %v4086_v23  ;;  %v5170_v21 = vld [vmem:[%s7518_s3 + $0x4ec] sm:$0xf0]  ;;  %v5168_v23 = vld [vmem:[%s7518_s3 + $0x4e4] sm:$0xf] }
 0x11e   :  { %1841 = vmatpush.bf16.msrb.mxu3 %v4090_v25  ;;  %1854 = vmatpush.bf16.msra.mxu0 %v4094_v26  ;;  %v4002_v25 = vor.u32 %v5110_v51, %v4001_v8  ;;  %v4006_v26 = vor.u32 %v5108_v57, %v4003_v11  ;;  %v4274_v34 = vor.u32 %v5170_v21, %v4273_v46  ;;  %v4235_v8 = vld [vmem:[%s7518_s3 + $0x498] sm:$0xf0]  ;;  %v4209_v51 = vld [vmem:[%s7518_s3 + $0x460] sm:$0xf]  ;;  %v5154_v57 = vld [vmem:[%s7518_s3 + $0x46c] sm:$0xf0] }
 0x11f   :  { %v4234_v11 = vor.u32 %v5159_v6, %v4233_v5  ;;  %v4219_v46 = vld [vmem:[%s7518_s3 + $0x478] sm:$0xf0]  ;;  %v4210_v21 = vor.u32 %v5154_v57, %v4209_v51  ;;  %v5201_v5 = vld [vmem:[%s7518_s3 + $0x5ec] sm:$0xf]  ;;  %v4417_v51 = vld [vmem:[%s7518_s3 + $0x5c0] sm:$0xf] }
 0x120   :  { %v4443_v6 = vld [vmem:[%s7518_s3 + $0x5f8] sm:$0xf0]  ;;  %v5198_v57 = vld [vmem:[%s7518_s3 + $0x5cc] sm:$0xf0] }
 0x121   :  { %1816 = vmatpush.bf16.msrb.mxu1 %v4066_v35  ;;  %1829 = vmatpush.bf16.msrb.mxu2 %v4070_v36  ;;  %v4278_v35 = vor.u32 %v5168_v23, %v4275_v22  ;;  %v4257_v36 = vld [vmem:[%s7518_s3 + $0x4c0] sm:$0xf] }
 0x122   :  { %1842 = vmatpush.bf16.msrb.mxu3 %v4074_v39  ;;  %1855 = vmatpush.bf16.msra.mxu0 %v4078_v38  ;;  %v4286_v39 = vor.u32 %v5169_v28, %v4283_v30  ;;  %v5164_v38 = vld [vmem:[%s7518_s3 + $0x4c4] sm:$0xf]  ;;  %v4193_v22 = vld [vmem:[%s7518_s3 + $0x440] sm:$0xf]  ;;  %v4195_v28 = vld [vmem:[%s7518_s3 + $0x450] sm:$0xf0] }
 0x123   :  { %v4262_v3 = vor.u32 %v5164_v38, %v4259_v40  ;;  %v4201_v30 = vld [vmem:[%s7518_s3 + $0x448] sm:$0xf] }
 0x125   :  { %1817 = vmatpush.bf16.msrb.mxu1 %v4050_v47  ;;  %1830 = vmatpush.bf16.msrb.mxu2 %v4054_v48  ;;  %v1651_v47 = vrot.slane %v6106_v15, 3  ;;  %v4258_v48 = vor.u32 %v5166_v50, %v4257_v36  ;;  %v4243_v15 = vld [vmem:[%s7518_s3 + $0x4b0] sm:$0xf0]  ;;  %v4194_v36 = vor.u32 %v5150_v24, %v4193_v22  ;;  %v4198_v50 = vor.u32 %v5148_v27, %v4195_v28  ;;  %v4401_v24 = vld [vmem:[%s7518_s3 + $0x5a0] sm:$0xf] }
 0x126   :  { %1843 = vmatpush.bf16.msrb.mxu3 %v4058_v52  ;;  %1856 = vmatpush.bf16.msra.mxu0 %v4062_v53  ;;  %v5162_v52 = vld [vmem:[%s7518_s3 + $0x4ac] sm:$0xf0]  ;;  %v4266_v53 = vor.u32 %v5167_v42, %v4265_v41  ;;  %v4246_v63 = vor.u32 %v5160_v55, %v4243_v15  ;;  %v5144_v41 = vld [vmem:[%s7518_s3 + $0x424] sm:$0xf]  ;;  %v4179_v42 = vld [vmem:[%s7518_s3 + $0x430] sm:$0xf0]  ;;  %v4186_v15 = vor.u32 %v5147_v43, %v4185_v58 }
 0x127   :  { %v4163_v55 = vld [vmem:[%s7518_s3 + $0x410] sm:$0xf0]  ;;  %v5192_v28 = vld [vmem:[%s7518_s3 + $0x5a4] sm:$0xf]  ;;  %v4393_v58 = vld [vmem:[%s7518_s3 + $0x588] sm:$0xf] }
 0x128   :  { %v5191_v43 = vld [vmem:[%s7518_s3 + $0x594] sm:$0xf0] }
 0x129   :  { %1818 = vmatpush.bf16.msrb.mxu1 %v4034_v61  ;;  %1831 = vmatpush.bf16.msrb.mxu2 %v4038_v62  ;;  %v864_v61 = vmul.f32 1.442695, %v860_v45  ;;  %v4242_v62 = vor.u32 %v5162_v52, %v4241_v49  ;;  %v5145_v45 = vld [vmem:[%s7518_s3 + $0x42c] sm:$0xf]  ;;  %v4182_v52 = vor.u32 %v5144_v41, %v4179_v42  ;;  %v5188_v41 = vld [vmem:[%s7518_s3 + $0x584] sm:$0xf] }
 0x12a   :  { %1844 = vmatpush.bf16.msrb.mxu3 %v4042_v1  ;;  %1857 = vmatpush.bf16.msra.mxu0 %v4046_v9  ;;  %v5158_v1 = vld [vmem:[%s7518_s3 + $0x48c] sm:$0xf0]  ;;  %v4250_v9 = vor.u32 %v5163_v44, %v4249_v56  ;;  %v4169_v44 = vld [vmem:[%s7518_s3 + $0x408] sm:$0xf]  ;;  %v4387_v42 = vld [vmem:[%s7518_s3 + $0x590] sm:$0xf0] }
 0x12b   :  { %5304 = vpow2.f32 %v864_v61  ;;  %v4171_v61 = vld [vmem:[%s7518_s3 + $0x418] sm:$0xf0] }
 0x12d   :  { %1819 = vmatpush.bf16.msrb.mxu1 %v4018_v10  ;;  %1832 = vmatpush.bf16.msrb.mxu2 %v4022_v32  ;;  %v4226_v10 = vor.u32 %v5158_v1, %v4225_v0  ;;  %v4230_v32 = vor.u32 %v5156_v4, %v4227_v29  ;;  %v5200_v0 = vld [vmem:[%s7518_s3 + $0x5e4] sm:$0xf]  ;;  %v4435_v1 = vld [vmem:[%s7518_s3 + $0x5f0] sm:$0xf0]  ;;  %v5203_v29 = vld [vmem:[%s7518_s3 + $0x5f4] sm:$0xf0] }
 0x12e   :  { %1845 = vmatpush.bf16.msrb.mxu3 %v4026_v12  ;;  %1858 = vmatpush.bf16.msra.mxu0 %v4030_v13  ;;  %v4238_v12 = vor.u32 %v5157_v7, %v4235_v8  ;;  %v5152_v13 = vld [vmem:[%s7518_s3 + $0x464] sm:$0xf]  ;;  %v4170_v7 = vor.u32 %v5143_v59, %v4169_v44  ;;  %v4174_v8 = vor.u32 %v5141_v60, %v4171_v61  ;;  %v5187_v44 = vld [vmem:[%s7518_s3 + $0x574] sm:$0xf0]  ;;  %v5185_v59 = vld [vmem:[%s7518_s3 + $0x56c] sm:$0xf] }
 0x12f   :  { %v4214_v23 = vor.u32 %v5152_v13, %v4211_v14  ;;  %v4446_v13 = vor.u32 %v5201_v5, %v4443_v6  ;;  %v5196_v14 = vld [vmem:[%s7518_s3 + $0x5c4] sm:$0xf]  ;;  %v4379_v60 = vld [vmem:[%s7518_s3 + $0x578] sm:$0xf0]  ;;  %v5183_v5 = vld [vmem:[%s7518_s3 + $0x554] sm:$0xf0] }
 0x130   :  { %v5181_v6 = vld [vmem:[%s7518_s3 + $0x54c] sm:$0xf] }
 0x131   :  { %1820 = vmatpush.bf16.msrb.mxu1 %v4002_v25  ;;  %1833 = vmatpush.bf16.msrb.mxu2 %v4006_v26  ;;  %v4218_v25 = vor.u32 %v5155_v19, %v4217_v17  ;;  %v4222_v26 = vor.u32 %v5153_v20, %v4219_v46  ;;  %v4419_v17 = vld [vmem:[%s7518_s3 + $0x5d0] sm:$0xf0]  ;;  %v4425_v19 = vld [vmem:[%s7518_s3 + $0x5c8] sm:$0xf]  ;;  %v5197_v20 = vld [vmem:[%s7518_s3 + $0x5cc] sm:$0xf] }
 0x132   :  { %1846 = vmatpush.bf16.msrb.mxu3 %v4010_v31  ;;  %1859 = vmatpush.bf16.msra.mxu0 %v4014_v33  ;;  %v5151_v31 = vld [vmem:[%s7518_s3 + $0x454] sm:$0xf0]  ;;  %v5149_v33 = vld [vmem:[%s7518_s3 + $0x44c] sm:$0xf]  ;;  %v4427_v46 = vld [vmem:[%s7518_s3 + $0x5d8] sm:$0xf0]  ;;  %v4422_v22 = vor.u32 %v5196_v14, %v4419_v17 }
 0x133   :  { %v4202_v38 = vor.u32 %v5151_v31, %v4201_v30  ;;  %v4430_v27 = vor.u32 %v5197_v20, %v4427_v46  ;;  %v4403_v30 = vld [vmem:[%s7518_s3 + $0x5b0] sm:$0xf0]  ;;  %v4409_v31 = vld [vmem:[%s7518_s3 + $0x5a8] sm:$0xf]  ;;  %v5179_v17 = vld [vmem:[%s7518_s3 + $0x534] sm:$0xf0] }
 0x134   :  { %1821 = vmatmul.bf16.vlgmr.msrb.gmra.mxu1 %v1651_v47  ;;  %1834 = vmatmul.bf16.vlgmr.msrb.gmra.mxu2 %v1651_v47  ;;  %v4345_v14 = vld [vmem:[%s7518_s3 + $0x528] sm:$0xf]  ;;  %v4321_v20 = vld [vmem:[%s7518_s3 + $0x500] sm:$0xf] }
 0x135   :  { %2063 = vmatpush.bf16.msra.mxu1 %v4274_v34  ;;  %2076 = vmatpush.bf16.msra.mxu2 %v4278_v35  ;;  %v4203_v34 = vld [vmem:[%s7518_s3 + $0x458] sm:$0xf0]  ;;  %v5305_v35 = vpop.eup %5304 }
 0x136   :  { %2089 = vmatpush.bf16.msra.mxu3 %v4282_v37  ;;  %2102 = vmatpush.bf16.msrb.mxu0 %v4286_v39  ;;  %v4177_v37 = vld [vmem:[%s7518_s3 + $0x420] sm:$0xf]  ;;  %v5146_v39 = vld [vmem:[%s7518_s3 + $0x42c] sm:$0xf0]  ;;  %v4206_v40 = vor.u32 %v5149_v33, %v4203_v34  ;;  %v5195_v33 = vld [vmem:[%s7518_s3 + $0x5b4] sm:$0xf0] }
 0x137   :  { %1847 = vmatmul.bf16.vlgmr.msrb.gmra.mxu3 %v1651_v47  ;;  %1860 = vmatmul.bf16.vlgmr.msra.gmra.mxu0 %v1651_v47  ;;  %v4187_v47 = vld [vmem:[%s7518_s3 + $0x438] sm:$0xf0]  ;;  %v4178_v49 = vor.u32 %v5146_v39, %v4177_v37  ;;  %v5193_v34 = vld [vmem:[%s7518_s3 + $0x5ac] sm:$0xf]  ;;  %v4385_v37 = vld [vmem:[%s7518_s3 + $0x580] sm:$0xf] }
 0x138   :  { %v4190_v56 = vor.u32 %v5145_v45, %v4187_v47  ;;  %v5190_v39 = vld [vmem:[%s7518_s3 + $0x58c] sm:$0xf0]  ;;  %v5189_v45 = vld [vmem:[%s7518_s3 + $0x58c] sm:$0xf]  ;;  %v4395_v47 = vld [vmem:[%s7518_s3 + $0x598] sm:$0xf0] }
 0x139   :  { %2064 = vmatpush.bf16.msra.mxu1 %v4258_v48  ;;  %2077 = vmatpush.bf16.msra.mxu2 %v4262_v3  ;;  %v3517_v48 = vadd.f32 -1.0, %v5305_v35  ;;  %v4161_v3 = vld [vmem:[%s7518_s3 + $0x400] sm:$0xf]  ;;  %v4411_v35 = vld [vmem:[%s7518_s3 + $0x5b8] sm:$0xf0] }
 0x13a   :  { %2090 = vmatpush.bf16.msra.mxu3 %v4266_v53  ;;  %2103 = vmatpush.bf16.msrb.mxu0 %v4270_v54  ;;  %v5142_v53 = vld [vmem:[%s7518_s3 + $0x40c] sm:$0xf0]  ;;  %v5140_v54 = vld [vmem:[%s7518_s3 + $0x404] sm:$0xf] }
 0x13b   :  { %v4166_v4 = vor.u32 %v5140_v54, %v4163_v55  ;;  %v4398_v54 = vor.u32 %v5189_v45, %v4395_v47  ;;  %v5184_v55 = vld [vmem:[%s7518_s3 + $0x564] sm:$0xf] }
 0x13d   :  { %2065 = vmatpush.bf16.msra.mxu1 %v4242_v62  ;;  %2078 = vmatpush.bf16.msra.mxu2 %v4246_v63  ;;  %v4433_v62 = vld [vmem:[%s7518_s3 + $0x5e0] sm:$0xf]  ;;  %v5202_v63 = vld [vmem:[%s7518_s3 + $0x5ec] sm:$0xf0] }
 0x13e   :  { %2091 = vmatpush.bf16.msra.mxu3 %v4250_v9  ;;  %2104 = vmatpush.bf16.msrb.mxu0 %v4254_v2  ;;  %v4441_v9 = vld [vmem:[%s7518_s3 + $0x5e8] sm:$0xf]  ;;  %v4162_v2 = vor.u32 %v5142_v53, %v4161_v3  ;;  %v4390_v3 = vor.u32 %v5188_v41, %v4387_v42  ;;  %v4394_v53 = vor.u32 %v5191_v43, %v4393_v58  ;;  %v5233_v41 = vld [vmem:[%s7518_s3 + $0x6ec] sm:$0xf]  ;;  %v4603_v42 = vld [vmem:[%s7518_s3 + $0x6f8] sm:$0xf0] }
 0x141   :  { %2066 = vmatpush.bf16.msra.mxu1 %v4226_v10  ;;  %2079 = vmatpush.bf16.msra.mxu2 %v4230_v32  ;;  %v4434_v10 = vor.u32 %v5202_v63, %v4433_v62  ;;  %v4438_v32 = vor.u32 %v5200_v0, %v4435_v1  ;;  %v4353_v63 = vld [vmem:[%s7518_s3 + $0x540] sm:$0xf]  ;;  %v5182_v0 = vld [vmem:[%s7518_s3 + $0x54c] sm:$0xf0] }
 0x142   :  { %2092 = vmatpush.bf16.msra.mxu3 %v4234_v11  ;;  %2105 = vmatpush.bf16.msrb.mxu0 %v4238_v12  ;;  %v872_v11 = vsel %vm857_vm1, %v6089_v18, %v3517_v48  ;;  %v4442_v12 = vor.u32 %v5203_v29, %v4441_v9  ;;  %v5199_v18 = vld [vmem:[%s7518_s3 + $0x5d4] sm:$0xf0]  ;;  %v4386_v48 = vor.u32 %v5190_v39, %v4385_v37  ;;  %v4361_v29 = vld [vmem:[%s7518_s3 + $0x548] sm:$0xf] }
 0x143   :  { %v4382_v9 = vor.u32 %v5185_v59, %v4379_v60  ;;  %v4601_v37 = vld [vmem:[%s7518_s3 + $0x6e8] sm:$0xf] }
 0x145   :  { %2067 = vmatpush.bf16.msra.mxu1 %v4210_v21  ;;  %2080 = vmatpush.bf16.msra.mxu2 %v4214_v23  ;;  %v6729_v21 = vpack.c.bf16 %v872_v11, %v872_v11  ;;  %v4418_v23 = vor.u32 %v5198_v57, %v4417_v51  ;;  %v5178_v51 = vld [vmem:[%s7518_s3 + $0x52c] sm:$0xf0]  ;;  %v4362_v57 = vor.u32 %v5183_v5, %v4361_v29  ;;  %v5227_v29 = vld [vmem:[%s7518_s3 + $0x6b4] sm:$0xf0]  ;;  %v5225_v5 = vld [vmem:[%s7518_s3 + $0x6ac] sm:$0xf] }
 0x146   :  { %2093 = vmatpush.bf16.msra.mxu3 %v4218_v25  ;;  %2106 = vmatpush.bf16.msrb.mxu0 %v4222_v26  ;;  %v5194_v25 = vld [vmem:[%s7518_s3 + $0x5ac] sm:$0xf0]  ;;  %v4426_v26 = vor.u32 %v5199_v18, %v4425_v19  ;;  %v5177_v19 = vld [vmem:[%s7518_s3 + $0x52c] sm:$0xf]  ;;  %v4347_v18 = vld [vmem:[%s7518_s3 + $0x538] sm:$0xf0] }
 0x147   :  { %v2153_v59 = vrot.slane %v6729_v21, 1 }
 0x149   :  { %2068 = vmatpush.bf16.msra.mxu1 %v4194_v36  ;;  %2081 = vmatpush.bf16.msra.mxu2 %v4198_v50  ;;  %v4402_v36 = vor.u32 %v5194_v25, %v4401_v24  ;;  %v4406_v50 = vor.u32 %v5192_v28, %v4403_v30  ;;  %v5172_v24 = vld [vmem:[%s7518_s3 + $0x504] sm:$0xf]  ;;  %v4323_v25 = vld [vmem:[%s7518_s3 + $0x510] sm:$0xf0]  ;;  %v4329_v28 = vld [vmem:[%s7518_s3 + $0x508] sm:$0xf] }
 0x14a   :  { %2094 = vmatpush.bf16.msra.mxu3 %v4202_v38  ;;  %2107 = vmatpush.bf16.msrb.mxu0 %v4206_v40  ;;  %v4410_v38 = vor.u32 %v5195_v33, %v4409_v31  ;;  %v4414_v40 = vor.u32 %v5193_v34, %v4411_v35  ;;  %v5175_v30 = vld [vmem:[%s7518_s3 + $0x514] sm:$0xf0]  ;;  %v5173_v31 = vld [vmem:[%s7518_s3 + $0x50c] sm:$0xf]  ;;  %v4331_v33 = vld [vmem:[%s7518_s3 + $0x518] sm:$0xf0] }
 0x14b   :  { %v4593_v34 = vld [vmem:[%s7518_s3 + $0x6e0] sm:$0xf]  ;;  %v5234_v35 = vld [vmem:[%s7518_s3 + $0x6ec] sm:$0xf0]  ;;  %v4330_v58 = vor.u32 %v5175_v30, %v4329_v28  ;;  %v4334_v43 = vor.u32 %v5173_v31, %v4331_v33  ;;  %v5216_v28 = vld [vmem:[%s7518_s3 + $0x664] sm:$0xf] }
 0x14c   :  { %v4594_v45 = vor.u32 %v5234_v35, %v4593_v34  ;;  %v4531_v30 = vld [vmem:[%s7518_s3 + $0x670] sm:$0xf0]  ;;  %v4537_v31 = vld [vmem:[%s7518_s3 + $0x668] sm:$0xf]  ;;  %v5219_v34 = vld [vmem:[%s7518_s3 + $0x674] sm:$0xf0] }
 0x14d   :  { %2069 = vmatpush.bf16.msra.mxu1 %v4178_v49  ;;  %2082 = vmatpush.bf16.msra.mxu2 %v4182_v52  ;;  %v4369_v49 = vld [vmem:[%s7518_s3 + $0x560] sm:$0xf]  ;;  %v5186_v52 = vld [vmem:[%s7518_s3 + $0x56c] sm:$0xf0]  ;;  %v5217_v35 = vld [vmem:[%s7518_s3 + $0x66c] sm:$0xf] }
 0x14e   :  { %2095 = vmatpush.bf16.msra.mxu3 %v4186_v15  ;;  %2108 = vmatpush.bf16.msrb.mxu0 %v4190_v56  ;;  %v4371_v15 = vld [vmem:[%s7518_s3 + $0x570] sm:$0xf0]  ;;  %v4377_v56 = vld [vmem:[%s7518_s3 + $0x568] sm:$0xf]  ;;  %v4370_v61 = vor.u32 %v5186_v52, %v4369_v49  ;;  %v4606_v52 = vor.u32 %v5233_v41, %v4603_v42  ;;  %v5214_v41 = vld [vmem:[%s7518_s3 + $0x64c] sm:$0xf0]  ;;  %v4538_v42 = vor.u32 %v5219_v34, %v4537_v31 }
 0x14f   :  { %v4374_v62 = vor.u32 %v5184_v55, %v4371_v15  ;;  %v4378_v1 = vor.u32 %v5187_v44, %v4377_v56  ;;  %v4585_v55 = vld [vmem:[%s7518_s3 + $0x6c8] sm:$0xf]  ;;  %v5231_v15 = vld [vmem:[%s7518_s3 + $0x6d4] sm:$0xf0]  ;;  %v5229_v56 = vld [vmem:[%s7518_s3 + $0x6cc] sm:$0xf] }
 0x150   :  { %v4587_v44 = vld [vmem:[%s7518_s3 + $0x6d8] sm:$0xf0] }
 0x151   :  { %2070 = vmatpush.bf16.msra.mxu1 %v4162_v2  ;;  %2083 = vmatpush.bf16.msra.mxu2 %v4166_v4  ;;  %v5180_v2 = vld [vmem:[%s7518_s3 + $0x544] sm:$0xf]  ;;  %v4355_v4 = vld [vmem:[%s7518_s3 + $0x550] sm:$0xf0] }
 0x152   :  { %2096 = vmatpush.bf16.msra.mxu3 %v4170_v7  ;;  %2109 = vmatpush.bf16.msrb.mxu0 %v4174_v8  ;;  %v4363_v7 = vld [vmem:[%s7518_s3 + $0x558] sm:$0xf0]  ;;  %v4354_v8 = vor.u32 %v5182_v0, %v4353_v63  ;;  %v5226_v63 = vld [vmem:[%s7518_s3 + $0x6ac] sm:$0xf0]  ;;  %v4586_v0 = vor.u32 %v5231_v15, %v4585_v55 }
 0x153   :  { %v4366_v11 = vor.u32 %v5181_v6, %v4363_v7  ;;  %v4571_v6 = vld [vmem:[%s7518_s3 + $0x6b8] sm:$0xf0]  ;;  %v5210_v55 = vld [vmem:[%s7518_s3 + $0x62c] sm:$0xf0] }
 0x154   :  { %2071 = vmatmul.bf16.vlgmr.msra.gmra.mxu1 %v6729_v21  ;;  %2084 = vmatmul.bf16.vlgmr.msra.gmra.mxu2 %v6729_v21 }
 0x155   :  { %2315 = vmatpush.bf16.msrb.mxu1 %v4434_v10  ;;  %2328 = vmatpush.bf16.msrb.mxu2 %v4438_v32  ;;  %v4358_v10 = vor.u32 %v5180_v2, %v4355_v4  ;;  %v4337_v32 = vld [vmem:[%s7518_s3 + $0x520] sm:$0xf]  ;;  %v4563_v2 = vld [vmem:[%s7518_s3 + $0x6b0] sm:$0xf0]  ;;  %v4569_v4 = vld [vmem:[%s7518_s3 + $0x6a8] sm:$0xf] }
 0x156   :  { %2341 = vmatpush.bf16.msrb.mxu3 %v4442_v12  ;;  %2354 = vmatpush.bf16.msra.mxu0 %v4446_v13  ;;  %v5176_v12 = vld [vmem:[%s7518_s3 + $0x524] sm:$0xf]  ;;  %v4339_v13 = vld [vmem:[%s7518_s3 + $0x530] sm:$0xf0]  ;;  %v4338_v46 = vor.u32 %v5178_v51, %v4337_v32  ;;  %v4545_v51 = vld [vmem:[%s7518_s3 + $0x680] sm:$0xf] }
 0x157   :  { %2097 = vmatmul.bf16.vlgmr.msra.gmra.mxu3 %v6729_v21  ;;  %2110 = vmatmul.bf16.vlgmr.msrb.gmra.mxu0 %v6729_v21 }
 0x159   :  { %2316 = vmatpush.bf16.msrb.mxu1 %v4418_v23  ;;  %2329 = vmatpush.bf16.msrb.mxu2 %v4422_v22  ;;  %v4342_v23 = vor.u32 %v5176_v12, %v4339_v13  ;;  %v5174_v22 = vld [vmem:[%s7518_s3 + $0x50c] sm:$0xf0]  ;;  %v4574_v12 = vor.u32 %v5225_v5, %v4571_v6  ;;  %v5220_v13 = vld [vmem:[%s7518_s3 + $0x684] sm:$0xf] }
 0x15a   :  { %2342 = vmatpush.bf16.msrb.mxu3 %v4426_v26  ;;  %2355 = vmatpush.bf16.msra.mxu0 %v4430_v27  ;;  %v4346_v26 = vor.u32 %v5179_v17, %v4345_v14  ;;  %v4350_v27 = vor.u32 %v5177_v19, %v4347_v18  ;;  %v4322_v39 = vor.u32 %v5174_v22, %v4321_v20  ;;  %v4547_v14 = vld [vmem:[%s7518_s3 + $0x690] sm:$0xf0]  ;;  %v4553_v17 = vld [vmem:[%s7518_s3 + $0x688] sm:$0xf]  ;;  %v5223_v19 = vld [vmem:[%s7518_s3 + $0x694] sm:$0xf0] }
 0x15b   :  { %v5221_v18 = vld [vmem:[%s7518_s3 + $0x68c] sm:$0xf]  ;;  %v4555_v20 = vld [vmem:[%s7518_s3 + $0x698] sm:$0xf0]  ;;  %v4529_v22 = vld [vmem:[%s7518_s3 + $0x660] sm:$0xf] }
 0x15d   :  { %2317 = vmatpush.bf16.msrb.mxu1 %v4402_v36  ;;  %2330 = vmatpush.bf16.msrb.mxu2 %v4406_v50  ;;  %v5232_v36 = vld [vmem:[%s7518_s3 + $0x6e4] sm:$0xf]  ;;  %v4595_v50 = vld [vmem:[%s7518_s3 + $0x6f0] sm:$0xf0] }
 0x15e   :  { %2343 = vmatpush.bf16.msrb.mxu3 %v4410_v38  ;;  %2356 = vmatpush.bf16.msra.mxu0 %v4414_v40  ;;  %v4326_v38 = vor.u32 %v5172_v24, %v4323_v25  ;;  %v5235_v40 = vld [vmem:[%s7518_s3 + $0x6f4] sm:$0xf0]  ;;  %v4598_v47 = vor.u32 %v5232_v36, %v4595_v50  ;;  %v5218_v24 = vld [vmem:[%s7518_s3 + $0x66c] sm:$0xf0]  ;;  %v4554_v25 = vor.u32 %v5223_v19, %v4553_v17  ;;  %v4539_v36 = vld [vmem:[%s7518_s3 + $0x678] sm:$0xf0] }
 0x15f   :  { %v4602_v49 = vor.u32 %v5235_v40, %v4601_v37  ;;  %v4530_v37 = vor.u32 %v5218_v24, %v4529_v22  ;;  %v4513_v40 = vld [vmem:[%s7518_s3 + $0x640] sm:$0xf]  ;;  %v4491_v17 = vld [vmem:[%s7518_s3 + $0x618] sm:$0xf0]  ;;  %v5266_v19 = vld [vmem:[%s7518_s3 + $0x7ec] sm:$0xf0] }
 0x160   :  { %v5267_v24 = vld [vmem:[%s7518_s3 + $0x7f4] sm:$0xf0] }
 0x161   :  { %2318 = vmatpush.bf16.msrb.mxu1 %v4386_v48  ;;  %2331 = vmatpush.bf16.msrb.mxu2 %v4390_v3  ;;  %v4577_v48 = vld [vmem:[%s7518_s3 + $0x6c0] sm:$0xf]  ;;  %v5230_v3 = vld [vmem:[%s7518_s3 + $0x6cc] sm:$0xf0] }
 0x162   :  { %2344 = vmatpush.bf16.msrb.mxu3 %v4394_v53  ;;  %2357 = vmatpush.bf16.msra.mxu0 %v4398_v54  ;;  %v5228_v53 = vld [vmem:[%s7518_s3 + $0x6c4] sm:$0xf]  ;;  %v4579_v54 = vld [vmem:[%s7518_s3 + $0x6d0] sm:$0xf0]  ;;  %v4578_v60 = vor.u32 %v5230_v3, %v4577_v48  ;;  %v5215_v48 = vld [vmem:[%s7518_s3 + $0x654] sm:$0xf0] }
 0x163   :  { %v5213_v3 = vld [vmem:[%s7518_s3 + $0x64c] sm:$0xf] }
 0x165   :  { %2319 = vmatpush.bf16.msrb.mxu1 %v4370_v61  ;;  %2332 = vmatpush.bf16.msrb.mxu2 %v4374_v62  ;;  %v4582_v61 = vor.u32 %v5228_v53, %v4579_v54  ;;  %v4561_v62 = vld [vmem:[%s7518_s3 + $0x6a0] sm:$0xf] }
 0x166   :  { %2345 = vmatpush.bf16.msrb.mxu3 %v4378_v1  ;;  %2358 = vmatpush.bf16.msra.mxu0 %v4382_v9  ;;  %v4590_v1 = vor.u32 %v5229_v56, %v4587_v44  ;;  %v5224_v9 = vld [vmem:[%s7518_s3 + $0x6a4] sm:$0xf]  ;;  %v4497_v54 = vld [vmem:[%s7518_s3 + $0x620] sm:$0xf] }
 0x169   :  { %2320 = vmatpush.bf16.msrb.mxu1 %v4354_v8  ;;  %2333 = vmatpush.bf16.msrb.mxu2 %v4358_v10  ;;  %v4562_v8 = vor.u32 %v5226_v63, %v4561_v62  ;;  %v4566_v10 = vor.u32 %v5224_v9, %v4563_v2  ;;  %v5211_v63 = vld [vmem:[%s7518_s3 + $0x634] sm:$0xf0]  ;;  %v4481_v2 = vld [vmem:[%s7518_s3 + $0x600] sm:$0xf] }
 0x16a   :  { %2346 = vmatpush.bf16.msrb.mxu3 %v4362_v57  ;;  %2359 = vmatpush.bf16.msra.mxu0 %v4366_v11  ;;  %v5222_v57 = vld [vmem:[%s7518_s3 + $0x68c] sm:$0xf0]  ;;  %v4570_v11 = vor.u32 %v5227_v29, %v4569_v4  ;;  %v4498_v4 = vor.u32 %v5210_v55, %v4497_v54 }
 0x16b   :  { %v5258_v54 = vld [vmem:[%s7518_s3 + $0x7ac] sm:$0xf0] }
 0x16d   :  { %2321 = vmatpush.bf16.msrb.mxu1 %v4338_v46  ;;  %2334 = vmatpush.bf16.msrb.mxu2 %v4342_v23  ;;  %v4546_v46 = vor.u32 %v5222_v57, %v4545_v51  ;;  %v4550_v23 = vor.u32 %v5220_v13, %v4547_v14  ;;  %v4483_v51 = vld [vmem:[%s7518_s3 + $0x610] sm:$0xf0]  ;;  %v5207_v13 = vld [vmem:[%s7518_s3 + $0x614] sm:$0xf0]  ;;  %v5205_v14 = vld [vmem:[%s7518_s3 + $0x60c] sm:$0xf] }
 0x16e   :  { %2347 = vmatpush.bf16.msrb.mxu3 %v4346_v26  ;;  %2360 = vmatpush.bf16.msra.mxu0 %v4350_v27  ;;  %v4558_v26 = vor.u32 %v5221_v18, %v4555_v20  ;;  %v5264_v18 = vld [vmem:[%s7518_s3 + $0x7e4] sm:$0xf]  ;;  %v4755_v20 = vld [vmem:[%s7518_s3 + $0x7f0] sm:$0xf0] }
 0x170   :  { %v6952_v7 = vpop.f32.mrf.mxu1 }
 0x171   :  { %2322 = vmatpush.bf16.msrb.mxu1 %v4322_v39  ;;  %2335 = vmatpush.bf16.msrb.mxu2 %v4326_v38  ;;  %v6954_v32 = vpop.f32.mrf.mxu0  ;;  %v4534_v39 = vor.u32 %v5216_v28, %v4531_v30  ;;  %v4494_v30 = vor.u32 %v5205_v14, %v4491_v17 }
 0x172   :  { %2348 = vmatpush.bf16.msrb.mxu3 %v4330_v58  ;;  %2361 = vmatpush.bf16.msra.mxu0 %v4334_v43  ;;  %v4542_v58 = vor.u32 %v5217_v35, %v4539_v36  ;;  %v5212_v43 = vld [vmem:[%s7518_s3 + $0x644] sm:$0xf]  ;;  %v4758_v35 = vor.u32 %v5264_v18, %v4755_v20  ;;  %v4689_v18 = vld [vmem:[%s7518_s3 + $0x760] sm:$0xf]  ;;  %v5250_v20 = vld [vmem:[%s7518_s3 + $0x76c] sm:$0xf0] }
 0x174   :  { %2323 = vmatmul.bf16.vlgmr.msrb.gmra.mxu1 %v2153_v59  ;;  %2336 = vmatmul.bf16.vlgmr.msrb.gmra.mxu2 %v2153_v59 }
 0x175   :  { %2566 = vmatpush.bf16.msra.mxu1 %v4594_v45  ;;  %2579 = vmatpush.bf16.msra.mxu2 %v4598_v47  ;;  %v4515_v45 = vld [vmem:[%s7518_s3 + $0x650] sm:$0xf0]  ;;  %v4521_v47 = vld [vmem:[%s7518_s3 + $0x648] sm:$0xf] }
 0x176   :  { %2592 = vmatpush.bf16.msra.mxu3 %v4602_v49  ;;  %2605 = vmatpush.bf16.msrb.mxu0 %v4606_v52  ;;  %v6986_v27 = vpop.f32.mrf.mxu2  ;;  %v4523_v49 = vld [vmem:[%s7518_s3 + $0x658] sm:$0xf0]  ;;  %v4514_v52 = vor.u32 %v5214_v41, %v4513_v40  ;;  %v4518_v53 = vor.u32 %v5212_v43, %v4515_v45  ;;  %v4522_v15 = vor.u32 %v5215_v48, %v4521_v47  ;;  %v4745_v43 = vld [vmem:[%s7518_s3 + $0x7c8] sm:$0xf]  ;;  %v5261_v47 = vld [vmem:[%s7518_s3 + $0x7cc] sm:$0xf] }
 0x177   :  { %2349 = vmatmul.bf16.vlgmr.msrb.gmra.mxu3 %v2153_v59  ;;  %2362 = vmatmul.bf16.vlgmr.msra.gmra.mxu0 %v2153_v59  ;;  %v6997_v33 = vpop.f32.mrf.mxu3  ;;  %v4526_v56 = vor.u32 %v5213_v3, %v4523_v49  ;;  %v5208_v59 = vld [vmem:[%s7518_s3 + $0x624] sm:$0xf]  ;;  %v4747_v48 = vld [vmem:[%s7518_s3 + $0x7d8] sm:$0xf0]  ;;  %v2404_v3 = vrot.slane %v6729_v21, 2 }
 0x178   :  { %v1114_v50 = vpop.f32.mrf.mxu1 }
 0x179   :  { %2567 = vmatpush.bf16.msra.mxu1 %v4578_v60  ;;  %2580 = vmatpush.bf16.msra.mxu2 %v4582_v61  ;;  %v1153_v38 = vpop.f32.mrf.mxu0  ;;  %v4499_v60 = vld [vmem:[%s7518_s3 + $0x630] sm:$0xf0]  ;;  %v4505_v61 = vld [vmem:[%s7518_s3 + $0x628] sm:$0xf] }
 0x17a   :  { %2593 = vmatpush.bf16.msra.mxu3 %v4586_v0  ;;  %2606 = vmatpush.bf16.msrb.mxu0 %v4590_v1  ;;  %v5209_v0 = vld [vmem:[%s7518_s3 + $0x62c] sm:$0xf]  ;;  %v4507_v1 = vld [vmem:[%s7518_s3 + $0x638] sm:$0xf0]  ;;  %v4502_v29 = vor.u32 %v5208_v59, %v4499_v60  ;;  %v4506_v57 = vor.u32 %v5211_v63, %v4505_v61  ;;  %v4729_v59 = vld [vmem:[%s7518_s3 + $0x7a8] sm:$0xf] }
 0x17b   :  { %v5259_v60 = vld [vmem:[%s7518_s3 + $0x7b4] sm:$0xf0]  ;;  %v5257_v61 = vld [vmem:[%s7518_s3 + $0x7ac] sm:$0xf] }
 0x17d   :  { %2568 = vmatpush.bf16.msra.mxu1 %v4562_v8  ;;  %2581 = vmatpush.bf16.msra.mxu2 %v4566_v10  ;;  %v5206_v8 = vld [vmem:[%s7518_s3 + $0x60c] sm:$0xf0]  ;;  %v5204_v10 = vld [vmem:[%s7518_s3 + $0x604] sm:$0xf] }
 0x17e   :  { %2594 = vmatpush.bf16.msra.mxu3 %v4570_v11  ;;  %2607 = vmatpush.bf16.msrb.mxu0 %v4574_v12  ;;  %v1127_v44 = vpop.f32.mrf.mxu2  ;;  %v4510_v11 = vor.u32 %v5209_v0, %v4507_v1  ;;  %v4489_v12 = vld [vmem:[%s7518_s3 + $0x608] sm:$0xf]  ;;  %v4486_v22 = vor.u32 %v5204_v10, %v4483_v51  ;;  %v4707_v10 = vld [vmem:[%s7518_s3 + $0x790] sm:$0xf0] }
 0x17f   :  { %v1140_v62 = vpop.f32.mrf.mxu3  ;;  %v4490_v28 = vor.u32 %v5207_v13, %v4489_v12  ;;  %v4723_v44 = vld [vmem:[%s7518_s3 + $0x7b0] sm:$0xf0]  ;;  %v4713_v51 = vld [vmem:[%s7518_s3 + $0x788] sm:$0xf]  ;;  %v4715_v12 = vld [vmem:[%s7518_s3 + $0x798] sm:$0xf0] }
 0x180   :  { %v1324_v9 = vpop.f32.mrf.mxu1  ;;  %v4731_v62 = vld [vmem:[%s7518_s3 + $0x7b8] sm:$0xf0] }
 0x181   :  { %2569 = vmatpush.bf16.msra.mxu1 %v4546_v46  ;;  %2582 = vmatpush.bf16.msra.mxu2 %v4550_v23  ;;  %v7060_v5 = vadd.f32 %v1324_v9, %v6952_v7  ;;  %v1363_v6 = vpop.f32.mrf.mxu0  ;;  %v4761_v46 = vld [vmem:[%s7518_s3 + $0x7e8] sm:$0xf]  ;;  %v4482_v23 = vor.u32 %v5206_v8, %v4481_v2  ;;  %v4705_v2 = vld [vmem:[%s7518_s3 + $0x780] sm:$0xf]  ;;  %v5252_v8 = vld [vmem:[%s7518_s3 + $0x784] sm:$0xf] }
 0x182   :  { %2595 = vmatpush.bf16.msra.mxu3 %v4554_v25  ;;  %2608 = vmatpush.bf16.msrb.mxu0 %v4558_v26  ;;  %v7072_v7 = vadd.f32 %v1363_v6, %v6954_v32  ;;  %v4753_v32 = vld [vmem:[%s7518_s3 + $0x7e0] sm:$0xf]  ;;  %v5265_v25 = vld [vmem:[%s7518_s3 + $0x7ec] sm:$0xf]  ;;  %v4763_v26 = vld [vmem:[%s7518_s3 + $0x7f8] sm:$0xf0]  ;;  %v4762_v38 = vor.u32 %v5267_v24, %v4761_v46  ;;  %v4734_v6 = vor.u32 %v5257_v61, %v4731_v62 }
 0x183   :  { %v4754_v34 = vor.u32 %v5266_v19, %v4753_v32  ;;  %v4766_v40 = vor.u32 %v5265_v25, %v4763_v26  ;;  %v4710_v19 = vor.u32 %v5252_v8, %v4707_v10  ;;  %v4691_v24 = vld [vmem:[%s7518_s3 + $0x770] sm:$0xf0]  ;;  %v4697_v25 = vld [vmem:[%s7518_s3 + $0x768] sm:$0xf]  ;;  %v5251_v26 = vld [vmem:[%s7518_s3 + $0x774] sm:$0xf0] }
 0x184   :  { %v4641_v61 = vld [vmem:[%s7518_s3 + $0x700] sm:$0xf]  ;;  %v5239_v8 = vld [vmem:[%s7518_s3 + $0x714] sm:$0xf0]  ;;  %v5237_v10 = vld [vmem:[%s7518_s3 + $0x70c] sm:$0xf] }
 0x185   :  { %2570 = vmatpush.bf16.msra.mxu1 %v4530_v37  ;;  %2583 = vmatpush.bf16.msra.mxu2 %v4534_v39  ;;  %v4737_v37 = vld [vmem:[%s7518_s3 + $0x7c0] sm:$0xf]  ;;  %v5262_v39 = vld [vmem:[%s7518_s3 + $0x7cc] sm:$0xf0] }
 0x186   :  { %2596 = vmatpush.bf16.msra.mxu3 %v4538_v42  ;;  %2609 = vmatpush.bf16.msrb.mxu0 %v4542_v58  ;;  %v1337_v31 = vpop.f32.mrf.mxu2  ;;  %v4739_v58 = vld [vmem:[%s7518_s3 + $0x7d0] sm:$0xf0]  ;;  %v4738_v49 = vor.u32 %v5262_v39, %v4737_v37 }
 0x187   :  { %v7111_v36 = vadd.f32 %v1337_v31, %v6986_v27  ;;  %v1350_v50 = vpop.f32.mrf.mxu3  ;;  %v5260_v27 = vld [vmem:[%s7518_s3 + $0x7c4] sm:$0xf] }
 0x188   :  { %v7120_v41 = vadd.f32 %v1350_v50, %v6997_v33  ;;  %v1326_v42 = vpop.f32.mrf.mxu1  ;;  %v5263_v33 = vld [vmem:[%s7518_s3 + $0x7d4] sm:$0xf0]  ;;  %v4698_v50 = vor.u32 %v5251_v26, %v4697_v25 }
 0x189   :  { %2571 = vmatpush.bf16.msra.mxu1 %v4514_v52  ;;  %2584 = vmatpush.bf16.msra.mxu2 %v4518_v53  ;;  %v1365_v45 = vpop.f32.mrf.mxu0  ;;  %v4742_v52 = vor.u32 %v5260_v27, %v4739_v58  ;;  %v4721_v53 = vld [vmem:[%s7518_s3 + $0x7a0] sm:$0xf]  ;;  %v4746_v55 = vor.u32 %v5263_v33, %v4745_v43  ;;  %v4681_v42 = vld [vmem:[%s7518_s3 + $0x748] sm:$0xf]  ;;  %v5247_v43 = vld [vmem:[%s7518_s3 + $0x754] sm:$0xf0] }
 0x18a   :  { %2597 = vmatpush.bf16.msra.mxu3 %v4522_v15  ;;  %2610 = vmatpush.bf16.msrb.mxu0 %v4526_v56  ;;  %v4750_v15 = vor.u32 %v5261_v47, %v4747_v48  ;;  %v5256_v56 = vld [vmem:[%s7518_s3 + $0x7a4] sm:$0xf]  ;;  %v4722_v0 = vor.u32 %v5258_v54, %v4721_v53  ;;  %v5245_v45 = vld [vmem:[%s7518_s3 + $0x74c] sm:$0xf]  ;;  %v4683_v33 = vld [vmem:[%s7518_s3 + $0x758] sm:$0xf0]  ;;  %v4682_v54 = vor.u32 %v5247_v43, %v4681_v42 }
 0x18b   :  { %v4726_v1 = vor.u32 %v5256_v56, %v4723_v44  ;;  %v5242_v53 = vld [vmem:[%s7518_s3 + $0x72c] sm:$0xf0]  ;;  %v4665_v56 = vld [vmem:[%s7518_s3 + $0x728] sm:$0xf]  ;;  %v5243_v44 = vld [vmem:[%s7518_s3 + $0x734] sm:$0xf0] }
 0x18c   :  { %v4881_v43 = vld [vmem:[%s7518_s3 + $0x8a0] sm:$0xf] }
 0x18d   :  { %2572 = vmatpush.bf16.msra.mxu1 %v4498_v4  ;;  %2585 = vmatpush.bf16.msra.mxu2 %v4502_v29  ;;  %v5254_v4 = vld [vmem:[%s7518_s3 + $0x78c] sm:$0xf0]  ;;  %v4730_v29 = vor.u32 %v5259_v60, %v4729_v59  ;;  %v5241_v59 = vld [vmem:[%s7518_s3 + $0x72c] sm:$0xf]  ;;  %v4667_v60 = vld [vmem:[%s7518_s3 + $0x738] sm:$0xf0] }
 0x18e   :  { %2598 = vmatpush.bf16.msra.mxu3 %v4506_v57  ;;  %2611 = vmatpush.bf16.msrb.mxu0 %v4510_v11  ;;  %v1339_v63 = vpop.f32.mrf.mxu2  ;;  %v5255_v57 = vld [vmem:[%s7518_s3 + $0x794] sm:$0xf0]  ;;  %v5253_v11 = vld [vmem:[%s7518_s3 + $0x78c] sm:$0xf]  ;;  %v4706_v32 = vor.u32 %v5254_v4, %v4705_v2  ;;  %v4666_v2 = vor.u32 %v5243_v44, %v4665_v56  ;;  %v4670_v4 = vor.u32 %v5241_v59, %v4667_v60  ;;  %v5286_v56 = vld [vmem:[%s7518_s3 + $0x88c] sm:$0xf0] }
 0x18f   :  { %v1352_v9 = vpop.f32.mrf.mxu3  ;;  %v5284_v60 = vld [vmem:[%s7518_s3 + $0x884] sm:$0xf] }
 0x190   :  { %v4643_v9 = vld [vmem:[%s7518_s3 + $0x710] sm:$0xf0] }
 0x191   :  { %2573 = vmatpush.bf16.msra.mxu1 %v4482_v23  ;;  %2586 = vmatpush.bf16.msra.mxu2 %v4486_v22  ;;  %v1571_v13 = vpop.f32.mrf.mxu1  ;;  %v4714_v23 = vor.u32 %v5255_v57, %v4713_v51  ;;  %v4718_v22 = vor.u32 %v5253_v11, %v4715_v12  ;;  %v4651_v57 = vld [vmem:[%s7518_s3 + $0x718] sm:$0xf0]  ;;  %v4913_v11 = vld [vmem:[%s7518_s3 + $0x8e0] sm:$0xf]  ;;  %v5298_v12 = vld [vmem:[%s7518_s3 + $0x8ec] sm:$0xf0] }
 0x192   :  { %2599 = vmatpush.bf16.msra.mxu3 %v4490_v28  ;;  %2612 = vmatpush.bf16.msrb.mxu0 %v4494_v30  ;;  %v7190_v14 = vadd.f32 %v1571_v13, %v7060_v5  ;;  %v5248_v5 = vld [vmem:[%s7518_s3 + $0x764] sm:$0xf]  ;;  %v4699_v28 = vld [vmem:[%s7518_s3 + $0x778] sm:$0xf0]  ;;  %v4690_v30 = vor.u32 %v5250_v20, %v4689_v18  ;;  %v5299_v20 = vld [vmem:[%s7518_s3 + $0x8f4] sm:$0xf0]  ;;  %v4914_v25 = vor.u32 %v5298_v12, %v4913_v11 }
 0x193   :  { %v4694_v31 = vor.u32 %v5248_v5, %v4691_v24  ;;  %v5296_v13 = vld [vmem:[%s7518_s3 + $0x8e4] sm:$0xf]  ;;  %v4654_v24 = vor.u32 %v5237_v10, %v4651_v57  ;;  %v4849_v10 = vld [vmem:[%s7518_s3 + $0x860] sm:$0xf] }
 0x194   :  { %2574 = vmatmul.bf16.vlgmr.msra.gmra.mxu1 %v2404_v3  ;;  %2587 = vmatmul.bf16.vlgmr.msra.gmra.mxu2 %v2404_v3  ;;  %v1610_v17 = vpop.f32.mrf.mxu0 }
 0x195   :  { %2817 = vmatpush.bf16.msrb.mxu1 %v4754_v34  ;;  %2830 = vmatpush.bf16.msrb.mxu2 %v4758_v35  ;;  %v7199_v46 = vadd.f32 %v1610_v17, %v7072_v7  ;;  %v5249_v7 = vld [vmem:[%s7518_s3 + $0x76c] sm:$0xf]  ;;  %v4673_v34 = vld [vmem:[%s7518_s3 + $0x740] sm:$0xf]  ;;  %v5246_v35 = vld [vmem:[%s7518_s3 + $0x74c] sm:$0xf0] }
 0x196   :  { %2843 = vmatpush.bf16.msrb.mxu3 %v4762_v38  ;;  %2856 = vmatpush.bf16.msra.mxu0 %v4766_v40  ;;  %v4702_v37 = vor.u32 %v5249_v7, %v4699_v28  ;;  %v5244_v38 = vld [vmem:[%s7518_s3 + $0x744] sm:$0xf]  ;;  %v4675_v40 = vld [vmem:[%s7518_s3 + $0x750] sm:$0xf0]  ;;  %v4897_v7 = vld [vmem:[%s7518_s3 + $0x8c0] sm:$0xf] }
 0x197   :  { %2600 = vmatmul.bf16.vlgmr.msra.gmra.mxu3 %v2404_v3  ;;  %2613 = vmatmul.bf16.vlgmr.msrb.gmra.mxu0 %v2404_v3  ;;  %v1584_v39 = vpop.f32.mrf.mxu2  ;;  %v4674_v3 = vor.u32 %v5246_v35, %v4673_v34  ;;  %v4915_v17 = vld [vmem:[%s7518_s3 + $0x8f0] sm:$0xf0]  ;;  %v5294_v28 = vld [vmem:[%s7518_s3 + $0x8cc] sm:$0xf0]  ;;  %v5292_v34 = vld [vmem:[%s7518_s3 + $0x8c4] sm:$0xf] }
 0x198   :  { %v7235_v27 = vadd.f32 %v1584_v39, %v7111_v36  ;;  %v4918_v26 = vor.u32 %v5296_v13, %v4915_v17  ;;  %v4899_v35 = vld [vmem:[%s7518_s3 + $0x8d0] sm:$0xf0]  ;;  %v5293_v39 = vld [vmem:[%s7518_s3 + $0x8cc] sm:$0xf]  ;;  %v4898_v42 = vor.u32 %v5294_v28, %v4897_v7  ;;  %v4857_v17 = vld [vmem:[%s7518_s3 + $0x868] sm:$0xf] }
 0x199   :  { %2818 = vmatpush.bf16.msrb.mxu1 %v4738_v49  ;;  %2831 = vmatpush.bf16.msrb.mxu2 %v4742_v52  ;;  %v1573_v48 = vpop.f32.mrf.mxu1  ;;  %v4678_v49 = vor.u32 %v5244_v38, %v4675_v40  ;;  %v4657_v52 = vld [vmem:[%s7518_s3 + $0x720] sm:$0xf]  ;;  %v4907_v38 = vld [vmem:[%s7518_s3 + $0x8d8] sm:$0xf0]  ;;  %v2655_v40 = vrot.slane %v6729_v21, 3 }
 0x19a   :  { %2844 = vmatpush.bf16.msrb.mxu3 %v4746_v55  ;;  %2857 = vmatpush.bf16.msra.mxu0 %v4750_v15  ;;  %v1597_v58 = vpop.f32.mrf.mxu3  ;;  %v4686_v55 = vor.u32 %v5245_v45, %v4683_v33  ;;  %v4659_v15 = vld [vmem:[%s7518_s3 + $0x730] sm:$0xf0]  ;;  %v4658_v62 = vor.u32 %v5242_v53, %v4657_v52  ;;  %v5290_v45 = vld [vmem:[%s7518_s3 + $0x8ac] sm:$0xf0]  ;;  %v4910_v48 = vor.u32 %v5293_v39, %v4907_v38  ;;  %v5289_v52 = vld [vmem:[%s7518_s3 + $0x8ac] sm:$0xf] }
 0x19b   :  { %v7247_v47 = vadd.f32 %v1597_v58, %v7120_v41  ;;  %v5240_v41 = vld [vmem:[%s7518_s3 + $0x724] sm:$0xf]  ;;  %v4902_v58 = vor.u32 %v5292_v34, %v4899_v35  ;;  %v4883_v21 = vld [vmem:[%s7518_s3 + $0x8b0] sm:$0xf0]  ;;  %v4891_v53 = vld [vmem:[%s7518_s3 + $0x8b8] sm:$0xf0] }
 0x19c   :  { %v1612_v36 = vpop.f32.mrf.mxu0  ;;  %v4662_v63 = vor.u32 %v5240_v41, %v4659_v15  ;;  %v4865_v15 = vld [vmem:[%s7518_s3 + $0x880] sm:$0xf]  ;;  %v4894_v59 = vor.u32 %v5289_v52, %v4891_v53  ;;  %v4851_v13 = vld [vmem:[%s7518_s3 + $0x870] sm:$0xf0]  ;;  %v4841_v28 = vld [vmem:[%s7518_s3 + $0x848] sm:$0xf] }
 0x19d   :  { %2819 = vmatpush.bf16.msrb.mxu1 %v4722_v0  ;;  %2832 = vmatpush.bf16.msrb.mxu2 %v4726_v1  ;;  %v5238_v0 = vld [vmem:[%s7518_s3 + $0x70c] sm:$0xf0]  ;;  %v5236_v1 = vld [vmem:[%s7518_s3 + $0x704] sm:$0xf]  ;;  %v4835_v7 = vld [vmem:[%s7518_s3 + $0x850] sm:$0xf0] }
 0x19e   :  { %2845 = vmatpush.bf16.msrb.mxu3 %v4730_v29  ;;  %2858 = vmatpush.bf16.msra.mxu0 %v4734_v6  ;;  %v4649_v6 = vld [vmem:[%s7518_s3 + $0x708] sm:$0xf]  ;;  %v4646_v18 = vor.u32 %v5236_v1, %v4643_v9  ;;  %v5288_v36 = vld [vmem:[%s7518_s3 + $0x8a4] sm:$0xf]  ;;  %v4875_v1 = vld [vmem:[%s7518_s3 + $0x898] sm:$0xf0] }
 0x19f   :  { %v1586_v29 = vpop.f32.mrf.mxu2  ;;  %v4650_v5 = vor.u32 %v5239_v8, %v4649_v6  ;;  %v4886_v41 = vor.u32 %v5288_v36, %v4883_v21  ;;  %v4866_v6 = vor.u32 %v5286_v56, %v4865_v15  ;;  %v5279_v34 = vld [vmem:[%s7518_s3 + $0x854] sm:$0xf0]  ;;  %v5277_v35 = vld [vmem:[%s7518_s3 + $0x84c] sm:$0xf]  ;;  %v4825_v36 = vld [vmem:[%s7518_s3 + $0x828] sm:$0xf] }
 0x1a0   :  { %v5275_v21 = vld [vmem:[%s7518_s3 + $0x834] sm:$0xf0] }
 0x1a1   :  { %2820 = vmatpush.bf16.msrb.mxu1 %v4706_v32  ;;  %2833 = vmatpush.bf16.msrb.mxu2 %v4710_v19  ;;  %v4921_v32 = vld [vmem:[%s7518_s3 + $0x8e8] sm:$0xf]  ;;  %v4642_v19 = vor.u32 %v5238_v0, %v4641_v61  ;;  %v4867_v61 = vld [vmem:[%s7518_s3 + $0x890] sm:$0xf0]  ;;  %v5285_v0 = vld [vmem:[%s7518_s3 + $0x88c] sm:$0xf]  ;;  %v4826_v15 = vor.u32 %v5275_v21, %v4825_v36 }
 0x1a2   :  { %2846 = vmatpush.bf16.msrb.mxu3 %v4714_v23  ;;  %2859 = vmatpush.bf16.msra.mxu0 %v4718_v22  ;;  %v1599_v51 = vpop.f32.mrf.mxu3  ;;  %v5297_v23 = vld [vmem:[%s7518_s3 + $0x8ec] sm:$0xf]  ;;  %v4923_v22 = vld [vmem:[%s7518_s3 + $0x8f8] sm:$0xf0]  ;;  %v4870_v8 = vor.u32 %v5284_v60, %v4867_v61  ;;  %v4878_v12 = vor.u32 %v5285_v0, %v4875_v1  ;;  %v4803_v60 = vld [vmem:[%s7518_s3 + $0x810] sm:$0xf0] }
 0x1a3   :  { %v5282_v51 = vld [vmem:[%s7518_s3 + $0x86c] sm:$0xf0]  ;;  %v4809_v61 = vld [vmem:[%s7518_s3 + $0x808] sm:$0xf]  ;;  %v5269_v0 = vld [vmem:[%s7518_s3 + $0x80c] sm:$0xf] }
 0x1a4   :  { %v4811_v1 = vld [vmem:[%s7518_s3 + $0x818] sm:$0xf0] }
 0x1a5   :  { %2821 = vmatpush.bf16.msrb.mxu1 %v4690_v30  ;;  %2834 = vmatpush.bf16.msrb.mxu2 %v4694_v31  ;;  %v4922_v30 = vor.u32 %v5299_v20, %v4921_v32  ;;  %v4926_v31 = vor.u32 %v5297_v23, %v4923_v22  ;;  %v5283_v32 = vld [vmem:[%s7518_s3 + $0x874] sm:$0xf0]  ;;  %v4833_v23 = vld [vmem:[%s7518_s3 + $0x840] sm:$0xf]  ;;  %v5278_v22 = vld [vmem:[%s7518_s3 + $0x84c] sm:$0xf0] }
 0x1a6   :  { %2847 = vmatpush.bf16.msrb.mxu3 %v4698_v50  ;;  %2860 = vmatpush.bf16.msra.mxu0 %v4702_v37  ;;  %v4905_v50 = vld [vmem:[%s7518_s3 + $0x8c8] sm:$0xf]  ;;  %v5295_v37 = vld [vmem:[%s7518_s3 + $0x8d4] sm:$0xf0]  ;;  %v4834_v38 = vor.u32 %v5278_v22, %v4833_v23 }
 0x1a7   :  { %v4906_v33 = vor.u32 %v5295_v37, %v4905_v50  ;;  %v4843_v50 = vld [vmem:[%s7518_s3 + $0x858] sm:$0xf0] }
 0x1a9   :  { %2822 = vmatpush.bf16.msrb.mxu1 %v4674_v3  ;;  %2835 = vmatpush.bf16.msrb.mxu2 %v4678_v49  ;;  %v4889_v3 = vld [vmem:[%s7518_s3 + $0x8a8] sm:$0xf]  ;;  %v5291_v49 = vld [vmem:[%s7518_s3 + $0x8b4] sm:$0xf0] }
 0x1aa   :  { %2848 = vmatpush.bf16.msrb.mxu3 %v4682_v54  ;;  %2861 = vmatpush.bf16.msra.mxu0 %v4686_v55  ;;  %v861_v54 = vmin.f32 %v6108_v16, 0.0  ;;  %v4882_v55 = vor.u32 %v5290_v45, %v4881_v43  ;;  %v4890_v44 = vor.u32 %v5291_v49, %v4889_v3  ;;  %v4842_v45 = vor.u32 %v5279_v34, %v4841_v28  ;;  %v5273_v3 = vld [vmem:[%s7518_s3 + $0x82c] sm:$0xf]  ;;  %v4827_v49 = vld [vmem:[%s7518_s3 + $0x838] sm:$0xf0] }
 0x1ab   :  { %v4830_v56 = vor.u32 %v5273_v3, %v4827_v49  ;;  %v3123_v3 = vld [vmem:[%s7519_s4] sm:$0xf]  ;;  %s5342_s4 = smov [#allocation2]  }
 0x1ac   :  { %v866_v9 = vmul.f32 1.442695, %v861_v54  ;;  %s3181_s16 = sshll.u32 %s5342_s4, 4  ;;  %s3182_s16 = int_to_ptr.vmem [resolvable:$true] %s3181_s16 }
 0x1ad   :  { %2823 = vmatpush.bf16.msrb.mxu1 %v4658_v62  ;;  %2836 = vmatpush.bf16.msrb.mxu2 %v4662_v63  ;;  %v4873_v62 = vld [vmem:[%s7518_s3 + $0x888] sm:$0xf]  ;;  %v5287_v63 = vld [vmem:[%s7518_s3 + $0x894] sm:$0xf0] }
 0x1ae   :  { %2849 = vmatpush.bf16.msrb.mxu3 %v4666_v2  ;;  %2862 = vmatpush.bf16.msra.mxu0 %v4670_v4  ;;  %v4874_v11 = vor.u32 %v5287_v63, %v4873_v62  ;;  %5306 = vpow2.f32 %v866_v9  ;;  %v5271_v63 = vld [vmem:[%s7518_s3 + $0x814] sm:$0xf0] }
 0x1b1   :  { %2824 = vmatpush.bf16.msrb.mxu1 %v4642_v19  ;;  %2837 = vmatpush.bf16.msrb.mxu2 %v4646_v18  ;;  %v1822_v2 = vpop.f32.mrf.mxu1  ;;  %v4859_v19 = vld [vmem:[%s7518_s3 + $0x878] sm:$0xf0]  ;;  %v4850_v18 = vor.u32 %v5282_v51, %v4849_v10 }
 0x1b2   :  { %2850 = vmatpush.bf16.msrb.mxu3 %v4650_v5  ;;  %2863 = vmatpush.bf16.msra.mxu0 %v4654_v24  ;;  %v7396_v4 = vadd.f32 %v1822_v2, %v7190_v14  ;;  %v5280_v14 = vld [vmem:[%s7518_s3 + $0x864] sm:$0xf]  ;;  %v4858_v5 = vor.u32 %v5283_v32, %v4857_v17 }
 0x1b3   :  { %v4854_v20 = vor.u32 %v5280_v14, %v4851_v13 }
 0x1b4   :  { %2825 = vmatmul.bf16.vlgmr.msrb.gmra.mxu1 %v2655_v40  ;;  %2838 = vmatmul.bf16.vlgmr.msrb.gmra.mxu2 %v2655_v40  ;;  %v1861_v29 = vpop.f32.mrf.mxu0  ;;  %v5307_v43 = vpop.eup %5306 }
 0x1b5   :  { %3067 = vmatpush.bf16.msra.mxu1 %v4914_v25  ;;  %3080 = vmatpush.bf16.msra.mxu2 %v4918_v26  ;;  %v7405_v57 = vadd.f32 %v1861_v29, %v7199_v46  ;;  %v5281_v46 = vld [vmem:[%s7518_s3 + $0x86c] sm:$0xf]  ;;  %v5276_v26 = vld [vmem:[%s7518_s3 + $0x844] sm:$0xf]  ;;  %v3518_v52 = vadd.f32 -1.0, %v5307_v43  ;;  %v4810_v29 = vor.u32 %v5271_v63, %v4809_v61 }
 0x1b6   :  { %3093 = vmatpush.bf16.msra.mxu3 %v4922_v30  ;;  %3106 = vmatpush.bf16.msrb.mxu0 %v4926_v31  ;;  %v4862_v24 = vor.u32 %v5281_v46, %v4859_v19 }
 0x1b7   :  { %2851 = vmatmul.bf16.vlgmr.msrb.gmra.mxu3 %v2655_v40  ;;  %2864 = vmatmul.bf16.vlgmr.msra.gmra.mxu0 %v2655_v40  ;;  %v1835_v25 = vpop.f32.mrf.mxu2  ;;  %v4838_v40 = vor.u32 %v5276_v26, %v4835_v7 }
 0x1b8   :  { %v7441_v30 = vadd.f32 %v1835_v25, %v7235_v27 }
 0x1b9   :  { %3068 = vmatpush.bf16.msra.mxu1 %v4898_v42  ;;  %3081 = vmatpush.bf16.msra.mxu2 %v4902_v58  ;;  %v1824_v39 = vpop.f32.mrf.mxu1  ;;  %v4817_v42 = vld [vmem:[%s7518_s3 + $0x820] sm:$0xf]  ;;  %v5274_v58 = vld [vmem:[%s7518_s3 + $0x82c] sm:$0xf0] }
 0x1ba   :  { %3094 = vmatpush.bf16.msra.mxu3 %v4906_v33  ;;  %3107 = vmatpush.bf16.msrb.mxu0 %v4910_v48  ;;  %v1848_v31 = vpop.f32.mrf.mxu3  ;;  %v5272_v33 = vld [vmem:[%s7518_s3 + $0x824] sm:$0xf]  ;;  %v4819_v48 = vld [vmem:[%s7518_s3 + $0x830] sm:$0xf0]  ;;  %v4818_v53 = vor.u32 %v5274_v58, %v4817_v42 }
 0x1bb   :  { %v7453_v37 = vadd.f32 %v1848_v31, %v7247_v47  ;;  %v4846_v47 = vor.u32 %v5277_v35, %v4843_v50  ;;  %v4822_v54 = vor.u32 %v5272_v33, %v4819_v48 }
 0x1bc   :  { %v1863_v27 = vpop.f32.mrf.mxu0 }
 0x1bd   :  { %3069 = vmatpush.bf16.msra.mxu1 %v4882_v55  ;;  %3082 = vmatpush.bf16.msra.mxu2 %v4886_v41  ;;  %v4801_v55 = vld [vmem:[%s7518_s3 + $0x800] sm:$0xf]  ;;  %v5270_v41 = vld [vmem:[%s7518_s3 + $0x80c] sm:$0xf0] }
 0x1be   :  { %3095 = vmatpush.bf16.msra.mxu3 %v4890_v44  ;;  %3108 = vmatpush.bf16.msrb.mxu0 %v4894_v59  ;;  %v5268_v59 = vld [vmem:[%s7518_s3 + $0x804] sm:$0xf]  ;;  %v4802_v9 = vor.u32 %v5270_v41, %v4801_v55  ;;  %v3128_v41 = vperm.slane %v3123_v3, 3 }
 0x1bf   :  { %v1837_v44 = vpop.f32.mrf.mxu2  ;;  %v4806_v2 = vor.u32 %v5268_v59, %v4803_v60 }
 0x1c1   :  { %3070 = vmatpush.bf16.msra.mxu1 %v4866_v6  ;;  %3083 = vmatpush.bf16.msra.mxu2 %v4870_v8  ;;  %v4814_v6 = vor.u32 %v5269_v0, %v4811_v1  ;;  %v873_v8 = vsel %vm858_vm2, %v6108_v16, %v3518_v52  ;;  %v3126_v1 = vperm.slane %v3123_v3, 1 }
 0x1c2   :  { %3096 = vmatpush.bf16.msra.mxu3 %v4874_v11  ;;  %3109 = vmatpush.bf16.msrb.mxu0 %v4878_v12  ;;  %v1850_v62 = vpop.f32.mrf.mxu3  ;;  %v2873_v10 = vpack.c.bf16 %v873_v8, %v873_v8 }
 0x1c5   :  { %3071 = vmatpush.bf16.msra.mxu1 %v4850_v18  ;;  %3084 = vmatpush.bf16.msra.mxu2 %v4854_v20 }
 0x1c6   :  { %3097 = vmatpush.bf16.msra.mxu3 %v4858_v5  ;;  %3110 = vmatpush.bf16.msrb.mxu0 %v4862_v24 }
 0x1c9   :  { %3072 = vmatpush.bf16.msra.mxu1 %v4834_v38  ;;  %3085 = vmatpush.bf16.msra.mxu2 %v4838_v40 }
 0x1ca   :  { %3098 = vmatpush.bf16.msra.mxu3 %v4842_v45  ;;  %3111 = vmatpush.bf16.msrb.mxu0 %v4846_v47 }
 0x1cd   :  { %3073 = vmatpush.bf16.msra.mxu1 %v4818_v53  ;;  %3086 = vmatpush.bf16.msra.mxu2 %v4822_v54  ;;  %v3125_v53 = vperm.slane %v3123_v3, 0 }
 0x1ce   :  { %3099 = vmatpush.bf16.msra.mxu3 %v4826_v15  ;;  %3112 = vmatpush.bf16.msrb.mxu0 %v4830_v56 }
 0x1d1   :  { %3074 = vmatpush.bf16.msra.mxu1 %v4802_v9  ;;  %3087 = vmatpush.bf16.msra.mxu2 %v4806_v2  ;;  %v2072_v51 = vpop.f32.mrf.mxu1 }
 0x1d2   :  { %3100 = vmatpush.bf16.msra.mxu3 %v4810_v29  ;;  %3113 = vmatpush.bf16.msrb.mxu0 %v4814_v6  ;;  %v2115_v11 = vadd.f32 %v2072_v51, %v7396_v4  ;;  %v3127_v6 = vperm.slane %v3123_v3, 2 }
 0x1d4   :  { %3075 = vmatmul.bf16.vlgmr.msra.gmra.mxu1 %v2873_v10  ;;  %3088 = vmatmul.bf16.vlgmr.msra.gmra.mxu2 %v2873_v10  ;;  %v2111_v12 = vpop.f32.mrf.mxu0 }
 0x1d5   :  { %3101 = vmatmul.bf16.vlgmr.msra.gmra.mxu3 %v2873_v10  ;;  %3114 = vmatmul.bf16.vlgmr.msrb.gmra.mxu0 %v2873_v10  ;;  %v2118_v14 = vadd.f32 %v2111_v12, %v7405_v57 }
 0x1d7   :  { %v2085_v13 = vpop.f32.mrf.mxu2 }
 0x1d8   :  { %v2116_v17 = vadd.f32 %v2085_v13, %v7441_v30 }
 0x1d9   :  { %v2074_v46 = vpop.f32.mrf.mxu1 }
 0x1da   :  { %v2098_v32 = vpop.f32.mrf.mxu3 }
 0x1db   :  { %v2117_v16 = vadd.f32 %v2098_v32, %v7453_v37 }
 0x1dc   :  { %v2113_v19 = vpop.f32.mrf.mxu0 }
 0x1df   :  { %v2087_v18 = vpop.f32.mrf.mxu2 }
 0x1e2   :  { %v2100_v20 = vpop.f32.mrf.mxu3 }
 0x1f1   :  { %v2324_v23 = vpop.f32.mrf.mxu1 }
 0x1f2   :  { %v2367_v22 = vadd.f32 %v2324_v23, %v2115_v11 }
 0x1f4   :  { %v2363_v5 = vpop.f32.mrf.mxu0 }
 0x1f5   :  { %v2370_v24 = vadd.f32 %v2363_v5, %v2118_v14 }
 0x1f7   :  { %v2337_v25 = vpop.f32.mrf.mxu2 }
 0x1f8   :  { %v2368_v26 = vadd.f32 %v2337_v25, %v2116_v17 }
 0x1f9   :  { %v2326_v28 = vpop.f32.mrf.mxu1 }
 0x1fa   :  { %v2350_v4 = vpop.f32.mrf.mxu3 }
 0x1fb   :  { %v2369_v7 = vadd.f32 %v2350_v4, %v2117_v16 }
 0x1fc   :  { %v2365_v57 = vpop.f32.mrf.mxu0 }
 0x1ff   :  { %v2339_v31 = vpop.f32.mrf.mxu2 }
 0x202   :  { %v2352_v34 = vpop.f32.mrf.mxu3 }
 0x211   :  { %v2575_v30 = vpop.f32.mrf.mxu1 }
 0x212   :  { %v2618_v35 = vadd.f32 %v2575_v30, %v2367_v22 }
 0x214   :  { %v2614_v50 = vpop.f32.mrf.mxu0 }
 0x215   :  { %v2621_v49 = vadd.f32 %v2614_v50, %v2370_v24 }
 0x217   :  { %v2588_v37 = vpop.f32.mrf.mxu2 }
 0x218   :  { %v2619_v59 = vadd.f32 %v2588_v37, %v2368_v26 }
 0x219   :  { %v2577_v27 = vpop.f32.mrf.mxu1 }
 0x21a   :  { %v2601_v39 = vpop.f32.mrf.mxu3 }
 0x21b   :  { %v2620_v61 = vadd.f32 %v2601_v39, %v2369_v7 }
 0x21c   :  { %v2616_v38 = vpop.f32.mrf.mxu0 }
 0x21f   :  { %v2590_v40 = vpop.f32.mrf.mxu2 }
 0x222   :  { %v2603_v42 = vpop.f32.mrf.mxu3 }
 0x231   :  { %v2826_v58 = vpop.f32.mrf.mxu1 }
 0x232   :  { %v2869_v52 = vadd.f32 %v2826_v58, %v2618_v35 }
 0x234   :  { %v2865_v43 = vpop.f32.mrf.mxu0 }
 0x235   :  { %v2872_v54 = vadd.f32 %v2865_v43, %v2621_v49 }
 0x237   :  { %v2839_v45 = vpop.f32.mrf.mxu2 }
 0x238   :  { %v2870_v63 = vadd.f32 %v2839_v45, %v2619_v59 }
 0x239   :  { %v2828_v33 = vpop.f32.mrf.mxu1 }
 0x23a   :  { %v2852_v47 = vpop.f32.mrf.mxu3 }
 0x23b   :  { %v2871_v9 = vadd.f32 %v2852_v47, %v2620_v61 }
 0x23c   :  { %v2867_v48 = vpop.f32.mrf.mxu0 }
 0x23f   :  { %v2841_v36 = vpop.f32.mrf.mxu2 }
 0x242   :  { %v2854_v21 = vpop.f32.mrf.mxu3 }
 0x251   :  { %v3076_v55 = vpop.f32.mrf.mxu1 }
 0x252   :  { %v3119_v15 = vadd.f32 %v3076_v55, %v2869_v52  ;;  %v3115_v56 = vpop.f32.mrf.mxu0 }
 0x253   :  { %v3122_v44 = vadd.f32 %v3115_v56, %v2872_v54 }
 0x254   :  { %v3133_v60 = vadd.f32 %v3125_v53, %v3119_v15 }
 0x255   :  { %v3136_v62 = vadd.f32 %v3128_v41, %v3122_v44 }
 0x256   :  { %v3141_v0 = vmin.f32 %v3133_v60, 0.0  ;;  %vm3137_vm7 = vcmp.gt.f32.partialorder %v3133_v60, 0.0 }
 0x257   :  { %v3144_v2 = vmin.f32 %v3136_v62, 0.0  ;;  %v3089_v29 = vpop.f32.mrf.mxu2  ;;  %vm3140_vm3 = vcmp.gt.f32.partialorder %v3136_v62, 0.0 }
 0x258   :  { %v3120_v8 = vadd.f32 %v3089_v29, %v2870_v63  ;;  %v3102_v10 = vpop.f32.mrf.mxu3  ;;  %v3145_v14 = vmul.f32 1.442695, %v3141_v0 }
 0x259   :  { %v3151_v51 = vmul.f32 1.442695, %v3144_v2  ;;  %v3121_v11 = vadd.f32 %v3102_v10, %v2871_v9  ;;  %v3078_v12 = vpop.f32.mrf.mxu1 }
 0x25a   :  { %v3134_v13 = vadd.f32 %v3126_v1, %v3120_v8  ;;  %v3117_v17 = vpop.f32.mrf.mxu0 }
 0x25b   :  { %5308 = vpow2.f32 %v3151_v51  ;;  %v3135_v32 = vadd.f32 %v3127_v6, %v3121_v11 }
 0x25c   :  { %v3142_v16 = vmin.f32 %v3134_v13, 0.0  ;;  %5310 = vpow2.f32 %v3145_v14  ;;  %vm3138_vm4 = vcmp.gt.f32.partialorder %v3134_v13, 0.0 }
 0x25d   :  { %v3143_v46 = vmin.f32 %v3135_v32, 0.0  ;;  %vm3139_vm5 = vcmp.gt.f32.partialorder %v3135_v32, 0.0 }
 0x25e   :  { %v3147_v19 = vmul.f32 1.442695, %v3142_v16 }
 0x25f   :  { %v3149_v18 = vmul.f32 1.442695, %v3143_v46  ;;  %v3091_v20 = vpop.f32.mrf.mxu2 }
 0x260   :  { %5312 = vpow2.f32 %v3147_v19  ;;  %v3104_v23 = vpop.f32.mrf.mxu3 }
 0x261   :  { %v5309_v22 = vpop.eup %5308  ;;  %5314 = vpow2.f32 %v3149_v18 }
 0x262   :  { %v5311_v5 = vpop.eup %5310  ;;  %v4930_v24 = vadd.f32 -1.0, %v5309_v22 }
 0x263   :  { %v4927_v4 = vadd.f32 -1.0, %v5311_v5 }
 0x264   :  { %v3160_v28 = vsel %vm3140_vm3, %v3136_v62, %v4930_v24 }
 0x265   :  { %v3157_v35 = vsel %vm3137_vm7, %v3133_v60, %v4927_v4  ;;  %v3167_v50 = vrot.slane %v3160_v28, 2 }
 0x266   :  { %v5313_v25 = vpop.eup %5312 }
 0x267   :  { %v5315_v26 = vpop.eup %5314  ;;  %v4928_v7 = vadd.f32 -1.0, %v5313_v25 }
 0x268   :  { %v4929_v57 = vadd.f32 -1.0, %v5315_v26 }
 0x269   :  { %v3158_v31 = vsel %vm3138_vm4, %v3134_v13, %v4928_v7 }
 0x26a   :  { %v3165_v34 = vrot.slane %v3158_v31, 6  ;;  %v3159_v30 = vsel %vm3139_vm5, %v3135_v32, %v4929_v57 }
 0x26b   :  { %v3166_v37 = vrot.slane %v3159_v30, 4 }
 0x26c   :  { %v3169_v39 = vsel %vm3168_vm6, %v3157_v35, %v3165_v34 }
 0x26d   :  { %v3171_v27 = vsel %vm3170_vm8, %v3166_v37, %v3167_v50 }
 0x26e   :  { %v3173_v38 = vsel %vm3172_vm9, %v3169_v39, %v3171_v27 }
 0x26f   :  { %3175 = vst [vmem:[#allocation2] sm:$0xff] %v3173_v38 }
 0x270   :  { %3186 = dma.vmem_to_hbm [thread:$0]  %s3182_s16, 128, %s3184_s19, [#allocation3]  }
 0x271   :  { %5340 = dma.done.wait [#allocation3], 128  }
 0x272   :  { %5341 = vsyncadd [#allocation3], 4294967168 }
 0x273   :  { %3191 = vsyncpa [#allocation3], 1 }

</bundles_post_ra>
